<compile_context>
chip_gen: v7x
topology: tpu7x:2x2x1
jax: 0.10.0
libtpu: 0.0.40
codegen_flags: <defaults>
</compile_context>

<pallas_src>
import jax
import jax.numpy as jnp
from jax.experimental import pallas as pl
from jax.experimental.pallas import tpu as pltpu

IN_FEATURES = 128 * 128 * 3        # 49152 (fixed by the module's first Linear)
HIDDEN = 128
NUM_CLASSES = 5

TK = 24576                         # reduction tile: 49152 = 2 * 24576
NK = IN_FEATURES // TK             # 2 grid steps
assert NK * TK == IN_FEATURES


def _fused_kernel(x_ref, w1_ref, b1_ref, w2_ref, b2_ref, out_ref, acc_ref):
    """Fused Flatten-cast + Linear(49152,128) + ReLU + Linear(128,5).

    grid = (NK,)  (reduction axis, 'arbitrary')
      x_ref   : (B, TK)                 f32   activation slab (cast in-kernel)
      w1_ref  : (TK, HIDDEN)            bf16  streamed weight tile
      b1_ref  : (1, HIDDEN)             f32
      w2_ref  : (HIDDEN, NUM_CLASSES)   f32
      b2_ref  : (1, NUM_CLASSES)        f32
      out_ref : (B, NUM_CLASSES)        f32   (same block across all steps)
      acc_ref : (B, HIDDEN)             f32   VMEM scratch accumulator
    """
    k = pl.program_id(0)

    @pl.when(k == 0)
    def _():
        acc_ref[...] = jnp.zeros_like(acc_ref)

    # In-kernel bf16 cast of the activations (VALU slack); bf16xbf16 MXU
    # matmul with f32 accumulation.
    x_bf16 = x_ref[...].astype(jnp.bfloat16)
    acc_ref[...] += jnp.dot(x_bf16, w1_ref[...],
                            preferred_element_type=jnp.float32)

    # Fused epilogue on the final reduction step: bias + ReLU + FC2 + bias.
    @pl.when(k == pl.num_programs(0) - 1)
    def _():
        h = jnp.maximum(acc_ref[...] + b1_ref[...], 0.0)          # (B, HIDDEN)
        logits = jnp.dot(h, w2_ref[...],
                         preferred_element_type=jnp.float32)       # (B, 5)
        out_ref[...] = (logits + b2_ref[...]).astype(out_ref.dtype)


@jax.jit
def visibility_classifier(x_nchw, w1t, b1, w2t, b2):
    """x_nchw: (B, 3, 128, 128) f32, w1t: (49152, 128) bf16 -> (B, 5) f32."""
    B = x_nchw.shape[0]
    # nn.Flatten on NCHW ordering; reshape only (no dtype cast here -- the
    # bf16 cast happens inside the kernel).
    x_flat = x_nchw.reshape(B, IN_FEATURES)

    cost = pl.CostEstimate(
        flops=2 * B * IN_FEATURES * HIDDEN + 2 * B * HIDDEN * NUM_CLASSES,
        bytes_accessed=(IN_FEATURES * HIDDEN * 2      # W1^T bf16 stream (~12.6 MB)
                        + B * IN_FEATURES * 4          # activations f32
                        + HIDDEN * NUM_CLASSES * 4 + HIDDEN * 4 + NUM_CLASSES * 4
                        + B * NUM_CLASSES * 4),
        transcendentals=0)

    return pl.pallas_call(
        _fused_kernel,
        out_shape=jax.ShapeDtypeStruct((B, NUM_CLASSES), jnp.float32),
        grid_spec=pltpu.PrefetchScalarGridSpec(
            num_scalar_prefetch=0,
            grid=(NK,),
            in_specs=[
                pl.BlockSpec((B, TK), lambda k: (0, k)),
                pl.BlockSpec((TK, HIDDEN), lambda k: (k, 0)),
                pl.BlockSpec((1, HIDDEN), lambda k: (0, 0)),
                pl.BlockSpec((HIDDEN, NUM_CLASSES), lambda k: (0, 0)),
                pl.BlockSpec((1, NUM_CLASSES), lambda k: (0, 0)),
            ],
            out_specs=pl.BlockSpec((B, NUM_CLASSES), lambda k: (0, 0)),
            scratch_shapes=[pltpu.VMEM((B, HIDDEN), jnp.float32)],
        ),
        compiler_params=pltpu.CompilerParams(
            dimension_semantics=("arbitrary",),
            # Peak ~12.5 MiB (2 x 6 MiB W1 buffers + activations); raise the
            # scoped-VMEM limit explicitly (v5e default is only 16 MiB).
            vmem_limit_bytes=32 * 1024 * 1024),
        cost_estimate=cost,
    )(x_flat, w1t, b1, w2t, b2)


def init_params(key):
    """PyTorch nn.Linear default init: U(-1/sqrt(fan_in), 1/sqrt(fan_in)).
    W1^T is stored in bf16 (the streamed weight); the tiny tensors stay f32."""
    k1, k2, k3, k4 = jax.random.split(key, 4)
    bound1 = 1.0 / jnp.sqrt(jnp.float32(IN_FEATURES))
    bound2 = 1.0 / jnp.sqrt(jnp.float32(HIDDEN))
    w1t = jax.random.uniform(k1, (IN_FEATURES, HIDDEN), jnp.float32,
                             -bound1, bound1).astype(jnp.bfloat16)
    b1 = jax.random.uniform(k2, (1, HIDDEN), jnp.float32, -bound1, bound1)
    w2t = jax.random.uniform(k3, (HIDDEN, NUM_CLASSES), jnp.float32,
                             -bound2, bound2)
    b2 = jax.random.uniform(k4, (1, NUM_CLASSES), jnp.float32, -bound2, bound2)
    return w1t, b1, w2t, b2


def reference(x_nchw, w1t, b1, w2t, b2):
    """Pure-JAX reference using the same bf16 weight/activation quantization."""
    x_flat = x_nchw.reshape(x_nchw.shape[0], -1).astype(jnp.bfloat16)
    h = jnp.dot(x_flat, w1t, preferred_element_type=jnp.float32) + b1
    h = jnp.maximum(h, 0.0)
    return jnp.dot(h, w2t, preferred_element_type=jnp.float32) + b2


if __name__ == "__main__":
    key = jax.random.PRNGKey(0)
    kx, kp = jax.random.split(key)

    B = 2
    # Input dims are fixed by the module's first Linear: (B, 3, 128, 128).
    x = jax.random.normal(kx, (B, 3, 128, 128), jnp.float32)
    w1t, b1, w2t, b2 = init_params(kp)

    out = jax.block_until_ready(visibility_classifier(x, w1t, b1, w2t, b2))
    ref = reference(x, w1t, b1, w2t, b2)

    assert out.shape == (B, NUM_CLASSES)
    assert jnp.allclose(out, ref, atol=2e-3, rtol=2e-3)

    print("KERNEL_OK")
</pallas_src>

<mosaic_0001>
module attributes {stable_mosaic.version = 11 : i64} {
  func.func @_fused_kernel(%arg0: i32, %arg1: memref<2x24576xf32, #tpu.memory_space<vmem>>, %arg2: memref<24576x128xbf16, #tpu.memory_space<vmem>>, %arg3: memref<1x128xf32, #tpu.memory_space<vmem>>, %arg4: memref<128x5xf32, #tpu.memory_space<vmem>>, %arg5: memref<1x5xf32, #tpu.memory_space<vmem>>, %arg6: memref<2x5xf32, #tpu.memory_space<vmem>>, %arg7: memref<2x128xf32, #tpu.memory_space<vmem>>) attributes {dimension_semantics = [#tpu.dimension_semantics<arbitrary>], iteration_bounds = array<i64: 2>, scalar_prefetch = 0 : i64, scratch_operands = 1 : i64, tpu.core_type = #tpu.core_type<tc>, window_params = [{transform_indices = @transform_0, window_bounds = array<i64: 2, 24576>}, {transform_indices = @transform_1, window_bounds = array<i64: 24576, 128>}, {pipeline_mode = #tpu.pipeline_mode<synchronous>, transform_indices = @transform_2, window_bounds = array<i64: 1, 128>}, {pipeline_mode = #tpu.pipeline_mode<synchronous>, transform_indices = @transform_3, window_bounds = array<i64: 128, 5>}, {pipeline_mode = #tpu.pipeline_mode<synchronous>, transform_indices = @transform_4, window_bounds = array<i64: 1, 5>}, {pipeline_mode = #tpu.pipeline_mode<synchronous>, transform_indices = @transform_5, window_bounds = array<i64: 2, 5>}]} {
    %c0_i32 = arith.constant 0 : i32
    %0 = arith.cmpi eq, %arg0, %c0_i32 : i32
    %1 = arith.extui %0 : i1 to i32
    %c0_i32_0 = arith.constant 0 : i32
    %2 = arith.cmpi ne, %1, %c0_i32_0 : i32
    scf.if %2 {
      %cst_9 = arith.constant 0.000000e+00 : f32
      %13 = vector.broadcast %cst_9 : f32 to vector<2x128xf32>
      %c0_10 = arith.constant 0 : index
      %c0_11 = arith.constant 0 : index
      %14 = vector.load %arg7[%c0_10, %c0_11] : memref<2x128xf32, #tpu.memory_space<vmem>>, vector<2x128xf32>
      tpu.vector_store %arg7[%c0_10, %c0_11], %13 {strides = array<i32>} : memref<2x128xf32, #tpu.memory_space<vmem>>, vector<2x128xf32>,
    } else {
    }
    %c0 = arith.constant 0 : index
    %c0_1 = arith.constant 0 : index
    %3 = vector.load %arg1[%c0, %c0_1] : memref<2x24576xf32, #tpu.memory_space<vmem>>, vector<2x24576xf32>
    %4 = arith.truncf %3 : vector<2x24576xf32> to vector<2x24576xbf16>
    %c0_2 = arith.constant 0 : index
    %c0_3 = arith.constant 0 : index
    %5 = vector.load %arg7[%c0_2, %c0_3] : memref<2x128xf32, #tpu.memory_space<vmem>>, vector<2x128xf32>
    %c0_4 = arith.constant 0 : index
    %c0_5 = arith.constant 0 : index
    %6 = vector.load %arg2[%c0_4, %c0_5] : memref<24576x128xbf16, #tpu.memory_space<vmem>>, vector<24576x128xbf16>
    %cst = arith.constant dense<0.000000e+00> : vector<2x128xf32>
    %7 = tpu.matmul %4, %6, %cst {dimension_numbers = #tpu.dot_dimension_numbers<[1], [0], [0], [1], [0, 0, 1, 1], [], []>} : vector<2x24576xbf16>, vector<24576x128xbf16>, vector<2x128xf32> -> vector<2x128xf32>
    %8 = arith.addf %5, %7 : vector<2x128xf32>
    %c0_6 = arith.constant 0 : index
    %c0_7 = arith.constant 0 : index
    %9 = vector.load %arg7[%c0_6, %c0_7] : memref<2x128xf32, #tpu.memory_space<vmem>>, vector<2x128xf32>
    tpu.vector_store %arg7[%c0_6, %c0_7], %8 {strides = array<i32>} : memref<2x128xf32, #tpu.memory_space<vmem>>, vector<2x128xf32>,
    %c1_i32 = arith.constant 1 : i32
    %10 = arith.cmpi eq, %arg0, %c1_i32 : i32
    %11 = arith.extui %10 : i1 to i32
    %c0_i32_8 = arith.constant 0 : i32
    %12 = arith.cmpi ne, %11, %c0_i32_8 : i32
    scf.if %12 {
      %c0_9 = arith.constant 0 : index
      %c0_10 = arith.constant 0 : index
      %13 = vector.load %arg7[%c0_9, %c0_10] : memref<2x128xf32, #tpu.memory_space<vmem>>, vector<2x128xf32>
      %c0_11 = arith.constant 0 : index
      %c0_12 = arith.constant 0 : index
      %14 = vector.load %arg3[%c0_11, %c0_12] : memref<1x128xf32, #tpu.memory_space<vmem>>, vector<1x128xf32>
      %15 = vector.broadcast %14 : vector<1x128xf32> to vector<2x128xf32>
      %16 = arith.addf %13, %15 : vector<2x128xf32>
      %cst_13 = arith.constant 0.000000e+00 : f32
      %17 = vector.broadcast %cst_13 : f32 to vector<2x128xf32>
      %18 = arith.maximumf %16, %17 : vector<2x128xf32>
      %c0_14 = arith.constant 0 : index
      %c0_15 = arith.constant 0 : index
      %19 = vector.load %arg4[%c0_14, %c0_15] : memref<128x5xf32, #tpu.memory_space<vmem>>, vector<128x5xf32>
      %cst_16 = arith.constant dense<0.000000e+00> : vector<2x5xf32>
      %20 = tpu.matmul %18, %19, %cst_16 {dimension_numbers = #tpu.dot_dimension_numbers<[1], [0], [0], [1], [0, 0, 1, 1], [], []>} : vector<2x128xf32>, vector<128x5xf32>, vector<2x5xf32> -> vector<2x5xf32>
      %c0_17 = arith.constant 0 : index
      %c0_18 = arith.constant 0 : index
      %21 = vector.load %arg5[%c0_17, %c0_18] : memref<1x5xf32, #tpu.memory_space<vmem>>, vector<1x5xf32>
      %22 = vector.broadcast %21 : vector<1x5xf32> to vector<2x5xf32>
      %23 = arith.addf %20, %22 : vector<2x5xf32>
      %c0_19 = arith.constant 0 : index
      %c0_20 = arith.constant 0 : index
      %24 = vector.load %arg6[%c0_19, %c0_20] : memref<2x5xf32, #tpu.memory_space<vmem>>, vector<2x5xf32>
      tpu.vector_store %arg6[%c0_19, %c0_20], %23 {strides = array<i32>} : memref<2x5xf32, #tpu.memory_space<vmem>>, vector<2x5xf32>,
    } else {
    }
    return
  }
  func.func @transform_0(%arg0: i32) -> (i32, i32) {
    %c0_i32 = arith.constant 0 : i32
    %c0_i32_0 = arith.constant 0 : i32
    return %c0_i32, %arg0 : i32, i32
  }
  func.func @transform_1(%arg0: i32) -> (i32, i32) {
    %c0_i32 = arith.constant 0 : i32
    %c0_i32_0 = arith.constant 0 : i32
    return %arg0, %c0_i32 : i32, i32
  }
  func.func @transform_2(%arg0: i32) -> (i32, i32) {
    %c0_i32 = arith.constant 0 : i32
    %c0_i32_0 = arith.constant 0 : i32
    %c0_i32_1 = arith.constant 0 : i32
    return %c0_i32, %c0_i32_0 : i32, i32
  }
  func.func @transform_3(%arg0: i32) -> (i32, i32) {
    %c0_i32 = arith.constant 0 : i32
    %c0_i32_0 = arith.constant 0 : i32
    %c0_i32_1 = arith.constant 0 : i32
    return %c0_i32, %c0_i32_0 : i32, i32
  }
  func.func @transform_4(%arg0: i32) -> (i32, i32) {
    %c0_i32 = arith.constant 0 : i32
    %c0_i32_0 = arith.constant 0 : i32
    %c0_i32_1 = arith.constant 0 : i32
    return %c0_i32, %c0_i32_0 : i32, i32
  }
  func.func @transform_5(%arg0: i32) -> (i32, i32) {
    %c0_i32 = arith.constant 0 : i32
    %c0_i32_0 = arith.constant 0 : i32
    %c0_i32_1 = arith.constant 0 : i32
    return %c0_i32, %c0_i32_0 : i32, i32
  }
}

</mosaic_0001>

<bundles_post_ra>
// kernel: visibility_classifier.1
= control target key start
LH: loop header
LB: loop body
LE: loop exit
PB: predicated region body
PF: predicated region fallthrough
CT: control target
= control target key end

     0   :  { %10 = vsyncpa [#allocation4], 0  ;;  %s25575_s0 = inlined_call_operand.vmem [shape: f32[2,49152], index: 0, kind: input, shape index: {}]   ;;  %s25576_s1 = inlined_call_operand.hbm [shape: bf16[49152,128], index: 1, kind: input, shape index: {}]   ;;  %s25577_s2 = inlined_call_operand.hbm [shape: f32[1,128], index: 2, kind: input, shape index: {}]   ;;  %s25578_s3 = inlined_call_operand.vmem [shape: f32[128,5], index: 3, kind: input, shape index: {}]   ;;  %s25579_s4 = inlined_call_operand.hbm [shape: f32[1,5], index: 4, kind: input, shape index: {}]   ;;  %s25580_s5 = inlined_call_operand.hbm [shape: f32[2,5], index: 5, kind: output, shape index: {}]  }
   0x1   :  { %12 = vsyncpa [#allocation4 + $0x1], 0 }
   0x2   :  { %13 = vsyncpa [#allocation7], 0 }
   0x3   :  { %14 = vsyncpa [#allocation5], 0  ;;  %s23509_s18 = smov 0   ;;  %s23511_s19 = smov 0  }
   0x4   :  { %s23513_s20 = smov 0   ;;  %s23515_s21 = smov 0  }
   0x5 LB: > { %s23528_s22 = sadd.s32 4294967295, %s23466_s21   ;;  %s23531_s23 = sadd.s32 1, %s23466_s21   ;;  %s23466_s21 = sphi %s23515_s21, %s25599_s21   ;;  %s23462_s20 = sphi %s23513_s20, %s25598_s20   ;;  %s23458_s19 = sphi %s23511_s19, %s25597_s19   ;;  %s23454_s18 = sphi %s23509_s18, %s25596_s18  }
   0x6   : > { %s50_s24 = ssub.s32 %s23466_s21, %s23531_s23  ;;  %s53_s25 = sadd.s32 1, %s23462_s20 }
   0x7   : > { %p51_p0 = scmp.eq.s32.totalorder %s50_s24, 0  ;;  %p60_p1 = scmp.ne.s32.totalorder %s23462_s20, %s23458_s19 }
   0x8   : > { %p61_p2 = scmp.eq.s32.totalorder %s23466_s21, 0  ;;  %p66_p3 = scmp.ne.s32.totalorder %s23458_s19, %s23454_s18 }
   0x9   : > { %s23541_s26 = scalar_select %p51_p0, %s23462_s20, %s53_s25  }
   0xa   : > { %p23543_p4 = por %p61_p2, %p60_p1  ;;  %p25581_p5 = scmp.eq.s32.totalorder %s23528_s22, 0 }
   0xb   : > { %p17910_p6 = scmp.ge.s32.totalorder %s23466_s21, 1  ;;  %p161_p7 = scmp.lt.s32.totalorder %s23466_s21, 3 }
   0xc   : > { %p23552_p8 = por %p25581_p5, %p66_p3  ;;  %s23468_s30 = smov [#allocation6]  }
   0xd   : > { %p23557_p10 = pnand %p17910_p6, %p161_p7  ;;  %s174_s6 = sshll.u32 %s23468_s30, 4  ;;  %s175_s6 = int_to_ptr.vmem [resolvable:$true] %s174_s6 }
   0xe   : > { %s25586_s28 = scalar_select %p23552_p8, 1, 0 }
   0xf   : > { %s25587_s29 = scalar_select %p23557_p10, 1, 0 }
  0x10   : > { %p21668_p11 = pneg %p23557_p10  ;;  %p21681_p12 = scmp.lt.s32.totalorder %s23466_s21, 2 }
  0x11   : > { %s23469_s8 = smov [#allocation8]   ;;  %s208_s11 = sand.u32 1, %s23462_s20  }
  0x12   : > { %p23566_p13 = pnand %p21668_p11, %p25581_p5  ;;  %s188_s9 = sshll.u32 %s23469_s8, 4  ;;  %s23576_s9 = int_to_ptr.vmem [resolvable:$true] %s188_s9 }
  0x13   : > { %p23572_p0 = pnand %p21681_p12, %p23543_p4  ;;  %s23312_s14 = scalar_lea.hbm %s25577_s2, 16 }
  0x14   : > { %p23313_p1 = scmp.ne.s32.totalorder %s25577_s2, %s23312_s14  ;;  %p23314_p2 = pneg %p23566_p13 }
  0x15   : > { %s25589_s10 = scalar_select %p23572_p0, 1, 0 }
  0x16   : > { %p23315_p3 = pnand %p23314_p2, %p23313_p1  ;;  %p23319_p6 = scmp.lt.u32.totalorder %s23312_s14, %s25577_s2 }
  0x18   : > { %p23316_p4 = pneg %p23315_p3 }
  0x1a   : > { %p23321_p7 = pnand %p23319_p6, %p23316_p4 }
  0x1c   : > { %23324 = shalt.err (!%p23321_p7)
}
  0x1d   : > { %s23325_s24 = scalar_lea.vmem %s175_s6, 16  ;;  %s23332_s25 = scalar_lea.vmem %s175_s6, 32 }
  0x1e   : > { %p23326_p11 = scmp.ne.s32.totalorder %s175_s6, %s23325_s24  ;;  %p23333_p5 = scmp.lt.s32.totalorder %s175_s6, %s175_s6 }
  0x1f   : > { %p23334_p8 = scmp.lt.s32.totalorder %s23332_s25, %s23325_s24 }
  0x20   : > { %p23328_p12 = pnand %p23326_p11, %p23314_p2 }
  0x21   : > { %p23335_p10 = por %p23334_p8, %p23333_p5 }
  0x22   : > { %p23329_p9 = pneg %p23328_p12 }
  0x24   : > { %p23336_p0 = pnand %p23335_p10, %p23329_p9 }
  0x26   : > { %23339 = shalt.err (!%p23336_p0)
}
  0x27   : > { %21671 = dma.hbm_to_vmem [thread:$0]  (!%p23566_p13), %s25577_s2, 16, %s175_s6, [#allocation7]  }
  0x28   : > { %s23340_s13 = scalar_lea.hbm %s25579_s4, 16 }
  0x29   : > { %p23341_p1 = scmp.ne.s32.totalorder %s25579_s4, %s23340_s13  ;;  %p23347_p9 = scmp.lt.u32.totalorder %s23340_s13, %s25579_s4 }
  0x2b   : > { %p23343_p5 = pnand %p23341_p1, %p23314_p2 }
  0x2d   : > { %p23344_p8 = pneg %p23343_p5 }
  0x2f   : > { %p23349_p10 = pnand %p23347_p9, %p23344_p8 }
  0x31   : > { %23352 = shalt.err (!%p23349_p10)
}
  0x32   : > { %s23353_s6 = scalar_lea.vmem %s23576_s9, 16  ;;  %s23360_s18 = scalar_lea.vmem %s23576_s9, 32 }
  0x33   : > { %p23354_p0 = scmp.ne.s32.totalorder %s23576_s9, %s23353_s6  ;;  %p23361_p6 = scmp.lt.s32.totalorder %s23576_s9, %s23576_s9 }
  0x34   : > { %p23362_p7 = scmp.lt.s32.totalorder %s23360_s18, %s23353_s6 }
  0x35   : > { %p23356_p3 = pnand %p23354_p0, %p23314_p2 }
  0x36   : > { %p23363_p11 = por %p23362_p7, %p23361_p6 }
  0x37   : > { %p23357_p4 = pneg %p23356_p3 }
  0x39   : > { %p23364_p12 = pnand %p23363_p11, %p23357_p4 }
  0x3b   : > { %23367 = shalt.err (!%p23364_p12)
}
  0x3c   : > { %21674 = dma.hbm_to_vmem [thread:$0]  (!%p23566_p13), %s25579_s4, 16, %s23576_s9, [#allocation7]  }
  0x3d   : > { %s21652_s27 = smul.u32 12288, %s208_s11  ;;  %s23639_s15 = scalar_lea.sflag [#allocation4], %s208_s11 }
  0x3e   : > { %s19463_s30 = smul.u32 196608, %s23466_s21  ;;  %p25590_p2 = scmp.ne.s32.totalorder %s25589_s10, 0 }
  0x3f   : > { %s212_s7 = scalar_lea.vmem [#allocation3], %s21652_s27  ;;  %s23373_s17 = scalar_lea.hbm %s25576_s1, 393216 }
  0x40   : > { %s23633_s13 = scalar_lea.hbm %s25576_s1, %s19463_s30  ;;  %s219_s14 = sshll.u32 %s212_s7, 4  ;;  %s23635_s14 = int_to_ptr.vmem [resolvable:$true] %s219_s14 }
  0x41   : > { %s23368_s9 = scalar_lea.hbm %s23633_s13, 196608  ;;  %p23370_p1 = pneg %p25590_p2 }
  0x42   : > { %p23369_p13 = scmp.ne.s32.totalorder %s23633_s13, %s23368_s9  ;;  %p23374_p9 = scmp.lt.u32.totalorder %s23633_s13, %s25576_s1 }
  0x43   : > { %p23375_p10 = scmp.lt.u32.totalorder %s23373_s17, %s23368_s9  ;;  %p23377_p3 = scmp.lt.u32.totalorder %s23368_s9, %s23633_s13 }
  0x44   : > { %p23371_p5 = pnand %p23370_p1, %p23369_p13 }
  0x45   : > { %p23376_p0 = por %p23375_p10, %p23374_p9 }
  0x46   : > { %p23372_p8 = pneg %p23371_p5 }
  0x47   : > { %p23378_p4 = por %p23377_p3, %p23376_p0 }
  0x49   : > { %p23379_p6 = pnand %p23378_p4, %p23372_p8 }
  0x4b   : > { %23382 = shalt.err (!%p23379_p6)
}
  0x4c   : > { %s23383_s11 = scalar_lea.vmem %s23635_s14, 196608  ;;  %s23470_s24 = smov [#allocation3]  }
  0x4d   : > { %p23384_p7 = scmp.ne.s32.totalorder %s23635_s14, %s23383_s11  ;;  %s23388_s25 = sshll.u32 %s23470_s24, 4  ;;  %s23389_s25 = int_to_ptr.vmem [resolvable:$false] %s23388_s25 }
  0x4e   : > { %s23390_s27 = scalar_lea.vmem %s23389_s25, 393216  ;;  %p23391_p13 = scmp.lt.s32.totalorder %s23635_s14, %s23389_s25 }
  0x4f   : > { %p23386_p11 = pnand %p23384_p7, %p23370_p1  ;;  %p23392_p5 = scmp.lt.s32.totalorder %s23390_s27, %s23383_s11 }
  0x51   : > { %p23387_p12 = pneg %p23386_p11  ;;  %p23393_p9 = por %p23392_p5, %p23391_p13 }
  0x53   : > { %p23394_p10 = pnand %p23393_p9, %p23387_p12 }
  0x55   : > { %23397 = shalt.err (!%p23394_p10)
}
  0x56   : > { %s23471_s30 = smov 64   ;;  %s23472_s8 = smov 4  }
  0x57   : > { %21678 = dma.hbm_to_vmem [thread:$0]  (!%p25590_p2), %s23633_s13, 196608, %s23635_s14, %s23639_s15, %s23471_s30, %s23471_s30, %s23472_s8  }
  0x58   : > { %p25591_p1 = scmp.ne.s32.totalorder %s25587_s29, 0 }
  0x59   : > { %s233_s12 = sand.u32 (!%p25591_p1), 1, %s23458_s19   ;;  %p25592_p8 = scmp.ne.s32.totalorder (!%p25591_p1), %s25586_s28, 0 }
  0x5a   : > { %231 = sbr.rel (%p25591_p1) target bundleno = 2121 (0x849), region = 40  ;;  %s234_s9 = scalar_lea.sflag (!%p25591_p1), [#allocation4], %s233_s12 }
  0x5b   : > { %s21653_s7 = smul.u32 (!%p25591_p1), 12288, %s233_s12 }
  0x5d   : > { %s23670_s21 = scalar_lea.vmem (!%p25591_p1), [#allocation3], %s21653_s7 }
  0x61   : > { %23441 = dma.done.wait (%p25592_p8), %s234_s9, 196608  }
  0x62   : > { %23443 = vsyncadd (%p25592_p8), %s234_s9, 4294770688  ;;  %p25593_p0 = scmp.eq.s32.totalorder %s23528_s22, 0 }
  0x64   : > { %23445 = dma.done.wait (%p25593_p0), [#allocation7], 32   ;;  %p25594_p2 = pmov %p25593_p0 }
  0x65   : > { %s272_s29 = smul.u32 192, %s23528_s22  ;;  %p25595_p4 = scmp.ne.s32.totalorder %s23528_s22, 0 }
  0x66   : > { %23447 = vsyncadd (%p25594_p2), [#allocation7], 4294967264  ;;  %v23473_v0 = vmov (!%p25595_p4), 0.0  }
  0x67   : > { %p273_p3 = scmp.lt.s32.totalorder %s272_s29, 383  ;;  %283 = sbr.rel (%p25595_p4) target bundleno = 110 (0x6e), region = 56  ;;  %284 = vst [vmem:[#allocation2] sm:$0x3] (!%p25595_p4), %v23473_v0 }
  0x69   : > { %s25601_s29 = smov (!%p273_p3, %s272_s29), 383 }
  0x6a   : > { %s17918_s10 = sshll.u32 %s25601_s29, 1 }
  0x6b   : > { %s23684_s15 = scalar_lea.vmem %s25575_s0, %s17918_s10 }
  0x6e PF: > { %v21728_v1 = vld [vmem:[%s23670_s21 + $0x40] sm:$0xff]   ;;  %v21732_v5 = vld [vmem:[%s23670_s21 + $0x48] sm:$0xff]   ;;  %v21736_v9 = vld [vmem:[%s23670_s21 + $0x50] sm:$0xff]   ;;  %v385_v29 = vlaneseq  ;;  %v23474_v37 = vmov 1983009808   ;;  %p19456_p6 = scmp.ne.s32.totalorder %s23528_s22, 1 }
  0x6f   : > { %v21729_v2 = vld [vmem:[%s23670_s21 + $0xc0] sm:$0xff]   ;;  %19464 = vmatprep.subr.bf16.mxu0 %v21728_v1  ;;  %v21733_v6 = vld [vmem:[%s23670_s21 + $0xc8] sm:$0xff]   ;;  %v21737_v10 = vld [vmem:[%s23670_s21 + $0xd0] sm:$0xff]   ;;  %v383_v38 = vunpack.c.l.s4 %v23474_v37  ;;  %vm23476_vm0 = vmmov (!%p19456_p6), 0   ;;  %vm17819_vm1 = vcmask (!%p19456_p6), 33792  }
  0x70   : > { %v21730_v3 = vld [vmem:[%s23670_s21] sm:$0xff]   ;;  %19486 = vmatprep.subr.bf16.mxu1 %v21729_v2  ;;  %v21734_v7 = vld [vmem:[%s23670_s21 + $0x8] sm:$0xff]   ;;  %v21738_v11 = vld [vmem:[%s23670_s21 + $0x10] sm:$0xff]   ;;  %v386_v34 = vshrl.u32 %v385_v29, 7 }
  0x71   : > { %v21731_v4 = vld [vmem:[%s23670_s21 + $0x80] sm:$0xff]   ;;  %19465 = vmatpush3.bf16.msra.mxu0 %v21730_v3  ;;  %v21735_v8 = vld [vmem:[%s23670_s21 + $0x88] sm:$0xff]   ;;  %v21739_v12 = vld [vmem:[%s23670_s21 + $0x90] sm:$0xff]   ;;  %v384_v40 = vunpack.c.0.s8 %v383_v38 }
  0x72   : > { %19487 = vmatpush3.bf16.msra.mxu1 %v21731_v4  ;;  %19466 = vmatprep.subr.bf16.mxu0 %v21732_v5  ;;  %v21740_v13 = vld [vmem:[%s23670_s21 + $0x58] sm:$0xff]   ;;  %v21744_v17 = vld [vmem:[%s23670_s21 + $0x60] sm:$0xff]   ;;  %v21748_v21 = vld [vmem:[%s23670_s21 + $0x68] sm:$0xff]  }
  0x73   : > { %19488 = vmatprep.subr.bf16.mxu1 %v21733_v6  ;;  %v21741_v14 = vld [vmem:[%s23670_s21 + $0xd8] sm:$0xff]   ;;  %v21745_v18 = vld [vmem:[%s23670_s21 + $0xe0] sm:$0xff]   ;;  %v21749_v22 = vld [vmem:[%s23670_s21 + $0xe8] sm:$0xff]   ;;  %v23723_v42 = vsub.s32 %v384_v40, %v386_v34 }
  0x74   : > { %v21742_v15 = vld [vmem:[%s23670_s21 + $0x18] sm:$0xff]   ;;  %v21746_v19 = vld [vmem:[%s23670_s21 + $0x20] sm:$0xff]   ;;  %v21750_v23 = vld [vmem:[%s23670_s21 + $0x28] sm:$0xff]  }
  0x75   : > { %19467 = vmatpush3.bf16.msra.mxu0 %v21734_v7  ;;  %v21743_v16 = vld [vmem:[%s23670_s21 + $0x98] sm:$0xff]   ;;  %v21747_v20 = vld [vmem:[%s23670_s21 + $0xa0] sm:$0xff]   ;;  %v21751_v24 = vld [vmem:[%s23670_s21 + $0xa8] sm:$0xff]  }
  0x76   : > { %19489 = vmatpush3.bf16.msra.mxu1 %v21735_v8  ;;  %19468 = vmatprep.subr.bf16.mxu0 %v21736_v9  ;;  %v21752_v25 = vld [vmem:[%s23670_s21 + $0x70] sm:$0xff]   ;;  %v21756_v30 = vld [vmem:[%s23670_s21 + $0x78] sm:$0xff]   ;;  %v21761_v36 = vld [vmem:[%s23670_s21 + $0x140] sm:$0xff]  }
  0x77   : > { %19490 = vmatprep.subr.bf16.mxu1 %v21737_v10  ;;  %v21753_v26 = vld [vmem:[%s23670_s21 + $0xf0] sm:$0xff]   ;;  %v21757_v31 = vld [vmem:[%s23670_s21 + $0xf8] sm:$0xff]   ;;  %v21762_v39 = vld [vmem:[%s23670_s21 + $0x1c0] sm:$0xff]  }
  0x78   : > { %v21754_v27 = vld [vmem:[%s23670_s21 + $0x30] sm:$0xff]   ;;  %v21758_v32 = vld [vmem:[%s23670_s21 + $0x38] sm:$0xff]   ;;  %v21763_v47 = vld [vmem:[%s23670_s21 + $0x100] sm:$0xff]  }
  0x79   : > { %19469 = vmatpush3.bf16.msra.mxu0 %v21738_v11  ;;  %v21755_v28 = vld [vmem:[%s23670_s21 + $0xb0] sm:$0xff]   ;;  %v21759_v33 = vld [vmem:[%s23670_s21 + $0xb8] sm:$0xff]   ;;  %v21764_v50 = vld [vmem:[%s23670_s21 + $0x180] sm:$0xff]  }
  0x7a   : > { %19491 = vmatpush3.bf16.msra.mxu1 %v21739_v12  ;;  %19470 = vmatprep.subr.bf16.mxu0 %v21740_v13  ;;  %v285_v35 = vld [vmem:[%s23684_s15] sm:$0xff]  ;;  %v21765_v53 = vld [vmem:[%s23670_s21 + $0x148] sm:$0xff]   ;;  %v21769_v57 = vld [vmem:[%s23670_s21 + $0x150] sm:$0xff]  }
  0x7b   : > { %19492 = vmatprep.subr.bf16.mxu1 %v21741_v14  ;;  %v381_v41 = vcombine.high %v285_v35, %v285_v35  ;;  %v388_v43 = vrot.slane %v285_v35, %v23723_v42  ;;  %v21766_v54 = vld [vmem:[%s23670_s21 + $0x1c8] sm:$0xff]   ;;  %v21770_v58 = vld [vmem:[%s23670_s21 + $0x1d0] sm:$0xff]   ;;  %v21773_v61 = vld [vmem:[%s23670_s21 + $0x158] sm:$0xff]  }
  0x7c   : > { %v21767_v55 = vld [vmem:[%s23670_s21 + $0x108] sm:$0xff]   ;;  %v21771_v59 = vld [vmem:[%s23670_s21 + $0x110] sm:$0xff]   ;;  %v21774_v62 = vld [vmem:[%s23670_s21 + $0x1d8] sm:$0xff]  }
  0x7d   : > { %19471 = vmatpush3.bf16.msra.mxu0 %v21742_v15  ;;  %v395_v44 = vrot.slane %v381_v41, %v23723_v42  ;;  %v396_v45 = vcombine.high %v388_v43, %v388_v43  ;;  %v1389_v48 = vpack.c.bf16 %v388_v43, %v388_v43  ;;  %v21768_v56 = vld [vmem:[%s23670_s21 + $0x188] sm:$0xff]   ;;  %v21772_v60 = vld [vmem:[%s23670_s21 + $0x190] sm:$0xff]   ;;  %v21775_v63 = vld [vmem:[%s23670_s21 + $0x118] sm:$0xff]  }
  0x7e   : > { %19493 = vmatpush3.bf16.msra.mxu1 %v21743_v16  ;;  %19472 = vmatprep.subr.bf16.mxu0 %v21744_v17  ;;  %v21776_v0 = vld [vmem:[%s23670_s21 + $0x198] sm:$0xff]   ;;  %v21777_v1 = vld [vmem:[%s23670_s21 + $0x160] sm:$0xff]   ;;  %v21781_v5 = vld [vmem:[%s23670_s21 + $0x168] sm:$0xff]  }
  0x7f   : > { %19494 = vmatprep.subr.bf16.mxu1 %v21745_v18  ;;  %v397_v46 = vcombine.high %v395_v44, %v395_v44  ;;  %v1391_v49 = vpack.c.bf16 %v395_v44, %v395_v44  ;;  %v1390_v51 = vpack.c.bf16 %v396_v45, %v396_v45  ;;  %v21778_v2 = vld [vmem:[%s23670_s21 + $0x1e0] sm:$0xff]   ;;  %v21782_v6 = vld [vmem:[%s23670_s21 + $0x1e8] sm:$0xff]   ;;  %v21785_v9 = vld [vmem:[%s23670_s21 + $0x170] sm:$0xff]  }
  0x80   : > { %v21779_v3 = vld [vmem:[%s23670_s21 + $0x120] sm:$0xff]   ;;  %v21783_v7 = vld [vmem:[%s23670_s21 + $0x128] sm:$0xff]   ;;  %v21786_v10 = vld [vmem:[%s23670_s21 + $0x1f0] sm:$0xff]  }
  0x81   : > { %19473 = vmatpush3.bf16.msra.mxu0 %v21746_v19  ;;  %v1392_v52 = vpack.c.bf16 %v397_v46, %v397_v46  ;;  %13902 = vmatprep.mubr.bf16.mxu0 %v1390_v51  ;;  %v21780_v4 = vld [vmem:[%s23670_s21 + $0x1a0] sm:$0xff]   ;;  %v21784_v8 = vld [vmem:[%s23670_s21 + $0x1a8] sm:$0xff]   ;;  %v21787_v12 = vld [vmem:[%s23670_s21 + $0x130] sm:$0xff]  }
  0x82   : > { %19495 = vmatpush3.bf16.msra.mxu1 %v21747_v20  ;;  %19474 = vmatprep.subr.bf16.mxu0 %v21748_v21  ;;  %v286_v11 = vld [vmem:[%s23684_s15 + $0x8] sm:$0xff]  ;;  %v21788_v15 = vld [vmem:[%s23670_s21 + $0x1b0] sm:$0xff]   ;;  %v21789_v16 = vld [vmem:[%s23670_s21 + $0x178] sm:$0xff]  }
  0x83   : > { %19496 = vmatprep.subr.bf16.mxu1 %v21749_v22  ;;  %13942 = vmatprep.mubr.bf16.mxu1 %v1392_v52  ;;  %v405_v13 = vrot.slane %v286_v11, %v23723_v42  ;;  %v398_v14 = vcombine.high %v286_v11, %v286_v11  ;;  %v21790_v19 = vld [vmem:[%s23670_s21 + $0x1f8] sm:$0xff]   ;;  %v21801_v34 = vld [vmem:[%s23670_s21 + $0x288] sm:$0xff]   ;;  %v21802_v35 = vld [vmem:[%s23670_s21 + $0x250] sm:$0xff]  }
  0x84   : > { %v21791_v20 = vld [vmem:[%s23670_s21 + $0x138] sm:$0xff]   ;;  %v21804_v37 = vld [vmem:[%s23670_s21 + $0x210] sm:$0xff]   ;;  %v21810_v44 = vld [vmem:[%s23670_s21 + $0x260] sm:$0xff]  }
  0x85   : > { %19475 = vmatpush3.bf16.msra.mxu0 %v21750_v23  ;;  %v413_v17 = vcombine.high %v405_v13, %v405_v13  ;;  %v412_v18 = vrot.slane %v398_v14, %v23723_v42  ;;  %v21792_v23 = vld [vmem:[%s23670_s21 + $0x1b8] sm:$0xff]   ;;  %v21805_v38 = vld [vmem:[%s23670_s21 + $0x290] sm:$0xff]   ;;  %v21811_v45 = vld [vmem:[%s23670_s21 + $0x2e0] sm:$0xff]  }
  0x86   : > { %19497 = vmatpush3.bf16.msra.mxu1 %v21751_v24  ;;  %19476 = vmatprep.subr.bf16.mxu0 %v21752_v25  ;;  %v21794_v25 = vld [vmem:[%s23670_s21 + $0x240] sm:$0xff]   ;;  %v21807_v40 = vld [vmem:[%s23670_s21 + $0x2d8] sm:$0xff]   ;;  %v21817_v51 = vld [vmem:[%s23670_s21 + $0x2a8] sm:$0xff]  }
  0x87   : > { %19498 = vmatprep.subr.bf16.mxu1 %v21753_v26  ;;  %v1394_v21 = vpack.c.bf16 %v413_v17, %v413_v17  ;;  %v414_v22 = vcombine.high %v412_v18, %v412_v18  ;;  %v21795_v26 = vld [vmem:[%s23670_s21 + $0x2c0] sm:$0xff]   ;;  %v1395_v29 = vpack.c.bf16 %v412_v18, %v412_v18  ;;  %v21808_v41 = vld [vmem:[%s23670_s21 + $0x218] sm:$0xff]   ;;  %v21818_v52 = vld [vmem:[%s23670_s21 + $0x270] sm:$0xff]  }
  0x88   : > { %v21809_v43 = vld [vmem:[%s23670_s21 + $0x298] sm:$0xff]   ;;  %v21812_v46 = vld [vmem:[%s23670_s21 + $0x220] sm:$0xff]   ;;  %v21832_v11 = vld [vmem:[%s23670_s21 + $0x3c8] sm:$0xff]  }
  0x89   : > { %19477 = vmatpush3.bf16.msra.mxu0 %v21754_v27  ;;  %v1396_v24 = vpack.c.bf16 %v414_v22, %v414_v22  ;;  %v21796_v27 = vld [vmem:[%s23670_s21 + $0x200] sm:$0xff]   ;;  %v21835_v14 = vld [vmem:[%s23670_s21 + $0x350] sm:$0xff]   ;;  %v21839_v18 = vld [vmem:[%s23670_s21 + $0x358] sm:$0xff]  }
  0x8a   : > { %19499 = vmatpush3.bf16.msra.mxu1 %v21755_v28  ;;  %19478 = vmatprep.subr.bf16.mxu0 %v21756_v30  ;;  %v1393_v28 = vpack.c.bf16 %v405_v13, %v405_v13  ;;  %v21797_v30 = vld [vmem:[%s23670_s21 + $0x280] sm:$0xff]   ;;  %v21834_v13 = vld [vmem:[%s23670_s21 + $0x388] sm:$0xff]   ;;  %v21838_v17 = vld [vmem:[%s23670_s21 + $0x390] sm:$0xff]  }
  0x8b   : > { %19500 = vmatprep.subr.bf16.mxu1 %v21757_v31  ;;  %v21798_v31 = vld [vmem:[%s23670_s21 + $0x248] sm:$0xff]   ;;  %v21843_v22 = vld [vmem:[%s23670_s21 + $0x360] sm:$0xff]  }
  0x8d   : > { %19479 = vmatpush3.bf16.msra.mxu0 %v21758_v32  ;;  %v21799_v32 = vld [vmem:[%s23670_s21 + $0x2c8] sm:$0xff]  }
  0x8e   : > { %19501 = vmatpush3.bf16.msra.mxu1 %v21759_v33  ;;  %19508 = vmatprep.subr.bf16.mxu0 %v21761_v36  ;;  %v21800_v33 = vld [vmem:[%s23670_s21 + $0x208] sm:$0xff]   ;;  %v21803_v36 = vld [vmem:[%s23670_s21 + $0x2d0] sm:$0xff]  }
  0x8f   : > { %19530 = vmatprep.subr.bf16.mxu1 %v21762_v39  ;;  %v21806_v39 = vld [vmem:[%s23670_s21 + $0x258] sm:$0xff]  }
  0x90   : > { %13903 = vmatmul.mubr.bf16.vlgmr.msra.gmra.mrb[0].mxu0 %v1389_v48  ;;  %v21814_v48 = vld [vmem:[%s23670_s21 + $0x268] sm:$0xff]  }
  0x91   : > { %13943 = vmatmul.mubr.bf16.vlgmr.msra.gmra.mrb[0].mxu1 %v1391_v49  ;;  %19509 = vmatpush3.bf16.msra.mxu0 %v21763_v47  ;;  %v21813_v47 = vld [vmem:[%s23670_s21 + $0x2a0] sm:$0xff]   ;;  %v21815_v49 = vld [vmem:[%s23670_s21 + $0x2e8] sm:$0xff]  }
  0x92   : > { %19531 = vmatpush3.bf16.msra.mxu1 %v21764_v50  ;;  %19510 = vmatprep.subr.bf16.mxu0 %v21765_v53  ;;  %v21816_v50 = vld [vmem:[%s23670_s21 + $0x228] sm:$0xff]   ;;  %v21819_v53 = vld [vmem:[%s23670_s21 + $0x2f0] sm:$0xff]  }
  0x93   : > { %19532 = vmatprep.subr.bf16.mxu1 %v21766_v54  ;;  %13982 = vmatprep.mubr.bf16.mxu0 %v1394_v21  ;;  %v287_v54 = vld [vmem:[%s23684_s15 + $0x10] sm:$0xff]  ;;  %v21842_v21 = vld [vmem:[%s23670_s21 + $0x398] sm:$0xff]  }
  0x94   : > { %14022 = vmatprep.mubr.bf16.mxu1 %v1396_v24  ;;  %v21845_v24 = vld [vmem:[%s23670_s21 + $0x320] sm:$0xff]  }
  0x95   : > { %19511 = vmatpush3.bf16.msra.mxu0 %v21767_v55  ;;  %v21820_v55 = vld [vmem:[%s23670_s21 + $0x230] sm:$0xff]  }
  0x96   : > { %19533 = vmatpush3.bf16.msra.mxu1 %v21768_v56  ;;  %19512 = vmatprep.subr.bf16.mxu0 %v21769_v57  ;;  %v422_v56 = vrot.slane %v287_v54, %v23723_v42  ;;  %v415_v57 = vcombine.high %v287_v54, %v287_v54  ;;  %v21865_v54 = vld [vmem:[%s23670_s21 + $0x4c8] sm:$0xff]  }
  0x97   : > { %19534 = vmatprep.subr.bf16.mxu1 %v21770_v58  ;;  %v21821_v58 = vld [vmem:[%s23670_s21 + $0x2b0] sm:$0xff]  }
  0x99   : > { %19513 = vmatpush3.bf16.msra.mxu0 %v21771_v59  ;;  %v21822_v59 = vld [vmem:[%s23670_s21 + $0x278] sm:$0xff]  }
  0x9a   : > { %19535 = vmatpush3.bf16.msra.mxu1 %v21772_v60  ;;  %19514 = vmatprep.subr.bf16.mxu0 %v21773_v61  ;;  %v430_v60 = vcombine.high %v422_v56, %v422_v56  ;;  %v429_v61 = vrot.slane %v415_v57, %v23723_v42  ;;  %v21868_v57 = vld [vmem:[%s23670_s21 + $0x450] sm:$0xff]  }
  0x9b   : > { %19536 = vmatprep.subr.bf16.mxu1 %v21774_v62  ;;  %v21823_v62 = vld [vmem:[%s23670_s21 + $0x2f8] sm:$0xff]  }
  0x9d   : > { %19515 = vmatpush3.bf16.msra.mxu0 %v21775_v63  ;;  %v21824_v63 = vld [vmem:[%s23670_s21 + $0x238] sm:$0xff]  }
  0x9e   : > { %19537 = vmatpush3.bf16.msra.mxu1 %v21776_v0  ;;  %19516 = vmatprep.subr.bf16.mxu0 %v21777_v1  ;;  %v1398_v0 = vpack.c.bf16 %v430_v60, %v430_v60  ;;  %v431_v1 = vcombine.high %v429_v61, %v429_v61  ;;  %v21871_v60 = vld [vmem:[%s23670_s21 + $0x490] sm:$0xff]  }
  0x9f   : > { %19538 = vmatprep.subr.bf16.mxu1 %v21778_v2  ;;  %v21825_v2 = vld [vmem:[%s23670_s21 + $0x2b8] sm:$0xff]  }
  0xa1   : > { %19517 = vmatpush3.bf16.msra.mxu0 %v21779_v3  ;;  %v1400_v3 = vpack.c.bf16 %v431_v1, %v431_v1  ;;  %v21876_v1 = vld [vmem:[%s23670_s21 + $0x460] sm:$0xff]  }
  0xa2   : > { %19539 = vmatpush3.bf16.msra.mxu1 %v21780_v4  ;;  %19518 = vmatprep.subr.bf16.mxu0 %v21781_v5  ;;  %v21827_v4 = vld [vmem:[%s23670_s21 + $0x340] sm:$0xff]  }
  0xa3   : > { %19540 = vmatprep.subr.bf16.mxu1 %v21782_v6  ;;  %v21828_v5 = vld [vmem:[%s23670_s21 + $0x3c0] sm:$0xff]  }
  0xa4   : > { %v21829_v6 = vld [vmem:[%s23670_s21 + $0x300] sm:$0xff]  }
  0xa5   : > { %19519 = vmatpush3.bf16.msra.mxu0 %v21783_v7  ;;  %v1397_v7 = vpack.c.bf16 %v422_v56, %v422_v56  ;;  %v21867_v56 = vld [vmem:[%s23670_s21 + $0x488] sm:$0xff]  }
  0xa6   : > { %19541 = vmatpush3.bf16.msra.mxu1 %v21784_v8  ;;  %19520 = vmatprep.subr.bf16.mxu0 %v21785_v9  ;;  %v1399_v8 = vpack.c.bf16 %v429_v61, %v429_v61  ;;  %v21830_v9 = vld [vmem:[%s23670_s21 + $0x380] sm:$0xff]   ;;  %v21872_v61 = vld [vmem:[%s23670_s21 + $0x458] sm:$0xff]  }
  0xa7   : > { %19542 = vmatprep.subr.bf16.mxu1 %v21786_v10  ;;  %v21831_v10 = vld [vmem:[%s23670_s21 + $0x348] sm:$0xff]  }
  0xa9   : > { %19521 = vmatpush3.bf16.msra.mxu0 %v21787_v12  ;;  %v21833_v12 = vld [vmem:[%s23670_s21 + $0x308] sm:$0xff]  }
  0xaa   : > { %19543 = vmatpush3.bf16.msra.mxu1 %v21788_v15  ;;  %19522 = vmatprep.subr.bf16.mxu0 %v21789_v16  ;;  %v21836_v15 = vld [vmem:[%s23670_s21 + $0x3d0] sm:$0xff]  }
  0xab   : > { %19544 = vmatprep.subr.bf16.mxu1 %v21790_v19  ;;  %v21837_v16 = vld [vmem:[%s23670_s21 + $0x310] sm:$0xff]   ;;  %v21840_v19 = vld [vmem:[%s23670_s21 + $0x3d8] sm:$0xff]  }
  0xad   : > { %19523 = vmatpush3.bf16.msra.mxu0 %v21791_v20  ;;  %v21841_v20 = vld [vmem:[%s23670_s21 + $0x318] sm:$0xff]  }
  0xae   : > { %19545 = vmatpush3.bf16.msra.mxu1 %v21792_v23  ;;  %19552 = vmatprep.subr.bf16.mxu0 %v21794_v25  ;;  %v21844_v23 = vld [vmem:[%s23670_s21 + $0x3e0] sm:$0xff]  }
  0xaf   : > { %19574 = vmatprep.subr.bf16.mxu1 %v21795_v26  ;;  %v21846_v25 = vld [vmem:[%s23670_s21 + $0x3a0] sm:$0xff]   ;;  %v21847_v26 = vld [vmem:[%s23670_s21 + $0x368] sm:$0xff]  }
  0xb0   : > { %13983 = vmatmul.mubr.bf16.vlgmr.msra.gmra.mrb[4].mxu0 %v1393_v28  ;;  %v21849_v28 = vld [vmem:[%s23670_s21 + $0x328] sm:$0xff]  }
  0xb1   : > { %14023 = vmatmul.mubr.bf16.vlgmr.msra.gmra.mrb[4].mxu1 %v1395_v29  ;;  %19553 = vmatpush3.bf16.msra.mxu0 %v21796_v27  ;;  %v21848_v27 = vld [vmem:[%s23670_s21 + $0x3e8] sm:$0xff]  }
  0xb2   : > { %19575 = vmatpush3.bf16.msra.mxu1 %v21797_v30  ;;  %19554 = vmatprep.subr.bf16.mxu0 %v21798_v31  ;;  %v21850_v29 = vld [vmem:[%s23670_s21 + $0x3a8] sm:$0xff]   ;;  %v21851_v30 = vld [vmem:[%s23670_s21 + $0x370] sm:$0xff]  }
  0xb3   : > { %19576 = vmatprep.subr.bf16.mxu1 %v21799_v32  ;;  %14062 = vmatprep.mubr.bf16.mxu0 %v1398_v0  ;;  %v21852_v31 = vld [vmem:[%s23670_s21 + $0x3f0] sm:$0xff]   ;;  %v21875_v0 = vld [vmem:[%s23670_s21 + $0x498] sm:$0xff]  }
  0xb4   : > { %14102 = vmatprep.mubr.bf16.mxu1 %v1400_v3  ;;  %v21853_v32 = vld [vmem:[%s23670_s21 + $0x330] sm:$0xff]   ;;  %v21878_v3 = vld [vmem:[%s23670_s21 + $0x420] sm:$0xff]  }
  0xb5   : > { %19555 = vmatpush3.bf16.msra.mxu0 %v21800_v33  ;;  %v288_v33 = vld [vmem:[%s23684_s15 + $0x18] sm:$0xff] }
  0xb6   : > { %19577 = vmatpush3.bf16.msra.mxu1 %v21801_v34  ;;  %19556 = vmatprep.subr.bf16.mxu0 %v21802_v35  ;;  %v21854_v34 = vld [vmem:[%s23670_s21 + $0x3b0] sm:$0xff]   ;;  %v439_v35 = vrot.slane %v288_v33, %v23723_v42 }
  0xb7   : > { %19578 = vmatprep.subr.bf16.mxu1 %v21803_v36  ;;  %v432_v36 = vcombine.high %v288_v33, %v288_v33  ;;  %v21899_v33 = vld [vmem:[%s23670_s21 + $0x508] sm:$0xff]  }
  0xb9   : > { %19557 = vmatpush3.bf16.msra.mxu0 %v21804_v37  ;;  %v21855_v37 = vld [vmem:[%s23670_s21 + $0x378] sm:$0xff]  }
  0xba   : > { %19579 = vmatpush3.bf16.msra.mxu1 %v21805_v38  ;;  %19558 = vmatprep.subr.bf16.mxu0 %v21806_v39  ;;  %v21856_v38 = vld [vmem:[%s23670_s21 + $0x3f8] sm:$0xff]   ;;  %v447_v39 = vcombine.high %v439_v35, %v439_v35 }
  0xbb   : > { %19580 = vmatprep.subr.bf16.mxu1 %v21807_v40  ;;  %v446_v40 = vrot.slane %v432_v36, %v23723_v42  ;;  %v21902_v36 = vld [vmem:[%s23670_s21 + $0x5d0] sm:$0xff]  }
  0xbd   : > { %19559 = vmatpush3.bf16.msra.mxu0 %v21808_v41  ;;  %v21857_v41 = vld [vmem:[%s23670_s21 + $0x338] sm:$0xff]  }
  0xbe   : > { %19581 = vmatpush3.bf16.msra.mxu1 %v21809_v43  ;;  %19560 = vmatprep.subr.bf16.mxu0 %v21810_v44  ;;  %v21858_v43 = vld [vmem:[%s23670_s21 + $0x3b8] sm:$0xff]   ;;  %v1402_v44 = vpack.c.bf16 %v447_v39, %v447_v39 }
  0xbf   : > { %19582 = vmatprep.subr.bf16.mxu1 %v21811_v45  ;;  %v448_v45 = vcombine.high %v446_v40, %v446_v40  ;;  %v21905_v39 = vld [vmem:[%s23670_s21 + $0x558] sm:$0xff]  }
  0xc1   : > { %19561 = vmatpush3.bf16.msra.mxu0 %v21812_v46  ;;  %v21860_v46 = vld [vmem:[%s23670_s21 + $0x440] sm:$0xff]  }
  0xc2   : > { %19583 = vmatpush3.bf16.msra.mxu1 %v21813_v47  ;;  %19562 = vmatprep.subr.bf16.mxu0 %v21814_v48  ;;  %v1404_v47 = vpack.c.bf16 %v448_v45, %v448_v45  ;;  %v21861_v48 = vld [vmem:[%s23670_s21 + $0x4c0] sm:$0xff]  }
  0xc3   : > { %19584 = vmatprep.subr.bf16.mxu1 %v21815_v49  ;;  %v21862_v49 = vld [vmem:[%s23670_s21 + $0x400] sm:$0xff]  }
  0xc4   : > { %v21910_v45 = vld [vmem:[%s23670_s21 + $0x5e0] sm:$0xff]  }
  0xc5   : > { %19563 = vmatpush3.bf16.msra.mxu0 %v21816_v50  ;;  %v1401_v50 = vpack.c.bf16 %v439_v35, %v439_v35  ;;  %v21901_v35 = vld [vmem:[%s23670_s21 + $0x550] sm:$0xff]  }
  0xc6   : > { %19585 = vmatpush3.bf16.msra.mxu1 %v21817_v51  ;;  %19564 = vmatprep.subr.bf16.mxu0 %v21818_v52  ;;  %v1403_v51 = vpack.c.bf16 %v446_v40, %v446_v40  ;;  %v21863_v52 = vld [vmem:[%s23670_s21 + $0x480] sm:$0xff]   ;;  %v21906_v40 = vld [vmem:[%s23670_s21 + $0x5d8] sm:$0xff]  }
  0xc7   : > { %19586 = vmatprep.subr.bf16.mxu1 %v21819_v53  ;;  %v21864_v53 = vld [vmem:[%s23670_s21 + $0x448] sm:$0xff]  }
  0xc9   : > { %19565 = vmatpush3.bf16.msra.mxu0 %v21820_v55  ;;  %v21866_v55 = vld [vmem:[%s23670_s21 + $0x408] sm:$0xff]  }
  0xca   : > { %19587 = vmatpush3.bf16.msra.mxu1 %v21821_v58  ;;  %19566 = vmatprep.subr.bf16.mxu0 %v21822_v59  ;;  %v21869_v58 = vld [vmem:[%s23670_s21 + $0x4d0] sm:$0xff]  }
  0xcb   : > { %19588 = vmatprep.subr.bf16.mxu1 %v21823_v62  ;;  %v21870_v59 = vld [vmem:[%s23670_s21 + $0x410] sm:$0xff]   ;;  %v21873_v62 = vld [vmem:[%s23670_s21 + $0x4d8] sm:$0xff]  }
  0xcd   : > { %19567 = vmatpush3.bf16.msra.mxu0 %v21824_v63  ;;  %v21874_v63 = vld [vmem:[%s23670_s21 + $0x418] sm:$0xff]  }
  0xce   : > { %19589 = vmatpush3.bf16.msra.mxu1 %v21825_v2  ;;  %19596 = vmatprep.subr.bf16.mxu0 %v21827_v4  ;;  %v21877_v2 = vld [vmem:[%s23670_s21 + $0x4e0] sm:$0xff]  }
  0xcf   : > { %19618 = vmatprep.subr.bf16.mxu1 %v21828_v5  ;;  %v21879_v4 = vld [vmem:[%s23670_s21 + $0x4a0] sm:$0xff]   ;;  %v21880_v5 = vld [vmem:[%s23670_s21 + $0x468] sm:$0xff]  }
  0xd0   : > { %14063 = vmatmul.mubr.bf16.vlgmr.msra.gmra.mrb[8].mxu0 %v1397_v7  ;;  %v21882_v7 = vld [vmem:[%s23670_s21 + $0x428] sm:$0xff]  }
  0xd1   : > { %14103 = vmatmul.mubr.bf16.vlgmr.msra.gmra.mrb[8].mxu1 %v1399_v8  ;;  %19597 = vmatpush3.bf16.msra.mxu0 %v21829_v6  ;;  %v21881_v6 = vld [vmem:[%s23670_s21 + $0x4e8] sm:$0xff]  }
  0xd2   : > { %19619 = vmatpush3.bf16.msra.mxu1 %v21830_v9  ;;  %19598 = vmatprep.subr.bf16.mxu0 %v21831_v10  ;;  %v21883_v8 = vld [vmem:[%s23670_s21 + $0x4a8] sm:$0xff]   ;;  %v21884_v9 = vld [vmem:[%s23670_s21 + $0x470] sm:$0xff]  }
  0xd3   : > { %19620 = vmatprep.subr.bf16.mxu1 %v21832_v11  ;;  %14142 = vmatprep.mubr.bf16.mxu0 %v1402_v44  ;;  %v21885_v10 = vld [vmem:[%s23670_s21 + $0x4f0] sm:$0xff]   ;;  %v21909_v44 = vld [vmem:[%s23670_s21 + $0x560] sm:$0xff]  }
  0xd4   : > { %14182 = vmatprep.mubr.bf16.mxu1 %v1404_v47  ;;  %v21886_v11 = vld [vmem:[%s23670_s21 + $0x430] sm:$0xff]   ;;  %v21912_v47 = vld [vmem:[%s23670_s21 + $0x5a0] sm:$0xff]  }
  0xd5   : > { %19599 = vmatpush3.bf16.msra.mxu0 %v21833_v12  ;;  %v289_v12 = vld [vmem:[%s23684_s15 + $0x20] sm:$0xff] }
  0xd6   : > { %19621 = vmatpush3.bf16.msra.mxu1 %v21834_v13  ;;  %19600 = vmatprep.subr.bf16.mxu0 %v21835_v14  ;;  %v21887_v13 = vld [vmem:[%s23670_s21 + $0x4b0] sm:$0xff]   ;;  %v456_v14 = vrot.slane %v289_v12, %v23723_v42 }
  0xd7   : > { %19622 = vmatprep.subr.bf16.mxu1 %v21836_v15  ;;  %v449_v15 = vcombine.high %v289_v12, %v289_v12  ;;  %v21932_v12 = vld [vmem:[%s23670_s21 + $0x608] sm:$0xff]  }
  0xd9   : > { %19601 = vmatpush3.bf16.msra.mxu0 %v21837_v16  ;;  %v21888_v16 = vld [vmem:[%s23670_s21 + $0x478] sm:$0xff]  }
  0xda   : > { %19623 = vmatpush3.bf16.msra.mxu1 %v21838_v17  ;;  %19602 = vmatprep.subr.bf16.mxu0 %v21839_v18  ;;  %v21889_v17 = vld [vmem:[%s23670_s21 + $0x4f8] sm:$0xff]   ;;  %v464_v18 = vcombine.high %v456_v14, %v456_v14 }
  0xdb   : > { %19624 = vmatprep.subr.bf16.mxu1 %v21840_v19  ;;  %v463_v19 = vrot.slane %v449_v15, %v23723_v42  ;;  %v21935_v15 = vld [vmem:[%s23670_s21 + $0x6d0] sm:$0xff]  }
  0xdd   : > { %19603 = vmatpush3.bf16.msra.mxu0 %v21841_v20  ;;  %v21890_v20 = vld [vmem:[%s23670_s21 + $0x438] sm:$0xff]  }
  0xde   : > { %19625 = vmatpush3.bf16.msra.mxu1 %v21842_v21  ;;  %19604 = vmatprep.subr.bf16.mxu0 %v21843_v22  ;;  %v21891_v21 = vld [vmem:[%s23670_s21 + $0x4b8] sm:$0xff]   ;;  %v1406_v22 = vpack.c.bf16 %v464_v18, %v464_v18 }
  0xdf   : > { %19626 = vmatprep.subr.bf16.mxu1 %v21844_v23  ;;  %v465_v23 = vcombine.high %v463_v19, %v463_v19  ;;  %v21938_v18 = vld [vmem:[%s23670_s21 + $0x658] sm:$0xff]  }
  0xe1   : > { %19605 = vmatpush3.bf16.msra.mxu0 %v21845_v24  ;;  %v21893_v24 = vld [vmem:[%s23670_s21 + $0x540] sm:$0xff]  }
  0xe2   : > { %19627 = vmatpush3.bf16.msra.mxu1 %v21846_v25  ;;  %19606 = vmatprep.subr.bf16.mxu0 %v21847_v26  ;;  %v1408_v25 = vpack.c.bf16 %v465_v23, %v465_v23  ;;  %v21894_v26 = vld [vmem:[%s23670_s21 + $0x5c0] sm:$0xff]  }
  0xe3   : > { %19628 = vmatprep.subr.bf16.mxu1 %v21848_v27  ;;  %v21895_v27 = vld [vmem:[%s23670_s21 + $0x500] sm:$0xff]  }
  0xe4   : > { %v21943_v23 = vld [vmem:[%s23670_s21 + $0x6e0] sm:$0xff]  }
  0xe5   : > { %19607 = vmatpush3.bf16.msra.mxu0 %v21849_v28  ;;  %v1405_v28 = vpack.c.bf16 %v456_v14, %v456_v14  ;;  %v21934_v14 = vld [vmem:[%s23670_s21 + $0x650] sm:$0xff]  }
  0xe6   : > { %19629 = vmatpush3.bf16.msra.mxu1 %v21850_v29  ;;  %19608 = vmatprep.subr.bf16.mxu0 %v21851_v30  ;;  %v1407_v29 = vpack.c.bf16 %v463_v19, %v463_v19  ;;  %v21896_v30 = vld [vmem:[%s23670_s21 + $0x580] sm:$0xff]   ;;  %v21939_v19 = vld [vmem:[%s23670_s21 + $0x6d8] sm:$0xff]  }
  0xe7   : > { %19630 = vmatprep.subr.bf16.mxu1 %v21852_v31  ;;  %v21897_v31 = vld [vmem:[%s23670_s21 + $0x548] sm:$0xff]  }
  0xe9   : > { %19609 = vmatpush3.bf16.msra.mxu0 %v21853_v32  ;;  %v21898_v32 = vld [vmem:[%s23670_s21 + $0x5c8] sm:$0xff]  }
  0xea   : > { %19631 = vmatpush3.bf16.msra.mxu1 %v21854_v34  ;;  %19610 = vmatprep.subr.bf16.mxu0 %v21855_v37  ;;  %v21900_v34 = vld [vmem:[%s23670_s21 + $0x588] sm:$0xff]   ;;  %v21903_v37 = vld [vmem:[%s23670_s21 + $0x510] sm:$0xff]  }
  0xeb   : > { %19632 = vmatprep.subr.bf16.mxu1 %v21856_v38  ;;  %v21904_v38 = vld [vmem:[%s23670_s21 + $0x590] sm:$0xff]  }
  0xed   : > { %19611 = vmatpush3.bf16.msra.mxu0 %v21857_v41  ;;  %v21907_v41 = vld [vmem:[%s23670_s21 + $0x518] sm:$0xff]  }
  0xee   : > { %19633 = vmatpush3.bf16.msra.mxu1 %v21858_v43  ;;  %19640 = vmatprep.subr.bf16.mxu0 %v21860_v46  ;;  %v21908_v43 = vld [vmem:[%s23670_s21 + $0x598] sm:$0xff]   ;;  %v21911_v46 = vld [vmem:[%s23670_s21 + $0x520] sm:$0xff]  }
  0xef   : > { %19662 = vmatprep.subr.bf16.mxu1 %v21861_v48  ;;  %v21913_v48 = vld [vmem:[%s23670_s21 + $0x568] sm:$0xff]  }
  0xf0   : > { %14143 = vmatmul.mubr.bf16.vlgmr.msra.gmra.mrb[12].mxu0 %v1401_v50  ;;  %v21915_v50 = vld [vmem:[%s23670_s21 + $0x528] sm:$0xff]  }
  0xf1   : > { %14183 = vmatmul.mubr.bf16.vlgmr.msra.gmra.mrb[12].mxu1 %v1403_v51  ;;  %19641 = vmatpush3.bf16.msra.mxu0 %v21862_v49  ;;  %v21914_v49 = vld [vmem:[%s23670_s21 + $0x5e8] sm:$0xff]  }
  0xf2   : > { %19663 = vmatpush3.bf16.msra.mxu1 %v21863_v52  ;;  %19642 = vmatprep.subr.bf16.mxu0 %v21864_v53  ;;  %v21916_v51 = vld [vmem:[%s23670_s21 + $0x5a8] sm:$0xff]   ;;  %v21917_v52 = vld [vmem:[%s23670_s21 + $0x570] sm:$0xff]  }
  0xf3   : > { %19664 = vmatprep.subr.bf16.mxu1 %v21865_v54  ;;  %14222 = vmatprep.mubr.bf16.mxu0 %v1406_v22  ;;  %v21918_v53 = vld [vmem:[%s23670_s21 + $0x5f0] sm:$0xff]   ;;  %v21942_v22 = vld [vmem:[%s23670_s21 + $0x660] sm:$0xff]  }
  0xf4   : > { %14262 = vmatprep.mubr.bf16.mxu1 %v1408_v25  ;;  %v21919_v54 = vld [vmem:[%s23670_s21 + $0x530] sm:$0xff]   ;;  %v21945_v25 = vld [vmem:[%s23670_s21 + $0x6a0] sm:$0xff]  }
  0xf5   : > { %19643 = vmatpush3.bf16.msra.mxu0 %v21866_v55  ;;  %v290_v55 = vld [vmem:[%s23684_s15 + $0x28] sm:$0xff] }
  0xf6   : > { %19665 = vmatpush3.bf16.msra.mxu1 %v21867_v56  ;;  %19644 = vmatprep.subr.bf16.mxu0 %v21868_v57  ;;  %v21920_v56 = vld [vmem:[%s23670_s21 + $0x5b0] sm:$0xff]   ;;  %v473_v57 = vrot.slane %v290_v55, %v23723_v42 }
  0xf7   : > { %19666 = vmatprep.subr.bf16.mxu1 %v21869_v58  ;;  %v466_v58 = vcombine.high %v290_v55, %v290_v55  ;;  %v21965_v55 = vld [vmem:[%s23670_s21 + $0x708] sm:$0xff]  }
  0xf9   : > { %19645 = vmatpush3.bf16.msra.mxu0 %v21870_v59  ;;  %v21921_v59 = vld [vmem:[%s23670_s21 + $0x578] sm:$0xff]  }
  0xfa   : > { %19667 = vmatpush3.bf16.msra.mxu1 %v21871_v60  ;;  %19646 = vmatprep.subr.bf16.mxu0 %v21872_v61  ;;  %v21922_v60 = vld [vmem:[%s23670_s21 + $0x5f8] sm:$0xff]   ;;  %v481_v61 = vcombine.high %v473_v57, %v473_v57 }
  0xfb   : > { %19668 = vmatprep.subr.bf16.mxu1 %v21873_v62  ;;  %v480_v62 = vrot.slane %v466_v58, %v23723_v42  ;;  %v21968_v58 = vld [vmem:[%s23670_s21 + $0x7d0] sm:$0xff]  }
  0xfd   : > { %19647 = vmatpush3.bf16.msra.mxu0 %v21874_v63  ;;  %v21923_v63 = vld [vmem:[%s23670_s21 + $0x538] sm:$0xff]  }
  0xfe   : > { %19669 = vmatpush3.bf16.msra.mxu1 %v21875_v0  ;;  %19648 = vmatprep.subr.bf16.mxu0 %v21876_v1  ;;  %v21924_v0 = vld [vmem:[%s23670_s21 + $0x5b8] sm:$0xff]   ;;  %v1410_v1 = vpack.c.bf16 %v481_v61, %v481_v61 }
  0xff   : > { %19670 = vmatprep.subr.bf16.mxu1 %v21877_v2  ;;  %v482_v2 = vcombine.high %v480_v62, %v480_v62  ;;  %v21971_v61 = vld [vmem:[%s23670_s21 + $0x758] sm:$0xff]  }
 0x101   : > { %19649 = vmatpush3.bf16.msra.mxu0 %v21878_v3  ;;  %v21926_v3 = vld [vmem:[%s23670_s21 + $0x640] sm:$0xff]  }
 0x102   : > { %19671 = vmatpush3.bf16.msra.mxu1 %v21879_v4  ;;  %19650 = vmatprep.subr.bf16.mxu0 %v21880_v5  ;;  %v1412_v4 = vpack.c.bf16 %v482_v2, %v482_v2  ;;  %v21927_v5 = vld [vmem:[%s23670_s21 + $0x6c0] sm:$0xff]  }
 0x103   : > { %19672 = vmatprep.subr.bf16.mxu1 %v21881_v6  ;;  %v21928_v6 = vld [vmem:[%s23670_s21 + $0x600] sm:$0xff]  }
 0x104   : > { %v21976_v2 = vld [vmem:[%s23670_s21 + $0x7e0] sm:$0xff]  }
 0x105   : > { %19651 = vmatpush3.bf16.msra.mxu0 %v21882_v7  ;;  %v1409_v7 = vpack.c.bf16 %v473_v57, %v473_v57  ;;  %v21967_v57 = vld [vmem:[%s23670_s21 + $0x750] sm:$0xff]  }
 0x106   : > { %19673 = vmatpush3.bf16.msra.mxu1 %v21883_v8  ;;  %19652 = vmatprep.subr.bf16.mxu0 %v21884_v9  ;;  %v1411_v8 = vpack.c.bf16 %v480_v62, %v480_v62  ;;  %v21929_v9 = vld [vmem:[%s23670_s21 + $0x680] sm:$0xff]   ;;  %v21972_v62 = vld [vmem:[%s23670_s21 + $0x7d8] sm:$0xff]  }
 0x107   : > { %19674 = vmatprep.subr.bf16.mxu1 %v21885_v10  ;;  %v21930_v10 = vld [vmem:[%s23670_s21 + $0x648] sm:$0xff]  }
 0x109   : > { %19653 = vmatpush3.bf16.msra.mxu0 %v21886_v11  ;;  %v21931_v11 = vld [vmem:[%s23670_s21 + $0x6c8] sm:$0xff]  }
 0x10a   : > { %19675 = vmatpush3.bf16.msra.mxu1 %v21887_v13  ;;  %19654 = vmatprep.subr.bf16.mxu0 %v21888_v16  ;;  %v21933_v13 = vld [vmem:[%s23670_s21 + $0x688] sm:$0xff]   ;;  %v21936_v16 = vld [vmem:[%s23670_s21 + $0x610] sm:$0xff]  }
 0x10b   : > { %19676 = vmatprep.subr.bf16.mxu1 %v21889_v17  ;;  %v21937_v17 = vld [vmem:[%s23670_s21 + $0x690] sm:$0xff]  }
 0x10d   : > { %19655 = vmatpush3.bf16.msra.mxu0 %v21890_v20  ;;  %v21940_v20 = vld [vmem:[%s23670_s21 + $0x618] sm:$0xff]  }
 0x10e   : > { %19677 = vmatpush3.bf16.msra.mxu1 %v21891_v21  ;;  %19684 = vmatprep.subr.bf16.mxu0 %v21893_v24  ;;  %v21941_v21 = vld [vmem:[%s23670_s21 + $0x698] sm:$0xff]   ;;  %v21944_v24 = vld [vmem:[%s23670_s21 + $0x620] sm:$0xff]  }
 0x10f   : > { %19706 = vmatprep.subr.bf16.mxu1 %v21894_v26  ;;  %v21946_v26 = vld [vmem:[%s23670_s21 + $0x668] sm:$0xff]  }
 0x110   : > { %14223 = vmatmul.mubr.bf16.vlgmr.msra.gmra.mrb[16].mxu0 %v1405_v28  ;;  %v21948_v28 = vld [vmem:[%s23670_s21 + $0x628] sm:$0xff]  }
 0x111   : > { %14263 = vmatmul.mubr.bf16.vlgmr.msra.gmra.mrb[16].mxu1 %v1407_v29  ;;  %19685 = vmatpush3.bf16.msra.mxu0 %v21895_v27  ;;  %v21947_v27 = vld [vmem:[%s23670_s21 + $0x6e8] sm:$0xff]  }
 0x112   : > { %19707 = vmatpush3.bf16.msra.mxu1 %v21896_v30  ;;  %19686 = vmatprep.subr.bf16.mxu0 %v21897_v31  ;;  %v21949_v29 = vld [vmem:[%s23670_s21 + $0x6a8] sm:$0xff]   ;;  %v21950_v30 = vld [vmem:[%s23670_s21 + $0x670] sm:$0xff]  }
 0x113   : > { %19708 = vmatprep.subr.bf16.mxu1 %v21898_v32  ;;  %14302 = vmatprep.mubr.bf16.mxu0 %v1410_v1  ;;  %v21951_v31 = vld [vmem:[%s23670_s21 + $0x6f0] sm:$0xff]   ;;  %v21975_v1 = vld [vmem:[%s23670_s21 + $0x760] sm:$0xff]  }
 0x114   : > { %14342 = vmatprep.mubr.bf16.mxu1 %v1412_v4  ;;  %v21952_v32 = vld [vmem:[%s23670_s21 + $0x630] sm:$0xff]   ;;  %v21978_v4 = vld [vmem:[%s23670_s21 + $0x7a0] sm:$0xff]  }
 0x115   : > { %19687 = vmatpush3.bf16.msra.mxu0 %v21899_v33  ;;  %v21953_v33 = vld [vmem:[%s23670_s21 + $0x6b0] sm:$0xff]  }
 0x116   : > { %19709 = vmatpush3.bf16.msra.mxu1 %v21900_v34  ;;  %19688 = vmatprep.subr.bf16.mxu0 %v21901_v35  ;;  %v291_v34 = vld [vmem:[%s23684_s15 + $0x30] sm:$0xff]  ;;  %v21954_v35 = vld [vmem:[%s23670_s21 + $0x678] sm:$0xff]  }
 0x117   : > { %19710 = vmatprep.subr.bf16.mxu1 %v21902_v36  ;;  %v490_v36 = vrot.slane %v291_v34, %v23723_v42 }
 0x119   : > { %19689 = vmatpush3.bf16.msra.mxu0 %v21903_v37  ;;  %v483_v37 = vcombine.high %v291_v34, %v291_v34  ;;  %v21992_v34 = vld [vmem:[%s23670_s21 + $0x840] sm:$0xff]  }
 0x11a   : > { %19711 = vmatpush3.bf16.msra.mxu1 %v21904_v38  ;;  %19690 = vmatprep.subr.bf16.mxu0 %v21905_v39  ;;  %v21955_v38 = vld [vmem:[%s23670_s21 + $0x6f8] sm:$0xff]  }
 0x11b   : > { %19712 = vmatprep.subr.bf16.mxu1 %v21906_v40  ;;  %v21956_v39 = vld [vmem:[%s23670_s21 + $0x638] sm:$0xff]   ;;  %v498_v40 = vcombine.high %v490_v36, %v490_v36 }
 0x11d   : > { %19691 = vmatpush3.bf16.msra.mxu0 %v21907_v41  ;;  %v497_v41 = vrot.slane %v483_v37, %v23723_v42  ;;  %v21994_v37 = vld [vmem:[%s23670_s21 + $0x800] sm:$0xff]  }
 0x11e   : > { %19713 = vmatpush3.bf16.msra.mxu1 %v21908_v43  ;;  %19692 = vmatprep.subr.bf16.mxu0 %v21909_v44  ;;  %v21957_v43 = vld [vmem:[%s23670_s21 + $0x6b8] sm:$0xff]   ;;  %v1414_v44 = vpack.c.bf16 %v498_v40, %v498_v40 }
 0x11f   : > { %19714 = vmatprep.subr.bf16.mxu1 %v21910_v45  ;;  %v499_v45 = vcombine.high %v497_v41, %v497_v41 }
 0x121   : > { %19693 = vmatpush3.bf16.msra.mxu0 %v21911_v46  ;;  %v21959_v46 = vld [vmem:[%s23670_s21 + $0x740] sm:$0xff]  }
 0x122   : > { %19715 = vmatpush3.bf16.msra.mxu1 %v21912_v47  ;;  %19694 = vmatprep.subr.bf16.mxu0 %v21913_v48  ;;  %v21960_v47 = vld [vmem:[%s23670_s21 + $0x7c0] sm:$0xff]   ;;  %v1416_v48 = vpack.c.bf16 %v499_v45, %v499_v45  ;;  %v21998_v45 = vld [vmem:[%s23670_s21 + $0x808] sm:$0xff]  }
 0x123   : > { %19716 = vmatprep.subr.bf16.mxu1 %v21914_v49  ;;  %v21961_v49 = vld [vmem:[%s23670_s21 + $0x700] sm:$0xff]  }
 0x125   : > { %19695 = vmatpush3.bf16.msra.mxu0 %v21915_v50  ;;  %v1413_v50 = vpack.c.bf16 %v490_v36, %v490_v36  ;;  %v21993_v36 = vld [vmem:[%s23670_s21 + $0x8c0] sm:$0xff]  }
 0x126   : > { %19717 = vmatpush3.bf16.msra.mxu1 %v21916_v51  ;;  %19696 = vmatprep.subr.bf16.mxu0 %v21917_v52  ;;  %v1415_v51 = vpack.c.bf16 %v497_v41, %v497_v41  ;;  %v21962_v52 = vld [vmem:[%s23670_s21 + $0x780] sm:$0xff]  }
 0x127   : > { %19718 = vmatprep.subr.bf16.mxu1 %v21918_v53  ;;  %v21963_v53 = vld [vmem:[%s23670_s21 + $0x748] sm:$0xff]   ;;  %v21995_v41 = vld [vmem:[%s23670_s21 + $0x880] sm:$0xff]  }
 0x129   : > { %19697 = vmatpush3.bf16.msra.mxu0 %v21919_v54  ;;  %v21964_v54 = vld [vmem:[%s23670_s21 + $0x7c8] sm:$0xff]  }
 0x12a   : > { %19719 = vmatpush3.bf16.msra.mxu1 %v21920_v56  ;;  %19698 = vmatprep.subr.bf16.mxu0 %v21921_v59  ;;  %v21966_v56 = vld [vmem:[%s23670_s21 + $0x788] sm:$0xff]   ;;  %v21969_v59 = vld [vmem:[%s23670_s21 + $0x710] sm:$0xff]  }
 0x12b   : > { %19720 = vmatprep.subr.bf16.mxu1 %v21922_v60  ;;  %v21970_v60 = vld [vmem:[%s23670_s21 + $0x790] sm:$0xff]  }
 0x12d   : > { %19699 = vmatpush3.bf16.msra.mxu0 %v21923_v63  ;;  %v21973_v63 = vld [vmem:[%s23670_s21 + $0x718] sm:$0xff]  }
 0x12e   : > { %19721 = vmatpush3.bf16.msra.mxu1 %v21924_v0  ;;  %19728 = vmatprep.subr.bf16.mxu0 %v21926_v3  ;;  %v21974_v0 = vld [vmem:[%s23670_s21 + $0x798] sm:$0xff]   ;;  %v21977_v3 = vld [vmem:[%s23670_s21 + $0x720] sm:$0xff]  }
 0x12f   : > { %19750 = vmatprep.subr.bf16.mxu1 %v21927_v5  ;;  %v21979_v5 = vld [vmem:[%s23670_s21 + $0x768] sm:$0xff]  }
 0x130   : > { %14303 = vmatmul.mubr.bf16.vlgmr.msra.gmra.mrb[20].mxu0 %v1409_v7  ;;  %v21981_v7 = vld [vmem:[%s23670_s21 + $0x728] sm:$0xff]  }
 0x131   : > { %14343 = vmatmul.mubr.bf16.vlgmr.msra.gmra.mrb[20].mxu1 %v1411_v8  ;;  %19729 = vmatpush3.bf16.msra.mxu0 %v21928_v6  ;;  %v21980_v6 = vld [vmem:[%s23670_s21 + $0x7e8] sm:$0xff]  }
 0x132   : > { %19751 = vmatpush3.bf16.msra.mxu1 %v21929_v9  ;;  %19730 = vmatprep.subr.bf16.mxu0 %v21930_v10  ;;  %v21982_v8 = vld [vmem:[%s23670_s21 + $0x7a8] sm:$0xff]   ;;  %v21983_v9 = vld [vmem:[%s23670_s21 + $0x770] sm:$0xff]  }
 0x133   : > { %19752 = vmatprep.subr.bf16.mxu1 %v21931_v11  ;;  %14382 = vmatprep.mubr.bf16.mxu0 %v1414_v44  ;;  %v21984_v10 = vld [vmem:[%s23670_s21 + $0x7f0] sm:$0xff]   ;;  %v21997_v44 = vld [vmem:[%s23670_s21 + $0x8c8] sm:$0xff]  }
 0x134   : > { %14422 = vmatprep.mubr.bf16.mxu1 %v1416_v48  ;;  %v22001_v48 = vld [vmem:[%s23670_s21 + $0x8d0] sm:$0xff]  }
 0x135   : > { %19731 = vmatpush3.bf16.msra.mxu0 %v21932_v12 }
 0x136   : > { %19753 = vmatpush3.bf16.msra.mxu1 %v21933_v13  ;;  %19732 = vmatprep.subr.bf16.mxu0 %v21934_v14  ;;  %v21985_v13 = vld [vmem:[%s23670_s21 + $0x730] sm:$0xff]  }
 0x137   : > { %19754 = vmatprep.subr.bf16.mxu1 %v21935_v15  ;;  %v21986_v14 = vld [vmem:[%s23670_s21 + $0x7b0] sm:$0xff]  }
 0x139   : > { %19733 = vmatpush3.bf16.msra.mxu0 %v21936_v16 }
 0x13a   : > { %19755 = vmatpush3.bf16.msra.mxu1 %v21937_v17  ;;  %19734 = vmatprep.subr.bf16.mxu0 %v21938_v18  ;;  %v21987_v17 = vld [vmem:[%s23670_s21 + $0x778] sm:$0xff]  }
 0x13b   : > { %19756 = vmatprep.subr.bf16.mxu1 %v21939_v19  ;;  %v21988_v18 = vld [vmem:[%s23670_s21 + $0x7f8] sm:$0xff]  }
 0x13c   : > { %v292_v19 = vld [vmem:[%s23684_s15 + $0x38] sm:$0xff] }
 0x13d   : > { %19735 = vmatpush3.bf16.msra.mxu0 %v21940_v20 }
 0x13e   : > { %19757 = vmatpush3.bf16.msra.mxu1 %v21941_v21  ;;  %19736 = vmatprep.subr.bf16.mxu0 %v21942_v22 }
 0x13f   : > { %19758 = vmatprep.subr.bf16.mxu1 %v21943_v23 }
 0x141   : > { %19737 = vmatpush3.bf16.msra.mxu0 %v21944_v24  ;;  %v507_v24 = vrot.slane %v292_v19, %v23723_v42 }
 0x142   : > { %19759 = vmatpush3.bf16.msra.mxu1 %v21945_v25  ;;  %19738 = vmatprep.subr.bf16.mxu0 %v21946_v26 }
 0x143   : > { %19760 = vmatprep.subr.bf16.mxu1 %v21947_v27  ;;  %v500_v27 = vcombine.high %v292_v19, %v292_v19  ;;  %v22022_v19 = vld [vmem:[%s23670_s21 + $0x838] sm:$0xff]  }
 0x145   : > { %19739 = vmatpush3.bf16.msra.mxu0 %v21948_v28 }
 0x146   : > { %19761 = vmatpush3.bf16.msra.mxu1 %v21949_v29  ;;  %19740 = vmatprep.subr.bf16.mxu0 %v21950_v30  ;;  %v21989_v29 = vld [vmem:[%s23670_s21 + $0x738] sm:$0xff]   ;;  %v515_v30 = vcombine.high %v507_v24, %v507_v24 }
 0x147   : > { %19762 = vmatprep.subr.bf16.mxu1 %v21951_v31  ;;  %v21990_v31 = vld [vmem:[%s23670_s21 + $0x7b8] sm:$0xff]  }
 0x149   : > { %19741 = vmatpush3.bf16.msra.mxu0 %v21952_v32  ;;  %v514_v32 = vrot.slane %v500_v27, %v23723_v42  ;;  %v22026_v27 = vld [vmem:[%s23670_s21 + $0x9c0] sm:$0xff]  }
 0x14a   : > { %19763 = vmatpush3.bf16.msra.mxu1 %v21953_v33  ;;  %19742 = vmatprep.subr.bf16.mxu0 %v21954_v35  ;;  %v1418_v33 = vpack.c.bf16 %v515_v30, %v515_v30 }
 0x14b   : > { %19764 = vmatprep.subr.bf16.mxu1 %v21955_v38  ;;  %v516_v35 = vcombine.high %v514_v32, %v514_v32  ;;  %v1419_v40 = vpack.c.bf16 %v514_v32, %v514_v32  ;;  %v22028_v32 = vld [vmem:[%s23670_s21 + $0x980] sm:$0xff]  }
 0x14d   : > { %19743 = vmatpush3.bf16.msra.mxu0 %v21956_v39  ;;  %v1420_v38 = vpack.c.bf16 %v516_v35, %v516_v35  ;;  %v1417_v39 = vpack.c.bf16 %v507_v24, %v507_v24  ;;  %v22025_v24 = vld [vmem:[%s23670_s21 + $0x940] sm:$0xff]   ;;  %v22031_v35 = vld [vmem:[%s23670_s21 + $0x908] sm:$0xff]  }
 0x14e   : > { %19765 = vmatpush3.bf16.msra.mxu1 %v21957_v43  ;;  %19772 = vmatprep.subr.bf16.mxu0 %v21959_v46  ;;  %v21996_v43 = vld [vmem:[%s23670_s21 + $0x848] sm:$0xff]  }
 0x14f   : > { %19794 = vmatprep.subr.bf16.mxu1 %v21960_v47  ;;  %v21999_v46 = vld [vmem:[%s23670_s21 + $0x888] sm:$0xff]   ;;  %v22000_v47 = vld [vmem:[%s23670_s21 + $0x850] sm:$0xff]  }
 0x150   : > { %14383 = vmatmul.mubr.bf16.vlgmr.msra.gmra.mrb[24].mxu0 %v1413_v50  ;;  %v22003_v50 = vld [vmem:[%s23670_s21 + $0x890] sm:$0xff]  }
 0x151   : > { %14423 = vmatmul.mubr.bf16.vlgmr.msra.gmra.mrb[24].mxu1 %v1415_v51  ;;  %19773 = vmatpush3.bf16.msra.mxu0 %v21961_v49  ;;  %v22002_v49 = vld [vmem:[%s23670_s21 + $0x810] sm:$0xff]   ;;  %v22004_v51 = vld [vmem:[%s23670_s21 + $0x858] sm:$0xff]  }
 0x152   : > { %19795 = vmatpush3.bf16.msra.mxu1 %v21962_v52  ;;  %19774 = vmatprep.subr.bf16.mxu0 %v21963_v53  ;;  %v22005_v52 = vld [vmem:[%s23670_s21 + $0x8d8] sm:$0xff]  }
 0x153   : > { %19796 = vmatprep.subr.bf16.mxu1 %v21964_v54  ;;  %14462 = vmatprep.mubr.bf16.mxu0 %v1418_v33  ;;  %v22006_v53 = vld [vmem:[%s23670_s21 + $0x818] sm:$0xff]   ;;  %v22029_v33 = vld [vmem:[%s23670_s21 + $0x948] sm:$0xff]  }
 0x154   : > { %14502 = vmatprep.mubr.bf16.mxu1 %v1420_v38  ;;  %v22007_v54 = vld [vmem:[%s23670_s21 + $0x898] sm:$0xff]   ;;  %v22034_v38 = vld [vmem:[%s23670_s21 + $0x9d0] sm:$0xff]  }
 0x155   : > { %19775 = vmatpush3.bf16.msra.mxu0 %v21965_v55  ;;  %v22008_v55 = vld [vmem:[%s23670_s21 + $0x860] sm:$0xff]  }
 0x156   : > { %19797 = vmatpush3.bf16.msra.mxu1 %v21966_v56  ;;  %19776 = vmatprep.subr.bf16.mxu0 %v21967_v57  ;;  %v22009_v56 = vld [vmem:[%s23670_s21 + $0x8e0] sm:$0xff]  }
 0x157   : > { %19798 = vmatprep.subr.bf16.mxu1 %v21968_v58  ;;  %v22010_v57 = vld [vmem:[%s23670_s21 + $0x820] sm:$0xff]  }
 0x158   : > { %v22011_v58 = vld [vmem:[%s23670_s21 + $0x8a0] sm:$0xff]  }
 0x159   : > { %19777 = vmatpush3.bf16.msra.mxu0 %v21969_v59  ;;  %v22012_v59 = vld [vmem:[%s23670_s21 + $0x868] sm:$0xff]  }
 0x15a   : > { %19799 = vmatpush3.bf16.msra.mxu1 %v21970_v60  ;;  %19778 = vmatprep.subr.bf16.mxu0 %v21971_v61  ;;  %v22013_v60 = vld [vmem:[%s23670_s21 + $0x8e8] sm:$0xff]  }
 0x15b   : > { %19800 = vmatprep.subr.bf16.mxu1 %v21972_v62  ;;  %v22014_v61 = vld [vmem:[%s23670_s21 + $0x828] sm:$0xff]  }
 0x15c   : > { %v22015_v62 = vld [vmem:[%s23670_s21 + $0x8a8] sm:$0xff]  }
 0x15d   : > { %19779 = vmatpush3.bf16.msra.mxu0 %v21973_v63  ;;  %v22016_v63 = vld [vmem:[%s23670_s21 + $0x870] sm:$0xff]  }
 0x15e   : > { %19801 = vmatpush3.bf16.msra.mxu1 %v21974_v0  ;;  %19780 = vmatprep.subr.bf16.mxu0 %v21975_v1  ;;  %v22017_v0 = vld [vmem:[%s23670_s21 + $0x8f0] sm:$0xff]  }
 0x15f   : > { %19802 = vmatprep.subr.bf16.mxu1 %v21976_v2 }
 0x161   : > { %19781 = vmatpush3.bf16.msra.mxu0 %v21977_v3  ;;  %v22018_v3 = vld [vmem:[%s23670_s21 + $0x830] sm:$0xff]  }
 0x162   : > { %19803 = vmatpush3.bf16.msra.mxu1 %v21978_v4  ;;  %19782 = vmatprep.subr.bf16.mxu0 %v21979_v5  ;;  %v22019_v4 = vld [vmem:[%s23670_s21 + $0x8b0] sm:$0xff]  }
 0x163   : > { %19804 = vmatprep.subr.bf16.mxu1 %v21980_v6  ;;  %v19480_v11 = vpop.f32.mrb[0].mxu0 }
 0x164   : > { %v19502_v12 = vpop.f32.mrb[0].mxu1  ;;  %v19481_v15 = vpop.f32.mrb[1].mxu0 }
 0x165   : > { %v19503_v16 = vpop.f32.mrb[1].mxu1  ;;  %v19482_v20 = vadd.f32 %v19481_v15, %v19480_v11  ;;  %v19483_v22 = vpop.f32.mrb[2].mxu0  ;;  %19783 = vmatpush3.bf16.msra.mxu0 %v21981_v7  ;;  %v22020_v7 = vld [vmem:[%s23670_s21 + $0x878] sm:$0xff]  }
 0x166   : > { %v19504_v21 = vadd.f32 %v19503_v16, %v19502_v12  ;;  %v19505_v23 = vpop.f32.mrb[2].mxu1  ;;  %19805 = vmatpush3.bf16.msra.mxu1 %v21982_v8  ;;  %v19484_v25 = vpop.f32.mrb[3].mxu0  ;;  %19784 = vmatprep.subr.bf16.mxu0 %v21983_v9  ;;  %v22021_v12 = vld [vmem:[%s23670_s21 + $0x8f8] sm:$0xff]  }
 0x167   : > { %v19506_v26 = vpop.f32.mrb[3].mxu1  ;;  %19806 = vmatprep.subr.bf16.mxu1 %v21984_v10 }
 0x168   : > { %v23967_v28 = vadd.f32 %v19504_v21, %v19482_v20  ;;  %v22023_v20 = vld [vmem:[%s23670_s21 + $0x8b8] sm:$0xff]  }
 0x169   : > { %19785 = vmatpush3.bf16.msra.mxu0 %v21985_v13  ;;  %v293_v13 = vld [vmem:[%s23684_s15 + $0x40] sm:$0xff] }
 0x16a   : > { %19807 = vmatpush3.bf16.msra.mxu1 %v21986_v14  ;;  %19786 = vmatprep.subr.bf16.mxu0 %v21987_v17  ;;  %v524_v16 = vrot.slane %v293_v13, %v23723_v42  ;;  %v517_v17 = vcombine.high %v293_v13, %v293_v13 }
 0x16b   : > { %19808 = vmatprep.subr.bf16.mxu1 %v21988_v18 }
 0x16c   : > { %v532_v21 = vcombine.high %v524_v16, %v524_v16  ;;  %v531_v22 = vrot.slane %v517_v17, %v23723_v42  ;;  %v1421_v30 = vpack.c.bf16 %v524_v16, %v524_v16  ;;  %v22059_v16 = vld [vmem:[%s23670_s21 + $0xac0] sm:$0xff]  }
 0x16d   : > { %19787 = vmatpush3.bf16.msra.mxu0 %v21989_v29 }
 0x16e   : > { %19809 = vmatpush3.bf16.msra.mxu1 %v21990_v31  ;;  %19816 = vmatprep.subr.bf16.mxu0 %v21992_v34  ;;  %v1422_v25 = vpack.c.bf16 %v532_v21, %v532_v21  ;;  %v533_v26 = vcombine.high %v531_v22, %v531_v22  ;;  %v1423_v31 = vpack.c.bf16 %v531_v22, %v531_v22  ;;  %v22030_v34 = vld [vmem:[%s23670_s21 + $0x9c8] sm:$0xff]   ;;  %v22061_v22 = vld [vmem:[%s23670_s21 + $0xa80] sm:$0xff]  }
 0x16f   : > { %19838 = vmatprep.subr.bf16.mxu1 %v21993_v36  ;;  %v22032_v36 = vld [vmem:[%s23670_s21 + $0x988] sm:$0xff]  }
 0x170   : > { %14463 = vmatmul.mubr.bf16.vlgmr.msra.gmra.mrb[28].mxu0 %v1417_v39  ;;  %v1424_v29 = vpack.c.bf16 %v533_v26, %v533_v26  ;;  %v22035_v39 = vld [vmem:[%s23670_s21 + $0x910] sm:$0xff]   ;;  %v22064_v26 = vld [vmem:[%s23670_s21 + $0xa08] sm:$0xff]  }
 0x171   : > { %14503 = vmatmul.mubr.bf16.vlgmr.msra.gmra.mrb[28].mxu1 %v1419_v40  ;;  %19817 = vmatpush3.bf16.msra.mxu0 %v21994_v37  ;;  %v22033_v37 = vld [vmem:[%s23670_s21 + $0x950] sm:$0xff]  }
 0x172   : > { %19839 = vmatpush3.bf16.msra.mxu1 %v21995_v41  ;;  %19818 = vmatprep.subr.bf16.mxu0 %v21996_v43  ;;  %v22036_v40 = vld [vmem:[%s23670_s21 + $0x990] sm:$0xff]   ;;  %v22037_v41 = vld [vmem:[%s23670_s21 + $0x958] sm:$0xff]  }
 0x173   : > { %19840 = vmatprep.subr.bf16.mxu1 %v21997_v44  ;;  %14542 = vmatprep.mubr.bf16.mxu0 %v1422_v25  ;;  %v22038_v43 = vld [vmem:[%s23670_s21 + $0x9d8] sm:$0xff]   ;;  %v22063_v25 = vld [vmem:[%s23670_s21 + $0xac8] sm:$0xff]  }
 0x174   : > { %14582 = vmatprep.mubr.bf16.mxu1 %v1424_v29  ;;  %v22039_v44 = vld [vmem:[%s23670_s21 + $0x918] sm:$0xff]   ;;  %v22067_v29 = vld [vmem:[%s23670_s21 + $0xad0] sm:$0xff]  }
 0x175   : > { %19819 = vmatpush3.bf16.msra.mxu0 %v21998_v45  ;;  %v22040_v45 = vld [vmem:[%s23670_s21 + $0x998] sm:$0xff]  }
 0x176   : > { %19841 = vmatpush3.bf16.msra.mxu1 %v21999_v46  ;;  %19820 = vmatprep.subr.bf16.mxu0 %v22000_v47  ;;  %v22041_v46 = vld [vmem:[%s23670_s21 + $0x960] sm:$0xff]  }
 0x177   : > { %19842 = vmatprep.subr.bf16.mxu1 %v22001_v48  ;;  %v22042_v47 = vld [vmem:[%s23670_s21 + $0x9e0] sm:$0xff]  }
 0x178   : > { %v22043_v48 = vld [vmem:[%s23670_s21 + $0x920] sm:$0xff]  }
 0x179   : > { %19821 = vmatpush3.bf16.msra.mxu0 %v22002_v49  ;;  %v22044_v49 = vld [vmem:[%s23670_s21 + $0x9a0] sm:$0xff]  }
 0x17a   : > { %19843 = vmatpush3.bf16.msra.mxu1 %v22003_v50  ;;  %19822 = vmatprep.subr.bf16.mxu0 %v22004_v51  ;;  %v22045_v50 = vld [vmem:[%s23670_s21 + $0x968] sm:$0xff]  }
 0x17b   : > { %19844 = vmatprep.subr.bf16.mxu1 %v22005_v52  ;;  %v22046_v51 = vld [vmem:[%s23670_s21 + $0x9e8] sm:$0xff]  }
 0x17c   : > { %v22047_v52 = vld [vmem:[%s23670_s21 + $0x928] sm:$0xff]  }
 0x17d   : > { %19823 = vmatpush3.bf16.msra.mxu0 %v22006_v53  ;;  %v22048_v53 = vld [vmem:[%s23670_s21 + $0x9a8] sm:$0xff]  }
 0x17e   : > { %19845 = vmatpush3.bf16.msra.mxu1 %v22007_v54  ;;  %19824 = vmatprep.subr.bf16.mxu0 %v22008_v55  ;;  %v22049_v54 = vld [vmem:[%s23670_s21 + $0x970] sm:$0xff]  }
 0x17f   : > { %19846 = vmatprep.subr.bf16.mxu1 %v22009_v56  ;;  %v22050_v55 = vld [vmem:[%s23670_s21 + $0x9f0] sm:$0xff]  }
 0x181   : > { %19825 = vmatpush3.bf16.msra.mxu0 %v22010_v57 }
 0x182   : > { %19847 = vmatpush3.bf16.msra.mxu1 %v22011_v58  ;;  %19826 = vmatprep.subr.bf16.mxu0 %v22012_v59  ;;  %v22051_v58 = vld [vmem:[%s23670_s21 + $0x930] sm:$0xff]  }
 0x183   : > { %19848 = vmatprep.subr.bf16.mxu1 %v22013_v60  ;;  %v19524_v1 = vpop.f32.mrb[4].mxu0  ;;  %v22052_v59 = vld [vmem:[%s23670_s21 + $0x9b0] sm:$0xff]  }
 0x184   : > { %v19546_v2 = vpop.f32.mrb[4].mxu1  ;;  %v19525_v5 = vpop.f32.mrb[5].mxu0 }
 0x185   : > { %v19547_v6 = vpop.f32.mrb[5].mxu1  ;;  %v19526_v8 = vadd.f32 %v19525_v5, %v19524_v1  ;;  %v19527_v10 = vpop.f32.mrb[6].mxu0  ;;  %19827 = vmatpush3.bf16.msra.mxu0 %v22014_v61 }
 0x186   : > { %v19548_v9 = vadd.f32 %v19547_v6, %v19546_v2  ;;  %v19549_v11 = vpop.f32.mrb[6].mxu1  ;;  %19849 = vmatpush3.bf16.msra.mxu1 %v22015_v62  ;;  %v19528_v14 = vpop.f32.mrb[7].mxu0  ;;  %19828 = vmatprep.subr.bf16.mxu0 %v22016_v63  ;;  %v22053_v2 = vld [vmem:[%s23670_s21 + $0x978] sm:$0xff]  }
 0x187   : > { %v19550_v15 = vpop.f32.mrb[7].mxu1  ;;  %19850 = vmatprep.subr.bf16.mxu1 %v22017_v0  ;;  %v13985_v18 = vadd.f32 %v19526_v8, %v23967_v28  ;;  %v22027_v28 = vld [vmem:[%s23670_s21 + $0x900] sm:$0xff]   ;;  %v22055_v8 = vld [vmem:[%s23670_s21 + $0x938] sm:$0xff]  }
 0x188   : > { %v22058_v15 = vld [vmem:[%s23670_s21 + $0xa40] sm:$0xff]  }
 0x189   : > { %v24008_v23 = vadd.f32 %v19548_v9, %v13985_v18  ;;  %19829 = vmatpush3.bf16.msra.mxu0 %v22018_v3  ;;  %v22054_v3 = vld [vmem:[%s23670_s21 + $0x9f8] sm:$0xff]  }
 0x18a   : > { %19851 = vmatpush3.bf16.msra.mxu1 %v22019_v4  ;;  %19830 = vmatprep.subr.bf16.mxu0 %v22020_v7  ;;  %v294_v7 = vld [vmem:[%s23684_s15 + $0x48] sm:$0xff] }
 0x18b   : > { %19852 = vmatprep.subr.bf16.mxu1 %v22021_v12  ;;  %v541_v9 = vrot.slane %v294_v7, %v23723_v42  ;;  %v534_v10 = vcombine.high %v294_v7, %v294_v7  ;;  %v22056_v12 = vld [vmem:[%s23670_s21 + $0x9b8] sm:$0xff]   ;;  %v22092_v7 = vld [vmem:[%s23670_s21 + $0xbc0] sm:$0xff]  }
 0x18d   : > { %19831 = vmatpush3.bf16.msra.mxu0 %v22022_v19  ;;  %v549_v13 = vcombine.high %v541_v9, %v541_v9  ;;  %v548_v14 = vrot.slane %v534_v10, %v23723_v42  ;;  %v1425_v19 = vpack.c.bf16 %v541_v9, %v541_v9  ;;  %v22093_v9 = vld [vmem:[%s23670_s21 + $0xb00] sm:$0xff]  }
 0x18e   : > { %19853 = vmatpush3.bf16.msra.mxu1 %v22023_v20  ;;  %19860 = vmatprep.subr.bf16.mxu0 %v22025_v24  ;;  %v22060_v20 = vld [vmem:[%s23670_s21 + $0xa00] sm:$0xff]   ;;  %v22062_v24 = vld [vmem:[%s23670_s21 + $0xa48] sm:$0xff]  }
 0x18f   : > { %19882 = vmatprep.subr.bf16.mxu1 %v22026_v27  ;;  %v1426_v17 = vpack.c.bf16 %v549_v13, %v549_v13  ;;  %v550_v18 = vcombine.high %v548_v14, %v548_v14  ;;  %v1427_v21 = vpack.c.bf16 %v548_v14, %v548_v14  ;;  %v22065_v27 = vld [vmem:[%s23670_s21 + $0xa88] sm:$0xff]  }
 0x190   : > { %14543 = vmatmul.mubr.bf16.vlgmr.msra.gmra.mrb[32].mxu0 %v1421_v30  ;;  %v22068_v30 = vld [vmem:[%s23670_s21 + $0xa10] sm:$0xff]   ;;  %v22095_v14 = vld [vmem:[%s23670_s21 + $0xb48] sm:$0xff]  }
 0x191   : > { %14583 = vmatmul.mubr.bf16.vlgmr.msra.gmra.mrb[32].mxu1 %v1423_v31  ;;  %19861 = vmatpush3.bf16.msra.mxu0 %v22027_v28  ;;  %v22066_v28 = vld [vmem:[%s23670_s21 + $0xa50] sm:$0xff]  }
 0x192   : > { %19883 = vmatpush3.bf16.msra.mxu1 %v22028_v32  ;;  %19862 = vmatprep.subr.bf16.mxu0 %v22029_v33  ;;  %v22069_v31 = vld [vmem:[%s23670_s21 + $0xa90] sm:$0xff]   ;;  %v22070_v32 = vld [vmem:[%s23670_s21 + $0xa58] sm:$0xff]  }
 0x193   : > { %19884 = vmatprep.subr.bf16.mxu1 %v22030_v34  ;;  %14622 = vmatprep.mubr.bf16.mxu0 %v1426_v17  ;;  %v22071_v33 = vld [vmem:[%s23670_s21 + $0xad8] sm:$0xff]   ;;  %v22097_v17 = vld [vmem:[%s23670_s21 + $0xb08] sm:$0xff]  }
 0x194   : > { %v22072_v34 = vld [vmem:[%s23670_s21 + $0xa18] sm:$0xff]  }
 0x195   : > { %19863 = vmatpush3.bf16.msra.mxu0 %v22031_v35  ;;  %v22073_v35 = vld [vmem:[%s23670_s21 + $0xa98] sm:$0xff]  }
 0x196   : > { %19885 = vmatpush3.bf16.msra.mxu1 %v22032_v36  ;;  %19864 = vmatprep.subr.bf16.mxu0 %v22033_v37  ;;  %v22074_v36 = vld [vmem:[%s23670_s21 + $0xa60] sm:$0xff]  }
 0x197   : > { %19886 = vmatprep.subr.bf16.mxu1 %v22034_v38  ;;  %v22075_v37 = vld [vmem:[%s23670_s21 + $0xae0] sm:$0xff]  }
 0x198   : > { %v22076_v38 = vld [vmem:[%s23670_s21 + $0xa20] sm:$0xff]  }
 0x199   : > { %19865 = vmatpush3.bf16.msra.mxu0 %v22035_v39  ;;  %v22077_v39 = vld [vmem:[%s23670_s21 + $0xaa0] sm:$0xff]  }
 0x19a   : > { %19887 = vmatpush3.bf16.msra.mxu1 %v22036_v40  ;;  %19866 = vmatprep.subr.bf16.mxu0 %v22037_v41  ;;  %v22078_v40 = vld [vmem:[%s23670_s21 + $0xa68] sm:$0xff]  }
 0x19b   : > { %19888 = vmatprep.subr.bf16.mxu1 %v22038_v43  ;;  %v22079_v41 = vld [vmem:[%s23670_s21 + $0xae8] sm:$0xff]  }
 0x19c   : > { %v22080_v43 = vld [vmem:[%s23670_s21 + $0xa28] sm:$0xff]  }
 0x19d   : > { %19867 = vmatpush3.bf16.msra.mxu0 %v22039_v44  ;;  %v22081_v44 = vld [vmem:[%s23670_s21 + $0xaa8] sm:$0xff]  }
 0x19e   : > { %19889 = vmatpush3.bf16.msra.mxu1 %v22040_v45  ;;  %19868 = vmatprep.subr.bf16.mxu0 %v22041_v46  ;;  %v22082_v45 = vld [vmem:[%s23670_s21 + $0xa70] sm:$0xff]  }
 0x19f   : > { %19890 = vmatprep.subr.bf16.mxu1 %v22042_v47 }
 0x1a1   : > { %19869 = vmatpush3.bf16.msra.mxu0 %v22043_v48  ;;  %v22083_v48 = vld [vmem:[%s23670_s21 + $0xaf0] sm:$0xff]  }
 0x1a2   : > { %19891 = vmatpush3.bf16.msra.mxu1 %v22044_v49  ;;  %19870 = vmatprep.subr.bf16.mxu0 %v22045_v50  ;;  %v22084_v49 = vld [vmem:[%s23670_s21 + $0xa30] sm:$0xff]  }
 0x1a3   : > { %19892 = vmatprep.subr.bf16.mxu1 %v22046_v51  ;;  %v19568_v56 = vpop.f32.mrb[8].mxu0 }
 0x1a4   : > { %v19590_v57 = vpop.f32.mrb[8].mxu1  ;;  %v19569_v60 = vpop.f32.mrb[9].mxu0 }
 0x1a5   : > { %v19591_v61 = vpop.f32.mrb[9].mxu1  ;;  %v19570_v62 = vadd.f32 %v19569_v60, %v19568_v56  ;;  %v19571_v0 = vpop.f32.mrb[10].mxu0  ;;  %19871 = vmatpush3.bf16.msra.mxu0 %v22047_v52  ;;  %v22085_v52 = vld [vmem:[%s23670_s21 + $0xab0] sm:$0xff]  }
 0x1a6   : > { %v19592_v63 = vadd.f32 %v19591_v61, %v19590_v57  ;;  %v19593_v1 = vpop.f32.mrb[10].mxu1  ;;  %19893 = vmatpush3.bf16.msra.mxu1 %v22048_v53  ;;  %v19572_v4 = vpop.f32.mrb[11].mxu0  ;;  %19872 = vmatprep.subr.bf16.mxu0 %v22049_v54  ;;  %v22086_v57 = vld [vmem:[%s23670_s21 + $0xa78] sm:$0xff]  }
 0x1a7   : > { %v19594_v5 = vpop.f32.mrb[11].mxu1  ;;  %19894 = vmatprep.subr.bf16.mxu1 %v22050_v55  ;;  %v14065_v6 = vadd.f32 %v19570_v62, %v24008_v23  ;;  %v1428_v23 = vpack.c.bf16 %v550_v18, %v550_v18  ;;  %v22088_v62 = vld [vmem:[%s23670_s21 + $0xa38] sm:$0xff]   ;;  %v22091_v4 = vld [vmem:[%s23670_s21 + $0xb40] sm:$0xff]   ;;  %v22098_v18 = vld [vmem:[%s23670_s21 + $0xb88] sm:$0xff]  }
 0x1a8   : > { %v22089_v1 = vld [vmem:[%s23670_s21 + $0xab8] sm:$0xff]  }
 0x1a9   : > { %v24044_v11 = vadd.f32 %v19592_v63, %v14065_v6  ;;  %19873 = vmatpush3.bf16.msra.mxu0 %v22051_v58  ;;  %14662 = vmatprep.mubr.bf16.mxu1 %v1428_v23  ;;  %v22087_v58 = vld [vmem:[%s23670_s21 + $0xaf8] sm:$0xff]   ;;  %v295_v63 = vld [vmem:[%s23684_s15 + $0x50] sm:$0xff] }
 0x1aa   : > { %19895 = vmatpush3.bf16.msra.mxu1 %v22052_v59  ;;  %19874 = vmatprep.subr.bf16.mxu0 %v22053_v2  ;;  %v558_v2 = vrot.slane %v295_v63, %v23723_v42  ;;  %v22103_v23 = vld [vmem:[%s23670_s21 + $0xb58] sm:$0xff]  }
 0x1ab   : > { %19896 = vmatprep.subr.bf16.mxu1 %v22054_v3  ;;  %v551_v3 = vcombine.high %v295_v63, %v295_v63 }
 0x1ac   : > { %v566_v5 = vcombine.high %v558_v2, %v558_v2 }
 0x1ad   : > { %19875 = vmatpush3.bf16.msra.mxu0 %v22055_v8  ;;  %v565_v6 = vrot.slane %v551_v3, %v23723_v42  ;;  %v1429_v8 = vpack.c.bf16 %v558_v2, %v558_v2  ;;  %v22126_v2 = vld [vmem:[%s23670_s21 + $0xc00] sm:$0xff]  }
 0x1ae   : > { %19897 = vmatpush3.bf16.msra.mxu1 %v22056_v12  ;;  %19904 = vmatprep.subr.bf16.mxu0 %v22058_v15  ;;  %v1430_v10 = vpack.c.bf16 %v566_v5, %v566_v5  ;;  %v22094_v12 = vld [vmem:[%s23670_s21 + $0xb80] sm:$0xff]  }
 0x1af   : > { %19926 = vmatprep.subr.bf16.mxu1 %v22059_v16  ;;  %v1431_v13 = vpack.c.bf16 %v565_v6, %v565_v6  ;;  %v22096_v16 = vld [vmem:[%s23670_s21 + $0xbc8] sm:$0xff]  }
 0x1b0   : > { %14623 = vmatmul.mubr.bf16.vlgmr.msra.gmra.mrb[36].mxu0 %v1425_v19  ;;  %v22099_v19 = vld [vmem:[%s23670_s21 + $0xb50] sm:$0xff]  }
 0x1b1   : > { %14663 = vmatmul.mubr.bf16.vlgmr.msra.gmra.mrb[36].mxu1 %v1427_v21  ;;  %19905 = vmatpush3.bf16.msra.mxu0 %v22060_v20  ;;  %v22100_v20 = vld [vmem:[%s23670_s21 + $0xbd0] sm:$0xff]  }
 0x1b2   : > { %19927 = vmatpush3.bf16.msra.mxu1 %v22061_v22  ;;  %19906 = vmatprep.subr.bf16.mxu0 %v22062_v24  ;;  %v22101_v21 = vld [vmem:[%s23670_s21 + $0xb10] sm:$0xff]   ;;  %v22104_v24 = vld [vmem:[%s23670_s21 + $0xbd8] sm:$0xff]  }
 0x1b3   : > { %19928 = vmatprep.subr.bf16.mxu1 %v22063_v25  ;;  %14702 = vmatprep.mubr.bf16.mxu0 %v1430_v10  ;;  %v22102_v22 = vld [vmem:[%s23670_s21 + $0xb90] sm:$0xff]   ;;  %v22105_v25 = vld [vmem:[%s23670_s21 + $0xb18] sm:$0xff]   ;;  %v22131_v10 = vld [vmem:[%s23670_s21 + $0xc88] sm:$0xff]  }
 0x1b5   : > { %19907 = vmatpush3.bf16.msra.mxu0 %v22064_v26  ;;  %v22106_v26 = vld [vmem:[%s23670_s21 + $0xb98] sm:$0xff]  }
 0x1b6   : > { %19929 = vmatpush3.bf16.msra.mxu1 %v22065_v27  ;;  %19908 = vmatprep.subr.bf16.mxu0 %v22066_v28  ;;  %v22107_v27 = vld [vmem:[%s23670_s21 + $0xb60] sm:$0xff]  }
 0x1b7   : > { %19930 = vmatprep.subr.bf16.mxu1 %v22067_v29  ;;  %v22108_v28 = vld [vmem:[%s23670_s21 + $0xbe0] sm:$0xff]  }
 0x1b8   : > { %v22109_v29 = vld [vmem:[%s23670_s21 + $0xb20] sm:$0xff]  }
 0x1b9   : > { %19909 = vmatpush3.bf16.msra.mxu0 %v22068_v30  ;;  %v22110_v30 = vld [vmem:[%s23670_s21 + $0xba0] sm:$0xff]  }
 0x1ba   : > { %19931 = vmatpush3.bf16.msra.mxu1 %v22069_v31  ;;  %19910 = vmatprep.subr.bf16.mxu0 %v22070_v32  ;;  %v22111_v31 = vld [vmem:[%s23670_s21 + $0xb68] sm:$0xff]  }
 0x1bb   : > { %19932 = vmatprep.subr.bf16.mxu1 %v22071_v33  ;;  %v22112_v32 = vld [vmem:[%s23670_s21 + $0xbe8] sm:$0xff]  }
 0x1bc   : > { %v22113_v33 = vld [vmem:[%s23670_s21 + $0xb28] sm:$0xff]  }
 0x1bd   : > { %19911 = vmatpush3.bf16.msra.mxu0 %v22072_v34  ;;  %v22114_v34 = vld [vmem:[%s23670_s21 + $0xba8] sm:$0xff]  }
 0x1be   : > { %19933 = vmatpush3.bf16.msra.mxu1 %v22073_v35  ;;  %19912 = vmatprep.subr.bf16.mxu0 %v22074_v36  ;;  %v22115_v35 = vld [vmem:[%s23670_s21 + $0xb70] sm:$0xff]  }
 0x1bf   : > { %19934 = vmatprep.subr.bf16.mxu1 %v22075_v37 }
 0x1c1   : > { %19913 = vmatpush3.bf16.msra.mxu0 %v22076_v38  ;;  %v22116_v38 = vld [vmem:[%s23670_s21 + $0xbf0] sm:$0xff]  }
 0x1c2   : > { %19935 = vmatpush3.bf16.msra.mxu1 %v22077_v39  ;;  %19914 = vmatprep.subr.bf16.mxu0 %v22078_v40  ;;  %v22117_v39 = vld [vmem:[%s23670_s21 + $0xb30] sm:$0xff]  }
 0x1c3   : > { %v19612_v46 = vpop.f32.mrb[12].mxu0  ;;  %19936 = vmatprep.subr.bf16.mxu1 %v22079_v41 }
 0x1c4   : > { %v19634_v47 = vpop.f32.mrb[12].mxu1  ;;  %v19613_v50 = vpop.f32.mrb[13].mxu0 }
 0x1c5   : > { %v19635_v51 = vpop.f32.mrb[13].mxu1  ;;  %v19614_v53 = vadd.f32 %v19613_v50, %v19612_v46  ;;  %v19615_v55 = vpop.f32.mrb[14].mxu0  ;;  %19915 = vmatpush3.bf16.msra.mxu0 %v22080_v43 }
 0x1c6   : > { %v19636_v54 = vadd.f32 %v19635_v51, %v19634_v47  ;;  %v19637_v56 = vpop.f32.mrb[14].mxu1  ;;  %19937 = vmatpush3.bf16.msra.mxu1 %v22081_v44  ;;  %v19616_v59 = vpop.f32.mrb[15].mxu0  ;;  %19916 = vmatprep.subr.bf16.mxu0 %v22082_v45  ;;  %v22118_v47 = vld [vmem:[%s23670_s21 + $0xbb0] sm:$0xff]  }
 0x1c7   : > { %v19638_v60 = vpop.f32.mrb[15].mxu1  ;;  %v14145_v61 = vadd.f32 %v19614_v53, %v24044_v11  ;;  %19938 = vmatprep.subr.bf16.mxu1 %v22083_v48  ;;  %v567_v11 = vcombine.high %v565_v6, %v565_v6  ;;  %v22119_v48 = vld [vmem:[%s23670_s21 + $0xb78] sm:$0xff]   ;;  %v22127_v6 = vld [vmem:[%s23670_s21 + $0xc80] sm:$0xff]  }
 0x1c8   : > { %v22121_v53 = vld [vmem:[%s23670_s21 + $0xb38] sm:$0xff]  }
 0x1c9   : > { %v24081_v0 = vadd.f32 %v19636_v54, %v14145_v61  ;;  %19917 = vmatpush3.bf16.msra.mxu0 %v22084_v49  ;;  %v1432_v15 = vpack.c.bf16 %v567_v11, %v567_v11  ;;  %v296_v55 = vld [vmem:[%s23684_s15 + $0x58] sm:$0xff] }
 0x1ca   : > { %19939 = vmatpush3.bf16.msra.mxu1 %v22085_v52  ;;  %19918 = vmatprep.subr.bf16.mxu0 %v22086_v57  ;;  %v22120_v52 = vld [vmem:[%s23670_s21 + $0xbf8] sm:$0xff]   ;;  %v575_v56 = vrot.slane %v296_v55, %v23723_v42  ;;  %v568_v57 = vcombine.high %v296_v55, %v296_v55  ;;  %v22133_v11 = vld [vmem:[%s23670_s21 + $0xcd0] sm:$0xff]   ;;  %v22159_v55 = vld [vmem:[%s23670_s21 + $0xd00] sm:$0xff]  }
 0x1cb   : > { %19940 = vmatprep.subr.bf16.mxu1 %v22087_v58  ;;  %14742 = vmatprep.mubr.bf16.mxu1 %v1432_v15  ;;  %v22124_v58 = vld [vmem:[%s23670_s21 + $0xc40] sm:$0xff]   ;;  %v22122_v59 = vld [vmem:[%s23670_s21 + $0xbb8] sm:$0xff]  }
 0x1cc   : > { %v583_v60 = vcombine.high %v575_v56, %v575_v56  ;;  %v582_v61 = vrot.slane %v568_v57, %v23723_v42  ;;  %v1433_v63 = vpack.c.bf16 %v575_v56, %v575_v56  ;;  %v22137_v15 = vld [vmem:[%s23670_s21 + $0xcd8] sm:$0xff]  }
 0x1cd   : > { %19919 = vmatpush3.bf16.msra.mxu0 %v22088_v62  ;;  %v22125_v62 = vld [vmem:[%s23670_s21 + $0xcc0] sm:$0xff]  }
 0x1ce   : > { %19941 = vmatpush3.bf16.msra.mxu1 %v22089_v1  ;;  %19948 = vmatprep.subr.bf16.mxu0 %v22091_v4  ;;  %v584_v1 = vcombine.high %v582_v61, %v582_v61  ;;  %v1435_v3 = vpack.c.bf16 %v582_v61, %v582_v61  ;;  %v22128_v4 = vld [vmem:[%s23670_s21 + $0xc48] sm:$0xff]  }
 0x1cf   : > { %19970 = vmatprep.subr.bf16.mxu1 %v22092_v7  ;;  %v22129_v7 = vld [vmem:[%s23670_s21 + $0xcc8] sm:$0xff]  }
 0x1d0   : > { %14703 = vmatmul.mubr.bf16.vlgmr.msra.gmra.mrb[40].mxu0 %v1429_v8  ;;  %v1436_v5 = vpack.c.bf16 %v584_v1, %v584_v1  ;;  %v22130_v8 = vld [vmem:[%s23670_s21 + $0xc08] sm:$0xff]   ;;  %v22165_v1 = vld [vmem:[%s23670_s21 + $0xd50] sm:$0xff]  }
 0x1d1   : > { %19949 = vmatpush3.bf16.msra.mxu0 %v22093_v9  ;;  %14743 = vmatmul.mubr.bf16.vlgmr.msra.gmra.mrb[40].mxu1 %v1431_v13  ;;  %v22132_v9 = vld [vmem:[%s23670_s21 + $0xc50] sm:$0xff]   ;;  %v22136_v13 = vld [vmem:[%s23670_s21 + $0xc58] sm:$0xff]  }
 0x1d2   : > { %19950 = vmatprep.subr.bf16.mxu0 %v22095_v14  ;;  %19971 = vmatpush3.bf16.msra.mxu1 %v22094_v12  ;;  %v22134_v12 = vld [vmem:[%s23670_s21 + $0xc10] sm:$0xff]  }
 0x1d3   : > { %19972 = vmatprep.subr.bf16.mxu1 %v22096_v16  ;;  %14822 = vmatprep.mubr.bf16.mxu1 %v1436_v5  ;;  %v22135_v14 = vld [vmem:[%s23670_s21 + $0xc90] sm:$0xff]   ;;  %v22138_v16 = vld [vmem:[%s23670_s21 + $0xc18] sm:$0xff]  }
 0x1d4   : > { %v22169_v5 = vld [vmem:[%s23670_s21 + $0xd58] sm:$0xff]  }
 0x1d5   : > { %19951 = vmatpush3.bf16.msra.mxu0 %v22097_v17  ;;  %v22140_v17 = vld [vmem:[%s23670_s21 + $0xc60] sm:$0xff]  }
 0x1d6   : > { %19952 = vmatprep.subr.bf16.mxu0 %v22099_v19  ;;  %19973 = vmatpush3.bf16.msra.mxu1 %v22098_v18  ;;  %v22139_v18 = vld [vmem:[%s23670_s21 + $0xc98] sm:$0xff]   ;;  %v22141_v19 = vld [vmem:[%s23670_s21 + $0xce0] sm:$0xff]  }
 0x1d7   : > { %19974 = vmatprep.subr.bf16.mxu1 %v22100_v20  ;;  %v22142_v20 = vld [vmem:[%s23670_s21 + $0xc20] sm:$0xff]  }
 0x1d9   : > { %19953 = vmatpush3.bf16.msra.mxu0 %v22101_v21  ;;  %v22144_v21 = vld [vmem:[%s23670_s21 + $0xc68] sm:$0xff]  }
 0x1da   : > { %19954 = vmatprep.subr.bf16.mxu0 %v22103_v23  ;;  %19975 = vmatpush3.bf16.msra.mxu1 %v22102_v22  ;;  %v22143_v22 = vld [vmem:[%s23670_s21 + $0xca0] sm:$0xff]   ;;  %v22145_v23 = vld [vmem:[%s23670_s21 + $0xce8] sm:$0xff]  }
 0x1db   : > { %19976 = vmatprep.subr.bf16.mxu1 %v22104_v24  ;;  %v22146_v24 = vld [vmem:[%s23670_s21 + $0xc28] sm:$0xff]  }
 0x1dd   : > { %19955 = vmatpush3.bf16.msra.mxu0 %v22105_v25 }
 0x1de   : > { %19956 = vmatprep.subr.bf16.mxu0 %v22107_v27  ;;  %19977 = vmatpush3.bf16.msra.mxu1 %v22106_v26  ;;  %v22147_v27 = vld [vmem:[%s23670_s21 + $0xca8] sm:$0xff]  }
 0x1df   : > { %19978 = vmatprep.subr.bf16.mxu1 %v22108_v28  ;;  %v22148_v28 = vld [vmem:[%s23670_s21 + $0xc70] sm:$0xff]  }
 0x1e1   : > { %19957 = vmatpush3.bf16.msra.mxu0 %v22109_v29 }
 0x1e2   : > { %19958 = vmatprep.subr.bf16.mxu0 %v22111_v31  ;;  %19979 = vmatpush3.bf16.msra.mxu1 %v22110_v30 }
 0x1e3   : > { %v19656_v36 = vpop.f32.mrb[16].mxu0  ;;  %19980 = vmatprep.subr.bf16.mxu1 %v22112_v32 }
 0x1e4   : > { %v19678_v37 = vpop.f32.mrb[16].mxu1  ;;  %v19657_v40 = vpop.f32.mrb[17].mxu0 }
 0x1e5   : > { %v19679_v41 = vpop.f32.mrb[17].mxu1  ;;  %v19658_v43 = vadd.f32 %v19657_v40, %v19656_v36  ;;  %v19659_v45 = vpop.f32.mrb[18].mxu0  ;;  %19959 = vmatpush3.bf16.msra.mxu0 %v22113_v33  ;;  %v22150_v36 = vld [vmem:[%s23670_s21 + $0xc30] sm:$0xff]  }
 0x1e6   : > { %v19680_v44 = vadd.f32 %v19679_v41, %v19678_v37  ;;  %v19681_v46 = vpop.f32.mrb[18].mxu1  ;;  %v19660_v49 = vpop.f32.mrb[19].mxu0  ;;  %19960 = vmatprep.subr.bf16.mxu0 %v22115_v35  ;;  %19981 = vmatpush3.bf16.msra.mxu1 %v22114_v34  ;;  %v22149_v35 = vld [vmem:[%s23670_s21 + $0xcf0] sm:$0xff]   ;;  %v22152_v41 = vld [vmem:[%s23670_s21 + $0xc78] sm:$0xff]  }
 0x1e7   : > { %v19682_v50 = vpop.f32.mrb[19].mxu1  ;;  %v14225_v51 = vadd.f32 %v19658_v43, %v24081_v0  ;;  %19982 = vmatprep.subr.bf16.mxu1 %v22116_v38  ;;  %v1434_v0 = vpack.c.bf16 %v583_v60, %v583_v60  ;;  %v22153_v43 = vld [vmem:[%s23670_s21 + $0xcf8] sm:$0xff]   ;;  %v22157_v49 = vld [vmem:[%s23670_s21 + $0xd40] sm:$0xff]   ;;  %v22161_v60 = vld [vmem:[%s23670_s21 + $0xd48] sm:$0xff]  }
 0x1e8   : > { %v22154_v45 = vld [vmem:[%s23670_s21 + $0xc38] sm:$0xff]  }
 0x1e9   : > { %v24118_v54 = vadd.f32 %v19680_v44, %v14225_v51  ;;  %19961 = vmatpush3.bf16.msra.mxu0 %v22117_v39  ;;  %14782 = vmatprep.mubr.bf16.mxu0 %v1434_v0  ;;  %v22151_v39 = vld [vmem:[%s23670_s21 + $0xcb0] sm:$0xff]   ;;  %v297_v46 = vld [vmem:[%s23684_s15 + $0x60] sm:$0xff]  ;;  %v22164_v0 = vld [vmem:[%s23670_s21 + $0xd88] sm:$0xff]  }
 0x1ea   : > { %19962 = vmatprep.subr.bf16.mxu0 %v22119_v48  ;;  %19983 = vmatpush3.bf16.msra.mxu1 %v22118_v47  ;;  %v592_v47 = vrot.slane %v297_v46, %v23723_v42  ;;  %v585_v48 = vcombine.high %v297_v46, %v297_v46  ;;  %v22155_v50 = vld [vmem:[%s23670_s21 + $0xcb8] sm:$0xff]  }
 0x1eb   : > { %19984 = vmatprep.subr.bf16.mxu1 %v22120_v52 }
 0x1ec   : > { %v600_v51 = vcombine.high %v592_v47, %v592_v47  ;;  %v599_v52 = vrot.slane %v585_v48, %v23723_v42  ;;  %v22192_v48 = vld [vmem:[%s23670_s21 + $0xe00] sm:$0xff]  }
 0x1ed   : > { %19963 = vmatpush3.bf16.msra.mxu0 %v22121_v53  ;;  %v22158_v53 = vld [vmem:[%s23670_s21 + $0xdc0] sm:$0xff]  }
 0x1ee   : > { %19992 = vmatprep.subr.bf16.mxu0 %v22124_v58  ;;  %19985 = vmatpush3.bf16.msra.mxu1 %v22122_v59  ;;  %v1438_v56 = vpack.c.bf16 %v600_v51, %v600_v51  ;;  %v601_v57 = vcombine.high %v599_v52, %v599_v52  ;;  %v22160_v58 = vld [vmem:[%s23670_s21 + $0xd80] sm:$0xff]   ;;  %v1439_v59 = vpack.c.bf16 %v599_v52, %v599_v52 }
 0x1ef   : > { %20014 = vmatprep.subr.bf16.mxu1 %v22125_v62  ;;  %v22162_v62 = vld [vmem:[%s23670_s21 + $0xdc8] sm:$0xff]   ;;  %v22193_v52 = vld [vmem:[%s23670_s21 + $0xe80] sm:$0xff]  }
 0x1f0   : > { %14783 = vmatmul.mubr.bf16.vlgmr.msra.gmra.mrb[44].mxu0 %v1433_v63  ;;  %v1440_v61 = vpack.c.bf16 %v601_v57, %v601_v57  ;;  %v22163_v63 = vld [vmem:[%s23670_s21 + $0xd08] sm:$0xff]   ;;  %v22199_v57 = vld [vmem:[%s23670_s21 + $0xed0] sm:$0xff]  }
 0x1f1   : > { %19993 = vmatpush3.bf16.msra.mxu0 %v22126_v2  ;;  %14823 = vmatmul.mubr.bf16.vlgmr.msra.gmra.mrb[44].mxu1 %v1435_v3  ;;  %v22166_v2 = vld [vmem:[%s23670_s21 + $0xdd0] sm:$0xff]  }
 0x1f2   : > { %19994 = vmatprep.subr.bf16.mxu0 %v22128_v4  ;;  %20015 = vmatpush3.bf16.msra.mxu1 %v22127_v6  ;;  %v22167_v3 = vld [vmem:[%s23670_s21 + $0xd10] sm:$0xff]   ;;  %v22170_v6 = vld [vmem:[%s23670_s21 + $0xdd8] sm:$0xff]  }
 0x1f3   : > { %20016 = vmatprep.subr.bf16.mxu1 %v22129_v7  ;;  %14862 = vmatprep.mubr.bf16.mxu0 %v1438_v56  ;;  %v22168_v4 = vld [vmem:[%s23670_s21 + $0xd90] sm:$0xff]   ;;  %v22171_v7 = vld [vmem:[%s23670_s21 + $0xd18] sm:$0xff]   ;;  %v22197_v56 = vld [vmem:[%s23670_s21 + $0xe88] sm:$0xff]  }
 0x1f4   : > { %14902 = vmatprep.mubr.bf16.mxu1 %v1440_v61  ;;  %v22203_v61 = vld [vmem:[%s23670_s21 + $0xed8] sm:$0xff]  }
 0x1f5   : > { %19995 = vmatpush3.bf16.msra.mxu0 %v22130_v8  ;;  %v22172_v8 = vld [vmem:[%s23670_s21 + $0xd98] sm:$0xff]  }
 0x1f6   : > { %19996 = vmatprep.subr.bf16.mxu0 %v22132_v9  ;;  %20017 = vmatpush3.bf16.msra.mxu1 %v22131_v10  ;;  %v22173_v9 = vld [vmem:[%s23670_s21 + $0xd60] sm:$0xff]  }
 0x1f7   : > { %20018 = vmatprep.subr.bf16.mxu1 %v22133_v11  ;;  %v22174_v10 = vld [vmem:[%s23670_s21 + $0xde0] sm:$0xff]  }
 0x1f8   : > { %v22175_v11 = vld [vmem:[%s23670_s21 + $0xd20] sm:$0xff]  }
 0x1f9   : > { %19997 = vmatpush3.bf16.msra.mxu0 %v22134_v12  ;;  %v22176_v12 = vld [vmem:[%s23670_s21 + $0xda0] sm:$0xff]  }
 0x1fa   : > { %19998 = vmatprep.subr.bf16.mxu0 %v22136_v13  ;;  %20019 = vmatpush3.bf16.msra.mxu1 %v22135_v14  ;;  %v22177_v13 = vld [vmem:[%s23670_s21 + $0xd68] sm:$0xff]  }
 0x1fb   : > { %20020 = vmatprep.subr.bf16.mxu1 %v22137_v15  ;;  %v22178_v14 = vld [vmem:[%s23670_s21 + $0xde8] sm:$0xff]  }
 0x1fc   : > { %v22179_v15 = vld [vmem:[%s23670_s21 + $0xd28] sm:$0xff]  }
 0x1fd   : > { %19999 = vmatpush3.bf16.msra.mxu0 %v22138_v16 }
 0x1fe   : > { %20000 = vmatprep.subr.bf16.mxu0 %v22140_v17  ;;  %20021 = vmatpush3.bf16.msra.mxu1 %v22139_v18  ;;  %v22180_v18 = vld [vmem:[%s23670_s21 + $0xda8] sm:$0xff]  }
 0x1ff   : > { %20022 = vmatprep.subr.bf16.mxu1 %v22141_v19  ;;  %v22181_v19 = vld [vmem:[%s23670_s21 + $0xd70] sm:$0xff]  }
 0x201   : > { %20001 = vmatpush3.bf16.msra.mxu0 %v22142_v20 }
 0x202   : > { %20002 = vmatprep.subr.bf16.mxu0 %v22144_v21  ;;  %20023 = vmatpush3.bf16.msra.mxu1 %v22143_v22 }
 0x203   : > { %v19700_v25 = vpop.f32.mrb[20].mxu0  ;;  %20024 = vmatprep.subr.bf16.mxu1 %v22145_v23 }
 0x204   : > { %v19722_v26 = vpop.f32.mrb[20].mxu1  ;;  %v19701_v29 = vpop.f32.mrb[21].mxu0 }
 0x205   : > { %v19723_v30 = vpop.f32.mrb[21].mxu1  ;;  %v19702_v31 = vadd.f32 %v19701_v29, %v19700_v25  ;;  %v19703_v33 = vpop.f32.mrb[22].mxu0  ;;  %20003 = vmatpush3.bf16.msra.mxu0 %v22146_v24 }
 0x206   : > { %v19724_v32 = vadd.f32 %v19723_v30, %v19722_v26  ;;  %v19725_v34 = vpop.f32.mrb[22].mxu1  ;;  %v19704_v37 = vpop.f32.mrb[23].mxu0  ;;  %20004 = vmatprep.subr.bf16.mxu0 %v22148_v28  ;;  %20025 = vmatpush3.bf16.msra.mxu1 %v22147_v27  ;;  %v22182_v26 = vld [vmem:[%s23670_s21 + $0xdf0] sm:$0xff]  }
 0x207   : > { %v19726_v38 = vpop.f32.mrb[23].mxu1  ;;  %v14305_v40 = vadd.f32 %v19702_v31, %v24118_v54  ;;  %20026 = vmatprep.subr.bf16.mxu1 %v22149_v35  ;;  %v1437_v54 = vpack.c.bf16 %v592_v47, %v592_v47  ;;  %v22183_v27 = vld [vmem:[%s23670_s21 + $0xd30] sm:$0xff]   ;;  %v22186_v34 = vld [vmem:[%s23670_s21 + $0xdf8] sm:$0xff]  }
 0x208   : > { %v22184_v31 = vld [vmem:[%s23670_s21 + $0xdb0] sm:$0xff]   ;;  %v22187_v35 = vld [vmem:[%s23670_s21 + $0xd38] sm:$0xff]  }
 0x209   : > { %v24155_v44 = vadd.f32 %v19724_v32, %v14305_v40  ;;  %20005 = vmatpush3.bf16.msra.mxu0 %v22150_v36  ;;  %v22185_v32 = vld [vmem:[%s23670_s21 + $0xd78] sm:$0xff]   ;;  %v298_v36 = vld [vmem:[%s23684_s15 + $0x68] sm:$0xff] }
 0x20a   : > { %20006 = vmatprep.subr.bf16.mxu0 %v22152_v41  ;;  %20027 = vmatpush3.bf16.msra.mxu1 %v22151_v39  ;;  %v609_v37 = vrot.slane %v298_v36, %v23723_v42  ;;  %v602_v38 = vcombine.high %v298_v36, %v298_v36  ;;  %v22190_v39 = vld [vmem:[%s23670_s21 + $0xe40] sm:$0xff]   ;;  %v22188_v40 = vld [vmem:[%s23670_s21 + $0xdb8] sm:$0xff]  }
 0x20b   : > { %20028 = vmatprep.subr.bf16.mxu1 %v22153_v43  ;;  %v22225_v36 = vld [vmem:[%s23670_s21 + $0xf00] sm:$0xff]  }
 0x20c   : > { %v617_v41 = vcombine.high %v609_v37, %v609_v37  ;;  %v616_v43 = vrot.slane %v602_v38, %v23723_v42 }
 0x20d   : > { %20007 = vmatpush3.bf16.msra.mxu0 %v22154_v45  ;;  %v1441_v45 = vpack.c.bf16 %v609_v37, %v609_v37 }
 0x20e   : > { %20036 = vmatprep.subr.bf16.mxu0 %v22157_v49  ;;  %20029 = vmatpush3.bf16.msra.mxu1 %v22155_v50  ;;  %v1442_v46 = vpack.c.bf16 %v617_v41, %v617_v41  ;;  %v618_v47 = vcombine.high %v616_v43, %v616_v43  ;;  %v1443_v49 = vpack.c.bf16 %v616_v43, %v616_v43  ;;  %v22194_v50 = vld [vmem:[%s23670_s21 + $0xe48] sm:$0xff]  }
 0x20f   : > { %20058 = vmatprep.subr.bf16.mxu1 %v22158_v53  ;;  %v22195_v53 = vld [vmem:[%s23670_s21 + $0xec8] sm:$0xff]  }
 0x210   : > { %14863 = vmatmul.mubr.bf16.vlgmr.msra.gmra.mrb[48].mxu0 %v1437_v54  ;;  %v1444_v51 = vpack.c.bf16 %v618_v47, %v618_v47  ;;  %v22196_v54 = vld [vmem:[%s23670_s21 + $0xe08] sm:$0xff]   ;;  %v22231_v47 = vld [vmem:[%s23670_s21 + $0xf50] sm:$0xff]  }
 0x211   : > { %20037 = vmatpush3.bf16.msra.mxu0 %v22159_v55  ;;  %14903 = vmatmul.mubr.bf16.vlgmr.msra.gmra.mrb[48].mxu1 %v1439_v59  ;;  %v22198_v55 = vld [vmem:[%s23670_s21 + $0xe50] sm:$0xff]   ;;  %v22202_v59 = vld [vmem:[%s23670_s21 + $0xe58] sm:$0xff]   ;;  %v22227_v41 = vld [vmem:[%s23670_s21 + $0xf48] sm:$0xff]  }
 0x212   : > { %20038 = vmatprep.subr.bf16.mxu0 %v22161_v60  ;;  %20059 = vmatpush3.bf16.msra.mxu1 %v22160_v58  ;;  %v22200_v58 = vld [vmem:[%s23670_s21 + $0xe10] sm:$0xff]  }
 0x213   : > { %20060 = vmatprep.subr.bf16.mxu1 %v22162_v62  ;;  %14942 = vmatprep.mubr.bf16.mxu0 %v1442_v46  ;;  %v22201_v60 = vld [vmem:[%s23670_s21 + $0xe90] sm:$0xff]   ;;  %v22204_v62 = vld [vmem:[%s23670_s21 + $0xe18] sm:$0xff]   ;;  %v22230_v46 = vld [vmem:[%s23670_s21 + $0xf88] sm:$0xff]  }
 0x214   : > { %14982 = vmatprep.mubr.bf16.mxu1 %v1444_v51  ;;  %v22235_v51 = vld [vmem:[%s23670_s21 + $0xf58] sm:$0xff]  }
 0x215   : > { %20039 = vmatpush3.bf16.msra.mxu0 %v22163_v63  ;;  %v22206_v63 = vld [vmem:[%s23670_s21 + $0xe60] sm:$0xff]  }
 0x216   : > { %20040 = vmatprep.subr.bf16.mxu0 %v22165_v1  ;;  %20061 = vmatpush3.bf16.msra.mxu1 %v22164_v0  ;;  %v22205_v0 = vld [vmem:[%s23670_s21 + $0xe98] sm:$0xff]   ;;  %v22207_v1 = vld [vmem:[%s23670_s21 + $0xee0] sm:$0xff]  }
 0x217   : > { %20062 = vmatprep.subr.bf16.mxu1 %v22166_v2  ;;  %v22208_v2 = vld [vmem:[%s23670_s21 + $0xe20] sm:$0xff]  }
 0x219   : > { %20041 = vmatpush3.bf16.msra.mxu0 %v22167_v3  ;;  %v22210_v3 = vld [vmem:[%s23670_s21 + $0xe68] sm:$0xff]  }
 0x21a   : > { %20042 = vmatprep.subr.bf16.mxu0 %v22169_v5  ;;  %20063 = vmatpush3.bf16.msra.mxu1 %v22168_v4  ;;  %v22209_v4 = vld [vmem:[%s23670_s21 + $0xea0] sm:$0xff]  }
 0x21b   : > { %20064 = vmatprep.subr.bf16.mxu1 %v22170_v6 }
 0x21d   : > { %20043 = vmatpush3.bf16.msra.mxu0 %v22171_v7  ;;  %v22211_v7 = vld [vmem:[%s23670_s21 + $0xee8] sm:$0xff]  }
 0x21e   : > { %20044 = vmatprep.subr.bf16.mxu0 %v22173_v9  ;;  %20065 = vmatpush3.bf16.msra.mxu1 %v22172_v8  ;;  %v22212_v8 = vld [vmem:[%s23670_s21 + $0xe28] sm:$0xff]  }
 0x21f   : > { %20066 = vmatprep.subr.bf16.mxu1 %v22174_v10 }
 0x221   : > { %20045 = vmatpush3.bf16.msra.mxu0 %v22175_v11  ;;  %v22213_v11 = vld [vmem:[%s23670_s21 + $0xea8] sm:$0xff]  }
 0x222   : > { %20046 = vmatprep.subr.bf16.mxu0 %v22177_v13  ;;  %20067 = vmatpush3.bf16.msra.mxu1 %v22176_v12 }
 0x223   : > { %v19744_v16 = vpop.f32.mrb[24].mxu0  ;;  %20068 = vmatprep.subr.bf16.mxu1 %v22178_v14 }
 0x224   : > { %v19766_v17 = vpop.f32.mrb[24].mxu1  ;;  %v19745_v20 = vpop.f32.mrb[25].mxu0 }
 0x225   : > { %v19767_v21 = vpop.f32.mrb[25].mxu1  ;;  %v19746_v22 = vadd.f32 %v19745_v20, %v19744_v16  ;;  %v19747_v24 = vpop.f32.mrb[26].mxu0  ;;  %20047 = vmatpush3.bf16.msra.mxu0 %v22179_v15  ;;  %v22214_v16 = vld [vmem:[%s23670_s21 + $0xe70] sm:$0xff]  }
 0x226   : > { %v19768_v23 = vadd.f32 %v19767_v21, %v19766_v17  ;;  %v19769_v25 = vpop.f32.mrb[26].mxu1  ;;  %v19748_v28 = vpop.f32.mrb[27].mxu0  ;;  %20048 = vmatprep.subr.bf16.mxu0 %v22181_v19  ;;  %20069 = vmatpush3.bf16.msra.mxu1 %v22180_v18  ;;  %v22215_v17 = vld [vmem:[%s23670_s21 + $0xef0] sm:$0xff]   ;;  %v22218_v24 = vld [vmem:[%s23670_s21 + $0xe78] sm:$0xff]  }
 0x227   : > { %v19770_v29 = vpop.f32.mrb[27].mxu1  ;;  %v14385_v30 = vadd.f32 %v19746_v22, %v24155_v44  ;;  %20070 = vmatprep.subr.bf16.mxu1 %v22182_v26  ;;  %v22191_v44 = vld [vmem:[%s23670_s21 + $0xec0] sm:$0xff]   ;;  %v22216_v21 = vld [vmem:[%s23670_s21 + $0xe30] sm:$0xff]   ;;  %v22219_v25 = vld [vmem:[%s23670_s21 + $0xef8] sm:$0xff]  }
 0x228   : > { %v22217_v22 = vld [vmem:[%s23670_s21 + $0xeb0] sm:$0xff]   ;;  %v22220_v26 = vld [vmem:[%s23670_s21 + $0xe38] sm:$0xff]  }
 0x229   : > { %v24192_v33 = vadd.f32 %v19768_v23, %v14385_v30  ;;  %20049 = vmatpush3.bf16.msra.mxu0 %v22183_v27  ;;  %v299_v27 = vld [vmem:[%s23684_s15 + $0x70] sm:$0xff]  ;;  %v22223_v30 = vld [vmem:[%s23670_s21 + $0xf40] sm:$0xff]  }
 0x22a   : > { %20050 = vmatprep.subr.bf16.mxu0 %v22185_v32  ;;  %20071 = vmatpush3.bf16.msra.mxu1 %v22184_v31  ;;  %v626_v28 = vrot.slane %v299_v27, %v23723_v42  ;;  %v619_v29 = vcombine.high %v299_v27, %v299_v27  ;;  %v22221_v31 = vld [vmem:[%s23670_s21 + $0xeb8] sm:$0xff]   ;;  %v22258_v27 = vld [vmem:[%s23670_s21 + $0x1000] sm:$0xff]  }
 0x22b   : > { %20072 = vmatprep.subr.bf16.mxu1 %v22186_v34  ;;  %v22224_v34 = vld [vmem:[%s23670_s21 + $0xfc0] sm:$0xff]  }
 0x22c   : > { %v634_v32 = vcombine.high %v626_v28, %v626_v28 }
 0x22d   : > { %20051 = vmatpush3.bf16.msra.mxu0 %v22187_v35  ;;  %v1445_v35 = vpack.c.bf16 %v626_v28, %v626_v28 }
 0x22e   : > { %20080 = vmatprep.subr.bf16.mxu0 %v22190_v39  ;;  %20073 = vmatpush3.bf16.msra.mxu1 %v22188_v40  ;;  %v1446_v37 = vpack.c.bf16 %v634_v32, %v634_v32  ;;  %v22226_v39 = vld [vmem:[%s23670_s21 + $0xf80] sm:$0xff]   ;;  %v22260_v32 = vld [vmem:[%s23670_s21 + $0x1048] sm:$0xff]  }
 0x22f   : > { %20102 = vmatprep.subr.bf16.mxu1 %v22191_v44  ;;  %v22228_v44 = vld [vmem:[%s23670_s21 + $0xfc8] sm:$0xff]  }
 0x230   : > { %14943 = vmatmul.mubr.bf16.vlgmr.msra.gmra.mrb[52].mxu0 %v1441_v45  ;;  %v22229_v45 = vld [vmem:[%s23670_s21 + $0xf08] sm:$0xff]  }
 0x231   : > { %20081 = vmatpush3.bf16.msra.mxu0 %v22192_v48  ;;  %14983 = vmatmul.mubr.bf16.vlgmr.msra.gmra.mrb[52].mxu1 %v1443_v49  ;;  %v22232_v48 = vld [vmem:[%s23670_s21 + $0xfd0] sm:$0xff]  }
 0x232   : > { %20082 = vmatprep.subr.bf16.mxu0 %v22194_v50  ;;  %20103 = vmatpush3.bf16.msra.mxu1 %v22193_v52  ;;  %v22233_v49 = vld [vmem:[%s23670_s21 + $0xf10] sm:$0xff]   ;;  %v22236_v52 = vld [vmem:[%s23670_s21 + $0xfd8] sm:$0xff]  }
 0x233   : > { %20104 = vmatprep.subr.bf16.mxu1 %v22195_v53  ;;  %15022 = vmatprep.mubr.bf16.mxu0 %v1446_v37  ;;  %v22234_v50 = vld [vmem:[%s23670_s21 + $0xf90] sm:$0xff]   ;;  %v22237_v53 = vld [vmem:[%s23670_s21 + $0xf18] sm:$0xff]  }
 0x234   : > { %v22264_v37 = vld [vmem:[%s23670_s21 + $0x1050] sm:$0xff]  }
 0x235   : > { %20083 = vmatpush3.bf16.msra.mxu0 %v22196_v54  ;;  %v22238_v54 = vld [vmem:[%s23670_s21 + $0xf98] sm:$0xff]  }
 0x236   : > { %20084 = vmatprep.subr.bf16.mxu0 %v22198_v55  ;;  %20105 = vmatpush3.bf16.msra.mxu1 %v22197_v56  ;;  %v22239_v55 = vld [vmem:[%s23670_s21 + $0xf60] sm:$0xff]  }
 0x237   : > { %20106 = vmatprep.subr.bf16.mxu1 %v22199_v57  ;;  %v22240_v56 = vld [vmem:[%s23670_s21 + $0xfe0] sm:$0xff]  }
 0x238   : > { %v22241_v57 = vld [vmem:[%s23670_s21 + $0xf20] sm:$0xff]  }
 0x239   : > { %20085 = vmatpush3.bf16.msra.mxu0 %v22200_v58  ;;  %v22242_v58 = vld [vmem:[%s23670_s21 + $0xfa0] sm:$0xff]  }
 0x23a   : > { %20086 = vmatprep.subr.bf16.mxu0 %v22202_v59  ;;  %20107 = vmatpush3.bf16.msra.mxu1 %v22201_v60  ;;  %v22243_v59 = vld [vmem:[%s23670_s21 + $0xf68] sm:$0xff]  }
 0x23b   : > { %20108 = vmatprep.subr.bf16.mxu1 %v22203_v61 }
 0x23d   : > { %20087 = vmatpush3.bf16.msra.mxu0 %v22204_v62  ;;  %v22244_v62 = vld [vmem:[%s23670_s21 + $0xfe8] sm:$0xff]  }
 0x23e   : > { %20088 = vmatprep.subr.bf16.mxu0 %v22206_v63  ;;  %20109 = vmatpush3.bf16.msra.mxu1 %v22205_v0  ;;  %v22245_v63 = vld [vmem:[%s23670_s21 + $0xf28] sm:$0xff]  }
 0x23f   : > { %20110 = vmatprep.subr.bf16.mxu1 %v22207_v1 }
 0x241   : > { %20089 = vmatpush3.bf16.msra.mxu0 %v22208_v2 }
 0x242   : > { %20090 = vmatprep.subr.bf16.mxu0 %v22210_v3  ;;  %20111 = vmatpush3.bf16.msra.mxu1 %v22209_v4 }
 0x243   : > { %v19788_v5 = vpop.f32.mrb[28].mxu0  ;;  %20112 = vmatprep.subr.bf16.mxu1 %v22211_v7  ;;  %v22247_v7 = vld [vmem:[%s23670_s21 + $0xf70] sm:$0xff]  }
 0x244   : > { %v19810_v6 = vpop.f32.mrb[28].mxu1  ;;  %v19789_v9 = vpop.f32.mrb[29].mxu0 }
 0x245   : > { %v19811_v10 = vpop.f32.mrb[29].mxu1  ;;  %v19790_v12 = vadd.f32 %v19789_v9, %v19788_v5  ;;  %v19791_v14 = vpop.f32.mrb[30].mxu0  ;;  %20091 = vmatpush3.bf16.msra.mxu0 %v22212_v8 }
 0x246   : > { %v19812_v13 = vadd.f32 %v19811_v10, %v19810_v6  ;;  %v19813_v15 = vpop.f32.mrb[30].mxu1  ;;  %v19792_v18 = vpop.f32.mrb[31].mxu0  ;;  %20092 = vmatprep.subr.bf16.mxu0 %v22214_v16  ;;  %20113 = vmatpush3.bf16.msra.mxu1 %v22213_v11  ;;  %v22246_v6 = vld [vmem:[%s23670_s21 + $0xfa8] sm:$0xff]   ;;  %v22248_v11 = vld [vmem:[%s23670_s21 + $0xff0] sm:$0xff]   ;;  %v22252_v16 = vld [vmem:[%s23670_s21 + $0xff8] sm:$0xff]  }
 0x247   : > { %v19814_v19 = vpop.f32.mrb[31].mxu1  ;;  %v14465_v20 = vadd.f32 %v19790_v12, %v24192_v33  ;;  %20114 = vmatprep.subr.bf16.mxu1 %v22215_v17  ;;  %v633_v33 = vrot.slane %v619_v29, %v23723_v42  ;;  %v22249_v12 = vld [vmem:[%s23670_s21 + $0xf30] sm:$0xff]   ;;  %v22251_v15 = vld [vmem:[%s23670_s21 + $0xf78] sm:$0xff]  }
 0x248   : > { %v22250_v14 = vld [vmem:[%s23670_s21 + $0xfb0] sm:$0xff]   ;;  %v22253_v17 = vld [vmem:[%s23670_s21 + $0xf38] sm:$0xff]  }
 0x249   : > { %v24229_v23 = vadd.f32 %v19812_v13, %v14465_v20  ;;  %20093 = vmatpush3.bf16.msra.mxu0 %v22216_v21  ;;  %v635_v38 = vcombine.high %v633_v33, %v633_v33  ;;  %v1447_v40 = vpack.c.bf16 %v633_v33, %v633_v33  ;;  %v300_v18 = vld [vmem:[%s23684_s15 + $0x78] sm:$0xff]  ;;  %v22256_v21 = vld [vmem:[%s23670_s21 + $0x1040] sm:$0xff]  }
 0x24a   : > { %20094 = vmatprep.subr.bf16.mxu0 %v22218_v24  ;;  %20115 = vmatpush3.bf16.msra.mxu1 %v22217_v22  ;;  %v643_v19 = vrot.slane %v300_v18, %v23723_v42  ;;  %v636_v20 = vcombine.high %v300_v18, %v300_v18  ;;  %v22254_v22 = vld [vmem:[%s23670_s21 + $0xfb8] sm:$0xff]   ;;  %v22291_v18 = vld [vmem:[%s23670_s21 + $0x1100] sm:$0xff]  }
 0x24b   : > { %20116 = vmatprep.subr.bf16.mxu1 %v22219_v25  ;;  %v1448_v43 = vpack.c.bf16 %v635_v38, %v635_v38  ;;  %v22257_v25 = vld [vmem:[%s23670_s21 + $0x10c0] sm:$0xff]   ;;  %v22265_v38 = vld [vmem:[%s23670_s21 + $0x10d0] sm:$0xff]  }
 0x24c   : > { %v650_v24 = vrot.slane %v636_v20, %v23723_v42 }
 0x24d   : > { %20095 = vmatpush3.bf16.msra.mxu0 %v22220_v26  ;;  %15062 = vmatprep.mubr.bf16.mxu1 %v1448_v43  ;;  %v1449_v26 = vpack.c.bf16 %v643_v19, %v643_v19  ;;  %v22269_v43 = vld [vmem:[%s23670_s21 + $0x10d8] sm:$0xff]  }
 0x24e   : > { %20124 = vmatprep.subr.bf16.mxu0 %v22223_v30  ;;  %20117 = vmatpush3.bf16.msra.mxu1 %v22221_v31  ;;  %v652_v29 = vcombine.high %v650_v24, %v650_v24  ;;  %v22259_v30 = vld [vmem:[%s23670_s21 + $0x1080] sm:$0xff]   ;;  %v1451_v31 = vpack.c.bf16 %v650_v24, %v650_v24 }
 0x24f   : > { %20146 = vmatprep.subr.bf16.mxu1 %v22224_v34  ;;  %v22261_v34 = vld [vmem:[%s23670_s21 + $0x10c8] sm:$0xff]  }
 0x250   : > { %15023 = vmatmul.mubr.bf16.vlgmr.msra.gmra.mrb[56].mxu0 %v1445_v35  ;;  %v1452_v33 = vpack.c.bf16 %v652_v29, %v652_v29  ;;  %v22262_v35 = vld [vmem:[%s23670_s21 + $0x1008] sm:$0xff]   ;;  %v22298_v29 = vld [vmem:[%s23670_s21 + $0x11d0] sm:$0xff]  }
 0x251   : > { %20125 = vmatpush3.bf16.msra.mxu0 %v22225_v36  ;;  %15063 = vmatmul.mubr.bf16.vlgmr.msra.gmra.mrb[56].mxu1 %v1447_v40  ;;  %v22263_v36 = vld [vmem:[%s23670_s21 + $0x1088] sm:$0xff]   ;;  %v22267_v40 = vld [vmem:[%s23670_s21 + $0x1090] sm:$0xff]  }
 0x252   : > { %20126 = vmatprep.subr.bf16.mxu0 %v22227_v41  ;;  %20147 = vmatpush3.bf16.msra.mxu1 %v22226_v39  ;;  %v22266_v39 = vld [vmem:[%s23670_s21 + $0x1010] sm:$0xff]   ;;  %v22268_v41 = vld [vmem:[%s23670_s21 + $0x1058] sm:$0xff]  }
 0x253   : > { %20148 = vmatprep.subr.bf16.mxu1 %v22228_v44  ;;  %15142 = vmatprep.mubr.bf16.mxu1 %v1452_v33  ;;  %v22270_v44 = vld [vmem:[%s23670_s21 + $0x1018] sm:$0xff]  }
 0x254   : > { %v22302_v33 = vld [vmem:[%s23670_s21 + $0x11d8] sm:$0xff]  }
 0x255   : > { %20127 = vmatpush3.bf16.msra.mxu0 %v22229_v45  ;;  %v22271_v45 = vld [vmem:[%s23670_s21 + $0x1098] sm:$0xff]  }
 0x256   : > { %20128 = vmatprep.subr.bf16.mxu0 %v22231_v47  ;;  %20149 = vmatpush3.bf16.msra.mxu1 %v22230_v46  ;;  %v22272_v46 = vld [vmem:[%s23670_s21 + $0x1060] sm:$0xff]  }
 0x257   : > { %20150 = vmatprep.subr.bf16.mxu1 %v22232_v48  ;;  %v22273_v47 = vld [vmem:[%s23670_s21 + $0x10e0] sm:$0xff]  }
 0x258   : > { %v22274_v48 = vld [vmem:[%s23670_s21 + $0x1020] sm:$0xff]  }
 0x259   : > { %20129 = vmatpush3.bf16.msra.mxu0 %v22233_v49  ;;  %v22275_v49 = vld [vmem:[%s23670_s21 + $0x10a0] sm:$0xff]  }
 0x25a   : > { %20130 = vmatprep.subr.bf16.mxu0 %v22235_v51  ;;  %20151 = vmatpush3.bf16.msra.mxu1 %v22234_v50  ;;  %v22276_v51 = vld [vmem:[%s23670_s21 + $0x1068] sm:$0xff]  }
 0x25b   : > { %20152 = vmatprep.subr.bf16.mxu1 %v22236_v52 }
 0x25d   : > { %20131 = vmatpush3.bf16.msra.mxu0 %v22237_v53 }
 0x25e   : > { %20132 = vmatprep.subr.bf16.mxu0 %v22239_v55  ;;  %20153 = vmatpush3.bf16.msra.mxu1 %v22238_v54  ;;  %v22277_v54 = vld [vmem:[%s23670_s21 + $0x10e8] sm:$0xff]  }
 0x25f   : > { %20154 = vmatprep.subr.bf16.mxu1 %v22240_v56  ;;  %v22278_v55 = vld [vmem:[%s23670_s21 + $0x1028] sm:$0xff]  }
 0x261   : > { %20133 = vmatpush3.bf16.msra.mxu0 %v22241_v57 }
 0x262   : > { %20134 = vmatprep.subr.bf16.mxu0 %v22243_v59  ;;  %20155 = vmatpush3.bf16.msra.mxu1 %v22242_v58 }
 0x263   : > { %v19832_v60 = vpop.f32.mrb[32].mxu0  ;;  %20156 = vmatprep.subr.bf16.mxu1 %v22244_v62 }
 0x264   : > { %v19854_v61 = vpop.f32.mrb[32].mxu1  ;;  %v19833_v0 = vpop.f32.mrb[33].mxu0 }
 0x265   : > { %v19855_v1 = vpop.f32.mrb[33].mxu1  ;;  %v19834_v2 = vadd.f32 %v19833_v0, %v19832_v60  ;;  %v19835_v4 = vpop.f32.mrb[34].mxu0  ;;  %20135 = vmatpush3.bf16.msra.mxu0 %v22245_v63  ;;  %v22280_v63 = vld [vmem:[%s23670_s21 + $0x1070] sm:$0xff]  }
 0x266   : > { %v19856_v3 = vadd.f32 %v19855_v1, %v19854_v61  ;;  %v19857_v5 = vpop.f32.mrb[34].mxu1  ;;  %v19836_v8 = vpop.f32.mrb[35].mxu0  ;;  %20136 = vmatprep.subr.bf16.mxu0 %v22247_v7  ;;  %20157 = vmatpush3.bf16.msra.mxu1 %v22246_v6  ;;  %v22279_v61 = vld [vmem:[%s23670_s21 + $0x10a8] sm:$0xff]   ;;  %v22282_v4 = vld [vmem:[%s23670_s21 + $0x1030] sm:$0xff]   ;;  %v22284_v6 = vld [vmem:[%s23670_s21 + $0x1078] sm:$0xff]  }
 0x267   : > { %v19858_v9 = vpop.f32.mrb[35].mxu1  ;;  %v14545_v10 = vadd.f32 %v19834_v2, %v24229_v23  ;;  %20158 = vmatprep.subr.bf16.mxu1 %v22248_v11  ;;  %v651_v23 = vcombine.high %v643_v19, %v643_v19  ;;  %v22281_v2 = vld [vmem:[%s23670_s21 + $0x10f0] sm:$0xff]   ;;  %v22285_v7 = vld [vmem:[%s23670_s21 + $0x10f8] sm:$0xff]  }
 0x268   : > { %v22283_v5 = vld [vmem:[%s23670_s21 + $0x10b0] sm:$0xff]   ;;  %v22286_v8 = vld [vmem:[%s23670_s21 + $0x1038] sm:$0xff]  }
 0x269   : > { %v24266_v13 = vadd.f32 %v19856_v3, %v14545_v10  ;;  %20137 = vmatpush3.bf16.msra.mxu0 %v22249_v12  ;;  %v1450_v28 = vpack.c.bf16 %v651_v23, %v651_v23  ;;  %v301_v9 = vld [vmem:[%s23684_s15 + $0x80] sm:$0xff]  ;;  %v22293_v23 = vld [vmem:[%s23670_s21 + $0x1148] sm:$0xff]  }
 0x26a   : > { %20138 = vmatprep.subr.bf16.mxu0 %v22251_v15  ;;  %20159 = vmatpush3.bf16.msra.mxu1 %v22250_v14  ;;  %v22287_v10 = vld [vmem:[%s23670_s21 + $0x10b8] sm:$0xff]   ;;  %v660_v11 = vrot.slane %v301_v9, %v23723_v42  ;;  %v653_v12 = vcombine.high %v301_v9, %v301_v9 }
 0x26b   : > { %20160 = vmatprep.subr.bf16.mxu1 %v22252_v16  ;;  %15102 = vmatprep.mubr.bf16.mxu0 %v1450_v28  ;;  %v22290_v16 = vld [vmem:[%s23670_s21 + $0x11c0] sm:$0xff]   ;;  %v22297_v28 = vld [vmem:[%s23670_s21 + $0x1150] sm:$0xff]  }
 0x26c   : > { %v668_v14 = vcombine.high %v660_v11, %v660_v11  ;;  %v667_v15 = vrot.slane %v653_v12, %v23723_v42 }
 0x26d   : > { %20139 = vmatpush3.bf16.msra.mxu0 %v22253_v17  ;;  %v1453_v17 = vpack.c.bf16 %v660_v11, %v660_v11  ;;  %v22324_v11 = vld [vmem:[%s23670_s21 + $0x1200] sm:$0xff]  }
 0x26e   : > { %20168 = vmatprep.subr.bf16.mxu0 %v22256_v21  ;;  %20161 = vmatpush3.bf16.msra.mxu1 %v22254_v22  ;;  %v1454_v19 = vpack.c.bf16 %v668_v14, %v668_v14  ;;  %v669_v20 = vcombine.high %v667_v15, %v667_v15  ;;  %v22292_v21 = vld [vmem:[%s23670_s21 + $0x1180] sm:$0xff]   ;;  %v1455_v22 = vpack.c.bf16 %v667_v15, %v667_v15 }
 0x26f   : > { %20190 = vmatprep.subr.bf16.mxu1 %v22257_v25  ;;  %v22294_v25 = vld [vmem:[%s23670_s21 + $0x11c8] sm:$0xff]   ;;  %v22325_v15 = vld [vmem:[%s23670_s21 + $0x1280] sm:$0xff]  }
 0x270   : > { %15103 = vmatmul.mubr.bf16.vlgmr.msra.gmra.mrb[60].mxu0 %v1449_v26  ;;  %v1456_v24 = vpack.c.bf16 %v669_v20, %v669_v20  ;;  %v22295_v26 = vld [vmem:[%s23670_s21 + $0x1108] sm:$0xff]   ;;  %v22331_v20 = vld [vmem:[%s23670_s21 + $0x12d0] sm:$0xff]  }
 0x271   : > { %20169 = vmatpush3.bf16.msra.mxu0 %v22258_v27  ;;  %15143 = vmatmul.mubr.bf16.vlgmr.msra.gmra.mrb[60].mxu1 %v1451_v31  ;;  %v22296_v27 = vld [vmem:[%s23670_s21 + $0x1188] sm:$0xff]   ;;  %v22300_v31 = vld [vmem:[%s23670_s21 + $0x1190] sm:$0xff]  }
 0x272   : > { %20170 = vmatprep.subr.bf16.mxu0 %v22260_v32  ;;  %20191 = vmatpush3.bf16.msra.mxu1 %v22259_v30  ;;  %v22299_v30 = vld [vmem:[%s23670_s21 + $0x1110] sm:$0xff]   ;;  %v22301_v32 = vld [vmem:[%s23670_s21 + $0x1158] sm:$0xff]  }
 0x273   : > { %20192 = vmatprep.subr.bf16.mxu1 %v22261_v34  ;;  %15182 = vmatprep.mubr.bf16.mxu0 %v1454_v19  ;;  %v22303_v34 = vld [vmem:[%s23670_s21 + $0x1118] sm:$0xff]   ;;  %v22329_v19 = vld [vmem:[%s23670_s21 + $0x1288] sm:$0xff]  }
 0x274   : > { %15222 = vmatprep.mubr.bf16.mxu1 %v1456_v24  ;;  %v22335_v24 = vld [vmem:[%s23670_s21 + $0x12d8] sm:$0xff]  }
 0x275   : > { %20171 = vmatpush3.bf16.msra.mxu0 %v22262_v35  ;;  %v22304_v35 = vld [vmem:[%s23670_s21 + $0x1198] sm:$0xff]  }
 0x276   : > { %20172 = vmatprep.subr.bf16.mxu0 %v22264_v37  ;;  %20193 = vmatpush3.bf16.msra.mxu1 %v22263_v36  ;;  %v22305_v36 = vld [vmem:[%s23670_s21 + $0x1160] sm:$0xff]  }
 0x277   : > { %20194 = vmatprep.subr.bf16.mxu1 %v22265_v38  ;;  %v22306_v37 = vld [vmem:[%s23670_s21 + $0x11e0] sm:$0xff]  }
 0x278   : > { %v22307_v38 = vld [vmem:[%s23670_s21 + $0x1120] sm:$0xff]  }
 0x279   : > { %20173 = vmatpush3.bf16.msra.mxu0 %v22266_v39  ;;  %v22308_v39 = vld [vmem:[%s23670_s21 + $0x11a0] sm:$0xff]  }
 0x27a   : > { %20174 = vmatprep.subr.bf16.mxu0 %v22268_v41  ;;  %20195 = vmatpush3.bf16.msra.mxu1 %v22267_v40  ;;  %v22309_v41 = vld [vmem:[%s23670_s21 + $0x1168] sm:$0xff]  }
 0x27b   : > { %20196 = vmatprep.subr.bf16.mxu1 %v22269_v43 }
 0x27d   : > { %20175 = vmatpush3.bf16.msra.mxu0 %v22270_v44  ;;  %v22310_v44 = vld [vmem:[%s23670_s21 + $0x11e8] sm:$0xff]  }
 0x27e   : > { %20176 = vmatprep.subr.bf16.mxu0 %v22272_v46  ;;  %20197 = vmatpush3.bf16.msra.mxu1 %v22271_v45 }
 0x27f   : > { %20198 = vmatprep.subr.bf16.mxu1 %v22273_v47 }
 0x281   : > { %20177 = vmatpush3.bf16.msra.mxu0 %v22274_v48 }
 0x282   : > { %20178 = vmatprep.subr.bf16.mxu0 %v22276_v51  ;;  %20199 = vmatpush3.bf16.msra.mxu1 %v22275_v49  ;;  %v22311_v49 = vld [vmem:[%s23670_s21 + $0x1128] sm:$0xff]  }
 0x283   : > { %v19876_v50 = vpop.f32.mrb[36].mxu0  ;;  %20200 = vmatprep.subr.bf16.mxu1 %v22277_v54 }
 0x284   : > { %v19898_v52 = vpop.f32.mrb[36].mxu1  ;;  %v19877_v53 = vpop.f32.mrb[37].mxu0 }
 0x285   : > { %v19878_v56 = vadd.f32 %v19877_v53, %v19876_v50  ;;  %v19899_v57 = vpop.f32.mrb[37].mxu1  ;;  %v19879_v58 = vpop.f32.mrb[38].mxu0  ;;  %20179 = vmatpush3.bf16.msra.mxu0 %v22278_v55  ;;  %v22312_v50 = vld [vmem:[%s23670_s21 + $0x11a8] sm:$0xff]   ;;  %v22313_v55 = vld [vmem:[%s23670_s21 + $0x1170] sm:$0xff]  }
 0x286   : > { %v19900_v59 = vadd.f32 %v19899_v57, %v19898_v52  ;;  %v19901_v60 = vpop.f32.mrb[38].mxu1  ;;  %v19880_v62 = vpop.f32.mrb[39].mxu0  ;;  %20180 = vmatprep.subr.bf16.mxu0 %v22280_v63  ;;  %20201 = vmatpush3.bf16.msra.mxu1 %v22279_v61  ;;  %v22314_v57 = vld [vmem:[%s23670_s21 + $0x11f0] sm:$0xff]   ;;  %v22319_v63 = vld [vmem:[%s23670_s21 + $0x1138] sm:$0xff]  }
 0x287   : > { %v14625_v0 = vadd.f32 %v19878_v56, %v24266_v13  ;;  %v19902_v1 = vpop.f32.mrb[39].mxu1  ;;  %20202 = vmatprep.subr.bf16.mxu1 %v22281_v2  ;;  %v22289_v13 = vld [vmem:[%s23670_s21 + $0x1140] sm:$0xff]   ;;  %v22317_v60 = vld [vmem:[%s23670_s21 + $0x1178] sm:$0xff]   ;;  %v22316_v61 = vld [vmem:[%s23670_s21 + $0x11b0] sm:$0xff]  }
 0x288   : > { %v22318_v62 = vld [vmem:[%s23670_s21 + $0x11f8] sm:$0xff]  }
 0x289   : > { %v24303_v3 = vadd.f32 %v19900_v59, %v14625_v0  ;;  %20181 = vmatpush3.bf16.msra.mxu0 %v22282_v4  ;;  %v22315_v59 = vld [vmem:[%s23670_s21 + $0x1130] sm:$0xff]   ;;  %v302_v0 = vld [vmem:[%s23684_s15 + $0x88] sm:$0xff]  ;;  %v22320_v4 = vld [vmem:[%s23670_s21 + $0x11b8] sm:$0xff]  }
 0x28a   : > { %20182 = vmatprep.subr.bf16.mxu0 %v22284_v6  ;;  %20203 = vmatpush3.bf16.msra.mxu1 %v22283_v5  ;;  %v677_v1 = vrot.slane %v302_v0, %v23723_v42  ;;  %v670_v2 = vcombine.high %v302_v0, %v302_v0 }
 0x28b   : > { %20204 = vmatprep.subr.bf16.mxu1 %v22285_v7  ;;  %v22323_v7 = vld [vmem:[%s23670_s21 + $0x12c0] sm:$0xff]  }
 0x28c   : > { %v685_v5 = vcombine.high %v677_v1, %v677_v1  ;;  %v684_v6 = vrot.slane %v670_v2, %v23723_v42  ;;  %v22357_v2 = vld [vmem:[%s23670_s21 + $0x1300] sm:$0xff]  }
 0x28d   : > { %20183 = vmatpush3.bf16.msra.mxu0 %v22286_v8  ;;  %v1457_v8 = vpack.c.bf16 %v677_v1, %v677_v1 }
 0x28e   : > { %20212 = vmatprep.subr.bf16.mxu0 %v22289_v13  ;;  %20205 = vmatpush3.bf16.msra.mxu1 %v22287_v10  ;;  %v1458_v9 = vpack.c.bf16 %v685_v5, %v685_v5  ;;  %v686_v10 = vcombine.high %v684_v6, %v684_v6  ;;  %v1459_v12 = vpack.c.bf16 %v684_v6, %v684_v6  ;;  %v22326_v13 = vld [vmem:[%s23670_s21 + $0x1248] sm:$0xff]   ;;  %v22358_v6 = vld [vmem:[%s23670_s21 + $0x1380] sm:$0xff]  }
 0x28f   : > { %20234 = vmatprep.subr.bf16.mxu1 %v22290_v16  ;;  %v22327_v16 = vld [vmem:[%s23670_s21 + $0x12c8] sm:$0xff]  }
 0x290   : > { %15183 = vmatmul.mubr.bf16.vlgmr.msra.gmra.mrb[64].mxu0 %v1453_v17  ;;  %v1460_v14 = vpack.c.bf16 %v686_v10, %v686_v10  ;;  %v22328_v17 = vld [vmem:[%s23670_s21 + $0x1208] sm:$0xff]  }
 0x291   : > { %20213 = vmatpush3.bf16.msra.mxu0 %v22291_v18  ;;  %15223 = vmatmul.mubr.bf16.vlgmr.msra.gmra.mrb[64].mxu1 %v1455_v22  ;;  %v22330_v18 = vld [vmem:[%s23670_s21 + $0x1250] sm:$0xff]   ;;  %v22334_v22 = vld [vmem:[%s23670_s21 + $0x1258] sm:$0xff]   ;;  %v22362_v10 = vld [vmem:[%s23670_s21 + $0x1388] sm:$0xff]  }
 0x292   : > { %20214 = vmatprep.subr.bf16.mxu0 %v22293_v23  ;;  %20235 = vmatpush3.bf16.msra.mxu1 %v22292_v21  ;;  %v22332_v21 = vld [vmem:[%s23670_s21 + $0x1210] sm:$0xff]  }
 0x293   : > { %20236 = vmatprep.subr.bf16.mxu1 %v22294_v25  ;;  %15262 = vmatprep.mubr.bf16.mxu0 %v1458_v9  ;;  %v22333_v23 = vld [vmem:[%s23670_s21 + $0x1290] sm:$0xff]   ;;  %v22336_v25 = vld [vmem:[%s23670_s21 + $0x1218] sm:$0xff]  }
 0x294   : > { %15302 = vmatprep.mubr.bf16.mxu1 %v1460_v14  ;;  %v22363_v9 = vld [vmem:[%s23670_s21 + $0x1350] sm:$0xff]  }
 0x295   : > { %20215 = vmatpush3.bf16.msra.mxu0 %v22295_v26  ;;  %v22338_v26 = vld [vmem:[%s23670_s21 + $0x1260] sm:$0xff]   ;;  %v22366_v14 = vld [vmem:[%s23670_s21 + $0x1390] sm:$0xff]  }
 0x296   : > { %20216 = vmatprep.subr.bf16.mxu0 %v22297_v28  ;;  %20237 = vmatpush3.bf16.msra.mxu1 %v22296_v27  ;;  %v22337_v27 = vld [vmem:[%s23670_s21 + $0x1298] sm:$0xff]   ;;  %v22339_v28 = vld [vmem:[%s23670_s21 + $0x12e0] sm:$0xff]  }
 0x297   : > { %20238 = vmatprep.subr.bf16.mxu1 %v22298_v29  ;;  %v22340_v29 = vld [vmem:[%s23670_s21 + $0x1220] sm:$0xff]  }
 0x299   : > { %20217 = vmatpush3.bf16.msra.mxu0 %v22299_v30 }
 0x29a   : > { %20218 = vmatprep.subr.bf16.mxu0 %v22301_v32  ;;  %20239 = vmatpush3.bf16.msra.mxu1 %v22300_v31  ;;  %v22342_v31 = vld [vmem:[%s23670_s21 + $0x1268] sm:$0xff]   ;;  %v22341_v32 = vld [vmem:[%s23670_s21 + $0x12a0] sm:$0xff]  }
 0x29b   : > { %20240 = vmatprep.subr.bf16.mxu1 %v22302_v33 }
 0x29d   : > { %20219 = vmatpush3.bf16.msra.mxu0 %v22303_v34 }
 0x29e   : > { %20220 = vmatprep.subr.bf16.mxu0 %v22305_v36  ;;  %20241 = vmatpush3.bf16.msra.mxu1 %v22304_v35  ;;  %v22343_v36 = vld [vmem:[%s23670_s21 + $0x12e8] sm:$0xff]  }
 0x29f   : > { %20242 = vmatprep.subr.bf16.mxu1 %v22306_v37 }
 0x2a1   : > { %20221 = vmatpush3.bf16.msra.mxu0 %v22307_v38  ;;  %v22344_v38 = vld [vmem:[%s23670_s21 + $0x1228] sm:$0xff]  }
 0x2a2   : > { %20222 = vmatprep.subr.bf16.mxu0 %v22309_v41  ;;  %20243 = vmatpush3.bf16.msra.mxu1 %v22308_v39 }
 0x2a3   : > { %v19920_v40 = vpop.f32.mrb[40].mxu0  ;;  %20244 = vmatprep.subr.bf16.mxu1 %v22310_v44 }
 0x2a4   : > { %v19921_v43 = vpop.f32.mrb[41].mxu0  ;;  %v19942_v45 = vpop.f32.mrb[40].mxu1 }
 0x2a5   : > { %v19922_v46 = vadd.f32 %v19921_v43, %v19920_v40  ;;  %v19923_v47 = vpop.f32.mrb[42].mxu0  ;;  %v19943_v48 = vpop.f32.mrb[41].mxu1  ;;  %20223 = vmatpush3.bf16.msra.mxu0 %v22311_v49  ;;  %v22345_v40 = vld [vmem:[%s23670_s21 + $0x12a8] sm:$0xff]  }
 0x2a6   : > { %v19924_v51 = vpop.f32.mrb[43].mxu0  ;;  %v19944_v53 = vadd.f32 %v19943_v48, %v19942_v45  ;;  %v19945_v54 = vpop.f32.mrb[42].mxu1  ;;  %20224 = vmatprep.subr.bf16.mxu0 %v22313_v55  ;;  %20245 = vmatpush3.bf16.msra.mxu1 %v22312_v50  ;;  %v22347_v48 = vld [vmem:[%s23670_s21 + $0x12f0] sm:$0xff]  }
 0x2a7   : > { %v14705_v52 = vadd.f32 %v19922_v46, %v24303_v3  ;;  %v19946_v56 = vpop.f32.mrb[43].mxu1  ;;  %20246 = vmatprep.subr.bf16.mxu1 %v22314_v57  ;;  %v22322_v3 = vld [vmem:[%s23670_s21 + $0x1240] sm:$0xff]   ;;  %v22346_v46 = vld [vmem:[%s23670_s21 + $0x1270] sm:$0xff]   ;;  %v22352_v54 = vld [vmem:[%s23670_s21 + $0x1238] sm:$0xff]  }
 0x2a8   : > { %v22348_v50 = vld [vmem:[%s23670_s21 + $0x1230] sm:$0xff]  }
 0x2a9   : > { %v24341_v58 = vadd.f32 %v19944_v53, %v14705_v52  ;;  %20225 = vmatpush3.bf16.msra.mxu0 %v22315_v59  ;;  %v22349_v51 = vld [vmem:[%s23670_s21 + $0x12b0] sm:$0xff]   ;;  %v22350_v52 = vld [vmem:[%s23670_s21 + $0x1278] sm:$0xff]  }
 0x2aa   : > { %20226 = vmatprep.subr.bf16.mxu0 %v22317_v60  ;;  %20247 = vmatpush3.bf16.msra.mxu1 %v22316_v61  ;;  %v22351_v53 = vld [vmem:[%s23670_s21 + $0x12f8] sm:$0xff]   ;;  %v303_v55 = vld [vmem:[%s23684_s15 + $0x90] sm:$0xff] }
 0x2ab   : > { %20248 = vmatprep.subr.bf16.mxu1 %v22318_v62  ;;  %v694_v56 = vrot.slane %v303_v55, %v23723_v42  ;;  %v687_v57 = vcombine.high %v303_v55, %v303_v55  ;;  %v22353_v59 = vld [vmem:[%s23670_s21 + $0x12b8] sm:$0xff]   ;;  %v22356_v62 = vld [vmem:[%s23670_s21 + $0x13c0] sm:$0xff]  }
 0x2ac   : > { %v22390_v55 = vld [vmem:[%s23670_s21 + $0x1400] sm:$0xff]  }
 0x2ad   : > { %20227 = vmatpush3.bf16.msra.mxu0 %v22319_v63  ;;  %v702_v60 = vcombine.high %v694_v56, %v694_v56  ;;  %v701_v61 = vrot.slane %v687_v57, %v23723_v42  ;;  %v1461_v63 = vpack.c.bf16 %v694_v56, %v694_v56 }
 0x2ae   : > { %20256 = vmatprep.subr.bf16.mxu0 %v22322_v3  ;;  %20249 = vmatpush3.bf16.msra.mxu1 %v22320_v4  ;;  %v22359_v4 = vld [vmem:[%s23670_s21 + $0x1348] sm:$0xff]  }
 0x2af   : > { %20278 = vmatprep.subr.bf16.mxu1 %v22323_v7  ;;  %v1462_v0 = vpack.c.bf16 %v702_v60, %v702_v60  ;;  %v703_v1 = vcombine.high %v701_v61, %v701_v61  ;;  %v1463_v3 = vpack.c.bf16 %v701_v61, %v701_v61  ;;  %v22360_v7 = vld [vmem:[%s23670_s21 + $0x13c8] sm:$0xff]  }
 0x2b0   : > { %15263 = vmatmul.mubr.bf16.vlgmr.msra.gmra.mrb[68].mxu0 %v1457_v8  ;;  %v22361_v8 = vld [vmem:[%s23670_s21 + $0x1308] sm:$0xff]  }
 0x2b1   : > { %20257 = vmatpush3.bf16.msra.mxu0 %v22324_v11  ;;  %15303 = vmatmul.mubr.bf16.vlgmr.msra.gmra.mrb[68].mxu1 %v1459_v12  ;;  %v1464_v5 = vpack.c.bf16 %v703_v1, %v703_v1  ;;  %v22364_v11 = vld [vmem:[%s23670_s21 + $0x13d0] sm:$0xff]   ;;  %v22392_v60 = vld [vmem:[%s23670_s21 + $0x1448] sm:$0xff]  }
 0x2b2   : > { %20258 = vmatprep.subr.bf16.mxu0 %v22326_v13  ;;  %20279 = vmatpush3.bf16.msra.mxu1 %v22325_v15  ;;  %v22365_v12 = vld [vmem:[%s23670_s21 + $0x1310] sm:$0xff]   ;;  %v22367_v13 = vld [vmem:[%s23670_s21 + $0x1358] sm:$0xff]  }
 0x2b3   : > { %20280 = vmatprep.subr.bf16.mxu1 %v22327_v16  ;;  %15342 = vmatprep.mubr.bf16.mxu0 %v1462_v0  ;;  %v22368_v15 = vld [vmem:[%s23670_s21 + $0x13d8] sm:$0xff]   ;;  %v22395_v0 = vld [vmem:[%s23670_s21 + $0x1488] sm:$0xff]   ;;  %v22396_v1 = vld [vmem:[%s23670_s21 + $0x1450] sm:$0xff]  }
 0x2b4   : > { %15382 = vmatprep.mubr.bf16.mxu1 %v1464_v5  ;;  %v22369_v16 = vld [vmem:[%s23670_s21 + $0x1318] sm:$0xff]  }
 0x2b5   : > { %20259 = vmatpush3.bf16.msra.mxu0 %v22328_v17  ;;  %v22371_v17 = vld [vmem:[%s23670_s21 + $0x1360] sm:$0xff]   ;;  %v22400_v5 = vld [vmem:[%s23670_s21 + $0x1458] sm:$0xff]  }
 0x2b6   : > { %20260 = vmatprep.subr.bf16.mxu0 %v22330_v18  ;;  %20281 = vmatpush3.bf16.msra.mxu1 %v22329_v19  ;;  %v22370_v18 = vld [vmem:[%s23670_s21 + $0x1398] sm:$0xff]   ;;  %v22372_v19 = vld [vmem:[%s23670_s21 + $0x13e0] sm:$0xff]  }
 0x2b7   : > { %20282 = vmatprep.subr.bf16.mxu1 %v22331_v20  ;;  %v22373_v20 = vld [vmem:[%s23670_s21 + $0x1320] sm:$0xff]  }
 0x2b9   : > { %20261 = vmatpush3.bf16.msra.mxu0 %v22332_v21 }
 0x2ba   : > { %20262 = vmatprep.subr.bf16.mxu0 %v22334_v22  ;;  %20283 = vmatpush3.bf16.msra.mxu1 %v22333_v23  ;;  %v22375_v22 = vld [vmem:[%s23670_s21 + $0x1368] sm:$0xff]   ;;  %v22374_v23 = vld [vmem:[%s23670_s21 + $0x13a0] sm:$0xff]  }
 0x2bb   : > { %20284 = vmatprep.subr.bf16.mxu1 %v22335_v24 }
 0x2bd   : > { %20263 = vmatpush3.bf16.msra.mxu0 %v22336_v25 }
 0x2be   : > { %20264 = vmatprep.subr.bf16.mxu0 %v22338_v26  ;;  %20285 = vmatpush3.bf16.msra.mxu1 %v22337_v27  ;;  %v22376_v27 = vld [vmem:[%s23670_s21 + $0x13e8] sm:$0xff]  }
 0x2bf   : > { %20286 = vmatprep.subr.bf16.mxu1 %v22339_v28 }
 0x2c1   : > { %20265 = vmatpush3.bf16.msra.mxu0 %v22340_v29  ;;  %v22377_v29 = vld [vmem:[%s23670_s21 + $0x1328] sm:$0xff]  }
 0x2c2   : > { %20266 = vmatprep.subr.bf16.mxu0 %v22342_v31  ;;  %20287 = vmatpush3.bf16.msra.mxu1 %v22341_v32  ;;  %v22378_v31 = vld [vmem:[%s23670_s21 + $0x13a8] sm:$0xff]  }
 0x2c3   : > { %v19964_v30 = vpop.f32.mrb[44].mxu0  ;;  %20288 = vmatprep.subr.bf16.mxu1 %v22343_v36  ;;  %v22379_v36 = vld [vmem:[%s23670_s21 + $0x1370] sm:$0xff]  }
 0x2c4   : > { %v19965_v33 = vpop.f32.mrb[45].mxu0  ;;  %v19986_v34 = vpop.f32.mrb[44].mxu1 }
 0x2c5   : > { %v19966_v35 = vadd.f32 %v19965_v33, %v19964_v30  ;;  %v19967_v37 = vpop.f32.mrb[46].mxu0  ;;  %v19987_v39 = vpop.f32.mrb[45].mxu1  ;;  %20267 = vmatpush3.bf16.msra.mxu0 %v22344_v38  ;;  %v22380_v38 = vld [vmem:[%s23670_s21 + $0x13f0] sm:$0xff]  }
 0x2c6   : > { %v19968_v41 = vpop.f32.mrb[47].mxu0  ;;  %v19988_v44 = vadd.f32 %v19987_v39, %v19986_v34  ;;  %v19989_v45 = vpop.f32.mrb[46].mxu1  ;;  %20268 = vmatprep.subr.bf16.mxu0 %v22346_v46  ;;  %20289 = vmatpush3.bf16.msra.mxu1 %v22345_v40  ;;  %v22381_v40 = vld [vmem:[%s23670_s21 + $0x1330] sm:$0xff]  }
 0x2c7   : > { %v14785_v43 = vadd.f32 %v19966_v35, %v24341_v58  ;;  %v19990_v47 = vpop.f32.mrb[47].mxu1  ;;  %20290 = vmatprep.subr.bf16.mxu1 %v22347_v48  ;;  %v22355_v58 = vld [vmem:[%s23670_s21 + $0x1340] sm:$0xff]   ;;  %v22382_v41 = vld [vmem:[%s23670_s21 + $0x13b0] sm:$0xff]   ;;  %v22385_v45 = vld [vmem:[%s23670_s21 + $0x1338] sm:$0xff]  }
 0x2c8   : > { %v304_v46 = vld [vmem:[%s23684_s15 + $0x98] sm:$0xff] }
 0x2c9   : > { %v24379_v49 = vadd.f32 %v19988_v44, %v14785_v43  ;;  %20269 = vmatpush3.bf16.msra.mxu0 %v22348_v50  ;;  %v22383_v43 = vld [vmem:[%s23670_s21 + $0x1378] sm:$0xff]   ;;  %v711_v48 = vrot.slane %v304_v46, %v23723_v42  ;;  %v22388_v50 = vld [vmem:[%s23670_s21 + $0x1440] sm:$0xff]  }
 0x2ca   : > { %20270 = vmatprep.subr.bf16.mxu0 %v22350_v52  ;;  %20291 = vmatpush3.bf16.msra.mxu1 %v22349_v51  ;;  %v22384_v44 = vld [vmem:[%s23670_s21 + $0x13f8] sm:$0xff]  }
 0x2cb   : > { %20292 = vmatprep.subr.bf16.mxu1 %v22351_v53  ;;  %v22386_v47 = vld [vmem:[%s23670_s21 + $0x13b8] sm:$0xff]   ;;  %v719_v51 = vcombine.high %v711_v48, %v711_v48  ;;  %v22389_v53 = vld [vmem:[%s23670_s21 + $0x14c0] sm:$0xff]  }
 0x2cd   : > { %20271 = vmatpush3.bf16.msra.mxu0 %v22352_v54  ;;  %v1465_v54 = vpack.c.bf16 %v711_v48, %v711_v48  ;;  %v1466_v56 = vpack.c.bf16 %v719_v51, %v719_v51  ;;  %v22425_v51 = vld [vmem:[%s23670_s21 + $0x1548] sm:$0xff]  }
 0x2ce   : > { %20300 = vmatprep.subr.bf16.mxu0 %v22355_v58  ;;  %20293 = vmatpush3.bf16.msra.mxu1 %v22353_v59  ;;  %v22391_v58 = vld [vmem:[%s23670_s21 + $0x1480] sm:$0xff]  }
 0x2cf   : > { %20322 = vmatprep.subr.bf16.mxu1 %v22356_v62  ;;  %v22393_v62 = vld [vmem:[%s23670_s21 + $0x14c8] sm:$0xff]  }
 0x2d0   : > { %15343 = vmatmul.mubr.bf16.vlgmr.msra.gmra.mrb[72].mxu0 %v1461_v63  ;;  %v22394_v63 = vld [vmem:[%s23670_s21 + $0x1408] sm:$0xff]  }
 0x2d1   : > { %20301 = vmatpush3.bf16.msra.mxu0 %v22357_v2  ;;  %15383 = vmatmul.mubr.bf16.vlgmr.msra.gmra.mrb[72].mxu1 %v1463_v3  ;;  %v22397_v2 = vld [vmem:[%s23670_s21 + $0x14d0] sm:$0xff]  }
 0x2d2   : > { %20302 = vmatprep.subr.bf16.mxu0 %v22359_v4  ;;  %20323 = vmatpush3.bf16.msra.mxu1 %v22358_v6  ;;  %v22398_v3 = vld [vmem:[%s23670_s21 + $0x1410] sm:$0xff]   ;;  %v22401_v6 = vld [vmem:[%s23670_s21 + $0x14d8] sm:$0xff]  }
 0x2d3   : > { %20324 = vmatprep.subr.bf16.mxu1 %v22360_v7  ;;  %15422 = vmatprep.mubr.bf16.mxu0 %v1466_v56  ;;  %v22399_v4 = vld [vmem:[%s23670_s21 + $0x1490] sm:$0xff]   ;;  %v22402_v7 = vld [vmem:[%s23670_s21 + $0x1418] sm:$0xff]  }
 0x2d4   : > { %v22429_v56 = vld [vmem:[%s23670_s21 + $0x1550] sm:$0xff]  }
 0x2d5   : > { %20303 = vmatpush3.bf16.msra.mxu0 %v22361_v8  ;;  %v22403_v8 = vld [vmem:[%s23670_s21 + $0x1498] sm:$0xff]  }
 0x2d6   : > { %20304 = vmatprep.subr.bf16.mxu0 %v22363_v9  ;;  %20325 = vmatpush3.bf16.msra.mxu1 %v22362_v10  ;;  %v22404_v9 = vld [vmem:[%s23670_s21 + $0x1460] sm:$0xff]  }
 0x2d7   : > { %20326 = vmatprep.subr.bf16.mxu1 %v22364_v11  ;;  %v22405_v10 = vld [vmem:[%s23670_s21 + $0x14e0] sm:$0xff]  }
 0x2d8   : > { %v22406_v11 = vld [vmem:[%s23670_s21 + $0x1420] sm:$0xff]  }
 0x2d9   : > { %20305 = vmatpush3.bf16.msra.mxu0 %v22365_v12  ;;  %v22407_v12 = vld [vmem:[%s23670_s21 + $0x14a0] sm:$0xff]  }
 0x2da   : > { %20306 = vmatprep.subr.bf16.mxu0 %v22367_v13  ;;  %20327 = vmatpush3.bf16.msra.mxu1 %v22366_v14  ;;  %v22408_v13 = vld [vmem:[%s23670_s21 + $0x1468] sm:$0xff]  }
 0x2db   : > { %20328 = vmatprep.subr.bf16.mxu1 %v22368_v15  ;;  %v22409_v15 = vld [vmem:[%s23670_s21 + $0x14e8] sm:$0xff]  }
 0x2dd   : > { %20307 = vmatpush3.bf16.msra.mxu0 %v22369_v16 }
 0x2de   : > { %20308 = vmatprep.subr.bf16.mxu0 %v22371_v17  ;;  %20329 = vmatpush3.bf16.msra.mxu1 %v22370_v18  ;;  %v22410_v17 = vld [vmem:[%s23670_s21 + $0x1428] sm:$0xff]  }
 0x2df   : > { %20330 = vmatprep.subr.bf16.mxu1 %v22372_v19 }
 0x2e1   : > { %20309 = vmatpush3.bf16.msra.mxu0 %v22373_v20 }
 0x2e2   : > { %20310 = vmatprep.subr.bf16.mxu0 %v22375_v22  ;;  %20331 = vmatpush3.bf16.msra.mxu1 %v22374_v23  ;;  %v22411_v22 = vld [vmem:[%s23670_s21 + $0x14a8] sm:$0xff]  }
 0x2e3   : > { %v20008_v21 = vpop.f32.mrb[48].mxu0  ;;  %20332 = vmatprep.subr.bf16.mxu1 %v22376_v27 }
 0x2e4   : > { %v20009_v24 = vpop.f32.mrb[49].mxu0  ;;  %v20030_v25 = vpop.f32.mrb[48].mxu1 }
 0x2e5   : > { %v20010_v26 = vadd.f32 %v20009_v24, %v20008_v21  ;;  %v20011_v28 = vpop.f32.mrb[50].mxu0  ;;  %v20031_v30 = vpop.f32.mrb[49].mxu1  ;;  %20311 = vmatpush3.bf16.msra.mxu0 %v22377_v29  ;;  %v22412_v24 = vld [vmem:[%s23670_s21 + $0x1470] sm:$0xff]  }
 0x2e6   : > { %v20012_v32 = vpop.f32.mrb[51].mxu0  ;;  %v20032_v34 = vadd.f32 %v20031_v30, %v20030_v25  ;;  %v20033_v35 = vpop.f32.mrb[50].mxu1  ;;  %20312 = vmatprep.subr.bf16.mxu0 %v22379_v36  ;;  %20333 = vmatpush3.bf16.msra.mxu1 %v22378_v31  ;;  %v22413_v28 = vld [vmem:[%s23670_s21 + $0x14f0] sm:$0xff]   ;;  %v305_v36 = vld [vmem:[%s23684_s15 + $0xa0] sm:$0xff] }
 0x2e7   : > { %v14865_v33 = vadd.f32 %v20010_v26, %v24379_v49  ;;  %v20034_v37 = vpop.f32.mrb[51].mxu1  ;;  %20334 = vmatprep.subr.bf16.mxu1 %v22380_v38  ;;  %v704_v49 = vcombine.high %v304_v46, %v304_v46  ;;  %v22414_v30 = vld [vmem:[%s23670_s21 + $0x1430] sm:$0xff]   ;;  %v22416_v32 = vld [vmem:[%s23670_s21 + $0x1478] sm:$0xff]   ;;  %v721_v38 = vcombine.high %v305_v36, %v305_v36  ;;  %v22423_v46 = vld [vmem:[%s23670_s21 + $0x1500] sm:$0xff]  }
 0x2e8   : > { %v22418_v35 = vld [vmem:[%s23670_s21 + $0x1438] sm:$0xff]   ;;  %v728_v37 = vrot.slane %v305_v36, %v23723_v42  ;;  %v22456_v36 = vld [vmem:[%s23670_s21 + $0x1600] sm:$0xff]  }
 0x2e9   : > { %v24417_v39 = vadd.f32 %v20032_v34, %v14865_v33  ;;  %20313 = vmatpush3.bf16.msra.mxu0 %v22381_v40  ;;  %v718_v52 = vrot.slane %v704_v49, %v23723_v42  ;;  %v22415_v33 = vld [vmem:[%s23670_s21 + $0x14b0] sm:$0xff]   ;;  %v22417_v34 = vld [vmem:[%s23670_s21 + $0x14f8] sm:$0xff]   ;;  %v22424_v49 = vld [vmem:[%s23670_s21 + $0x1580] sm:$0xff]  }
 0x2ea   : > { %20314 = vmatprep.subr.bf16.mxu0 %v22383_v43  ;;  %20335 = vmatpush3.bf16.msra.mxu1 %v22382_v41  ;;  %v22419_v40 = vld [vmem:[%s23670_s21 + $0x14b8] sm:$0xff]   ;;  %v736_v41 = vcombine.high %v728_v37, %v728_v37  ;;  %v735_v43 = vrot.slane %v721_v38, %v23723_v42 }
 0x2eb   : > { %20336 = vmatprep.subr.bf16.mxu1 %v22384_v44  ;;  %v720_v57 = vcombine.high %v718_v52, %v718_v52  ;;  %v1467_v59 = vpack.c.bf16 %v718_v52, %v718_v52  ;;  %v22422_v44 = vld [vmem:[%s23670_s21 + $0x15c0] sm:$0xff]  }
 0x2ec   : > { %v737_v48 = vcombine.high %v735_v43, %v735_v43 }
 0x2ed   : > { %20315 = vmatpush3.bf16.msra.mxu0 %v22385_v45  ;;  %v1468_v61 = vpack.c.bf16 %v720_v57, %v720_v57  ;;  %v1469_v45 = vpack.c.bf16 %v728_v37, %v728_v37  ;;  %v22430_v57 = vld [vmem:[%s23670_s21 + $0x15d0] sm:$0xff]  }
 0x2ee   : > { %20344 = vmatprep.subr.bf16.mxu0 %v22388_v50  ;;  %20337 = vmatpush3.bf16.msra.mxu1 %v22386_v47  ;;  %v1470_v47 = vpack.c.bf16 %v736_v41, %v736_v41  ;;  %v1471_v50 = vpack.c.bf16 %v735_v43, %v735_v43  ;;  %v1472_v52 = vpack.c.bf16 %v737_v48, %v737_v48  ;;  %v22458_v41 = vld [vmem:[%s23670_s21 + $0x1648] sm:$0xff]   ;;  %v22463_v48 = vld [vmem:[%s23670_s21 + $0x16d0] sm:$0xff]  }
 0x2ef   : > { %20366 = vmatprep.subr.bf16.mxu1 %v22389_v53  ;;  %15462 = vmatprep.mubr.bf16.mxu1 %v1468_v61  ;;  %v22426_v53 = vld [vmem:[%s23670_s21 + $0x15c8] sm:$0xff]   ;;  %v22434_v61 = vld [vmem:[%s23670_s21 + $0x15d8] sm:$0xff]  }
 0x2f0   : > { %15423 = vmatmul.mubr.bf16.vlgmr.msra.gmra.mrb[76].mxu0 %v1465_v54  ;;  %v22427_v54 = vld [vmem:[%s23670_s21 + $0x1508] sm:$0xff]  }
 0x2f1   : > { %20345 = vmatpush3.bf16.msra.mxu0 %v22390_v55  ;;  %15463 = vmatmul.mubr.bf16.vlgmr.msra.gmra.mrb[76].mxu1 %v1467_v59  ;;  %v22428_v55 = vld [vmem:[%s23670_s21 + $0x1588] sm:$0xff]   ;;  %v22432_v59 = vld [vmem:[%s23670_s21 + $0x1590] sm:$0xff]  }
 0x2f2   : > { %20346 = vmatprep.subr.bf16.mxu0 %v22392_v60  ;;  %20367 = vmatpush3.bf16.msra.mxu1 %v22391_v58  ;;  %v22431_v58 = vld [vmem:[%s23670_s21 + $0x1510] sm:$0xff]   ;;  %v22433_v60 = vld [vmem:[%s23670_s21 + $0x1558] sm:$0xff]  }
 0x2f3   : > { %20368 = vmatprep.subr.bf16.mxu1 %v22393_v62  ;;  %15502 = vmatprep.mubr.bf16.mxu0 %v1470_v47  ;;  %v22435_v62 = vld [vmem:[%s23670_s21 + $0x1518] sm:$0xff]   ;;  %v22462_v47 = vld [vmem:[%s23670_s21 + $0x1650] sm:$0xff]  }
 0x2f4   : > { %15542 = vmatprep.mubr.bf16.mxu1 %v1472_v52  ;;  %v22467_v52 = vld [vmem:[%s23670_s21 + $0x16d8] sm:$0xff]  }
 0x2f5   : > { %20347 = vmatpush3.bf16.msra.mxu0 %v22394_v63  ;;  %v22436_v63 = vld [vmem:[%s23670_s21 + $0x1598] sm:$0xff]  }
 0x2f6   : > { %20348 = vmatprep.subr.bf16.mxu0 %v22396_v1  ;;  %20369 = vmatpush3.bf16.msra.mxu1 %v22395_v0  ;;  %v22437_v0 = vld [vmem:[%s23670_s21 + $0x1560] sm:$0xff]  }
 0x2f7   : > { %20370 = vmatprep.subr.bf16.mxu1 %v22397_v2  ;;  %v22438_v1 = vld [vmem:[%s23670_s21 + $0x15e0] sm:$0xff]  }
 0x2f8   : > { %v22439_v2 = vld [vmem:[%s23670_s21 + $0x1520] sm:$0xff]  }
 0x2f9   : > { %20349 = vmatpush3.bf16.msra.mxu0 %v22398_v3  ;;  %v22440_v3 = vld [vmem:[%s23670_s21 + $0x15a0] sm:$0xff]  }
 0x2fa   : > { %20350 = vmatprep.subr.bf16.mxu0 %v22400_v5  ;;  %20371 = vmatpush3.bf16.msra.mxu1 %v22399_v4  ;;  %v22441_v4 = vld [vmem:[%s23670_s21 + $0x1568] sm:$0xff]  }
 0x2fb   : > { %20372 = vmatprep.subr.bf16.mxu1 %v22401_v6  ;;  %v22442_v6 = vld [vmem:[%s23670_s21 + $0x15e8] sm:$0xff]  }
 0x2fd   : > { %20351 = vmatpush3.bf16.msra.mxu0 %v22402_v7 }
 0x2fe   : > { %20352 = vmatprep.subr.bf16.mxu0 %v22404_v9  ;;  %20373 = vmatpush3.bf16.msra.mxu1 %v22403_v8  ;;  %v22443_v8 = vld [vmem:[%s23670_s21 + $0x1528] sm:$0xff]  }
 0x2ff   : > { %20374 = vmatprep.subr.bf16.mxu1 %v22405_v10 }
 0x301   : > { %20353 = vmatpush3.bf16.msra.mxu0 %v22406_v11 }
 0x302   : > { %20354 = vmatprep.subr.bf16.mxu0 %v22408_v13  ;;  %20375 = vmatpush3.bf16.msra.mxu1 %v22407_v12  ;;  %v22444_v12 = vld [vmem:[%s23670_s21 + $0x15a8] sm:$0xff]   ;;  %v22445_v13 = vld [vmem:[%s23670_s21 + $0x1570] sm:$0xff]  }
 0x303   : > { %v20052_v14 = vpop.f32.mrb[52].mxu0  ;;  %20376 = vmatprep.subr.bf16.mxu1 %v22409_v15 }
 0x304   : > { %v20053_v16 = vpop.f32.mrb[53].mxu0  ;;  %v20074_v18 = vpop.f32.mrb[52].mxu1 }
 0x305   : > { %v20054_v19 = vadd.f32 %v20053_v16, %v20052_v14  ;;  %v20055_v20 = vpop.f32.mrb[54].mxu0  ;;  %v20075_v21 = vpop.f32.mrb[53].mxu1  ;;  %20355 = vmatpush3.bf16.msra.mxu0 %v22410_v17 }
 0x306   : > { %v20056_v23 = vpop.f32.mrb[55].mxu0  ;;  %v20076_v26 = vadd.f32 %v20075_v21, %v20074_v18  ;;  %v20077_v27 = vpop.f32.mrb[54].mxu1  ;;  %20356 = vmatprep.subr.bf16.mxu0 %v22412_v24  ;;  %20377 = vmatpush3.bf16.msra.mxu1 %v22411_v22  ;;  %v22447_v21 = vld [vmem:[%s23670_s21 + $0x1530] sm:$0xff]   ;;  %v22449_v24 = vld [vmem:[%s23670_s21 + $0x1578] sm:$0xff]  }
 0x307   : > { %v14945_v25 = vadd.f32 %v20054_v19, %v24417_v39  ;;  %v20078_v29 = vpop.f32.mrb[55].mxu1  ;;  %20378 = vmatprep.subr.bf16.mxu1 %v22413_v28  ;;  %v22421_v39 = vld [vmem:[%s23670_s21 + $0x1540] sm:$0xff]   ;;  %v22446_v19 = vld [vmem:[%s23670_s21 + $0x15f0] sm:$0xff]  }
 0x308   : > { %v22448_v23 = vld [vmem:[%s23670_s21 + $0x15b0] sm:$0xff]   ;;  %v306_v27 = vld [vmem:[%s23684_s15 + $0xa8] sm:$0xff] }
 0x309   : > { %v24456_v31 = vadd.f32 %v20076_v26, %v14945_v25  ;;  %20357 = vmatpush3.bf16.msra.mxu0 %v22414_v30  ;;  %v22450_v25 = vld [vmem:[%s23670_s21 + $0x15f8] sm:$0xff]   ;;  %v745_v28 = vrot.slane %v306_v27, %v23723_v42  ;;  %v738_v29 = vcombine.high %v306_v27, %v306_v27  ;;  %v22454_v30 = vld [vmem:[%s23670_s21 + $0x1640] sm:$0xff]  }
 0x30a   : > { %20358 = vmatprep.subr.bf16.mxu0 %v22416_v32  ;;  %20379 = vmatpush3.bf16.msra.mxu1 %v22415_v33  ;;  %v22451_v26 = vld [vmem:[%s23670_s21 + $0x1538] sm:$0xff]   ;;  %v22489_v27 = vld [vmem:[%s23670_s21 + $0x1700] sm:$0xff]  }
 0x30b   : > { %20380 = vmatprep.subr.bf16.mxu1 %v22417_v34  ;;  %v753_v32 = vcombine.high %v745_v28, %v745_v28  ;;  %v752_v33 = vrot.slane %v738_v29, %v23723_v42  ;;  %v22455_v34 = vld [vmem:[%s23670_s21 + $0x16c0] sm:$0xff]  }
 0x30d   : > { %20359 = vmatpush3.bf16.msra.mxu0 %v22418_v35  ;;  %v1473_v35 = vpack.c.bf16 %v745_v28, %v745_v28  ;;  %v1474_v37 = vpack.c.bf16 %v753_v32, %v753_v32  ;;  %v754_v38 = vcombine.high %v752_v33, %v752_v33  ;;  %v22491_v32 = vld [vmem:[%s23670_s21 + $0x1748] sm:$0xff]  }
 0x30e   : > { %20388 = vmatprep.subr.bf16.mxu0 %v22421_v39  ;;  %20381 = vmatpush3.bf16.msra.mxu1 %v22419_v40  ;;  %v22457_v39 = vld [vmem:[%s23670_s21 + $0x1680] sm:$0xff]   ;;  %v1475_v40 = vpack.c.bf16 %v752_v33, %v752_v33 }
 0x30f   : > { %20410 = vmatprep.subr.bf16.mxu1 %v22422_v44  ;;  %v1476_v43 = vpack.c.bf16 %v754_v38, %v754_v38  ;;  %v22459_v44 = vld [vmem:[%s23670_s21 + $0x16c8] sm:$0xff]   ;;  %v22496_v38 = vld [vmem:[%s23670_s21 + $0x17d0] sm:$0xff]  }
 0x310   : > { %15503 = vmatmul.mubr.bf16.vlgmr.msra.gmra.mrb[80].mxu0 %v1469_v45  ;;  %v22460_v45 = vld [vmem:[%s23670_s21 + $0x1608] sm:$0xff]  }
 0x311   : > { %20389 = vmatpush3.bf16.msra.mxu0 %v22423_v46  ;;  %15543 = vmatmul.mubr.bf16.vlgmr.msra.gmra.mrb[80].mxu1 %v1471_v50  ;;  %v22461_v46 = vld [vmem:[%s23670_s21 + $0x1688] sm:$0xff]   ;;  %v22465_v50 = vld [vmem:[%s23670_s21 + $0x1690] sm:$0xff]  }
 0x312   : > { %20390 = vmatprep.subr.bf16.mxu0 %v22425_v51  ;;  %20411 = vmatpush3.bf16.msra.mxu1 %v22424_v49  ;;  %v22464_v49 = vld [vmem:[%s23670_s21 + $0x1610] sm:$0xff]   ;;  %v22466_v51 = vld [vmem:[%s23670_s21 + $0x1658] sm:$0xff]  }
 0x313   : > { %20412 = vmatprep.subr.bf16.mxu1 %v22426_v53  ;;  %15582 = vmatprep.mubr.bf16.mxu0 %v1474_v37  ;;  %v22468_v53 = vld [vmem:[%s23670_s21 + $0x1618] sm:$0xff]   ;;  %v22495_v37 = vld [vmem:[%s23670_s21 + $0x1750] sm:$0xff]  }
 0x314   : > { %15622 = vmatprep.mubr.bf16.mxu1 %v1476_v43  ;;  %v22500_v43 = vld [vmem:[%s23670_s21 + $0x17d8] sm:$0xff]  }
 0x315   : > { %20391 = vmatpush3.bf16.msra.mxu0 %v22427_v54  ;;  %v22469_v54 = vld [vmem:[%s23670_s21 + $0x1698] sm:$0xff]  }
 0x316   : > { %20392 = vmatprep.subr.bf16.mxu0 %v22429_v56  ;;  %20413 = vmatpush3.bf16.msra.mxu1 %v22428_v55  ;;  %v22470_v55 = vld [vmem:[%s23670_s21 + $0x1660] sm:$0xff]  }
 0x317   : > { %20414 = vmatprep.subr.bf16.mxu1 %v22430_v57  ;;  %v22471_v56 = vld [vmem:[%s23670_s21 + $0x16e0] sm:$0xff]  }
 0x318   : > { %v22472_v57 = vld [vmem:[%s23670_s21 + $0x1620] sm:$0xff]  }
 0x319   : > { %20393 = vmatpush3.bf16.msra.mxu0 %v22431_v58  ;;  %v22473_v58 = vld [vmem:[%s23670_s21 + $0x16a0] sm:$0xff]  }
 0x31a   : > { %20394 = vmatprep.subr.bf16.mxu0 %v22433_v60  ;;  %20415 = vmatpush3.bf16.msra.mxu1 %v22432_v59  ;;  %v22474_v59 = vld [vmem:[%s23670_s21 + $0x1668] sm:$0xff]  }
 0x31b   : > { %20416 = vmatprep.subr.bf16.mxu1 %v22434_v61  ;;  %v22475_v61 = vld [vmem:[%s23670_s21 + $0x16e8] sm:$0xff]  }
 0x31d   : > { %20395 = vmatpush3.bf16.msra.mxu0 %v22435_v62 }
 0x31e   : > { %20396 = vmatprep.subr.bf16.mxu0 %v22437_v0  ;;  %20417 = vmatpush3.bf16.msra.mxu1 %v22436_v63  ;;  %v22476_v63 = vld [vmem:[%s23670_s21 + $0x1628] sm:$0xff]  }
 0x31f   : > { %20418 = vmatprep.subr.bf16.mxu1 %v22438_v1 }
 0x321   : > { %20397 = vmatpush3.bf16.msra.mxu0 %v22439_v2 }
 0x322   : > { %20398 = vmatprep.subr.bf16.mxu0 %v22441_v4  ;;  %20419 = vmatpush3.bf16.msra.mxu1 %v22440_v3  ;;  %v22477_v3 = vld [vmem:[%s23670_s21 + $0x16a8] sm:$0xff]   ;;  %v22478_v4 = vld [vmem:[%s23670_s21 + $0x1670] sm:$0xff]  }
 0x323   : > { %v20096_v5 = vpop.f32.mrb[56].mxu0  ;;  %20420 = vmatprep.subr.bf16.mxu1 %v22442_v6 }
 0x324   : > { %v20097_v7 = vpop.f32.mrb[57].mxu0  ;;  %v20118_v9 = vpop.f32.mrb[56].mxu1 }
 0x325   : > { %v20098_v10 = vadd.f32 %v20097_v7, %v20096_v5  ;;  %v20099_v11 = vpop.f32.mrb[58].mxu0  ;;  %v20119_v14 = vpop.f32.mrb[57].mxu1  ;;  %20399 = vmatpush3.bf16.msra.mxu0 %v22443_v8 }
 0x326   : > { %v20100_v15 = vpop.f32.mrb[59].mxu0  ;;  %v20120_v17 = vadd.f32 %v20119_v14, %v20118_v9  ;;  %v20121_v18 = vpop.f32.mrb[58].mxu1  ;;  %20400 = vmatprep.subr.bf16.mxu0 %v22445_v13  ;;  %20421 = vmatpush3.bf16.msra.mxu1 %v22444_v12  ;;  %v22480_v12 = vld [vmem:[%s23670_s21 + $0x1630] sm:$0xff]  }
 0x327   : > { %v15025_v16 = vadd.f32 %v20098_v10, %v24456_v31  ;;  %v20122_v20 = vpop.f32.mrb[59].mxu1  ;;  %20422 = vmatprep.subr.bf16.mxu1 %v22446_v19  ;;  %v22452_v31 = vld [vmem:[%s23670_s21 + $0x15b8] sm:$0xff]   ;;  %v22479_v10 = vld [vmem:[%s23670_s21 + $0x16f0] sm:$0xff]  }
 0x328   : > { %v22481_v14 = vld [vmem:[%s23670_s21 + $0x16b0] sm:$0xff]   ;;  %v22482_v15 = vld [vmem:[%s23670_s21 + $0x1678] sm:$0xff]  }
 0x329   : > { %v24494_v22 = vadd.f32 %v20120_v17, %v15025_v16  ;;  %20401 = vmatpush3.bf16.msra.mxu0 %v22447_v21  ;;  %v22483_v16 = vld [vmem:[%s23670_s21 + $0x16f8] sm:$0xff]   ;;  %v307_v18 = vld [vmem:[%s23684_s15 + $0xb0] sm:$0xff] }
 0x32a   : > { %20402 = vmatprep.subr.bf16.mxu0 %v22449_v24  ;;  %20423 = vmatpush3.bf16.msra.mxu1 %v22448_v23  ;;  %v22484_v17 = vld [vmem:[%s23670_s21 + $0x1638] sm:$0xff]   ;;  %v762_v20 = vrot.slane %v307_v18, %v23723_v42  ;;  %v755_v21 = vcombine.high %v307_v18, %v307_v18  ;;  %v22522_v18 = vld [vmem:[%s23670_s21 + $0x1800] sm:$0xff]  }
 0x32b   : > { %20424 = vmatprep.subr.bf16.mxu1 %v22450_v25  ;;  %v22485_v19 = vld [vmem:[%s23670_s21 + $0x16b8] sm:$0xff]   ;;  %v22488_v25 = vld [vmem:[%s23670_s21 + $0x17c0] sm:$0xff]  }
 0x32c   : > { %v770_v23 = vcombine.high %v762_v20, %v762_v20  ;;  %v769_v24 = vrot.slane %v755_v21, %v23723_v42  ;;  %v22523_v21 = vld [vmem:[%s23670_s21 + $0x1880] sm:$0xff]  }
 0x32d   : > { %20403 = vmatpush3.bf16.msra.mxu0 %v22451_v26  ;;  %v1477_v26 = vpack.c.bf16 %v762_v20, %v762_v20 }
 0x32e   : > { %20432 = vmatprep.subr.bf16.mxu0 %v22454_v30  ;;  %20425 = vmatpush3.bf16.msra.mxu1 %v22452_v31  ;;  %v1478_v28 = vpack.c.bf16 %v770_v23, %v770_v23  ;;  %v771_v29 = vcombine.high %v769_v24, %v769_v24  ;;  %v22490_v30 = vld [vmem:[%s23670_s21 + $0x1780] sm:$0xff]   ;;  %v1479_v31 = vpack.c.bf16 %v769_v24, %v769_v24  ;;  %v22524_v23 = vld [vmem:[%s23670_s21 + $0x1848] sm:$0xff]  }
 0x32f   : > { %20454 = vmatprep.subr.bf16.mxu1 %v22455_v34  ;;  %v22492_v34 = vld [vmem:[%s23670_s21 + $0x17c8] sm:$0xff]  }
 0x330   : > { %15583 = vmatmul.mubr.bf16.vlgmr.msra.gmra.mrb[84].mxu0 %v1473_v35  ;;  %v1480_v33 = vpack.c.bf16 %v771_v29, %v771_v29  ;;  %v22493_v35 = vld [vmem:[%s23670_s21 + $0x1708] sm:$0xff]   ;;  %v22529_v29 = vld [vmem:[%s23670_s21 + $0x18d0] sm:$0xff]  }
 0x331   : > { %20433 = vmatpush3.bf16.msra.mxu0 %v22456_v36  ;;  %15623 = vmatmul.mubr.bf16.vlgmr.msra.gmra.mrb[84].mxu1 %v1475_v40  ;;  %v22494_v36 = vld [vmem:[%s23670_s21 + $0x1788] sm:$0xff]   ;;  %v22498_v40 = vld [vmem:[%s23670_s21 + $0x1790] sm:$0xff]  }
 0x332   : > { %20434 = vmatprep.subr.bf16.mxu0 %v22458_v41  ;;  %20455 = vmatpush3.bf16.msra.mxu1 %v22457_v39  ;;  %v22497_v39 = vld [vmem:[%s23670_s21 + $0x1710] sm:$0xff]   ;;  %v22499_v41 = vld [vmem:[%s23670_s21 + $0x1758] sm:$0xff]  }
 0x333   : > { %20456 = vmatprep.subr.bf16.mxu1 %v22459_v44  ;;  %15662 = vmatprep.mubr.bf16.mxu0 %v1478_v28  ;;  %v22501_v44 = vld [vmem:[%s23670_s21 + $0x1718] sm:$0xff]   ;;  %v22528_v28 = vld [vmem:[%s23670_s21 + $0x1850] sm:$0xff]  }
 0x334   : > { %15702 = vmatprep.mubr.bf16.mxu1 %v1480_v33  ;;  %v22533_v33 = vld [vmem:[%s23670_s21 + $0x18d8] sm:$0xff]  }
 0x335   : > { %20435 = vmatpush3.bf16.msra.mxu0 %v22460_v45  ;;  %v22502_v45 = vld [vmem:[%s23670_s21 + $0x1798] sm:$0xff]  }
 0x336   : > { %20436 = vmatprep.subr.bf16.mxu0 %v22462_v47  ;;  %20457 = vmatpush3.bf16.msra.mxu1 %v22461_v46  ;;  %v22503_v46 = vld [vmem:[%s23670_s21 + $0x1760] sm:$0xff]  }
 0x337   : > { %20458 = vmatprep.subr.bf16.mxu1 %v22463_v48  ;;  %v22504_v47 = vld [vmem:[%s23670_s21 + $0x17e0] sm:$0xff]  }
 0x338   : > { %v22505_v48 = vld [vmem:[%s23670_s21 + $0x1720] sm:$0xff]  }
 0x339   : > { %20437 = vmatpush3.bf16.msra.mxu0 %v22464_v49  ;;  %v22506_v49 = vld [vmem:[%s23670_s21 + $0x17a0] sm:$0xff]  }
 0x33a   : > { %20438 = vmatprep.subr.bf16.mxu0 %v22466_v51  ;;  %20459 = vmatpush3.bf16.msra.mxu1 %v22465_v50  ;;  %v22507_v50 = vld [vmem:[%s23670_s21 + $0x1768] sm:$0xff]  }
 0x33b   : > { %20460 = vmatprep.subr.bf16.mxu1 %v22467_v52  ;;  %v22508_v52 = vld [vmem:[%s23670_s21 + $0x17e8] sm:$0xff]  }
 0x33d   : > { %20439 = vmatpush3.bf16.msra.mxu0 %v22468_v53 }
 0x33e   : > { %20440 = vmatprep.subr.bf16.mxu0 %v22470_v55  ;;  %20461 = vmatpush3.bf16.msra.mxu1 %v22469_v54  ;;  %v22509_v54 = vld [vmem:[%s23670_s21 + $0x1728] sm:$0xff]  }
 0x33f   : > { %20462 = vmatprep.subr.bf16.mxu1 %v22471_v56 }
 0x341   : > { %20441 = vmatpush3.bf16.msra.mxu0 %v22472_v57 }
 0x342   : > { %20442 = vmatprep.subr.bf16.mxu0 %v22474_v59  ;;  %20463 = vmatpush3.bf16.msra.mxu1 %v22473_v58  ;;  %v22510_v59 = vld [vmem:[%s23670_s21 + $0x17a8] sm:$0xff]  }
 0x343   : > { %v20140_v60 = vpop.f32.mrb[60].mxu0  ;;  %20464 = vmatprep.subr.bf16.mxu1 %v22475_v61  ;;  %v22511_v61 = vld [vmem:[%s23670_s21 + $0x1770] sm:$0xff]  }
 0x344   : > { %v20141_v62 = vpop.f32.mrb[61].mxu0  ;;  %v20162_v0 = vpop.f32.mrb[60].mxu1 }
 0x345   : > { %v20142_v1 = vadd.f32 %v20141_v62, %v20140_v60  ;;  %v20143_v2 = vpop.f32.mrb[62].mxu0  ;;  %v20163_v5 = vpop.f32.mrb[61].mxu1  ;;  %20443 = vmatpush3.bf16.msra.mxu0 %v22476_v63 }
 0x346   : > { %v20144_v6 = vpop.f32.mrb[63].mxu0  ;;  %v20164_v8 = vadd.f32 %v20163_v5, %v20162_v0  ;;  %v20165_v9 = vpop.f32.mrb[62].mxu1  ;;  %20444 = vmatprep.subr.bf16.mxu0 %v22478_v4  ;;  %20465 = vmatpush3.bf16.msra.mxu1 %v22477_v3  ;;  %v22513_v3 = vld [vmem:[%s23670_s21 + $0x1730] sm:$0xff]   ;;  %v22515_v5 = vld [vmem:[%s23670_s21 + $0x1778] sm:$0xff]  }
 0x347   : > { %v15105_v7 = vadd.f32 %v20142_v1, %v24494_v22  ;;  %v20166_v11 = vpop.f32.mrb[63].mxu1  ;;  %20466 = vmatprep.subr.bf16.mxu1 %v22479_v10  ;;  %v22487_v22 = vld [vmem:[%s23670_s21 + $0x1740] sm:$0xff]   ;;  %v22512_v1 = vld [vmem:[%s23670_s21 + $0x17f0] sm:$0xff]  }
 0x348   : > { %v22514_v6 = vld [vmem:[%s23670_s21 + $0x17b0] sm:$0xff]  }
 0x349   : > { %v24532_v13 = vadd.f32 %v20164_v8, %v15105_v7  ;;  %20445 = vmatpush3.bf16.msra.mxu0 %v22480_v12  ;;  %v22516_v7 = vld [vmem:[%s23670_s21 + $0x17f8] sm:$0xff]   ;;  %v22520_v12 = vld [vmem:[%s23670_s21 + $0x1840] sm:$0xff]  }
 0x34a   : > { %20446 = vmatprep.subr.bf16.mxu0 %v22482_v15  ;;  %20467 = vmatpush3.bf16.msra.mxu1 %v22481_v14  ;;  %v22517_v8 = vld [vmem:[%s23670_s21 + $0x1738] sm:$0xff]  }
 0x34b   : > { %20468 = vmatprep.subr.bf16.mxu1 %v22483_v16  ;;  %v308_v9 = vld [vmem:[%s23684_s15 + $0xb8] sm:$0xff]  ;;  %v22521_v16 = vld [vmem:[%s23670_s21 + $0x18c0] sm:$0xff]  }
 0x34c   : > { %v779_v10 = vrot.slane %v308_v9, %v23723_v42  ;;  %v772_v11 = vcombine.high %v308_v9, %v308_v9  ;;  %v22555_v9 = vld [vmem:[%s23670_s21 + $0x1900] sm:$0xff]  }
 0x34d   : > { %20447 = vmatpush3.bf16.msra.mxu0 %v22484_v17 }
 0x34e   : > { %20476 = vmatprep.subr.bf16.mxu0 %v22487_v22  ;;  %20469 = vmatpush3.bf16.msra.mxu1 %v22485_v19  ;;  %v787_v14 = vcombine.high %v779_v10, %v779_v10  ;;  %v786_v15 = vrot.slane %v772_v11, %v23723_v42  ;;  %v1481_v17 = vpack.c.bf16 %v779_v10, %v779_v10 }
 0x34f   : > { %20498 = vmatprep.subr.bf16.mxu1 %v22488_v25  ;;  %v22525_v25 = vld [vmem:[%s23670_s21 + $0x18c8] sm:$0xff]  }
 0x350   : > { %15663 = vmatmul.mubr.bf16.vlgmr.msra.gmra.mrb[88].mxu0 %v1477_v26  ;;  %v1482_v19 = vpack.c.bf16 %v787_v14, %v787_v14  ;;  %v788_v20 = vcombine.high %v786_v15, %v786_v15  ;;  %v1483_v22 = vpack.c.bf16 %v786_v15, %v786_v15  ;;  %v22526_v26 = vld [vmem:[%s23670_s21 + $0x1808] sm:$0xff]  }
 0x351   : > { %20477 = vmatpush3.bf16.msra.mxu0 %v22489_v27  ;;  %15703 = vmatmul.mubr.bf16.vlgmr.msra.gmra.mrb[88].mxu1 %v1479_v31  ;;  %v22527_v27 = vld [vmem:[%s23670_s21 + $0x1888] sm:$0xff]   ;;  %v22531_v31 = vld [vmem:[%s23670_s21 + $0x1890] sm:$0xff]  }
 0x352   : > { %20478 = vmatprep.subr.bf16.mxu0 %v22491_v32  ;;  %20499 = vmatpush3.bf16.msra.mxu1 %v22490_v30  ;;  %v1484_v24 = vpack.c.bf16 %v788_v20, %v788_v20  ;;  %v22530_v30 = vld [vmem:[%s23670_s21 + $0x1810] sm:$0xff]   ;;  %v22532_v32 = vld [vmem:[%s23670_s21 + $0x1858] sm:$0xff]   ;;  %v22557_v14 = vld [vmem:[%s23670_s21 + $0x1948] sm:$0xff]  }
 0x353   : > { %20500 = vmatprep.subr.bf16.mxu1 %v22492_v34  ;;  %15742 = vmatprep.mubr.bf16.mxu0 %v1482_v19  ;;  %v22534_v34 = vld [vmem:[%s23670_s21 + $0x1818] sm:$0xff]   ;;  %v22561_v19 = vld [vmem:[%s23670_s21 + $0x1950] sm:$0xff]  }
 0x354   : > { %15782 = vmatprep.mubr.bf16.mxu1 %v1484_v24  ;;  %v22562_v20 = vld [vmem:[%s23670_s21 + $0x19d0] sm:$0xff]   ;;  %v22566_v24 = vld [vmem:[%s23670_s21 + $0x19d8] sm:$0xff]  }
 0x355   : > { %20479 = vmatpush3.bf16.msra.mxu0 %v22493_v35  ;;  %v22535_v35 = vld [vmem:[%s23670_s21 + $0x1898] sm:$0xff]  }
 0x356   : > { %20480 = vmatprep.subr.bf16.mxu0 %v22495_v37  ;;  %20501 = vmatpush3.bf16.msra.mxu1 %v22494_v36  ;;  %v22536_v36 = vld [vmem:[%s23670_s21 + $0x1860] sm:$0xff]  }
 0x357   : > { %20502 = vmatprep.subr.bf16.mxu1 %v22496_v38  ;;  %v22537_v37 = vld [vmem:[%s23670_s21 + $0x18e0] sm:$0xff]  }
 0x358   : > { %v22538_v38 = vld [vmem:[%s23670_s21 + $0x1820] sm:$0xff]  }
 0x359   : > { %20481 = vmatpush3.bf16.msra.mxu0 %v22497_v39  ;;  %v22539_v39 = vld [vmem:[%s23670_s21 + $0x18a0] sm:$0xff]  }
 0x35a   : > { %20482 = vmatprep.subr.bf16.mxu0 %v22499_v41  ;;  %20503 = vmatpush3.bf16.msra.mxu1 %v22498_v40  ;;  %v22540_v40 = vld [vmem:[%s23670_s21 + $0x1868] sm:$0xff]  }
 0x35b   : > { %20504 = vmatprep.subr.bf16.mxu1 %v22500_v43  ;;  %v22541_v43 = vld [vmem:[%s23670_s21 + $0x18e8] sm:$0xff]  }
 0x35d   : > { %20483 = vmatpush3.bf16.msra.mxu0 %v22501_v44 }
 0x35e   : > { %20484 = vmatprep.subr.bf16.mxu0 %v22503_v46  ;;  %20505 = vmatpush3.bf16.msra.mxu1 %v22502_v45  ;;  %v22542_v45 = vld [vmem:[%s23670_s21 + $0x1828] sm:$0xff]  }
 0x35f   : > { %20506 = vmatprep.subr.bf16.mxu1 %v22504_v47 }
 0x361   : > { %20485 = vmatpush3.bf16.msra.mxu0 %v22505_v48 }
 0x362   : > { %20486 = vmatprep.subr.bf16.mxu0 %v22507_v50  ;;  %20507 = vmatpush3.bf16.msra.mxu1 %v22506_v49  ;;  %v22543_v49 = vld [vmem:[%s23670_s21 + $0x18a8] sm:$0xff]   ;;  %v22544_v50 = vld [vmem:[%s23670_s21 + $0x1870] sm:$0xff]  }
 0x363   : > { %v20184_v51 = vpop.f32.mrb[64].mxu0  ;;  %20508 = vmatprep.subr.bf16.mxu1 %v22508_v52 }
 0x364   : > { %v20185_v53 = vpop.f32.mrb[65].mxu0  ;;  %v20206_v55 = vpop.f32.mrb[64].mxu1 }
 0x365   : > { %v20186_v56 = vadd.f32 %v20185_v53, %v20184_v51  ;;  %v20187_v57 = vpop.f32.mrb[66].mxu0  ;;  %v20207_v58 = vpop.f32.mrb[65].mxu1  ;;  %20487 = vmatpush3.bf16.msra.mxu0 %v22509_v54 }
 0x366   : > { %v20188_v60 = vpop.f32.mrb[67].mxu0  ;;  %v20208_v63 = vadd.f32 %v20207_v58, %v20206_v55  ;;  %v20209_v0 = vpop.f32.mrb[66].mxu1  ;;  %20488 = vmatprep.subr.bf16.mxu0 %v22511_v61  ;;  %20509 = vmatpush3.bf16.msra.mxu1 %v22510_v59  ;;  %v22546_v58 = vld [vmem:[%s23670_s21 + $0x1830] sm:$0xff]   ;;  %v22548_v61 = vld [vmem:[%s23670_s21 + $0x1878] sm:$0xff]  }
 0x367   : > { %v15185_v62 = vadd.f32 %v20186_v56, %v24532_v13  ;;  %v20210_v2 = vpop.f32.mrb[67].mxu1  ;;  %20510 = vmatprep.subr.bf16.mxu1 %v22512_v1  ;;  %v22518_v13 = vld [vmem:[%s23670_s21 + $0x17b8] sm:$0xff]   ;;  %v22545_v56 = vld [vmem:[%s23670_s21 + $0x18f0] sm:$0xff]  }
 0x368   : > { %v22547_v60 = vld [vmem:[%s23670_s21 + $0x18b0] sm:$0xff]   ;;  %v309_v0 = vld [vmem:[%s23684_s15 + $0xc0] sm:$0xff] }
 0x369   : > { %v24570_v4 = vadd.f32 %v20208_v63, %v15185_v62  ;;  %20489 = vmatpush3.bf16.msra.mxu0 %v22513_v3  ;;  %v22549_v62 = vld [vmem:[%s23670_s21 + $0x18f8] sm:$0xff]   ;;  %v796_v1 = vrot.slane %v309_v0, %v23723_v42  ;;  %v789_v2 = vcombine.high %v309_v0, %v309_v0  ;;  %v22553_v3 = vld [vmem:[%s23670_s21 + $0x1940] sm:$0xff]  }
 0x36a   : > { %20490 = vmatprep.subr.bf16.mxu0 %v22515_v5  ;;  %20511 = vmatpush3.bf16.msra.mxu1 %v22514_v6  ;;  %v22550_v63 = vld [vmem:[%s23670_s21 + $0x1838] sm:$0xff]   ;;  %v22588_v0 = vld [vmem:[%s23670_s21 + $0x1a00] sm:$0xff]  }
 0x36b   : > { %20512 = vmatprep.subr.bf16.mxu1 %v22516_v7  ;;  %v804_v5 = vcombine.high %v796_v1, %v796_v1  ;;  %v803_v6 = vrot.slane %v789_v2, %v23723_v42  ;;  %v22554_v7 = vld [vmem:[%s23670_s21 + $0x19c0] sm:$0xff]  }
 0x36d   : > { %20491 = vmatpush3.bf16.msra.mxu0 %v22517_v8  ;;  %v1485_v8 = vpack.c.bf16 %v796_v1, %v796_v1  ;;  %v1486_v10 = vpack.c.bf16 %v804_v5, %v804_v5  ;;  %v805_v11 = vcombine.high %v803_v6, %v803_v6  ;;  %v22590_v5 = vld [vmem:[%s23670_s21 + $0x1a48] sm:$0xff]  }
 0x36e   : > { %20520 = vmatprep.subr.bf16.mxu0 %v22520_v12  ;;  %20513 = vmatpush3.bf16.msra.mxu1 %v22518_v13  ;;  %v22556_v12 = vld [vmem:[%s23670_s21 + $0x1980] sm:$0xff]   ;;  %v1487_v13 = vpack.c.bf16 %v803_v6, %v803_v6 }
 0x36f   : > { %20542 = vmatprep.subr.bf16.mxu1 %v22521_v16  ;;  %v1488_v15 = vpack.c.bf16 %v805_v11, %v805_v11  ;;  %v22558_v16 = vld [vmem:[%s23670_s21 + $0x19c8] sm:$0xff]   ;;  %v22595_v11 = vld [vmem:[%s23670_s21 + $0x1ad0] sm:$0xff]  }
 0x370   : > { %15743 = vmatmul.mubr.bf16.vlgmr.msra.gmra.mrb[92].mxu0 %v1481_v17  ;;  %v22559_v17 = vld [vmem:[%s23670_s21 + $0x1908] sm:$0xff]  }
 0x371   : > { %20521 = vmatpush3.bf16.msra.mxu0 %v22522_v18  ;;  %15783 = vmatmul.mubr.bf16.vlgmr.msra.gmra.mrb[92].mxu1 %v1483_v22  ;;  %v22560_v18 = vld [vmem:[%s23670_s21 + $0x1988] sm:$0xff]   ;;  %v22564_v22 = vld [vmem:[%s23670_s21 + $0x1990] sm:$0xff]  }
 0x372   : > { %20522 = vmatprep.subr.bf16.mxu0 %v22524_v23  ;;  %20543 = vmatpush3.bf16.msra.mxu1 %v22523_v21  ;;  %v22563_v21 = vld [vmem:[%s23670_s21 + $0x1910] sm:$0xff]   ;;  %v22565_v23 = vld [vmem:[%s23670_s21 + $0x1958] sm:$0xff]  }
 0x373   : > { %20544 = vmatprep.subr.bf16.mxu1 %v22525_v25  ;;  %15822 = vmatprep.mubr.bf16.mxu0 %v1486_v10  ;;  %v22567_v25 = vld [vmem:[%s23670_s21 + $0x1918] sm:$0xff]   ;;  %v22594_v10 = vld [vmem:[%s23670_s21 + $0x1a50] sm:$0xff]  }
 0x374   : > { %15862 = vmatprep.mubr.bf16.mxu1 %v1488_v15  ;;  %v22599_v15 = vld [vmem:[%s23670_s21 + $0x1ad8] sm:$0xff]  }
 0x375   : > { %20523 = vmatpush3.bf16.msra.mxu0 %v22526_v26  ;;  %v22568_v26 = vld [vmem:[%s23670_s21 + $0x1998] sm:$0xff]  }
 0x376   : > { %20524 = vmatprep.subr.bf16.mxu0 %v22528_v28  ;;  %20545 = vmatpush3.bf16.msra.mxu1 %v22527_v27  ;;  %v22569_v27 = vld [vmem:[%s23670_s21 + $0x1960] sm:$0xff]  }
 0x377   : > { %20546 = vmatprep.subr.bf16.mxu1 %v22529_v29  ;;  %v22570_v28 = vld [vmem:[%s23670_s21 + $0x19e0] sm:$0xff]  }
 0x378   : > { %v22571_v29 = vld [vmem:[%s23670_s21 + $0x1920] sm:$0xff]  }
 0x379   : > { %20525 = vmatpush3.bf16.msra.mxu0 %v22530_v30  ;;  %v22572_v30 = vld [vmem:[%s23670_s21 + $0x19a0] sm:$0xff]  }
 0x37a   : > { %20526 = vmatprep.subr.bf16.mxu0 %v22532_v32  ;;  %20547 = vmatpush3.bf16.msra.mxu1 %v22531_v31  ;;  %v22573_v31 = vld [vmem:[%s23670_s21 + $0x1968] sm:$0xff]  }
 0x37b   : > { %20548 = vmatprep.subr.bf16.mxu1 %v22533_v33  ;;  %v22574_v33 = vld [vmem:[%s23670_s21 + $0x19e8] sm:$0xff]  }
 0x37d   : > { %20527 = vmatpush3.bf16.msra.mxu0 %v22534_v34 }
 0x37e   : > { %20528 = vmatprep.subr.bf16.mxu0 %v22536_v36  ;;  %20549 = vmatpush3.bf16.msra.mxu1 %v22535_v35  ;;  %v22575_v35 = vld [vmem:[%s23670_s21 + $0x1928] sm:$0xff]  }
 0x37f   : > { %20550 = vmatprep.subr.bf16.mxu1 %v22537_v37 }
 0x381   : > { %20529 = vmatpush3.bf16.msra.mxu0 %v22538_v38 }
 0x382   : > { %20530 = vmatprep.subr.bf16.mxu0 %v22540_v40  ;;  %20551 = vmatpush3.bf16.msra.mxu1 %v22539_v39  ;;  %v22576_v39 = vld [vmem:[%s23670_s21 + $0x19a8] sm:$0xff]   ;;  %v22577_v40 = vld [vmem:[%s23670_s21 + $0x1970] sm:$0xff]  }
 0x383   : > { %v20228_v41 = vpop.f32.mrb[68].mxu0  ;;  %20552 = vmatprep.subr.bf16.mxu1 %v22541_v43 }
 0x384   : > { %v20229_v44 = vpop.f32.mrb[69].mxu0  ;;  %v20250_v46 = vpop.f32.mrb[68].mxu1 }
 0x385   : > { %v20230_v47 = vadd.f32 %v20229_v44, %v20228_v41  ;;  %v20231_v48 = vpop.f32.mrb[70].mxu0  ;;  %v20251_v51 = vpop.f32.mrb[69].mxu1  ;;  %20531 = vmatpush3.bf16.msra.mxu0 %v22542_v45 }
 0x386   : > { %v20232_v52 = vpop.f32.mrb[71].mxu0  ;;  %v20252_v54 = vadd.f32 %v20251_v51, %v20250_v46  ;;  %v20253_v55 = vpop.f32.mrb[70].mxu1  ;;  %20532 = vmatprep.subr.bf16.mxu0 %v22544_v50  ;;  %20553 = vmatpush3.bf16.msra.mxu1 %v22543_v49  ;;  %v22579_v49 = vld [vmem:[%s23670_s21 + $0x1930] sm:$0xff]  }
 0x387   : > { %v15265_v53 = vadd.f32 %v20230_v47, %v24570_v4  ;;  %v20254_v57 = vpop.f32.mrb[71].mxu1  ;;  %20554 = vmatprep.subr.bf16.mxu1 %v22545_v56  ;;  %v22551_v4 = vld [vmem:[%s23670_s21 + $0x18b8] sm:$0xff]   ;;  %v22578_v47 = vld [vmem:[%s23670_s21 + $0x19f0] sm:$0xff]   ;;  %v310_v55 = vld [vmem:[%s23684_s15 + $0xc8] sm:$0xff] }
 0x388   : > { %v22580_v51 = vld [vmem:[%s23670_s21 + $0x19b0] sm:$0xff]   ;;  %v22581_v52 = vld [vmem:[%s23670_s21 + $0x1978] sm:$0xff]   ;;  %v813_v57 = vrot.slane %v310_v55, %v23723_v42 }
 0x389   : > { %v24608_v59 = vadd.f32 %v20252_v54, %v15265_v53  ;;  %20533 = vmatpush3.bf16.msra.mxu0 %v22546_v58  ;;  %v22582_v53 = vld [vmem:[%s23670_s21 + $0x19f8] sm:$0xff]   ;;  %v806_v58 = vcombine.high %v310_v55, %v310_v55  ;;  %v22621_v55 = vld [vmem:[%s23670_s21 + $0x1b00] sm:$0xff]  }
 0x38a   : > { %20534 = vmatprep.subr.bf16.mxu0 %v22548_v61  ;;  %20555 = vmatpush3.bf16.msra.mxu1 %v22547_v60  ;;  %v22583_v54 = vld [vmem:[%s23670_s21 + $0x1938] sm:$0xff]   ;;  %v821_v60 = vcombine.high %v813_v57, %v813_v57 }
 0x38b   : > { %20556 = vmatprep.subr.bf16.mxu1 %v22549_v62  ;;  %v22584_v56 = vld [vmem:[%s23670_s21 + $0x19b8] sm:$0xff]   ;;  %v820_v61 = vrot.slane %v806_v58, %v23723_v42  ;;  %v22587_v62 = vld [vmem:[%s23670_s21 + $0x1ac0] sm:$0xff]  }
 0x38c   : > { %v1490_v1 = vpack.c.bf16 %v821_v60, %v821_v60  ;;  %v22622_v58 = vld [vmem:[%s23670_s21 + $0x1b80] sm:$0xff]   ;;  %v22623_v60 = vld [vmem:[%s23670_s21 + $0x1b48] sm:$0xff]  }
 0x38d   : > { %20535 = vmatpush3.bf16.msra.mxu0 %v22550_v63  ;;  %v1489_v63 = vpack.c.bf16 %v813_v57, %v813_v57  ;;  %v822_v2 = vcombine.high %v820_v61, %v820_v61 }
 0x38e   : > { %20564 = vmatprep.subr.bf16.mxu0 %v22553_v3  ;;  %20557 = vmatpush3.bf16.msra.mxu1 %v22551_v4  ;;  %v22589_v3 = vld [vmem:[%s23670_s21 + $0x1a80] sm:$0xff]   ;;  %v1491_v4 = vpack.c.bf16 %v820_v61, %v820_v61 }
 0x38f   : > { %20586 = vmatprep.subr.bf16.mxu1 %v22554_v7  ;;  %v1492_v6 = vpack.c.bf16 %v822_v2, %v822_v2  ;;  %v22591_v7 = vld [vmem:[%s23670_s21 + $0x1ac8] sm:$0xff]   ;;  %v22628_v2 = vld [vmem:[%s23670_s21 + $0x1bd0] sm:$0xff]  }
 0x390   : > { %15823 = vmatmul.mubr.bf16.vlgmr.msra.gmra.mrb[96].mxu0 %v1485_v8  ;;  %v22592_v8 = vld [vmem:[%s23670_s21 + $0x1a08] sm:$0xff]  }
 0x391   : > { %20565 = vmatpush3.bf16.msra.mxu0 %v22555_v9  ;;  %15863 = vmatmul.mubr.bf16.vlgmr.msra.gmra.mrb[96].mxu1 %v1487_v13  ;;  %v22593_v9 = vld [vmem:[%s23670_s21 + $0x1a88] sm:$0xff]   ;;  %v22597_v13 = vld [vmem:[%s23670_s21 + $0x1a90] sm:$0xff]  }
 0x392   : > { %20566 = vmatprep.subr.bf16.mxu0 %v22557_v14  ;;  %20587 = vmatpush3.bf16.msra.mxu1 %v22556_v12  ;;  %v22596_v12 = vld [vmem:[%s23670_s21 + $0x1a10] sm:$0xff]   ;;  %v22598_v14 = vld [vmem:[%s23670_s21 + $0x1a58] sm:$0xff]  }
 0x393   : > { %20588 = vmatprep.subr.bf16.mxu1 %v22558_v16  ;;  %15902 = vmatprep.mubr.bf16.mxu0 %v1490_v1  ;;  %v22600_v16 = vld [vmem:[%s23670_s21 + $0x1a18] sm:$0xff]   ;;  %v22627_v1 = vld [vmem:[%s23670_s21 + $0x1b50] sm:$0xff]  }
 0x394   : > { %15942 = vmatprep.mubr.bf16.mxu1 %v1492_v6  ;;  %v22632_v6 = vld [vmem:[%s23670_s21 + $0x1bd8] sm:$0xff]  }
 0x395   : > { %20567 = vmatpush3.bf16.msra.mxu0 %v22559_v17  ;;  %v22601_v17 = vld [vmem:[%s23670_s21 + $0x1a98] sm:$0xff]  }
 0x396   : > { %20568 = vmatprep.subr.bf16.mxu0 %v22561_v19  ;;  %20589 = vmatpush3.bf16.msra.mxu1 %v22560_v18  ;;  %v22602_v18 = vld [vmem:[%s23670_s21 + $0x1a60] sm:$0xff]  }
 0x397   : > { %20590 = vmatprep.subr.bf16.mxu1 %v22562_v20  ;;  %v22603_v19 = vld [vmem:[%s23670_s21 + $0x1ae0] sm:$0xff]  }
 0x398   : > { %v22604_v20 = vld [vmem:[%s23670_s21 + $0x1a20] sm:$0xff]  }
 0x399   : > { %20569 = vmatpush3.bf16.msra.mxu0 %v22563_v21  ;;  %v22605_v21 = vld [vmem:[%s23670_s21 + $0x1aa0] sm:$0xff]  }
 0x39a   : > { %20570 = vmatprep.subr.bf16.mxu0 %v22565_v23  ;;  %20591 = vmatpush3.bf16.msra.mxu1 %v22564_v22  ;;  %v22606_v22 = vld [vmem:[%s23670_s21 + $0x1a68] sm:$0xff]  }
 0x39b   : > { %20592 = vmatprep.subr.bf16.mxu1 %v22566_v24  ;;  %v22607_v24 = vld [vmem:[%s23670_s21 + $0x1ae8] sm:$0xff]  }
 0x39d   : > { %20571 = vmatpush3.bf16.msra.mxu0 %v22567_v25 }
 0x39e   : > { %20572 = vmatprep.subr.bf16.mxu0 %v22569_v27  ;;  %20593 = vmatpush3.bf16.msra.mxu1 %v22568_v26  ;;  %v22608_v26 = vld [vmem:[%s23670_s21 + $0x1a28] sm:$0xff]  }
 0x39f   : > { %20594 = vmatprep.subr.bf16.mxu1 %v22570_v28 }
 0x3a1   : > { %20573 = vmatpush3.bf16.msra.mxu0 %v22571_v29 }
 0x3a2   : > { %20574 = vmatprep.subr.bf16.mxu0 %v22573_v31  ;;  %20595 = vmatpush3.bf16.msra.mxu1 %v22572_v30  ;;  %v22609_v31 = vld [vmem:[%s23670_s21 + $0x1aa8] sm:$0xff]  }
 0x3a3   : > { %v20272_v32 = vpop.f32.mrb[72].mxu0  ;;  %20596 = vmatprep.subr.bf16.mxu1 %v22574_v33  ;;  %v22610_v33 = vld [vmem:[%s23670_s21 + $0x1a70] sm:$0xff]  }
 0x3a4   : > { %v20273_v34 = vpop.f32.mrb[73].mxu0  ;;  %v20294_v36 = vpop.f32.mrb[72].mxu1 }
 0x3a5   : > { %v20274_v37 = vadd.f32 %v20273_v34, %v20272_v32  ;;  %v20275_v38 = vpop.f32.mrb[74].mxu0  ;;  %v20295_v41 = vpop.f32.mrb[73].mxu1  ;;  %20575 = vmatpush3.bf16.msra.mxu0 %v22575_v35 }
 0x3a6   : > { %v20276_v43 = vpop.f32.mrb[75].mxu0  ;;  %v20296_v45 = vadd.f32 %v20295_v41, %v20294_v36  ;;  %v20297_v46 = vpop.f32.mrb[74].mxu1  ;;  %20576 = vmatprep.subr.bf16.mxu0 %v22577_v40  ;;  %20597 = vmatpush3.bf16.msra.mxu1 %v22576_v39  ;;  %v22612_v39 = vld [vmem:[%s23670_s21 + $0x1a30] sm:$0xff]   ;;  %v22614_v41 = vld [vmem:[%s23670_s21 + $0x1a78] sm:$0xff]  }
 0x3a7   : > { %v15345_v44 = vadd.f32 %v20274_v37, %v24608_v59  ;;  %v20298_v48 = vpop.f32.mrb[75].mxu1  ;;  %20598 = vmatprep.subr.bf16.mxu1 %v22578_v47  ;;  %v22586_v59 = vld [vmem:[%s23670_s21 + $0x1a40] sm:$0xff]   ;;  %v22611_v37 = vld [vmem:[%s23670_s21 + $0x1af0] sm:$0xff]  }
 0x3a8   : > { %v22613_v43 = vld [vmem:[%s23670_s21 + $0x1ab0] sm:$0xff]  }
 0x3a9   : > { %v24646_v50 = vadd.f32 %v20296_v45, %v15345_v44  ;;  %20577 = vmatpush3.bf16.msra.mxu0 %v22579_v49  ;;  %v22615_v44 = vld [vmem:[%s23670_s21 + $0x1af8] sm:$0xff]   ;;  %v311_v46 = vld [vmem:[%s23684_s15 + $0xd0] sm:$0xff]  ;;  %v22619_v49 = vld [vmem:[%s23670_s21 + $0x1b40] sm:$0xff]  }
 0x3aa   : > { %20578 = vmatprep.subr.bf16.mxu0 %v22581_v52  ;;  %20599 = vmatpush3.bf16.msra.mxu1 %v22580_v51  ;;  %v22616_v45 = vld [vmem:[%s23670_s21 + $0x1a38] sm:$0xff]   ;;  %v830_v47 = vrot.slane %v311_v46, %v23723_v42  ;;  %v823_v48 = vcombine.high %v311_v46, %v311_v46  ;;  %v22654_v46 = vld [vmem:[%s23670_s21 + $0x1c00] sm:$0xff]  }
 0x3ab   : > { %20600 = vmatprep.subr.bf16.mxu1 %v22582_v53  ;;  %v22620_v53 = vld [vmem:[%s23670_s21 + $0x1bc0] sm:$0xff]  }
 0x3ac   : > { %v838_v51 = vcombine.high %v830_v47, %v830_v47  ;;  %v837_v52 = vrot.slane %v823_v48, %v23723_v42 }
 0x3ad   : > { %20579 = vmatpush3.bf16.msra.mxu0 %v22583_v54  ;;  %v1493_v54 = vpack.c.bf16 %v830_v47, %v830_v47 }
 0x3ae   : > { %20608 = vmatprep.subr.bf16.mxu0 %v22586_v59  ;;  %20601 = vmatpush3.bf16.msra.mxu1 %v22584_v56  ;;  %v1494_v56 = vpack.c.bf16 %v838_v51, %v838_v51  ;;  %v839_v57 = vcombine.high %v837_v52, %v837_v52  ;;  %v1495_v59 = vpack.c.bf16 %v837_v52, %v837_v52  ;;  %v22656_v51 = vld [vmem:[%s23670_s21 + $0x1c48] sm:$0xff]  }
 0x3af   : > { %20630 = vmatprep.subr.bf16.mxu1 %v22587_v62  ;;  %v22624_v62 = vld [vmem:[%s23670_s21 + $0x1bc8] sm:$0xff]  }
 0x3b0   : > { %15903 = vmatmul.mubr.bf16.vlgmr.msra.gmra.mrb[100].mxu0 %v1489_v63  ;;  %v1496_v61 = vpack.c.bf16 %v839_v57, %v839_v57  ;;  %v22625_v63 = vld [vmem:[%s23670_s21 + $0x1b08] sm:$0xff]   ;;  %v22661_v57 = vld [vmem:[%s23670_s21 + $0x1cd0] sm:$0xff]  }
 0x3b1   : > { %20609 = vmatpush3.bf16.msra.mxu0 %v22588_v0  ;;  %15943 = vmatmul.mubr.bf16.vlgmr.msra.gmra.mrb[100].mxu1 %v1491_v4  ;;  %v22626_v0 = vld [vmem:[%s23670_s21 + $0x1b88] sm:$0xff]   ;;  %v22630_v4 = vld [vmem:[%s23670_s21 + $0x1b90] sm:$0xff]  }
 0x3b2   : > { %20610 = vmatprep.subr.bf16.mxu0 %v22590_v5  ;;  %20631 = vmatpush3.bf16.msra.mxu1 %v22589_v3  ;;  %v22629_v3 = vld [vmem:[%s23670_s21 + $0x1b10] sm:$0xff]   ;;  %v22631_v5 = vld [vmem:[%s23670_s21 + $0x1b58] sm:$0xff]  }
 0x3b3   : > { %20632 = vmatprep.subr.bf16.mxu1 %v22591_v7  ;;  %15982 = vmatprep.mubr.bf16.mxu0 %v1494_v56  ;;  %v22633_v7 = vld [vmem:[%s23670_s21 + $0x1b18] sm:$0xff]   ;;  %v22660_v56 = vld [vmem:[%s23670_s21 + $0x1c50] sm:$0xff]  }
 0x3b4   : > { %16022 = vmatprep.mubr.bf16.mxu1 %v1496_v61  ;;  %v22665_v61 = vld [vmem:[%s23670_s21 + $0x1cd8] sm:$0xff]  }
 0x3b5   : > { %20611 = vmatpush3.bf16.msra.mxu0 %v22592_v8  ;;  %v22634_v8 = vld [vmem:[%s23670_s21 + $0x1b98] sm:$0xff]  }
 0x3b6   : > { %20612 = vmatprep.subr.bf16.mxu0 %v22594_v10  ;;  %20633 = vmatpush3.bf16.msra.mxu1 %v22593_v9  ;;  %v22635_v9 = vld [vmem:[%s23670_s21 + $0x1b60] sm:$0xff]  }
 0x3b7   : > { %20634 = vmatprep.subr.bf16.mxu1 %v22595_v11  ;;  %v22636_v10 = vld [vmem:[%s23670_s21 + $0x1be0] sm:$0xff]  }
 0x3b8   : > { %v22637_v11 = vld [vmem:[%s23670_s21 + $0x1b20] sm:$0xff]  }
 0x3b9   : > { %20613 = vmatpush3.bf16.msra.mxu0 %v22596_v12  ;;  %v22638_v12 = vld [vmem:[%s23670_s21 + $0x1ba0] sm:$0xff]  }
 0x3ba   : > { %20614 = vmatprep.subr.bf16.mxu0 %v22598_v14  ;;  %20635 = vmatpush3.bf16.msra.mxu1 %v22597_v13  ;;  %v22639_v13 = vld [vmem:[%s23670_s21 + $0x1b68] sm:$0xff]  }
 0x3bb   : > { %20636 = vmatprep.subr.bf16.mxu1 %v22599_v15  ;;  %v22640_v15 = vld [vmem:[%s23670_s21 + $0x1be8] sm:$0xff]  }
 0x3bd   : > { %20615 = vmatpush3.bf16.msra.mxu0 %v22600_v16 }
 0x3be   : > { %20616 = vmatprep.subr.bf16.mxu0 %v22602_v18  ;;  %20637 = vmatpush3.bf16.msra.mxu1 %v22601_v17  ;;  %v22641_v17 = vld [vmem:[%s23670_s21 + $0x1b28] sm:$0xff]  }
 0x3bf   : > { %20638 = vmatprep.subr.bf16.mxu1 %v22603_v19 }
 0x3c1   : > { %20617 = vmatpush3.bf16.msra.mxu0 %v22604_v20 }
 0x3c2   : > { %20618 = vmatprep.subr.bf16.mxu0 %v22606_v22  ;;  %20639 = vmatpush3.bf16.msra.mxu1 %v22605_v21  ;;  %v22642_v21 = vld [vmem:[%s23670_s21 + $0x1ba8] sm:$0xff]   ;;  %v22643_v22 = vld [vmem:[%s23670_s21 + $0x1b70] sm:$0xff]  }
 0x3c3   : > { %v20316_v23 = vpop.f32.mrb[76].mxu0  ;;  %20640 = vmatprep.subr.bf16.mxu1 %v22607_v24 }
 0x3c4   : > { %v20317_v25 = vpop.f32.mrb[77].mxu0  ;;  %v20338_v27 = vpop.f32.mrb[76].mxu1 }
 0x3c5   : > { %v20318_v28 = vadd.f32 %v20317_v25, %v20316_v23  ;;  %v20319_v29 = vpop.f32.mrb[78].mxu0  ;;  %v20339_v30 = vpop.f32.mrb[77].mxu1  ;;  %20619 = vmatpush3.bf16.msra.mxu0 %v22608_v26 }
 0x3c6   : > { %v20320_v32 = vpop.f32.mrb[79].mxu0  ;;  %v20340_v35 = vadd.f32 %v20339_v30, %v20338_v27  ;;  %v20341_v36 = vpop.f32.mrb[78].mxu1  ;;  %20620 = vmatprep.subr.bf16.mxu0 %v22610_v33  ;;  %20641 = vmatpush3.bf16.msra.mxu1 %v22609_v31  ;;  %v22645_v30 = vld [vmem:[%s23670_s21 + $0x1b30] sm:$0xff]   ;;  %v22647_v33 = vld [vmem:[%s23670_s21 + $0x1b78] sm:$0xff]  }
 0x3c7   : > { %v15425_v34 = vadd.f32 %v20318_v28, %v24646_v50  ;;  %v20342_v38 = vpop.f32.mrb[79].mxu1  ;;  %20642 = vmatprep.subr.bf16.mxu1 %v22611_v37  ;;  %v22617_v50 = vld [vmem:[%s23670_s21 + $0x1ab8] sm:$0xff]   ;;  %v22644_v28 = vld [vmem:[%s23670_s21 + $0x1bf0] sm:$0xff]  }
 0x3c8   : > { %v22646_v32 = vld [vmem:[%s23670_s21 + $0x1bb0] sm:$0xff]  }
 0x3c9   : > { %v24684_v40 = vadd.f32 %v20340_v35, %v15425_v34  ;;  %20621 = vmatpush3.bf16.msra.mxu0 %v22612_v39  ;;  %v22648_v34 = vld [vmem:[%s23670_s21 + $0x1bf8] sm:$0xff]   ;;  %v22652_v39 = vld [vmem:[%s23670_s21 + $0x1c40] sm:$0xff]  }
 0x3ca   : > { %20622 = vmatprep.subr.bf16.mxu0 %v22614_v41  ;;  %20643 = vmatpush3.bf16.msra.mxu1 %v22613_v43  ;;  %v22649_v35 = vld [vmem:[%s23670_s21 + $0x1b38] sm:$0xff]  }
 0x3cb   : > { %20644 = vmatprep.subr.bf16.mxu1 %v22615_v44  ;;  %v312_v36 = vld [vmem:[%s23684_s15 + $0xd8] sm:$0xff]  ;;  %v22653_v44 = vld [vmem:[%s23670_s21 + $0x1cc0] sm:$0xff]  }
 0x3cc   : > { %v847_v37 = vrot.slane %v312_v36, %v23723_v42  ;;  %v840_v38 = vcombine.high %v312_v36, %v312_v36  ;;  %v22687_v36 = vld [vmem:[%s23670_s21 + $0x1d00] sm:$0xff]  }
 0x3cd   : > { %20623 = vmatpush3.bf16.msra.mxu0 %v22616_v45 }
 0x3ce   : > { %20652 = vmatprep.subr.bf16.mxu0 %v22619_v49  ;;  %20645 = vmatpush3.bf16.msra.mxu1 %v22617_v50  ;;  %v855_v41 = vcombine.high %v847_v37, %v847_v37  ;;  %v854_v43 = vrot.slane %v840_v38, %v23723_v42  ;;  %v1497_v45 = vpack.c.bf16 %v847_v37, %v847_v37  ;;  %v22655_v49 = vld [vmem:[%s23670_s21 + $0x1c80] sm:$0xff]  }
 0x3cf   : > { %20674 = vmatprep.subr.bf16.mxu1 %v22620_v53  ;;  %v22657_v53 = vld [vmem:[%s23670_s21 + $0x1cc8] sm:$0xff]  }
 0x3d0   : > { %15983 = vmatmul.mubr.bf16.vlgmr.msra.gmra.mrb[104].mxu0 %v1493_v54  ;;  %v1498_v47 = vpack.c.bf16 %v855_v41, %v855_v41  ;;  %v856_v48 = vcombine.high %v854_v43, %v854_v43  ;;  %v1499_v50 = vpack.c.bf16 %v854_v43, %v854_v43  ;;  %v22658_v54 = vld [vmem:[%s23670_s21 + $0x1c08] sm:$0xff]  }
 0x3d1   : > { %20653 = vmatpush3.bf16.msra.mxu0 %v22621_v55  ;;  %16023 = vmatmul.mubr.bf16.vlgmr.msra.gmra.mrb[104].mxu1 %v1495_v59  ;;  %v22659_v55 = vld [vmem:[%s23670_s21 + $0x1c88] sm:$0xff]   ;;  %v22663_v59 = vld [vmem:[%s23670_s21 + $0x1c90] sm:$0xff]  }
 0x3d2   : > { %20654 = vmatprep.subr.bf16.mxu0 %v22623_v60  ;;  %20675 = vmatpush3.bf16.msra.mxu1 %v22622_v58  ;;  %v1500_v52 = vpack.c.bf16 %v856_v48, %v856_v48  ;;  %v22662_v58 = vld [vmem:[%s23670_s21 + $0x1c10] sm:$0xff]   ;;  %v22664_v60 = vld [vmem:[%s23670_s21 + $0x1c58] sm:$0xff]   ;;  %v22689_v41 = vld [vmem:[%s23670_s21 + $0x1d48] sm:$0xff]  }
 0x3d3   : > { %20676 = vmatprep.subr.bf16.mxu1 %v22624_v62  ;;  %16062 = vmatprep.mubr.bf16.mxu0 %v1498_v47  ;;  %v22666_v62 = vld [vmem:[%s23670_s21 + $0x1c18] sm:$0xff]   ;;  %v22693_v47 = vld [vmem:[%s23670_s21 + $0x1d50] sm:$0xff]  }
 0x3d4   : > { %16102 = vmatprep.mubr.bf16.mxu1 %v1500_v52  ;;  %v22694_v48 = vld [vmem:[%s23670_s21 + $0x1dd0] sm:$0xff]   ;;  %v22698_v52 = vld [vmem:[%s23670_s21 + $0x1dd8] sm:$0xff]  }
 0x3d5   : > { %20655 = vmatpush3.bf16.msra.mxu0 %v22625_v63  ;;  %v22667_v63 = vld [vmem:[%s23670_s21 + $0x1c98] sm:$0xff]  }
 0x3d6   : > { %20656 = vmatprep.subr.bf16.mxu0 %v22627_v1  ;;  %20677 = vmatpush3.bf16.msra.mxu1 %v22626_v0  ;;  %v22668_v0 = vld [vmem:[%s23670_s21 + $0x1c60] sm:$0xff]  }
 0x3d7   : > { %20678 = vmatprep.subr.bf16.mxu1 %v22628_v2  ;;  %v22669_v1 = vld [vmem:[%s23670_s21 + $0x1ce0] sm:$0xff]  }
 0x3d8   : > { %v22670_v2 = vld [vmem:[%s23670_s21 + $0x1c20] sm:$0xff]  }
 0x3d9   : > { %20657 = vmatpush3.bf16.msra.mxu0 %v22629_v3  ;;  %v22671_v3 = vld [vmem:[%s23670_s21 + $0x1ca0] sm:$0xff]  }
 0x3da   : > { %20658 = vmatprep.subr.bf16.mxu0 %v22631_v5  ;;  %20679 = vmatpush3.bf16.msra.mxu1 %v22630_v4  ;;  %v22672_v4 = vld [vmem:[%s23670_s21 + $0x1c68] sm:$0xff]  }
 0x3db   : > { %20680 = vmatprep.subr.bf16.mxu1 %v22632_v6  ;;  %v22673_v6 = vld [vmem:[%s23670_s21 + $0x1ce8] sm:$0xff]  }
 0x3dd   : > { %20659 = vmatpush3.bf16.msra.mxu0 %v22633_v7 }
 0x3de   : > { %20660 = vmatprep.subr.bf16.mxu0 %v22635_v9  ;;  %20681 = vmatpush3.bf16.msra.mxu1 %v22634_v8  ;;  %v22674_v8 = vld [vmem:[%s23670_s21 + $0x1c28] sm:$0xff]  }
 0x3df   : > { %20682 = vmatprep.subr.bf16.mxu1 %v22636_v10 }
 0x3e1   : > { %20661 = vmatpush3.bf16.msra.mxu0 %v22637_v11 }
 0x3e2   : > { %20662 = vmatprep.subr.bf16.mxu0 %v22639_v13  ;;  %20683 = vmatpush3.bf16.msra.mxu1 %v22638_v12  ;;  %v22675_v12 = vld [vmem:[%s23670_s21 + $0x1ca8] sm:$0xff]   ;;  %v22676_v13 = vld [vmem:[%s23670_s21 + $0x1c70] sm:$0xff]  }
 0x3e3   : > { %v20360_v14 = vpop.f32.mrb[80].mxu0  ;;  %20684 = vmatprep.subr.bf16.mxu1 %v22640_v15 }
 0x3e4   : > { %v20361_v16 = vpop.f32.mrb[81].mxu0  ;;  %v20382_v18 = vpop.f32.mrb[80].mxu1 }
 0x3e5   : > { %v20362_v19 = vadd.f32 %v20361_v16, %v20360_v14  ;;  %v20363_v20 = vpop.f32.mrb[82].mxu0  ;;  %v20383_v23 = vpop.f32.mrb[81].mxu1  ;;  %20663 = vmatpush3.bf16.msra.mxu0 %v22641_v17 }
 0x3e6   : > { %v20364_v24 = vpop.f32.mrb[83].mxu0  ;;  %v20384_v26 = vadd.f32 %v20383_v23, %v20382_v18  ;;  %v20385_v27 = vpop.f32.mrb[82].mxu1  ;;  %20664 = vmatprep.subr.bf16.mxu0 %v22643_v22  ;;  %20685 = vmatpush3.bf16.msra.mxu1 %v22642_v21  ;;  %v22678_v21 = vld [vmem:[%s23670_s21 + $0x1c30] sm:$0xff]  }
 0x3e7   : > { %v15505_v25 = vadd.f32 %v20362_v19, %v24684_v40  ;;  %v20386_v29 = vpop.f32.mrb[83].mxu1  ;;  %20686 = vmatprep.subr.bf16.mxu1 %v22644_v28  ;;  %v22650_v40 = vld [vmem:[%s23670_s21 + $0x1bb8] sm:$0xff]   ;;  %v22677_v19 = vld [vmem:[%s23670_s21 + $0x1cf0] sm:$0xff]  }
 0x3e8   : > { %v22679_v23 = vld [vmem:[%s23670_s21 + $0x1cb0] sm:$0xff]   ;;  %v22680_v24 = vld [vmem:[%s23670_s21 + $0x1c78] sm:$0xff]  }
 0x3e9   : > { %v24722_v31 = vadd.f32 %v20384_v26, %v15505_v25  ;;  %20665 = vmatpush3.bf16.msra.mxu0 %v22645_v30  ;;  %v22681_v25 = vld [vmem:[%s23670_s21 + $0x1cf8] sm:$0xff]  }
 0x3ea   : > { %20666 = vmatprep.subr.bf16.mxu0 %v22647_v33  ;;  %20687 = vmatpush3.bf16.msra.mxu1 %v22646_v32  ;;  %v22682_v26 = vld [vmem:[%s23670_s21 + $0x1c38] sm:$0xff]  }
 0x3eb   : > { %20688 = vmatprep.subr.bf16.mxu1 %v22648_v34  ;;  %v313_v27 = vld [vmem:[%s23684_s15 + $0xe0] sm:$0xff] }
 0x3ec   : > { %v22683_v28 = vld [vmem:[%s23670_s21 + $0x1cb8] sm:$0xff]   ;;  %v864_v29 = vrot.slane %v313_v27, %v23723_v42  ;;  %v857_v30 = vcombine.high %v313_v27, %v313_v27  ;;  %v22686_v34 = vld [vmem:[%s23670_s21 + $0x1dc0] sm:$0xff]  }
 0x3ed   : > { %20667 = vmatpush3.bf16.msra.mxu0 %v22649_v35  ;;  %v22720_v27 = vld [vmem:[%s23670_s21 + $0x1e00] sm:$0xff]  }
 0x3ee   : > { %20696 = vmatprep.subr.bf16.mxu0 %v22652_v39  ;;  %20689 = vmatpush3.bf16.msra.mxu1 %v22650_v40  ;;  %v872_v32 = vcombine.high %v864_v29, %v864_v29  ;;  %v871_v33 = vrot.slane %v857_v30, %v23723_v42  ;;  %v1501_v35 = vpack.c.bf16 %v864_v29, %v864_v29  ;;  %v22688_v39 = vld [vmem:[%s23670_s21 + $0x1d80] sm:$0xff]  }
 0x3ef   : > { %20718 = vmatprep.subr.bf16.mxu1 %v22653_v44  ;;  %v22690_v44 = vld [vmem:[%s23670_s21 + $0x1dc8] sm:$0xff]   ;;  %v22721_v30 = vld [vmem:[%s23670_s21 + $0x1e80] sm:$0xff]  }
 0x3f0   : > { %16063 = vmatmul.mubr.bf16.vlgmr.msra.gmra.mrb[108].mxu0 %v1497_v45  ;;  %v1502_v37 = vpack.c.bf16 %v872_v32, %v872_v32  ;;  %v873_v38 = vcombine.high %v871_v33, %v871_v33  ;;  %v1503_v40 = vpack.c.bf16 %v871_v33, %v871_v33  ;;  %v22691_v45 = vld [vmem:[%s23670_s21 + $0x1d08] sm:$0xff]  }
 0x3f1   : > { %20697 = vmatpush3.bf16.msra.mxu0 %v22654_v46  ;;  %16103 = vmatmul.mubr.bf16.vlgmr.msra.gmra.mrb[108].mxu1 %v1499_v50  ;;  %v22692_v46 = vld [vmem:[%s23670_s21 + $0x1d88] sm:$0xff]   ;;  %v22696_v50 = vld [vmem:[%s23670_s21 + $0x1d90] sm:$0xff]  }
 0x3f2   : > { %20698 = vmatprep.subr.bf16.mxu0 %v22656_v51  ;;  %20719 = vmatpush3.bf16.msra.mxu1 %v22655_v49  ;;  %v1504_v43 = vpack.c.bf16 %v873_v38, %v873_v38  ;;  %v22695_v49 = vld [vmem:[%s23670_s21 + $0x1d10] sm:$0xff]   ;;  %v22697_v51 = vld [vmem:[%s23670_s21 + $0x1d58] sm:$0xff]   ;;  %v22722_v32 = vld [vmem:[%s23670_s21 + $0x1e48] sm:$0xff]  }
 0x3f3   : > { %20720 = vmatprep.subr.bf16.mxu1 %v22657_v53  ;;  %16142 = vmatprep.mubr.bf16.mxu0 %v1502_v37  ;;  %v22699_v53 = vld [vmem:[%s23670_s21 + $0x1d18] sm:$0xff]   ;;  %v22726_v37 = vld [vmem:[%s23670_s21 + $0x1e50] sm:$0xff]  }
 0x3f4   : > { %16182 = vmatprep.mubr.bf16.mxu1 %v1504_v43  ;;  %v22727_v38 = vld [vmem:[%s23670_s21 + $0x1ed0] sm:$0xff]   ;;  %v22731_v43 = vld [vmem:[%s23670_s21 + $0x1ed8] sm:$0xff]  }
 0x3f5   : > { %20699 = vmatpush3.bf16.msra.mxu0 %v22658_v54  ;;  %v22700_v54 = vld [vmem:[%s23670_s21 + $0x1d98] sm:$0xff]  }
 0x3f6   : > { %20700 = vmatprep.subr.bf16.mxu0 %v22660_v56  ;;  %20721 = vmatpush3.bf16.msra.mxu1 %v22659_v55  ;;  %v22701_v55 = vld [vmem:[%s23670_s21 + $0x1d60] sm:$0xff]  }
 0x3f7   : > { %20722 = vmatprep.subr.bf16.mxu1 %v22661_v57  ;;  %v22702_v56 = vld [vmem:[%s23670_s21 + $0x1de0] sm:$0xff]  }
 0x3f8   : > { %v22703_v57 = vld [vmem:[%s23670_s21 + $0x1d20] sm:$0xff]  }
 0x3f9   : > { %20701 = vmatpush3.bf16.msra.mxu0 %v22662_v58  ;;  %v22704_v58 = vld [vmem:[%s23670_s21 + $0x1da0] sm:$0xff]  }
 0x3fa   : > { %20702 = vmatprep.subr.bf16.mxu0 %v22664_v60  ;;  %20723 = vmatpush3.bf16.msra.mxu1 %v22663_v59  ;;  %v22705_v59 = vld [vmem:[%s23670_s21 + $0x1d68] sm:$0xff]  }
 0x3fb   : > { %20724 = vmatprep.subr.bf16.mxu1 %v22665_v61  ;;  %v22706_v61 = vld [vmem:[%s23670_s21 + $0x1de8] sm:$0xff]  }
 0x3fd   : > { %20703 = vmatpush3.bf16.msra.mxu0 %v22666_v62 }
 0x3fe   : > { %20704 = vmatprep.subr.bf16.mxu0 %v22668_v0  ;;  %20725 = vmatpush3.bf16.msra.mxu1 %v22667_v63  ;;  %v22707_v63 = vld [vmem:[%s23670_s21 + $0x1d28] sm:$0xff]  }
 0x3ff   : > { %20726 = vmatprep.subr.bf16.mxu1 %v22669_v1 }
 0x401   : > { %20705 = vmatpush3.bf16.msra.mxu0 %v22670_v2 }
 0x402   : > { %20706 = vmatprep.subr.bf16.mxu0 %v22672_v4  ;;  %20727 = vmatpush3.bf16.msra.mxu1 %v22671_v3  ;;  %v22708_v4 = vld [vmem:[%s23670_s21 + $0x1da8] sm:$0xff]  }
 0x403   : > { %v20404_v5 = vpop.f32.mrb[84].mxu0  ;;  %20728 = vmatprep.subr.bf16.mxu1 %v22673_v6  ;;  %v22709_v6 = vld [vmem:[%s23670_s21 + $0x1d70] sm:$0xff]  }
 0x404   : > { %v20405_v7 = vpop.f32.mrb[85].mxu0  ;;  %v20426_v9 = vpop.f32.mrb[84].mxu1 }
 0x405   : > { %v20406_v10 = vadd.f32 %v20405_v7, %v20404_v5  ;;  %v20407_v11 = vpop.f32.mrb[86].mxu0  ;;  %v20427_v14 = vpop.f32.mrb[85].mxu1  ;;  %20707 = vmatpush3.bf16.msra.mxu0 %v22674_v8 }
 0x406   : > { %v20408_v15 = vpop.f32.mrb[87].mxu0  ;;  %v20428_v17 = vadd.f32 %v20427_v14, %v20426_v9  ;;  %v20429_v18 = vpop.f32.mrb[86].mxu1  ;;  %20708 = vmatprep.subr.bf16.mxu0 %v22676_v13  ;;  %20729 = vmatpush3.bf16.msra.mxu1 %v22675_v12  ;;  %v22711_v12 = vld [vmem:[%s23670_s21 + $0x1d30] sm:$0xff]   ;;  %v22713_v14 = vld [vmem:[%s23670_s21 + $0x1d78] sm:$0xff]  }
 0x407   : > { %v15585_v16 = vadd.f32 %v20406_v10, %v24722_v31  ;;  %v20430_v20 = vpop.f32.mrb[87].mxu1  ;;  %20730 = vmatprep.subr.bf16.mxu1 %v22677_v19  ;;  %v22685_v31 = vld [vmem:[%s23670_s21 + $0x1d40] sm:$0xff]   ;;  %v22710_v10 = vld [vmem:[%s23670_s21 + $0x1df0] sm:$0xff]  }
 0x408   : > { %v22712_v15 = vld [vmem:[%s23670_s21 + $0x1db0] sm:$0xff]   ;;  %v314_v18 = vld [vmem:[%s23684_s15 + $0xe8] sm:$0xff] }
 0x409   : > { %v24760_v22 = vadd.f32 %v20428_v17, %v15585_v16  ;;  %20709 = vmatpush3.bf16.msra.mxu0 %v22678_v21  ;;  %v22714_v16 = vld [vmem:[%s23670_s21 + $0x1df8] sm:$0xff]   ;;  %v881_v19 = vrot.slane %v314_v18, %v23723_v42  ;;  %v874_v20 = vcombine.high %v314_v18, %v314_v18  ;;  %v22718_v21 = vld [vmem:[%s23670_s21 + $0x1e40] sm:$0xff]  }
 0x40a   : > { %20710 = vmatprep.subr.bf16.mxu0 %v22680_v24  ;;  %20731 = vmatpush3.bf16.msra.mxu1 %v22679_v23  ;;  %v22715_v17 = vld [vmem:[%s23670_s21 + $0x1d38] sm:$0xff]   ;;  %v22753_v18 = vld [vmem:[%s23670_s21 + $0x1f00] sm:$0xff]  }
 0x40b   : > { %20732 = vmatprep.subr.bf16.mxu1 %v22681_v25  ;;  %v889_v23 = vcombine.high %v881_v19, %v881_v19  ;;  %v888_v24 = vrot.slane %v874_v20, %v23723_v42  ;;  %v22719_v25 = vld [vmem:[%s23670_s21 + $0x1ec0] sm:$0xff]  }
 0x40d   : > { %20711 = vmatpush3.bf16.msra.mxu0 %v22682_v26  ;;  %v1505_v26 = vpack.c.bf16 %v881_v19, %v881_v19  ;;  %v890_v29 = vcombine.high %v888_v24, %v888_v24 }
 0x40e   : > { %20740 = vmatprep.subr.bf16.mxu0 %v22685_v31  ;;  %20733 = vmatpush3.bf16.msra.mxu1 %v22683_v28  ;;  %v1506_v28 = vpack.c.bf16 %v889_v23, %v889_v23  ;;  %v1507_v31 = vpack.c.bf16 %v888_v24, %v888_v24  ;;  %v22755_v23 = vld [vmem:[%s23670_s21 + $0x1f48] sm:$0xff]  }
 0x40f   : > { %20762 = vmatprep.subr.bf16.mxu1 %v22686_v34  ;;  %v1508_v33 = vpack.c.bf16 %v890_v29, %v890_v29  ;;  %v22723_v34 = vld [vmem:[%s23670_s21 + $0x1ec8] sm:$0xff]   ;;  %v22760_v29 = vld [vmem:[%s23670_s21 + $0x1fd0] sm:$0xff]  }
 0x410   : > { %16143 = vmatmul.mubr.bf16.vlgmr.msra.gmra.mrb[112].mxu0 %v1501_v35  ;;  %v22724_v35 = vld [vmem:[%s23670_s21 + $0x1e08] sm:$0xff]  }
 0x411   : > { %20741 = vmatpush3.bf16.msra.mxu0 %v22687_v36  ;;  %16183 = vmatmul.mubr.bf16.vlgmr.msra.gmra.mrb[112].mxu1 %v1503_v40  ;;  %v22725_v36 = vld [vmem:[%s23670_s21 + $0x1e88] sm:$0xff]   ;;  %v22729_v40 = vld [vmem:[%s23670_s21 + $0x1e90] sm:$0xff]  }
 0x412   : > { %20742 = vmatprep.subr.bf16.mxu0 %v22689_v41  ;;  %20763 = vmatpush3.bf16.msra.mxu1 %v22688_v39  ;;  %v22728_v39 = vld [vmem:[%s23670_s21 + $0x1e10] sm:$0xff]   ;;  %v22730_v41 = vld [vmem:[%s23670_s21 + $0x1e58] sm:$0xff]  }
 0x413   : > { %20764 = vmatprep.subr.bf16.mxu1 %v22690_v44  ;;  %16222 = vmatprep.mubr.bf16.mxu0 %v1506_v28  ;;  %v22732_v44 = vld [vmem:[%s23670_s21 + $0x1e18] sm:$0xff]   ;;  %v22759_v28 = vld [vmem:[%s23670_s21 + $0x1f50] sm:$0xff]  }
 0x414   : > { %16262 = vmatprep.mubr.bf16.mxu1 %v1508_v33  ;;  %v22764_v33 = vld [vmem:[%s23670_s21 + $0x1fd8] sm:$0xff]  }
 0x415   : > { %20743 = vmatpush3.bf16.msra.mxu0 %v22691_v45  ;;  %v22733_v45 = vld [vmem:[%s23670_s21 + $0x1e98] sm:$0xff]  }
 0x416   : > { %20744 = vmatprep.subr.bf16.mxu0 %v22693_v47  ;;  %20765 = vmatpush3.bf16.msra.mxu1 %v22692_v46  ;;  %v22734_v46 = vld [vmem:[%s23670_s21 + $0x1e60] sm:$0xff]  }
 0x417   : > { %20766 = vmatprep.subr.bf16.mxu1 %v22694_v48  ;;  %v22735_v47 = vld [vmem:[%s23670_s21 + $0x1ee0] sm:$0xff]  }
 0x418   : > { %v22736_v48 = vld [vmem:[%s23670_s21 + $0x1e20] sm:$0xff]  }
 0x419   : > { %20745 = vmatpush3.bf16.msra.mxu0 %v22695_v49  ;;  %v22737_v49 = vld [vmem:[%s23670_s21 + $0x1ea0] sm:$0xff]  }
 0x41a   : > { %20746 = vmatprep.subr.bf16.mxu0 %v22697_v51  ;;  %20767 = vmatpush3.bf16.msra.mxu1 %v22696_v50  ;;  %v22738_v50 = vld [vmem:[%s23670_s21 + $0x1e68] sm:$0xff]  }
 0x41b   : > { %20768 = vmatprep.subr.bf16.mxu1 %v22698_v52  ;;  %v22739_v52 = vld [vmem:[%s23670_s21 + $0x1ee8] sm:$0xff]  }
 0x41d   : > { %20747 = vmatpush3.bf16.msra.mxu0 %v22699_v53 }
 0x41e   : > { %20748 = vmatprep.subr.bf16.mxu0 %v22701_v55  ;;  %20769 = vmatpush3.bf16.msra.mxu1 %v22700_v54  ;;  %v22740_v54 = vld [vmem:[%s23670_s21 + $0x1e28] sm:$0xff]  }
 0x41f   : > { %20770 = vmatprep.subr.bf16.mxu1 %v22702_v56 }
 0x421   : > { %20749 = vmatpush3.bf16.msra.mxu0 %v22703_v57 }
 0x422   : > { %20750 = vmatprep.subr.bf16.mxu0 %v22705_v59  ;;  %20771 = vmatpush3.bf16.msra.mxu1 %v22704_v58  ;;  %v22741_v58 = vld [vmem:[%s23670_s21 + $0x1ea8] sm:$0xff]   ;;  %v22742_v59 = vld [vmem:[%s23670_s21 + $0x1e70] sm:$0xff]  }
 0x423   : > { %v20448_v60 = vpop.f32.mrb[88].mxu0  ;;  %20772 = vmatprep.subr.bf16.mxu1 %v22706_v61 }
 0x424   : > { %v20449_v62 = vpop.f32.mrb[89].mxu0  ;;  %v20470_v0 = vpop.f32.mrb[88].mxu1 }
 0x425   : > { %v20450_v1 = vadd.f32 %v20449_v62, %v20448_v60  ;;  %v20451_v2 = vpop.f32.mrb[90].mxu0  ;;  %v20471_v3 = vpop.f32.mrb[89].mxu1  ;;  %20751 = vmatpush3.bf16.msra.mxu0 %v22707_v63 }
 0x426   : > { %v20452_v5 = vpop.f32.mrb[91].mxu0  ;;  %v20472_v8 = vadd.f32 %v20471_v3, %v20470_v0  ;;  %v20473_v9 = vpop.f32.mrb[90].mxu1  ;;  %20752 = vmatprep.subr.bf16.mxu0 %v22709_v6  ;;  %20773 = vmatpush3.bf16.msra.mxu1 %v22708_v4  ;;  %v22744_v3 = vld [vmem:[%s23670_s21 + $0x1e30] sm:$0xff]   ;;  %v22746_v6 = vld [vmem:[%s23670_s21 + $0x1e78] sm:$0xff]  }
 0x427   : > { %v15665_v7 = vadd.f32 %v20450_v1, %v24760_v22  ;;  %v20474_v11 = vpop.f32.mrb[91].mxu1  ;;  %20774 = vmatprep.subr.bf16.mxu1 %v22710_v10  ;;  %v22716_v22 = vld [vmem:[%s23670_s21 + $0x1db8] sm:$0xff]   ;;  %v22743_v1 = vld [vmem:[%s23670_s21 + $0x1ef0] sm:$0xff]  }
 0x428   : > { %v22745_v5 = vld [vmem:[%s23670_s21 + $0x1eb0] sm:$0xff]  }
 0x429   : > { %v24798_v13 = vadd.f32 %v20472_v8, %v15665_v7  ;;  %20753 = vmatpush3.bf16.msra.mxu0 %v22711_v12  ;;  %v22747_v7 = vld [vmem:[%s23670_s21 + $0x1ef8] sm:$0xff]   ;;  %v315_v9 = vld [vmem:[%s23684_s15 + $0xf0] sm:$0xff]  ;;  %v22751_v12 = vld [vmem:[%s23670_s21 + $0x1f40] sm:$0xff]  }
 0x42a   : > { %20754 = vmatprep.subr.bf16.mxu0 %v22713_v14  ;;  %20775 = vmatpush3.bf16.msra.mxu1 %v22712_v15  ;;  %v22748_v8 = vld [vmem:[%s23670_s21 + $0x1e38] sm:$0xff]   ;;  %v898_v10 = vrot.slane %v315_v9, %v23723_v42  ;;  %v891_v11 = vcombine.high %v315_v9, %v315_v9  ;;  %v22786_v9 = vld [vmem:[%s23670_s21 + $0x2000] sm:$0xff]  }
 0x42b   : > { %20776 = vmatprep.subr.bf16.mxu1 %v22714_v16  ;;  %v22752_v16 = vld [vmem:[%s23670_s21 + $0x1fc0] sm:$0xff]  }
 0x42c   : > { %v906_v14 = vcombine.high %v898_v10, %v898_v10  ;;  %v905_v15 = vrot.slane %v891_v11, %v23723_v42 }
 0x42d   : > { %20755 = vmatpush3.bf16.msra.mxu0 %v22715_v17  ;;  %v1509_v17 = vpack.c.bf16 %v898_v10, %v898_v10 }
 0x42e   : > { %20784 = vmatprep.subr.bf16.mxu0 %v22718_v21  ;;  %20777 = vmatpush3.bf16.msra.mxu1 %v22716_v22  ;;  %v1510_v19 = vpack.c.bf16 %v906_v14, %v906_v14  ;;  %v907_v20 = vcombine.high %v905_v15, %v905_v15  ;;  %v22754_v21 = vld [vmem:[%s23670_s21 + $0x1f80] sm:$0xff]   ;;  %v1511_v22 = vpack.c.bf16 %v905_v15, %v905_v15  ;;  %v22788_v14 = vld [vmem:[%s23670_s21 + $0x2048] sm:$0xff]  }
 0x42f   : > { %20806 = vmatprep.subr.bf16.mxu1 %v22719_v25  ;;  %v22756_v25 = vld [vmem:[%s23670_s21 + $0x1fc8] sm:$0xff]  }
 0x430   : > { %16223 = vmatmul.mubr.bf16.vlgmr.msra.gmra.mrb[116].mxu0 %v1505_v26  ;;  %v1512_v24 = vpack.c.bf16 %v907_v20, %v907_v20  ;;  %v22757_v26 = vld [vmem:[%s23670_s21 + $0x1f08] sm:$0xff]   ;;  %v22793_v20 = vld [vmem:[%s23670_s21 + $0x20d0] sm:$0xff]  }
 0x431   : > { %20785 = vmatpush3.bf16.msra.mxu0 %v22720_v27  ;;  %16263 = vmatmul.mubr.bf16.vlgmr.msra.gmra.mrb[116].mxu1 %v1507_v31  ;;  %v22758_v27 = vld [vmem:[%s23670_s21 + $0x1f88] sm:$0xff]   ;;  %v22762_v31 = vld [vmem:[%s23670_s21 + $0x1f90] sm:$0xff]  }
 0x432   : > { %20786 = vmatprep.subr.bf16.mxu0 %v22722_v32  ;;  %20807 = vmatpush3.bf16.msra.mxu1 %v22721_v30  ;;  %v22761_v30 = vld [vmem:[%s23670_s21 + $0x1f10] sm:$0xff]   ;;  %v22763_v32 = vld [vmem:[%s23670_s21 + $0x1f58] sm:$0xff]  }
 0x433   : > { %20808 = vmatprep.subr.bf16.mxu1 %v22723_v34  ;;  %16302 = vmatprep.mubr.bf16.mxu0 %v1510_v19  ;;  %v22765_v34 = vld [vmem:[%s23670_s21 + $0x1f18] sm:$0xff]   ;;  %v22792_v19 = vld [vmem:[%s23670_s21 + $0x2050] sm:$0xff]  }
 0x434   : > { %16342 = vmatprep.mubr.bf16.mxu1 %v1512_v24  ;;  %v22797_v24 = vld [vmem:[%s23670_s21 + $0x20d8] sm:$0xff]  }
 0x435   : > { %20787 = vmatpush3.bf16.msra.mxu0 %v22724_v35  ;;  %v22766_v35 = vld [vmem:[%s23670_s21 + $0x1f98] sm:$0xff]  }
 0x436   : > { %20788 = vmatprep.subr.bf16.mxu0 %v22726_v37  ;;  %20809 = vmatpush3.bf16.msra.mxu1 %v22725_v36  ;;  %v22767_v36 = vld [vmem:[%s23670_s21 + $0x1f60] sm:$0xff]  }
 0x437   : > { %20810 = vmatprep.subr.bf16.mxu1 %v22727_v38  ;;  %v22768_v37 = vld [vmem:[%s23670_s21 + $0x1fe0] sm:$0xff]  }
 0x438   : > { %v22769_v38 = vld [vmem:[%s23670_s21 + $0x1f20] sm:$0xff]  }
 0x439   : > { %20789 = vmatpush3.bf16.msra.mxu0 %v22728_v39  ;;  %v22770_v39 = vld [vmem:[%s23670_s21 + $0x1fa0] sm:$0xff]  }
 0x43a   : > { %20790 = vmatprep.subr.bf16.mxu0 %v22730_v41  ;;  %20811 = vmatpush3.bf16.msra.mxu1 %v22729_v40  ;;  %v22771_v40 = vld [vmem:[%s23670_s21 + $0x1f68] sm:$0xff]  }
 0x43b   : > { %20812 = vmatprep.subr.bf16.mxu1 %v22731_v43  ;;  %v22772_v43 = vld [vmem:[%s23670_s21 + $0x1fe8] sm:$0xff]  }
 0x43d   : > { %20791 = vmatpush3.bf16.msra.mxu0 %v22732_v44 }
 0x43e   : > { %20792 = vmatprep.subr.bf16.mxu0 %v22734_v46  ;;  %20813 = vmatpush3.bf16.msra.mxu1 %v22733_v45  ;;  %v22773_v45 = vld [vmem:[%s23670_s21 + $0x1f28] sm:$0xff]  }
 0x43f   : > { %20814 = vmatprep.subr.bf16.mxu1 %v22735_v47 }
 0x441   : > { %20793 = vmatpush3.bf16.msra.mxu0 %v22736_v48 }
 0x442   : > { %20794 = vmatprep.subr.bf16.mxu0 %v22738_v50  ;;  %20815 = vmatpush3.bf16.msra.mxu1 %v22737_v49  ;;  %v22774_v49 = vld [vmem:[%s23670_s21 + $0x1fa8] sm:$0xff]   ;;  %v22775_v50 = vld [vmem:[%s23670_s21 + $0x1f70] sm:$0xff]  }
 0x443   : > { %v20492_v51 = vpop.f32.mrb[92].mxu0  ;;  %20816 = vmatprep.subr.bf16.mxu1 %v22739_v52 }
 0x444   : > { %v20493_v53 = vpop.f32.mrb[93].mxu0  ;;  %v20514_v55 = vpop.f32.mrb[92].mxu1 }
 0x445   : > { %v20494_v56 = vadd.f32 %v20493_v53, %v20492_v51  ;;  %v20495_v57 = vpop.f32.mrb[94].mxu0  ;;  %v20515_v60 = vpop.f32.mrb[93].mxu1  ;;  %20795 = vmatpush3.bf16.msra.mxu0 %v22740_v54 }
 0x446   : > { %v20496_v61 = vpop.f32.mrb[95].mxu0  ;;  %v20516_v63 = vadd.f32 %v20515_v60, %v20514_v55  ;;  %v20517_v0 = vpop.f32.mrb[94].mxu1  ;;  %20796 = vmatprep.subr.bf16.mxu0 %v22742_v59  ;;  %20817 = vmatpush3.bf16.msra.mxu1 %v22741_v58  ;;  %v22777_v58 = vld [vmem:[%s23670_s21 + $0x1f30] sm:$0xff]  }
 0x447   : > { %v15745_v62 = vadd.f32 %v20494_v56, %v24798_v13  ;;  %v20518_v2 = vpop.f32.mrb[95].mxu1  ;;  %20818 = vmatprep.subr.bf16.mxu1 %v22743_v1  ;;  %v22749_v13 = vld [vmem:[%s23670_s21 + $0x1eb8] sm:$0xff]   ;;  %v22776_v56 = vld [vmem:[%s23670_s21 + $0x1ff0] sm:$0xff]  }
 0x448   : > { %v22778_v60 = vld [vmem:[%s23670_s21 + $0x1fb0] sm:$0xff]   ;;  %v22779_v61 = vld [vmem:[%s23670_s21 + $0x1f78] sm:$0xff]  }
 0x449   : > { %v24836_v4 = vadd.f32 %v20516_v63, %v15745_v62  ;;  %20797 = vmatpush3.bf16.msra.mxu0 %v22744_v3  ;;  %v22780_v62 = vld [vmem:[%s23670_s21 + $0x1ff8] sm:$0xff]  }
 0x44a   : > { %20798 = vmatprep.subr.bf16.mxu0 %v22746_v6  ;;  %20819 = vmatpush3.bf16.msra.mxu1 %v22745_v5  ;;  %v22781_v63 = vld [vmem:[%s23670_s21 + $0x1f38] sm:$0xff]  }
 0x44b   : > { %20820 = vmatprep.subr.bf16.mxu1 %v22747_v7  ;;  %v316_v0 = vld [vmem:[%s23684_s15 + $0xf8] sm:$0xff]  ;;  %v22785_v7 = vld [vmem:[%s23670_s21 + $0x20c0] sm:$0xff]  }
 0x44c   : > { %v22782_v1 = vld [vmem:[%s23670_s21 + $0x1fb8] sm:$0xff]   ;;  %v915_v2 = vrot.slane %v316_v0, %v23723_v42  ;;  %v908_v3 = vcombine.high %v316_v0, %v316_v0  ;;  %v22819_v0 = vld [vmem:[%s23670_s21 + $0x2100] sm:$0xff]  }
 0x44d   : > { %20799 = vmatpush3.bf16.msra.mxu0 %v22748_v8 }
 0x44e   : > { %20828 = vmatprep.subr.bf16.mxu0 %v22751_v12  ;;  %20821 = vmatpush3.bf16.msra.mxu1 %v22749_v13  ;;  %v923_v5 = vcombine.high %v915_v2, %v915_v2  ;;  %v922_v6 = vrot.slane %v908_v3, %v23723_v42  ;;  %v1513_v8 = vpack.c.bf16 %v915_v2, %v915_v2  ;;  %v22787_v12 = vld [vmem:[%s23670_s21 + $0x2080] sm:$0xff]  }
 0x44f   : > { %20850 = vmatprep.subr.bf16.mxu1 %v22752_v16  ;;  %v22789_v16 = vld [vmem:[%s23670_s21 + $0x20c8] sm:$0xff]   ;;  %v22820_v3 = vld [vmem:[%s23670_s21 + $0x2180] sm:$0xff]  }
 0x450   : > { %16303 = vmatmul.mubr.bf16.vlgmr.msra.gmra.mrb[120].mxu0 %v1509_v17  ;;  %v1514_v10 = vpack.c.bf16 %v923_v5, %v923_v5  ;;  %v924_v11 = vcombine.high %v922_v6, %v922_v6  ;;  %v1515_v13 = vpack.c.bf16 %v922_v6, %v922_v6  ;;  %v22790_v17 = vld [vmem:[%s23670_s21 + $0x2008] sm:$0xff]  }
 0x451   : > { %20829 = vmatpush3.bf16.msra.mxu0 %v22753_v18  ;;  %16343 = vmatmul.mubr.bf16.vlgmr.msra.gmra.mrb[120].mxu1 %v1511_v22  ;;  %v22791_v18 = vld [vmem:[%s23670_s21 + $0x2088] sm:$0xff]   ;;  %v22795_v22 = vld [vmem:[%s23670_s21 + $0x2090] sm:$0xff]  }
 0x452   : > { %20830 = vmatprep.subr.bf16.mxu0 %v22755_v23  ;;  %20851 = vmatpush3.bf16.msra.mxu1 %v22754_v21  ;;  %v1516_v15 = vpack.c.bf16 %v924_v11, %v924_v11  ;;  %v22794_v21 = vld [vmem:[%s23670_s21 + $0x2010] sm:$0xff]   ;;  %v22796_v23 = vld [vmem:[%s23670_s21 + $0x2058] sm:$0xff]   ;;  %v22821_v5 = vld [vmem:[%s23670_s21 + $0x2148] sm:$0xff]  }
 0x453   : > { %20852 = vmatprep.subr.bf16.mxu1 %v22756_v25  ;;  %16382 = vmatprep.mubr.bf16.mxu0 %v1514_v10  ;;  %v22798_v25 = vld [vmem:[%s23670_s21 + $0x2018] sm:$0xff]   ;;  %v22825_v10 = vld [vmem:[%s23670_s21 + $0x2150] sm:$0xff]  }
 0x454   : > { %16422 = vmatprep.mubr.bf16.mxu1 %v1516_v15  ;;  %v22826_v11 = vld [vmem:[%s23670_s21 + $0x21d0] sm:$0xff]   ;;  %v22830_v15 = vld [vmem:[%s23670_s21 + $0x21d8] sm:$0xff]  }
 0x455   : > { %20831 = vmatpush3.bf16.msra.mxu0 %v22757_v26  ;;  %v22799_v26 = vld [vmem:[%s23670_s21 + $0x2098] sm:$0xff]  }
 0x456   : > { %20832 = vmatprep.subr.bf16.mxu0 %v22759_v28  ;;  %20853 = vmatpush3.bf16.msra.mxu1 %v22758_v27  ;;  %v22800_v27 = vld [vmem:[%s23670_s21 + $0x2060] sm:$0xff]  }
 0x457   : > { %20854 = vmatprep.subr.bf16.mxu1 %v22760_v29  ;;  %v22801_v28 = vld [vmem:[%s23670_s21 + $0x20e0] sm:$0xff]  }
 0x458   : > { %v22802_v29 = vld [vmem:[%s23670_s21 + $0x2020] sm:$0xff]  }
 0x459   : > { %20833 = vmatpush3.bf16.msra.mxu0 %v22761_v30  ;;  %v22803_v30 = vld [vmem:[%s23670_s21 + $0x20a0] sm:$0xff]  }
 0x45a   : > { %20834 = vmatprep.subr.bf16.mxu0 %v22763_v32  ;;  %20855 = vmatpush3.bf16.msra.mxu1 %v22762_v31  ;;  %v22804_v31 = vld [vmem:[%s23670_s21 + $0x2068] sm:$0xff]  }
 0x45b   : > { %20856 = vmatprep.subr.bf16.mxu1 %v22764_v33  ;;  %v22805_v33 = vld [vmem:[%s23670_s21 + $0x20e8] sm:$0xff]  }
 0x45d   : > { %20835 = vmatpush3.bf16.msra.mxu0 %v22765_v34 }
 0x45e   : > { %20836 = vmatprep.subr.bf16.mxu0 %v22767_v36  ;;  %20857 = vmatpush3.bf16.msra.mxu1 %v22766_v35  ;;  %v22806_v35 = vld [vmem:[%s23670_s21 + $0x2028] sm:$0xff]  }
 0x45f   : > { %20858 = vmatprep.subr.bf16.mxu1 %v22768_v37 }
 0x461   : > { %20837 = vmatpush3.bf16.msra.mxu0 %v22769_v38 }
 0x462   : > { %20838 = vmatprep.subr.bf16.mxu0 %v22771_v40  ;;  %20859 = vmatpush3.bf16.msra.mxu1 %v22770_v39  ;;  %v22807_v40 = vld [vmem:[%s23670_s21 + $0x20a8] sm:$0xff]  }
 0x463   : > { %v20536_v41 = vpop.f32.mrb[96].mxu0  ;;  %20860 = vmatprep.subr.bf16.mxu1 %v22772_v43  ;;  %v22808_v43 = vld [vmem:[%s23670_s21 + $0x2070] sm:$0xff]  }
 0x464   : > { %v20537_v44 = vpop.f32.mrb[97].mxu0  ;;  %v20558_v46 = vpop.f32.mrb[96].mxu1 }
 0x465   : > { %v20538_v47 = vadd.f32 %v20537_v44, %v20536_v41  ;;  %v20539_v48 = vpop.f32.mrb[98].mxu0  ;;  %v20559_v51 = vpop.f32.mrb[97].mxu1  ;;  %20839 = vmatpush3.bf16.msra.mxu0 %v22773_v45 }
 0x466   : > { %v20540_v52 = vpop.f32.mrb[99].mxu0  ;;  %v20560_v54 = vadd.f32 %v20559_v51, %v20558_v46  ;;  %v20561_v55 = vpop.f32.mrb[98].mxu1  ;;  %20840 = vmatprep.subr.bf16.mxu0 %v22775_v50  ;;  %20861 = vmatpush3.bf16.msra.mxu1 %v22774_v49  ;;  %v22810_v49 = vld [vmem:[%s23670_s21 + $0x2030] sm:$0xff]   ;;  %v22812_v51 = vld [vmem:[%s23670_s21 + $0x2078] sm:$0xff]  }
 0x467   : > { %v15825_v53 = vadd.f32 %v20538_v47, %v24836_v4  ;;  %v20562_v57 = vpop.f32.mrb[99].mxu1  ;;  %20862 = vmatprep.subr.bf16.mxu1 %v22776_v56  ;;  %v22784_v4 = vld [vmem:[%s23670_s21 + $0x2040] sm:$0xff]   ;;  %v22809_v47 = vld [vmem:[%s23670_s21 + $0x20f0] sm:$0xff]  }
 0x468   : > { %v22811_v52 = vld [vmem:[%s23670_s21 + $0x20b0] sm:$0xff]   ;;  %v317_v55 = vld [vmem:[%s23684_s15 + $0x100] sm:$0xff] }
 0x469   : > { %v24874_v59 = vadd.f32 %v20560_v54, %v15825_v53  ;;  %20841 = vmatpush3.bf16.msra.mxu0 %v22777_v58  ;;  %v22813_v53 = vld [vmem:[%s23670_s21 + $0x20f8] sm:$0xff]   ;;  %v932_v56 = vrot.slane %v317_v55, %v23723_v42  ;;  %v925_v57 = vcombine.high %v317_v55, %v317_v55  ;;  %v22817_v58 = vld [vmem:[%s23670_s21 + $0x2140] sm:$0xff]  }
 0x46a   : > { %20842 = vmatprep.subr.bf16.mxu0 %v22779_v61  ;;  %20863 = vmatpush3.bf16.msra.mxu1 %v22778_v60  ;;  %v22814_v54 = vld [vmem:[%s23670_s21 + $0x2038] sm:$0xff]   ;;  %v22852_v55 = vld [vmem:[%s23670_s21 + $0x2200] sm:$0xff]  }
 0x46b   : > { %20864 = vmatprep.subr.bf16.mxu1 %v22780_v62  ;;  %v940_v60 = vcombine.high %v932_v56, %v932_v56  ;;  %v939_v61 = vrot.slane %v925_v57, %v23723_v42  ;;  %v22818_v62 = vld [vmem:[%s23670_s21 + $0x21c0] sm:$0xff]  }
 0x46d   : > { %20843 = vmatpush3.bf16.msra.mxu0 %v22781_v63  ;;  %v1517_v63 = vpack.c.bf16 %v932_v56, %v932_v56  ;;  %v941_v2 = vcombine.high %v939_v61, %v939_v61 }
 0x46e   : > { %20872 = vmatprep.subr.bf16.mxu0 %v22784_v4  ;;  %20865 = vmatpush3.bf16.msra.mxu1 %v22782_v1  ;;  %v1518_v1 = vpack.c.bf16 %v940_v60, %v940_v60  ;;  %v1519_v4 = vpack.c.bf16 %v939_v61, %v939_v61  ;;  %v22854_v60 = vld [vmem:[%s23670_s21 + $0x2248] sm:$0xff]  }
 0x46f   : > { %20894 = vmatprep.subr.bf16.mxu1 %v22785_v7  ;;  %v1520_v6 = vpack.c.bf16 %v941_v2, %v941_v2  ;;  %v22822_v7 = vld [vmem:[%s23670_s21 + $0x21c8] sm:$0xff]   ;;  %v22859_v2 = vld [vmem:[%s23670_s21 + $0x22d0] sm:$0xff]  }
 0x470   : > { %16383 = vmatmul.mubr.bf16.vlgmr.msra.gmra.mrb[124].mxu0 %v1513_v8  ;;  %v22823_v8 = vld [vmem:[%s23670_s21 + $0x2108] sm:$0xff]  }
 0x471   : > { %20873 = vmatpush3.bf16.msra.mxu0 %v22786_v9  ;;  %16423 = vmatmul.mubr.bf16.vlgmr.msra.gmra.mrb[124].mxu1 %v1515_v13  ;;  %v22824_v9 = vld [vmem:[%s23670_s21 + $0x2188] sm:$0xff]   ;;  %v22828_v13 = vld [vmem:[%s23670_s21 + $0x2190] sm:$0xff]  }
 0x472   : > { %20874 = vmatprep.subr.bf16.mxu0 %v22788_v14  ;;  %20895 = vmatpush3.bf16.msra.mxu1 %v22787_v12  ;;  %v22827_v12 = vld [vmem:[%s23670_s21 + $0x2110] sm:$0xff]   ;;  %v22829_v14 = vld [vmem:[%s23670_s21 + $0x2158] sm:$0xff]  }
 0x473   : > { %20896 = vmatprep.subr.bf16.mxu1 %v22789_v16  ;;  %16462 = vmatprep.mubr.bf16.mxu0 %v1518_v1  ;;  %v22831_v16 = vld [vmem:[%s23670_s21 + $0x2118] sm:$0xff]   ;;  %v22858_v1 = vld [vmem:[%s23670_s21 + $0x2250] sm:$0xff]  }
 0x474   : > { %16502 = vmatprep.mubr.bf16.mxu1 %v1520_v6  ;;  %v22863_v6 = vld [vmem:[%s23670_s21 + $0x22d8] sm:$0xff]  }
 0x475   : > { %20875 = vmatpush3.bf16.msra.mxu0 %v22790_v17  ;;  %v22832_v17 = vld [vmem:[%s23670_s21 + $0x2198] sm:$0xff]  }
 0x476   : > { %20876 = vmatprep.subr.bf16.mxu0 %v22792_v19  ;;  %20897 = vmatpush3.bf16.msra.mxu1 %v22791_v18  ;;  %v22833_v18 = vld [vmem:[%s23670_s21 + $0x2160] sm:$0xff]  }
 0x477   : > { %20898 = vmatprep.subr.bf16.mxu1 %v22793_v20  ;;  %v22834_v19 = vld [vmem:[%s23670_s21 + $0x21e0] sm:$0xff]  }
 0x478   : > { %v22835_v20 = vld [vmem:[%s23670_s21 + $0x2120] sm:$0xff]  }
 0x479   : > { %20877 = vmatpush3.bf16.msra.mxu0 %v22794_v21  ;;  %v22836_v21 = vld [vmem:[%s23670_s21 + $0x21a0] sm:$0xff]  }
 0x47a   : > { %20878 = vmatprep.subr.bf16.mxu0 %v22796_v23  ;;  %20899 = vmatpush3.bf16.msra.mxu1 %v22795_v22  ;;  %v22837_v22 = vld [vmem:[%s23670_s21 + $0x2168] sm:$0xff]  }
 0x47b   : > { %20900 = vmatprep.subr.bf16.mxu1 %v22797_v24  ;;  %v22838_v24 = vld [vmem:[%s23670_s21 + $0x21e8] sm:$0xff]  }
 0x47d   : > { %20879 = vmatpush3.bf16.msra.mxu0 %v22798_v25 }
 0x47e   : > { %20880 = vmatprep.subr.bf16.mxu0 %v22800_v27  ;;  %20901 = vmatpush3.bf16.msra.mxu1 %v22799_v26  ;;  %v22839_v26 = vld [vmem:[%s23670_s21 + $0x2128] sm:$0xff]  }
 0x47f   : > { %20902 = vmatprep.subr.bf16.mxu1 %v22801_v28 }
 0x481   : > { %20881 = vmatpush3.bf16.msra.mxu0 %v22802_v29 }
 0x482   : > { %20882 = vmatprep.subr.bf16.mxu0 %v22804_v31  ;;  %20903 = vmatpush3.bf16.msra.mxu1 %v22803_v30  ;;  %v22840_v30 = vld [vmem:[%s23670_s21 + $0x21a8] sm:$0xff]   ;;  %v22841_v31 = vld [vmem:[%s23670_s21 + $0x2170] sm:$0xff]  }
 0x483   : > { %v20580_v32 = vpop.f32.mrb[100].mxu0  ;;  %20904 = vmatprep.subr.bf16.mxu1 %v22805_v33 }
 0x484   : > { %v20581_v34 = vpop.f32.mrb[101].mxu0  ;;  %v20602_v36 = vpop.f32.mrb[100].mxu1 }
 0x485   : > { %v20582_v37 = vadd.f32 %v20581_v34, %v20580_v32  ;;  %v20583_v38 = vpop.f32.mrb[102].mxu0  ;;  %v20603_v39 = vpop.f32.mrb[101].mxu1  ;;  %20883 = vmatpush3.bf16.msra.mxu0 %v22806_v35 }
 0x486   : > { %v20584_v41 = vpop.f32.mrb[103].mxu0  ;;  %v20604_v45 = vadd.f32 %v20603_v39, %v20602_v36  ;;  %v20605_v46 = vpop.f32.mrb[102].mxu1  ;;  %20884 = vmatprep.subr.bf16.mxu0 %v22808_v43  ;;  %20905 = vmatpush3.bf16.msra.mxu1 %v22807_v40  ;;  %v22843_v39 = vld [vmem:[%s23670_s21 + $0x2130] sm:$0xff]   ;;  %v22845_v43 = vld [vmem:[%s23670_s21 + $0x2178] sm:$0xff]  }
 0x487   : > { %v15905_v44 = vadd.f32 %v20582_v37, %v24874_v59  ;;  %v20606_v48 = vpop.f32.mrb[103].mxu1  ;;  %20906 = vmatprep.subr.bf16.mxu1 %v22809_v47  ;;  %v22815_v59 = vld [vmem:[%s23670_s21 + $0x20b8] sm:$0xff]   ;;  %v22842_v37 = vld [vmem:[%s23670_s21 + $0x21f0] sm:$0xff]   ;;  %v318_v46 = vld [vmem:[%s23684_s15 + $0x108] sm:$0xff] }
 0x488   : > { %v22844_v41 = vld [vmem:[%s23670_s21 + $0x21b0] sm:$0xff]   ;;  %v949_v47 = vrot.slane %v318_v46, %v23723_v42  ;;  %v942_v48 = vcombine.high %v318_v46, %v318_v46  ;;  %v22885_v46 = vld [vmem:[%s23670_s21 + $0x2300] sm:$0xff]  }
 0x489   : > { %v24912_v50 = vadd.f32 %v20604_v45, %v15905_v44  ;;  %20885 = vmatpush3.bf16.msra.mxu0 %v22810_v49  ;;  %v22846_v44 = vld [vmem:[%s23670_s21 + $0x21f8] sm:$0xff]   ;;  %v22850_v49 = vld [vmem:[%s23670_s21 + $0x2240] sm:$0xff]  }
 0x48a   : > { %20886 = vmatprep.subr.bf16.mxu0 %v22812_v51  ;;  %20907 = vmatpush3.bf16.msra.mxu1 %v22811_v52  ;;  %v22847_v45 = vld [vmem:[%s23670_s21 + $0x2138] sm:$0xff]   ;;  %v957_v51 = vcombine.high %v949_v47, %v949_v47  ;;  %v956_v52 = vrot.slane %v942_v48, %v23723_v42 }
 0x48b   : > { %20908 = vmatprep.subr.bf16.mxu1 %v22813_v53  ;;  %v22851_v53 = vld [vmem:[%s23670_s21 + $0x22c0] sm:$0xff]  }
 0x48c   : > { %v1522_v56 = vpack.c.bf16 %v957_v51, %v957_v51  ;;  %v958_v57 = vcombine.high %v956_v52, %v956_v52  ;;  %v22887_v51 = vld [vmem:[%s23670_s21 + $0x2348] sm:$0xff]  }
 0x48d   : > { %20887 = vmatpush3.bf16.msra.mxu0 %v22814_v54  ;;  %v1521_v54 = vpack.c.bf16 %v949_v47, %v949_v47 }
 0x48e   : > { %20916 = vmatprep.subr.bf16.mxu0 %v22817_v58  ;;  %20909 = vmatpush3.bf16.msra.mxu1 %v22815_v59  ;;  %v22853_v58 = vld [vmem:[%s23670_s21 + $0x2280] sm:$0xff]   ;;  %v1523_v59 = vpack.c.bf16 %v956_v52, %v956_v52  ;;  %v1524_v61 = vpack.c.bf16 %v958_v57, %v958_v57  ;;  %v22892_v57 = vld [vmem:[%s23670_s21 + $0x23d0] sm:$0xff]  }
 0x48f   : > { %20938 = vmatprep.subr.bf16.mxu1 %v22818_v62  ;;  %v22855_v62 = vld [vmem:[%s23670_s21 + $0x22c8] sm:$0xff]  }
 0x490   : > { %16463 = vmatmul.mubr.bf16.vlgmr.msra.gmra.mrb[128].mxu0 %v1517_v63  ;;  %v22856_v63 = vld [vmem:[%s23670_s21 + $0x2208] sm:$0xff]  }
 0x491   : > { %20917 = vmatpush3.bf16.msra.mxu0 %v22819_v0  ;;  %16503 = vmatmul.mubr.bf16.vlgmr.msra.gmra.mrb[128].mxu1 %v1519_v4  ;;  %v22857_v0 = vld [vmem:[%s23670_s21 + $0x2288] sm:$0xff]   ;;  %v22861_v4 = vld [vmem:[%s23670_s21 + $0x2290] sm:$0xff]  }
 0x492   : > { %20918 = vmatprep.subr.bf16.mxu0 %v22821_v5  ;;  %20939 = vmatpush3.bf16.msra.mxu1 %v22820_v3  ;;  %v22860_v3 = vld [vmem:[%s23670_s21 + $0x2210] sm:$0xff]   ;;  %v22862_v5 = vld [vmem:[%s23670_s21 + $0x2258] sm:$0xff]  }
 0x493   : > { %20940 = vmatprep.subr.bf16.mxu1 %v22822_v7  ;;  %16542 = vmatprep.mubr.bf16.mxu0 %v1522_v56  ;;  %v22864_v7 = vld [vmem:[%s23670_s21 + $0x2218] sm:$0xff]   ;;  %v22891_v56 = vld [vmem:[%s23670_s21 + $0x2350] sm:$0xff]  }
 0x494   : > { %16582 = vmatprep.mubr.bf16.mxu1 %v1524_v61  ;;  %v22896_v61 = vld [vmem:[%s23670_s21 + $0x23d8] sm:$0xff]  }
 0x495   : > { %20919 = vmatpush3.bf16.msra.mxu0 %v22823_v8  ;;  %v22865_v8 = vld [vmem:[%s23670_s21 + $0x2298] sm:$0xff]  }
 0x496   : > { %20920 = vmatprep.subr.bf16.mxu0 %v22825_v10  ;;  %20941 = vmatpush3.bf16.msra.mxu1 %v22824_v9  ;;  %v22866_v9 = vld [vmem:[%s23670_s21 + $0x2260] sm:$0xff]  }
 0x497   : > { %20942 = vmatprep.subr.bf16.mxu1 %v22826_v11  ;;  %v22867_v10 = vld [vmem:[%s23670_s21 + $0x22e0] sm:$0xff]  }
 0x498   : > { %v22868_v11 = vld [vmem:[%s23670_s21 + $0x2220] sm:$0xff]  }
 0x499   : > { %20921 = vmatpush3.bf16.msra.mxu0 %v22827_v12  ;;  %v22869_v12 = vld [vmem:[%s23670_s21 + $0x22a0] sm:$0xff]  }
 0x49a   : > { %20922 = vmatprep.subr.bf16.mxu0 %v22829_v14  ;;  %20943 = vmatpush3.bf16.msra.mxu1 %v22828_v13  ;;  %v22870_v13 = vld [vmem:[%s23670_s21 + $0x2268] sm:$0xff]  }
 0x49b   : > { %20944 = vmatprep.subr.bf16.mxu1 %v22830_v15  ;;  %v22871_v15 = vld [vmem:[%s23670_s21 + $0x22e8] sm:$0xff]  }
 0x49d   : > { %20923 = vmatpush3.bf16.msra.mxu0 %v22831_v16 }
 0x49e   : > { %20924 = vmatprep.subr.bf16.mxu0 %v22833_v18  ;;  %20945 = vmatpush3.bf16.msra.mxu1 %v22832_v17  ;;  %v22872_v17 = vld [vmem:[%s23670_s21 + $0x2228] sm:$0xff]  }
 0x49f   : > { %20946 = vmatprep.subr.bf16.mxu1 %v22834_v19 }
 0x4a1   : > { %20925 = vmatpush3.bf16.msra.mxu0 %v22835_v20 }
 0x4a2   : > { %20926 = vmatprep.subr.bf16.mxu0 %v22837_v22  ;;  %20947 = vmatpush3.bf16.msra.mxu1 %v22836_v21  ;;  %v22873_v21 = vld [vmem:[%s23670_s21 + $0x22a8] sm:$0xff]   ;;  %v22874_v22 = vld [vmem:[%s23670_s21 + $0x2270] sm:$0xff]  }
 0x4a3   : > { %v20624_v23 = vpop.f32.mrb[104].mxu0  ;;  %20948 = vmatprep.subr.bf16.mxu1 %v22838_v24 }
 0x4a4   : > { %v20625_v25 = vpop.f32.mrb[105].mxu0  ;;  %v20646_v27 = vpop.f32.mrb[104].mxu1 }
 0x4a5   : > { %v20626_v28 = vadd.f32 %v20625_v25, %v20624_v23  ;;  %v20627_v29 = vpop.f32.mrb[106].mxu0  ;;  %v20647_v32 = vpop.f32.mrb[105].mxu1  ;;  %20927 = vmatpush3.bf16.msra.mxu0 %v22839_v26 }
 0x4a6   : > { %v20628_v33 = vpop.f32.mrb[107].mxu0  ;;  %v20648_v35 = vadd.f32 %v20647_v32, %v20646_v27  ;;  %v20649_v36 = vpop.f32.mrb[106].mxu1  ;;  %20928 = vmatprep.subr.bf16.mxu0 %v22841_v31  ;;  %20949 = vmatpush3.bf16.msra.mxu1 %v22840_v30  ;;  %v22876_v30 = vld [vmem:[%s23670_s21 + $0x2230] sm:$0xff]  }
 0x4a7   : > { %v15985_v34 = vadd.f32 %v20626_v28, %v24912_v50  ;;  %v20650_v38 = vpop.f32.mrb[107].mxu1  ;;  %20950 = vmatprep.subr.bf16.mxu1 %v22842_v37  ;;  %v22848_v50 = vld [vmem:[%s23670_s21 + $0x21b8] sm:$0xff]   ;;  %v22875_v28 = vld [vmem:[%s23670_s21 + $0x22f0] sm:$0xff]  }
 0x4a8   : > { %v22877_v32 = vld [vmem:[%s23670_s21 + $0x22b0] sm:$0xff]   ;;  %v22878_v33 = vld [vmem:[%s23670_s21 + $0x2278] sm:$0xff]  }
 0x4a9   : > { %v24950_v40 = vadd.f32 %v20648_v35, %v15985_v34  ;;  %20929 = vmatpush3.bf16.msra.mxu0 %v22843_v39  ;;  %v22879_v34 = vld [vmem:[%s23670_s21 + $0x22f8] sm:$0xff]   ;;  %v319_v36 = vld [vmem:[%s23684_s15 + $0x110] sm:$0xff] }
 0x4aa   : > { %20930 = vmatprep.subr.bf16.mxu0 %v22845_v43  ;;  %20951 = vmatpush3.bf16.msra.mxu1 %v22844_v41  ;;  %v22880_v35 = vld [vmem:[%s23670_s21 + $0x2238] sm:$0xff]   ;;  %v966_v38 = vrot.slane %v319_v36, %v23723_v42  ;;  %v959_v39 = vcombine.high %v319_v36, %v319_v36  ;;  %v22918_v36 = vld [vmem:[%s23670_s21 + $0x2400] sm:$0xff]  }
 0x4ab   : > { %20952 = vmatprep.subr.bf16.mxu1 %v22846_v44  ;;  %v22881_v37 = vld [vmem:[%s23670_s21 + $0x22b8] sm:$0xff]   ;;  %v22884_v44 = vld [vmem:[%s23670_s21 + $0x23c0] sm:$0xff]  }
 0x4ac   : > { %v974_v41 = vcombine.high %v966_v38, %v966_v38  ;;  %v973_v43 = vrot.slane %v959_v39, %v23723_v42  ;;  %v22919_v39 = vld [vmem:[%s23670_s21 + $0x2480] sm:$0xff]  }
 0x4ad   : > { %20931 = vmatpush3.bf16.msra.mxu0 %v22847_v45  ;;  %v1525_v45 = vpack.c.bf16 %v966_v38, %v966_v38 }
 0x4ae   : > { %20960 = vmatprep.subr.bf16.mxu0 %v22850_v49  ;;  %20953 = vmatpush3.bf16.msra.mxu1 %v22848_v50  ;;  %v1526_v47 = vpack.c.bf16 %v974_v41, %v974_v41  ;;  %v975_v48 = vcombine.high %v973_v43, %v973_v43  ;;  %v22886_v49 = vld [vmem:[%s23670_s21 + $0x2380] sm:$0xff]   ;;  %v1527_v50 = vpack.c.bf16 %v973_v43, %v973_v43  ;;  %v22920_v41 = vld [vmem:[%s23670_s21 + $0x2448] sm:$0xff]  }
 0x4af   : > { %20982 = vmatprep.subr.bf16.mxu1 %v22851_v53  ;;  %v22888_v53 = vld [vmem:[%s23670_s21 + $0x23c8] sm:$0xff]  }
 0x4b0   : > { %16543 = vmatmul.mubr.bf16.vlgmr.msra.gmra.mrb[132].mxu0 %v1521_v54  ;;  %v1528_v52 = vpack.c.bf16 %v975_v48, %v975_v48  ;;  %v22889_v54 = vld [vmem:[%s23670_s21 + $0x2308] sm:$0xff]   ;;  %v22925_v48 = vld [vmem:[%s23670_s21 + $0x24d0] sm:$0xff]  }
 0x4b1   : > { %20961 = vmatpush3.bf16.msra.mxu0 %v22852_v55  ;;  %16583 = vmatmul.mubr.bf16.vlgmr.msra.gmra.mrb[132].mxu1 %v1523_v59  ;;  %v22890_v55 = vld [vmem:[%s23670_s21 + $0x2388] sm:$0xff]   ;;  %v22894_v59 = vld [vmem:[%s23670_s21 + $0x2390] sm:$0xff]  }
 0x4b2   : > { %20962 = vmatprep.subr.bf16.mxu0 %v22854_v60  ;;  %20983 = vmatpush3.bf16.msra.mxu1 %v22853_v58  ;;  %v22893_v58 = vld [vmem:[%s23670_s21 + $0x2310] sm:$0xff]   ;;  %v22895_v60 = vld [vmem:[%s23670_s21 + $0x2358] sm:$0xff]  }
 0x4b3   : > { %20984 = vmatprep.subr.bf16.mxu1 %v22855_v62  ;;  %16622 = vmatprep.mubr.bf16.mxu0 %v1526_v47  ;;  %v22897_v62 = vld [vmem:[%s23670_s21 + $0x2318] sm:$0xff]   ;;  %v22924_v47 = vld [vmem:[%s23670_s21 + $0x2450] sm:$0xff]  }
 0x4b4   : > { %16662 = vmatprep.mubr.bf16.mxu1 %v1528_v52  ;;  %v22929_v52 = vld [vmem:[%s23670_s21 + $0x24d8] sm:$0xff]  }
 0x4b5   : > { %20963 = vmatpush3.bf16.msra.mxu0 %v22856_v63  ;;  %v22898_v63 = vld [vmem:[%s23670_s21 + $0x2398] sm:$0xff]  }
 0x4b6   : > { %20964 = vmatprep.subr.bf16.mxu0 %v22858_v1  ;;  %20985 = vmatpush3.bf16.msra.mxu1 %v22857_v0  ;;  %v22899_v0 = vld [vmem:[%s23670_s21 + $0x2360] sm:$0xff]  }
 0x4b7   : > { %20986 = vmatprep.subr.bf16.mxu1 %v22859_v2  ;;  %v22900_v1 = vld [vmem:[%s23670_s21 + $0x23e0] sm:$0xff]  }
 0x4b8   : > { %v22901_v2 = vld [vmem:[%s23670_s21 + $0x2320] sm:$0xff]  }
 0x4b9   : > { %20965 = vmatpush3.bf16.msra.mxu0 %v22860_v3  ;;  %v22902_v3 = vld [vmem:[%s23670_s21 + $0x23a0] sm:$0xff]  }
 0x4ba   : > { %20966 = vmatprep.subr.bf16.mxu0 %v22862_v5  ;;  %20987 = vmatpush3.bf16.msra.mxu1 %v22861_v4  ;;  %v22903_v4 = vld [vmem:[%s23670_s21 + $0x2368] sm:$0xff]  }
 0x4bb   : > { %20988 = vmatprep.subr.bf16.mxu1 %v22863_v6  ;;  %v22904_v6 = vld [vmem:[%s23670_s21 + $0x23e8] sm:$0xff]  }
 0x4bd   : > { %20967 = vmatpush3.bf16.msra.mxu0 %v22864_v7 }
 0x4be   : > { %20968 = vmatprep.subr.bf16.mxu0 %v22866_v9  ;;  %20989 = vmatpush3.bf16.msra.mxu1 %v22865_v8  ;;  %v22905_v8 = vld [vmem:[%s23670_s21 + $0x2328] sm:$0xff]  }
 0x4bf   : > { %20990 = vmatprep.subr.bf16.mxu1 %v22867_v10 }
 0x4c1   : > { %20969 = vmatpush3.bf16.msra.mxu0 %v22868_v11 }
 0x4c2   : > { %20970 = vmatprep.subr.bf16.mxu0 %v22870_v13  ;;  %20991 = vmatpush3.bf16.msra.mxu1 %v22869_v12  ;;  %v22906_v13 = vld [vmem:[%s23670_s21 + $0x23a8] sm:$0xff]  }
 0x4c3   : > { %v20668_v14 = vpop.f32.mrb[108].mxu0  ;;  %20992 = vmatprep.subr.bf16.mxu1 %v22871_v15  ;;  %v22907_v15 = vld [vmem:[%s23670_s21 + $0x2370] sm:$0xff]  }
 0x4c4   : > { %v20669_v16 = vpop.f32.mrb[109].mxu0  ;;  %v20690_v18 = vpop.f32.mrb[108].mxu1 }
 0x4c5   : > { %v20670_v19 = vadd.f32 %v20669_v16, %v20668_v14  ;;  %v20671_v20 = vpop.f32.mrb[110].mxu0  ;;  %v20691_v23 = vpop.f32.mrb[109].mxu1  ;;  %20971 = vmatpush3.bf16.msra.mxu0 %v22872_v17 }
 0x4c6   : > { %v20672_v24 = vpop.f32.mrb[111].mxu0  ;;  %v20692_v26 = vadd.f32 %v20691_v23, %v20690_v18  ;;  %v20693_v27 = vpop.f32.mrb[110].mxu1  ;;  %20972 = vmatprep.subr.bf16.mxu0 %v22874_v22  ;;  %20993 = vmatpush3.bf16.msra.mxu1 %v22873_v21  ;;  %v22909_v21 = vld [vmem:[%s23670_s21 + $0x2330] sm:$0xff]   ;;  %v22911_v23 = vld [vmem:[%s23670_s21 + $0x2378] sm:$0xff]  }
 0x4c7   : > { %v16065_v25 = vadd.f32 %v20670_v19, %v24950_v40  ;;  %v20694_v29 = vpop.f32.mrb[111].mxu1  ;;  %20994 = vmatprep.subr.bf16.mxu1 %v22875_v28  ;;  %v22883_v40 = vld [vmem:[%s23670_s21 + $0x2340] sm:$0xff]   ;;  %v22908_v19 = vld [vmem:[%s23670_s21 + $0x23f0] sm:$0xff]  }
 0x4c8   : > { %v22910_v24 = vld [vmem:[%s23670_s21 + $0x23b0] sm:$0xff]  }
 0x4c9   : > { %v24988_v31 = vadd.f32 %v20692_v26, %v16065_v25  ;;  %20973 = vmatpush3.bf16.msra.mxu0 %v22876_v30  ;;  %v22912_v25 = vld [vmem:[%s23670_s21 + $0x23f8] sm:$0xff]   ;;  %v22916_v30 = vld [vmem:[%s23670_s21 + $0x2440] sm:$0xff]  }
 0x4ca   : > { %20974 = vmatprep.subr.bf16.mxu0 %v22878_v33  ;;  %20995 = vmatpush3.bf16.msra.mxu1 %v22877_v32  ;;  %v22913_v26 = vld [vmem:[%s23670_s21 + $0x2338] sm:$0xff]  }
 0x4cb   : > { %20996 = vmatprep.subr.bf16.mxu1 %v22879_v34  ;;  %v320_v27 = vld [vmem:[%s23684_s15 + $0x118] sm:$0xff]  ;;  %v22917_v34 = vld [vmem:[%s23670_s21 + $0x24c0] sm:$0xff]  }
 0x4cc   : > { %v983_v28 = vrot.slane %v320_v27, %v23723_v42  ;;  %v976_v29 = vcombine.high %v320_v27, %v320_v27  ;;  %v22951_v27 = vld [vmem:[%s23670_s21 + $0x2500] sm:$0xff]  }
 0x4cd   : > { %20975 = vmatpush3.bf16.msra.mxu0 %v22880_v35 }
 0x4ce   : > { %21004 = vmatprep.subr.bf16.mxu0 %v22883_v40  ;;  %20997 = vmatpush3.bf16.msra.mxu1 %v22881_v37  ;;  %v991_v32 = vcombine.high %v983_v28, %v983_v28  ;;  %v990_v33 = vrot.slane %v976_v29, %v23723_v42  ;;  %v1529_v35 = vpack.c.bf16 %v983_v28, %v983_v28 }
 0x4cf   : > { %21026 = vmatprep.subr.bf16.mxu1 %v22884_v44  ;;  %v22921_v44 = vld [vmem:[%s23670_s21 + $0x24c8] sm:$0xff]  }
 0x4d0   : > { %16623 = vmatmul.mubr.bf16.vlgmr.msra.gmra.mrb[136].mxu0 %v1525_v45  ;;  %v1530_v37 = vpack.c.bf16 %v991_v32, %v991_v32  ;;  %v992_v38 = vcombine.high %v990_v33, %v990_v33  ;;  %v1531_v40 = vpack.c.bf16 %v990_v33, %v990_v33  ;;  %v22922_v45 = vld [vmem:[%s23670_s21 + $0x2408] sm:$0xff]  }
 0x4d1   : > { %21005 = vmatpush3.bf16.msra.mxu0 %v22885_v46  ;;  %16663 = vmatmul.mubr.bf16.vlgmr.msra.gmra.mrb[136].mxu1 %v1527_v50  ;;  %v22923_v46 = vld [vmem:[%s23670_s21 + $0x2488] sm:$0xff]   ;;  %v22927_v50 = vld [vmem:[%s23670_s21 + $0x2490] sm:$0xff]  }
 0x4d2   : > { %21006 = vmatprep.subr.bf16.mxu0 %v22887_v51  ;;  %21027 = vmatpush3.bf16.msra.mxu1 %v22886_v49  ;;  %v1532_v43 = vpack.c.bf16 %v992_v38, %v992_v38  ;;  %v22926_v49 = vld [vmem:[%s23670_s21 + $0x2410] sm:$0xff]   ;;  %v22928_v51 = vld [vmem:[%s23670_s21 + $0x2458] sm:$0xff]   ;;  %v22953_v32 = vld [vmem:[%s23670_s21 + $0x2548] sm:$0xff]  }
 0x4d3   : > { %21028 = vmatprep.subr.bf16.mxu1 %v22888_v53  ;;  %16702 = vmatprep.mubr.bf16.mxu0 %v1530_v37  ;;  %v22930_v53 = vld [vmem:[%s23670_s21 + $0x2418] sm:$0xff]   ;;  %v22957_v37 = vld [vmem:[%s23670_s21 + $0x2550] sm:$0xff]  }
 0x4d4   : > { %16742 = vmatprep.mubr.bf16.mxu1 %v1532_v43  ;;  %v22958_v38 = vld [vmem:[%s23670_s21 + $0x25d0] sm:$0xff]   ;;  %v22962_v43 = vld [vmem:[%s23670_s21 + $0x25d8] sm:$0xff]  }
 0x4d5   : > { %21007 = vmatpush3.bf16.msra.mxu0 %v22889_v54  ;;  %v22931_v54 = vld [vmem:[%s23670_s21 + $0x2498] sm:$0xff]  }
 0x4d6   : > { %21008 = vmatprep.subr.bf16.mxu0 %v22891_v56  ;;  %21029 = vmatpush3.bf16.msra.mxu1 %v22890_v55  ;;  %v22932_v55 = vld [vmem:[%s23670_s21 + $0x2460] sm:$0xff]  }
 0x4d7   : > { %21030 = vmatprep.subr.bf16.mxu1 %v22892_v57  ;;  %v22933_v56 = vld [vmem:[%s23670_s21 + $0x24e0] sm:$0xff]  }
 0x4d8   : > { %v22934_v57 = vld [vmem:[%s23670_s21 + $0x2420] sm:$0xff]  }
 0x4d9   : > { %21009 = vmatpush3.bf16.msra.mxu0 %v22893_v58  ;;  %v22935_v58 = vld [vmem:[%s23670_s21 + $0x24a0] sm:$0xff]  }
 0x4da   : > { %21010 = vmatprep.subr.bf16.mxu0 %v22895_v60  ;;  %21031 = vmatpush3.bf16.msra.mxu1 %v22894_v59  ;;  %v22936_v59 = vld [vmem:[%s23670_s21 + $0x2468] sm:$0xff]  }
 0x4db   : > { %21032 = vmatprep.subr.bf16.mxu1 %v22896_v61  ;;  %v22937_v61 = vld [vmem:[%s23670_s21 + $0x24e8] sm:$0xff]  }
 0x4dd   : > { %21011 = vmatpush3.bf16.msra.mxu0 %v22897_v62 }
 0x4de   : > { %21012 = vmatprep.subr.bf16.mxu0 %v22899_v0  ;;  %21033 = vmatpush3.bf16.msra.mxu1 %v22898_v63  ;;  %v22938_v63 = vld [vmem:[%s23670_s21 + $0x2428] sm:$0xff]  }
 0x4df   : > { %21034 = vmatprep.subr.bf16.mxu1 %v22900_v1 }
 0x4e1   : > { %21013 = vmatpush3.bf16.msra.mxu0 %v22901_v2 }
 0x4e2   : > { %21014 = vmatprep.subr.bf16.mxu0 %v22903_v4  ;;  %21035 = vmatpush3.bf16.msra.mxu1 %v22902_v3  ;;  %v22939_v3 = vld [vmem:[%s23670_s21 + $0x24a8] sm:$0xff]   ;;  %v22940_v4 = vld [vmem:[%s23670_s21 + $0x2470] sm:$0xff]  }
 0x4e3   : > { %v20712_v5 = vpop.f32.mrb[112].mxu0  ;;  %21036 = vmatprep.subr.bf16.mxu1 %v22904_v6 }
 0x4e4   : > { %v20713_v7 = vpop.f32.mrb[113].mxu0  ;;  %v20734_v9 = vpop.f32.mrb[112].mxu1 }
 0x4e5   : > { %v20714_v10 = vadd.f32 %v20713_v7, %v20712_v5  ;;  %v20715_v11 = vpop.f32.mrb[114].mxu0  ;;  %v20735_v12 = vpop.f32.mrb[113].mxu1  ;;  %21015 = vmatpush3.bf16.msra.mxu0 %v22905_v8 }
 0x4e6   : > { %v20716_v14 = vpop.f32.mrb[115].mxu0  ;;  %v20736_v17 = vadd.f32 %v20735_v12, %v20734_v9  ;;  %v20737_v18 = vpop.f32.mrb[114].mxu1  ;;  %21016 = vmatprep.subr.bf16.mxu0 %v22907_v15  ;;  %21037 = vmatpush3.bf16.msra.mxu1 %v22906_v13  ;;  %v22942_v12 = vld [vmem:[%s23670_s21 + $0x2430] sm:$0xff]   ;;  %v22944_v15 = vld [vmem:[%s23670_s21 + $0x2478] sm:$0xff]  }
 0x4e7   : > { %v16145_v16 = vadd.f32 %v20714_v10, %v24988_v31  ;;  %v20738_v20 = vpop.f32.mrb[115].mxu1  ;;  %21038 = vmatprep.subr.bf16.mxu1 %v22908_v19  ;;  %v22914_v31 = vld [vmem:[%s23670_s21 + $0x23b8] sm:$0xff]   ;;  %v22941_v10 = vld [vmem:[%s23670_s21 + $0x24f0] sm:$0xff]  }
 0x4e8   : > { %v22943_v14 = vld [vmem:[%s23670_s21 + $0x24b0] sm:$0xff]   ;;  %v321_v18 = vld [vmem:[%s23684_s15 + $0x120] sm:$0xff] }
 0x4e9   : > { %v25026_v22 = vadd.f32 %v20736_v17, %v16145_v16  ;;  %21017 = vmatpush3.bf16.msra.mxu0 %v22909_v21  ;;  %v22945_v16 = vld [vmem:[%s23670_s21 + $0x24f8] sm:$0xff]   ;;  %v1000_v19 = vrot.slane %v321_v18, %v23723_v42  ;;  %v993_v20 = vcombine.high %v321_v18, %v321_v18  ;;  %v22949_v21 = vld [vmem:[%s23670_s21 + $0x2540] sm:$0xff]  }
 0x4ea   : > { %21018 = vmatprep.subr.bf16.mxu0 %v22911_v23  ;;  %21039 = vmatpush3.bf16.msra.mxu1 %v22910_v24  ;;  %v22946_v17 = vld [vmem:[%s23670_s21 + $0x2438] sm:$0xff]   ;;  %v22984_v18 = vld [vmem:[%s23670_s21 + $0x2600] sm:$0xff]  }
 0x4eb   : > { %21040 = vmatprep.subr.bf16.mxu1 %v22912_v25  ;;  %v1008_v23 = vcombine.high %v1000_v19, %v1000_v19  ;;  %v1007_v24 = vrot.slane %v993_v20, %v23723_v42  ;;  %v22950_v25 = vld [vmem:[%s23670_s21 + $0x25c0] sm:$0xff]  }
 0x4ed   : > { %21019 = vmatpush3.bf16.msra.mxu0 %v22913_v26  ;;  %v1533_v26 = vpack.c.bf16 %v1000_v19, %v1000_v19  ;;  %v1534_v28 = vpack.c.bf16 %v1008_v23, %v1008_v23  ;;  %v1009_v29 = vcombine.high %v1007_v24, %v1007_v24  ;;  %v22986_v23 = vld [vmem:[%s23670_s21 + $0x2648] sm:$0xff]  }
 0x4ee   : > { %21048 = vmatprep.subr.bf16.mxu0 %v22916_v30  ;;  %21041 = vmatpush3.bf16.msra.mxu1 %v22914_v31  ;;  %v22952_v30 = vld [vmem:[%s23670_s21 + $0x2580] sm:$0xff]   ;;  %v1535_v31 = vpack.c.bf16 %v1007_v24, %v1007_v24 }
 0x4ef   : > { %21070 = vmatprep.subr.bf16.mxu1 %v22917_v34  ;;  %v1536_v33 = vpack.c.bf16 %v1009_v29, %v1009_v29  ;;  %v22954_v34 = vld [vmem:[%s23670_s21 + $0x25c8] sm:$0xff]   ;;  %v22991_v29 = vld [vmem:[%s23670_s21 + $0x26d0] sm:$0xff]  }
 0x4f0   : > { %16703 = vmatmul.mubr.bf16.vlgmr.msra.gmra.mrb[140].mxu0 %v1529_v35  ;;  %v22955_v35 = vld [vmem:[%s23670_s21 + $0x2508] sm:$0xff]  }
 0x4f1   : > { %21049 = vmatpush3.bf16.msra.mxu0 %v22918_v36  ;;  %16743 = vmatmul.mubr.bf16.vlgmr.msra.gmra.mrb[140].mxu1 %v1531_v40  ;;  %v22956_v36 = vld [vmem:[%s23670_s21 + $0x2588] sm:$0xff]   ;;  %v22960_v40 = vld [vmem:[%s23670_s21 + $0x2590] sm:$0xff]  }
 0x4f2   : > { %21050 = vmatprep.subr.bf16.mxu0 %v22920_v41  ;;  %21071 = vmatpush3.bf16.msra.mxu1 %v22919_v39  ;;  %v22959_v39 = vld [vmem:[%s23670_s21 + $0x2510] sm:$0xff]   ;;  %v22961_v41 = vld [vmem:[%s23670_s21 + $0x2558] sm:$0xff]  }
 0x4f3   : > { %21072 = vmatprep.subr.bf16.mxu1 %v22921_v44  ;;  %16782 = vmatprep.mubr.bf16.mxu0 %v1534_v28  ;;  %v22963_v44 = vld [vmem:[%s23670_s21 + $0x2518] sm:$0xff]   ;;  %v22990_v28 = vld [vmem:[%s23670_s21 + $0x2650] sm:$0xff]  }
 0x4f4   : > { %16822 = vmatprep.mubr.bf16.mxu1 %v1536_v33  ;;  %v22995_v33 = vld [vmem:[%s23670_s21 + $0x26d8] sm:$0xff]  }
 0x4f5   : > { %21051 = vmatpush3.bf16.msra.mxu0 %v22922_v45  ;;  %v22964_v45 = vld [vmem:[%s23670_s21 + $0x2598] sm:$0xff]  }
 0x4f6   : > { %21052 = vmatprep.subr.bf16.mxu0 %v22924_v47  ;;  %21073 = vmatpush3.bf16.msra.mxu1 %v22923_v46  ;;  %v22965_v46 = vld [vmem:[%s23670_s21 + $0x2560] sm:$0xff]  }
 0x4f7   : > { %21074 = vmatprep.subr.bf16.mxu1 %v22925_v48  ;;  %v22966_v47 = vld [vmem:[%s23670_s21 + $0x25e0] sm:$0xff]  }
 0x4f8   : > { %v22967_v48 = vld [vmem:[%s23670_s21 + $0x2520] sm:$0xff]  }
 0x4f9   : > { %21053 = vmatpush3.bf16.msra.mxu0 %v22926_v49  ;;  %v22968_v49 = vld [vmem:[%s23670_s21 + $0x25a0] sm:$0xff]  }
 0x4fa   : > { %21054 = vmatprep.subr.bf16.mxu0 %v22928_v51  ;;  %21075 = vmatpush3.bf16.msra.mxu1 %v22927_v50  ;;  %v22969_v50 = vld [vmem:[%s23670_s21 + $0x2568] sm:$0xff]  }
 0x4fb   : > { %21076 = vmatprep.subr.bf16.mxu1 %v22929_v52  ;;  %v22970_v52 = vld [vmem:[%s23670_s21 + $0x25e8] sm:$0xff]  }
 0x4fd   : > { %21055 = vmatpush3.bf16.msra.mxu0 %v22930_v53 }
 0x4fe   : > { %21056 = vmatprep.subr.bf16.mxu0 %v22932_v55  ;;  %21077 = vmatpush3.bf16.msra.mxu1 %v22931_v54  ;;  %v22971_v54 = vld [vmem:[%s23670_s21 + $0x2528] sm:$0xff]  }
 0x4ff   : > { %21078 = vmatprep.subr.bf16.mxu1 %v22933_v56 }
 0x501   : > { %21057 = vmatpush3.bf16.msra.mxu0 %v22934_v57 }
 0x502   : > { %21058 = vmatprep.subr.bf16.mxu0 %v22936_v59  ;;  %21079 = vmatpush3.bf16.msra.mxu1 %v22935_v58  ;;  %v22972_v58 = vld [vmem:[%s23670_s21 + $0x25a8] sm:$0xff]   ;;  %v22973_v59 = vld [vmem:[%s23670_s21 + $0x2570] sm:$0xff]  }
 0x503   : > { %v20756_v60 = vpop.f32.mrb[116].mxu0  ;;  %21080 = vmatprep.subr.bf16.mxu1 %v22937_v61 }
 0x504   : > { %v20757_v62 = vpop.f32.mrb[117].mxu0  ;;  %v20778_v0 = vpop.f32.mrb[116].mxu1 }
 0x505   : > { %v20758_v1 = vadd.f32 %v20757_v62, %v20756_v60  ;;  %v20759_v2 = vpop.f32.mrb[118].mxu0  ;;  %v20779_v5 = vpop.f32.mrb[117].mxu1  ;;  %21059 = vmatpush3.bf16.msra.mxu0 %v22938_v63 }
 0x506   : > { %v20760_v6 = vpop.f32.mrb[119].mxu0  ;;  %v20780_v8 = vadd.f32 %v20779_v5, %v20778_v0  ;;  %v20781_v9 = vpop.f32.mrb[118].mxu1  ;;  %21060 = vmatprep.subr.bf16.mxu0 %v22940_v4  ;;  %21081 = vmatpush3.bf16.msra.mxu1 %v22939_v3  ;;  %v22975_v3 = vld [vmem:[%s23670_s21 + $0x2530] sm:$0xff]  }
 0x507   : > { %v16225_v7 = vadd.f32 %v20758_v1, %v25026_v22  ;;  %v20782_v11 = vpop.f32.mrb[119].mxu1  ;;  %21082 = vmatprep.subr.bf16.mxu1 %v22941_v10  ;;  %v22947_v22 = vld [vmem:[%s23670_s21 + $0x24b8] sm:$0xff]   ;;  %v22974_v1 = vld [vmem:[%s23670_s21 + $0x25f0] sm:$0xff]   ;;  %v322_v9 = vld [vmem:[%s23684_s15 + $0x128] sm:$0xff] }
 0x508   : > { %v22976_v5 = vld [vmem:[%s23670_s21 + $0x25b0] sm:$0xff]   ;;  %v22977_v6 = vld [vmem:[%s23670_s21 + $0x2578] sm:$0xff]   ;;  %v1017_v11 = vrot.slane %v322_v9, %v23723_v42 }
 0x509   : > { %v25064_v13 = vadd.f32 %v20780_v8, %v16225_v7  ;;  %21061 = vmatpush3.bf16.msra.mxu0 %v22942_v12  ;;  %v22978_v7 = vld [vmem:[%s23670_s21 + $0x25f8] sm:$0xff]   ;;  %v1010_v12 = vcombine.high %v322_v9, %v322_v9  ;;  %v23017_v9 = vld [vmem:[%s23670_s21 + $0x2700] sm:$0xff]  }
 0x50a   : > { %21062 = vmatprep.subr.bf16.mxu0 %v22944_v15  ;;  %21083 = vmatpush3.bf16.msra.mxu1 %v22943_v14  ;;  %v22979_v8 = vld [vmem:[%s23670_s21 + $0x2538] sm:$0xff]   ;;  %v1025_v14 = vcombine.high %v1017_v11, %v1017_v11 }
 0x50b   : > { %21084 = vmatprep.subr.bf16.mxu1 %v22945_v16  ;;  %v22980_v10 = vld [vmem:[%s23670_s21 + $0x25b8] sm:$0xff]   ;;  %v1024_v15 = vrot.slane %v1010_v12, %v23723_v42  ;;  %v22983_v16 = vld [vmem:[%s23670_s21 + $0x26c0] sm:$0xff]  }
 0x50c   : > { %v1538_v19 = vpack.c.bf16 %v1025_v14, %v1025_v14  ;;  %v23018_v12 = vld [vmem:[%s23670_s21 + $0x2780] sm:$0xff]   ;;  %v23019_v14 = vld [vmem:[%s23670_s21 + $0x2748] sm:$0xff]  }
 0x50d   : > { %21063 = vmatpush3.bf16.msra.mxu0 %v22946_v17  ;;  %v1537_v17 = vpack.c.bf16 %v1017_v11, %v1017_v11  ;;  %v1026_v20 = vcombine.high %v1024_v15, %v1024_v15 }
 0x50e   : > { %21092 = vmatprep.subr.bf16.mxu0 %v22949_v21  ;;  %21085 = vmatpush3.bf16.msra.mxu1 %v22947_v22  ;;  %v22985_v21 = vld [vmem:[%s23670_s21 + $0x2680] sm:$0xff]   ;;  %v1539_v22 = vpack.c.bf16 %v1024_v15, %v1024_v15 }
 0x50f   : > { %21114 = vmatprep.subr.bf16.mxu1 %v22950_v25  ;;  %v1540_v24 = vpack.c.bf16 %v1026_v20, %v1026_v20  ;;  %v22987_v25 = vld [vmem:[%s23670_s21 + $0x26c8] sm:$0xff]   ;;  %v23024_v20 = vld [vmem:[%s23670_s21 + $0x27d0] sm:$0xff]  }
 0x510   : > { %16783 = vmatmul.mubr.bf16.vlgmr.msra.gmra.mrb[144].mxu0 %v1533_v26  ;;  %v22988_v26 = vld [vmem:[%s23670_s21 + $0x2608] sm:$0xff]  }
 0x511   : > { %21093 = vmatpush3.bf16.msra.mxu0 %v22951_v27  ;;  %16823 = vmatmul.mubr.bf16.vlgmr.msra.gmra.mrb[144].mxu1 %v1535_v31  ;;  %v22989_v27 = vld [vmem:[%s23670_s21 + $0x2688] sm:$0xff]   ;;  %v22993_v31 = vld [vmem:[%s23670_s21 + $0x2690] sm:$0xff]  }
 0x512   : > { %21094 = vmatprep.subr.bf16.mxu0 %v22953_v32  ;;  %21115 = vmatpush3.bf16.msra.mxu1 %v22952_v30  ;;  %v22992_v30 = vld [vmem:[%s23670_s21 + $0x2610] sm:$0xff]   ;;  %v22994_v32 = vld [vmem:[%s23670_s21 + $0x2658] sm:$0xff]  }
 0x513   : > { %21116 = vmatprep.subr.bf16.mxu1 %v22954_v34  ;;  %16862 = vmatprep.mubr.bf16.mxu0 %v1538_v19  ;;  %v22996_v34 = vld [vmem:[%s23670_s21 + $0x2618] sm:$0xff]   ;;  %v23023_v19 = vld [vmem:[%s23670_s21 + $0x2750] sm:$0xff]  }
 0x514   : > { %16902 = vmatprep.mubr.bf16.mxu1 %v1540_v24  ;;  %v23028_v24 = vld [vmem:[%s23670_s21 + $0x27d8] sm:$0xff]  }
 0x515   : > { %21095 = vmatpush3.bf16.msra.mxu0 %v22955_v35  ;;  %v22997_v35 = vld [vmem:[%s23670_s21 + $0x2698] sm:$0xff]  }
 0x516   : > { %21096 = vmatprep.subr.bf16.mxu0 %v22957_v37  ;;  %21117 = vmatpush3.bf16.msra.mxu1 %v22956_v36  ;;  %v22998_v36 = vld [vmem:[%s23670_s21 + $0x2660] sm:$0xff]  }
 0x517   : > { %21118 = vmatprep.subr.bf16.mxu1 %v22958_v38  ;;  %v22999_v37 = vld [vmem:[%s23670_s21 + $0x26e0] sm:$0xff]  }
 0x518   : > { %v23000_v38 = vld [vmem:[%s23670_s21 + $0x2620] sm:$0xff]  }
 0x519   : > { %21097 = vmatpush3.bf16.msra.mxu0 %v22959_v39  ;;  %v23001_v39 = vld [vmem:[%s23670_s21 + $0x26a0] sm:$0xff]  }
 0x51a   : > { %21098 = vmatprep.subr.bf16.mxu0 %v22961_v41  ;;  %21119 = vmatpush3.bf16.msra.mxu1 %v22960_v40  ;;  %v23002_v40 = vld [vmem:[%s23670_s21 + $0x2668] sm:$0xff]  }
 0x51b   : > { %21120 = vmatprep.subr.bf16.mxu1 %v22962_v43  ;;  %v23003_v43 = vld [vmem:[%s23670_s21 + $0x26e8] sm:$0xff]  }
 0x51d   : > { %21099 = vmatpush3.bf16.msra.mxu0 %v22963_v44 }
 0x51e   : > { %21100 = vmatprep.subr.bf16.mxu0 %v22965_v46  ;;  %21121 = vmatpush3.bf16.msra.mxu1 %v22964_v45  ;;  %v23004_v45 = vld [vmem:[%s23670_s21 + $0x2628] sm:$0xff]  }
 0x51f   : > { %21122 = vmatprep.subr.bf16.mxu1 %v22966_v47 }
 0x521   : > { %21101 = vmatpush3.bf16.msra.mxu0 %v22967_v48 }
 0x522   : > { %21102 = vmatprep.subr.bf16.mxu0 %v22969_v50  ;;  %21123 = vmatpush3.bf16.msra.mxu1 %v22968_v49  ;;  %v23005_v50 = vld [vmem:[%s23670_s21 + $0x26a8] sm:$0xff]  }
 0x523   : > { %v20800_v51 = vpop.f32.mrb[120].mxu0  ;;  %21124 = vmatprep.subr.bf16.mxu1 %v22970_v52  ;;  %v23006_v52 = vld [vmem:[%s23670_s21 + $0x2670] sm:$0xff]  }
 0x524   : > { %v20801_v53 = vpop.f32.mrb[121].mxu0  ;;  %v20822_v55 = vpop.f32.mrb[120].mxu1 }
 0x525   : > { %v20802_v56 = vadd.f32 %v20801_v53, %v20800_v51  ;;  %v20803_v57 = vpop.f32.mrb[122].mxu0  ;;  %v20823_v60 = vpop.f32.mrb[121].mxu1  ;;  %21103 = vmatpush3.bf16.msra.mxu0 %v22971_v54 }
 0x526   : > { %v20804_v61 = vpop.f32.mrb[123].mxu0  ;;  %v20824_v63 = vadd.f32 %v20823_v60, %v20822_v55  ;;  %v20825_v0 = vpop.f32.mrb[122].mxu1  ;;  %21104 = vmatprep.subr.bf16.mxu0 %v22973_v59  ;;  %21125 = vmatpush3.bf16.msra.mxu1 %v22972_v58  ;;  %v23008_v58 = vld [vmem:[%s23670_s21 + $0x2630] sm:$0xff]   ;;  %v23010_v60 = vld [vmem:[%s23670_s21 + $0x2678] sm:$0xff]  }
 0x527   : > { %v16305_v62 = vadd.f32 %v20802_v56, %v25064_v13  ;;  %v20826_v2 = vpop.f32.mrb[123].mxu1  ;;  %21126 = vmatprep.subr.bf16.mxu1 %v22974_v1  ;;  %v22982_v13 = vld [vmem:[%s23670_s21 + $0x2640] sm:$0xff]   ;;  %v23007_v56 = vld [vmem:[%s23670_s21 + $0x26f0] sm:$0xff]  }
 0x528   : > { %v23009_v61 = vld [vmem:[%s23670_s21 + $0x26b0] sm:$0xff]  }
 0x529   : > { %v25102_v4 = vadd.f32 %v20824_v63, %v16305_v62  ;;  %21105 = vmatpush3.bf16.msra.mxu0 %v22975_v3  ;;  %v23011_v62 = vld [vmem:[%s23670_s21 + $0x26f8] sm:$0xff]   ;;  %v323_v0 = vld [vmem:[%s23684_s15 + $0x130] sm:$0xff]  ;;  %v23015_v3 = vld [vmem:[%s23670_s21 + $0x2740] sm:$0xff]  }
 0x52a   : > { %21106 = vmatprep.subr.bf16.mxu0 %v22977_v6  ;;  %21127 = vmatpush3.bf16.msra.mxu1 %v22976_v5  ;;  %v23012_v63 = vld [vmem:[%s23670_s21 + $0x2638] sm:$0xff]   ;;  %v1034_v1 = vrot.slane %v323_v0, %v23723_v42  ;;  %v1027_v2 = vcombine.high %v323_v0, %v323_v0  ;;  %v23050_v0 = vld [vmem:[%s23670_s21 + $0x2800] sm:$0xff]  }
 0x52b   : > { %21128 = vmatprep.subr.bf16.mxu1 %v22978_v7  ;;  %v23016_v7 = vld [vmem:[%s23670_s21 + $0x27c0] sm:$0xff]  }
 0x52c   : > { %v1042_v5 = vcombine.high %v1034_v1, %v1034_v1  ;;  %v1041_v6 = vrot.slane %v1027_v2, %v23723_v42 }
 0x52d   : > { %21107 = vmatpush3.bf16.msra.mxu0 %v22979_v8  ;;  %v1541_v8 = vpack.c.bf16 %v1034_v1, %v1034_v1 }
 0x52e   : > { %21136 = vmatprep.subr.bf16.mxu0 %v22982_v13  ;;  %21129 = vmatpush3.bf16.msra.mxu1 %v22980_v10  ;;  %v1542_v10 = vpack.c.bf16 %v1042_v5, %v1042_v5  ;;  %v1043_v11 = vcombine.high %v1041_v6, %v1041_v6  ;;  %v1543_v13 = vpack.c.bf16 %v1041_v6, %v1041_v6  ;;  %v23052_v5 = vld [vmem:[%s23670_s21 + $0x2848] sm:$0xff]  }
 0x52f   : > { %21158 = vmatprep.subr.bf16.mxu1 %v22983_v16  ;;  %v23020_v16 = vld [vmem:[%s23670_s21 + $0x27c8] sm:$0xff]  }
 0x530   : > { %16863 = vmatmul.mubr.bf16.vlgmr.msra.gmra.mrb[148].mxu0 %v1537_v17  ;;  %v1544_v15 = vpack.c.bf16 %v1043_v11, %v1043_v11  ;;  %v23021_v17 = vld [vmem:[%s23670_s21 + $0x2708] sm:$0xff]   ;;  %v23057_v11 = vld [vmem:[%s23670_s21 + $0x28d0] sm:$0xff]  }
 0x531   : > { %21137 = vmatpush3.bf16.msra.mxu0 %v22984_v18  ;;  %16903 = vmatmul.mubr.bf16.vlgmr.msra.gmra.mrb[148].mxu1 %v1539_v22  ;;  %v23022_v18 = vld [vmem:[%s23670_s21 + $0x2788] sm:$0xff]   ;;  %v23026_v22 = vld [vmem:[%s23670_s21 + $0x2790] sm:$0xff]  }
 0x532   : > { %21138 = vmatprep.subr.bf16.mxu0 %v22986_v23  ;;  %21159 = vmatpush3.bf16.msra.mxu1 %v22985_v21  ;;  %v23025_v21 = vld [vmem:[%s23670_s21 + $0x2710] sm:$0xff]   ;;  %v23027_v23 = vld [vmem:[%s23670_s21 + $0x2758] sm:$0xff]  }
 0x533   : > { %21160 = vmatprep.subr.bf16.mxu1 %v22987_v25  ;;  %16942 = vmatprep.mubr.bf16.mxu0 %v1542_v10  ;;  %v23029_v25 = vld [vmem:[%s23670_s21 + $0x2718] sm:$0xff]   ;;  %v23056_v10 = vld [vmem:[%s23670_s21 + $0x2850] sm:$0xff]  }
 0x534   : > { %16982 = vmatprep.mubr.bf16.mxu1 %v1544_v15  ;;  %v23061_v15 = vld [vmem:[%s23670_s21 + $0x28d8] sm:$0xff]  }
 0x535   : > { %21139 = vmatpush3.bf16.msra.mxu0 %v22988_v26  ;;  %v23030_v26 = vld [vmem:[%s23670_s21 + $0x2798] sm:$0xff]  }
 0x536   : > { %21140 = vmatprep.subr.bf16.mxu0 %v22990_v28  ;;  %21161 = vmatpush3.bf16.msra.mxu1 %v22989_v27  ;;  %v23031_v27 = vld [vmem:[%s23670_s21 + $0x2760] sm:$0xff]  }
 0x537   : > { %21162 = vmatprep.subr.bf16.mxu1 %v22991_v29  ;;  %v23032_v28 = vld [vmem:[%s23670_s21 + $0x27e0] sm:$0xff]  }
 0x538   : > { %v23033_v29 = vld [vmem:[%s23670_s21 + $0x2720] sm:$0xff]  }
 0x539   : > { %21141 = vmatpush3.bf16.msra.mxu0 %v22992_v30  ;;  %v23034_v30 = vld [vmem:[%s23670_s21 + $0x27a0] sm:$0xff]  }
 0x53a   : > { %21142 = vmatprep.subr.bf16.mxu0 %v22994_v32  ;;  %21163 = vmatpush3.bf16.msra.mxu1 %v22993_v31  ;;  %v23035_v31 = vld [vmem:[%s23670_s21 + $0x2768] sm:$0xff]  }
 0x53b   : > { %21164 = vmatprep.subr.bf16.mxu1 %v22995_v33  ;;  %v23036_v33 = vld [vmem:[%s23670_s21 + $0x27e8] sm:$0xff]  }
 0x53d   : > { %21143 = vmatpush3.bf16.msra.mxu0 %v22996_v34 }
 0x53e   : > { %21144 = vmatprep.subr.bf16.mxu0 %v22998_v36  ;;  %21165 = vmatpush3.bf16.msra.mxu1 %v22997_v35  ;;  %v23037_v35 = vld [vmem:[%s23670_s21 + $0x2728] sm:$0xff]  }
 0x53f   : > { %21166 = vmatprep.subr.bf16.mxu1 %v22999_v37 }
 0x541   : > { %21145 = vmatpush3.bf16.msra.mxu0 %v23000_v38 }
 0x542   : > { %21146 = vmatprep.subr.bf16.mxu0 %v23002_v40  ;;  %21167 = vmatpush3.bf16.msra.mxu1 %v23001_v39  ;;  %v23038_v39 = vld [vmem:[%s23670_s21 + $0x27a8] sm:$0xff]   ;;  %v23039_v40 = vld [vmem:[%s23670_s21 + $0x2770] sm:$0xff]  }
 0x543   : > { %v20844_v41 = vpop.f32.mrb[124].mxu0  ;;  %21168 = vmatprep.subr.bf16.mxu1 %v23003_v43 }
 0x544   : > { %v20845_v44 = vpop.f32.mrb[125].mxu0  ;;  %v20866_v46 = vpop.f32.mrb[124].mxu1 }
 0x545   : > { %v20846_v47 = vadd.f32 %v20845_v44, %v20844_v41  ;;  %v20847_v48 = vpop.f32.mrb[126].mxu0  ;;  %v20867_v49 = vpop.f32.mrb[125].mxu1  ;;  %21147 = vmatpush3.bf16.msra.mxu0 %v23004_v45 }
 0x546   : > { %v20848_v51 = vpop.f32.mrb[127].mxu0  ;;  %v20868_v54 = vadd.f32 %v20867_v49, %v20866_v46  ;;  %v20869_v55 = vpop.f32.mrb[126].mxu1  ;;  %21148 = vmatprep.subr.bf16.mxu0 %v23006_v52  ;;  %21169 = vmatpush3.bf16.msra.mxu1 %v23005_v50  ;;  %v23041_v49 = vld [vmem:[%s23670_s21 + $0x2730] sm:$0xff]   ;;  %v23043_v52 = vld [vmem:[%s23670_s21 + $0x2778] sm:$0xff]  }
 0x547   : > { %v16385_v53 = vadd.f32 %v20846_v47, %v25102_v4  ;;  %v20870_v57 = vpop.f32.mrb[127].mxu1  ;;  %21170 = vmatprep.subr.bf16.mxu1 %v23007_v56  ;;  %v23013_v4 = vld [vmem:[%s23670_s21 + $0x26b8] sm:$0xff]   ;;  %v23040_v47 = vld [vmem:[%s23670_s21 + $0x27f0] sm:$0xff]  }
 0x548   : > { %v23042_v51 = vld [vmem:[%s23670_s21 + $0x27b0] sm:$0xff]  }
 0x549   : > { %v25140_v59 = vadd.f32 %v20868_v54, %v16385_v53  ;;  %21149 = vmatpush3.bf16.msra.mxu0 %v23008_v58  ;;  %v23044_v53 = vld [vmem:[%s23670_s21 + $0x27f8] sm:$0xff]   ;;  %v23048_v58 = vld [vmem:[%s23670_s21 + $0x2840] sm:$0xff]  }
 0x54a   : > { %21150 = vmatprep.subr.bf16.mxu0 %v23010_v60  ;;  %21171 = vmatpush3.bf16.msra.mxu1 %v23009_v61  ;;  %v23045_v54 = vld [vmem:[%s23670_s21 + $0x2738] sm:$0xff]  }
 0x54b   : > { %21172 = vmatprep.subr.bf16.mxu1 %v23011_v62  ;;  %v324_v55 = vld [vmem:[%s23684_s15 + $0x138] sm:$0xff]  ;;  %v23049_v62 = vld [vmem:[%s23670_s21 + $0x28c0] sm:$0xff]  }
 0x54c   : > { %v1051_v56 = vrot.slane %v324_v55, %v23723_v42  ;;  %v1044_v57 = vcombine.high %v324_v55, %v324_v55  ;;  %v23083_v55 = vld [vmem:[%s23670_s21 + $0x2900] sm:$0xff]  }
 0x54d   : > { %21151 = vmatpush3.bf16.msra.mxu0 %v23012_v63 }
 0x54e   : > { %21180 = vmatprep.subr.bf16.mxu0 %v23015_v3  ;;  %21173 = vmatpush3.bf16.msra.mxu1 %v23013_v4  ;;  %v1059_v60 = vcombine.high %v1051_v56, %v1051_v56  ;;  %v1058_v61 = vrot.slane %v1044_v57, %v23723_v42  ;;  %v1545_v63 = vpack.c.bf16 %v1051_v56, %v1051_v56  ;;  %v23051_v3 = vld [vmem:[%s23670_s21 + $0x2880] sm:$0xff]  }
 0x54f   : > { %21202 = vmatprep.subr.bf16.mxu1 %v23016_v7  ;;  %v23053_v7 = vld [vmem:[%s23670_s21 + $0x28c8] sm:$0xff]  }
 0x550   : > { %16943 = vmatmul.mubr.bf16.vlgmr.msra.gmra.mrb[152].mxu0 %v1541_v8  ;;  %v1546_v1 = vpack.c.bf16 %v1059_v60, %v1059_v60  ;;  %v1060_v2 = vcombine.high %v1058_v61, %v1058_v61  ;;  %v1547_v4 = vpack.c.bf16 %v1058_v61, %v1058_v61  ;;  %v23054_v8 = vld [vmem:[%s23670_s21 + $0x2808] sm:$0xff]  }
 0x551   : > { %21181 = vmatpush3.bf16.msra.mxu0 %v23017_v9  ;;  %16983 = vmatmul.mubr.bf16.vlgmr.msra.gmra.mrb[152].mxu1 %v1543_v13  ;;  %v23055_v9 = vld [vmem:[%s23670_s21 + $0x2888] sm:$0xff]   ;;  %v23059_v13 = vld [vmem:[%s23670_s21 + $0x2890] sm:$0xff]  }
 0x552   : > { %21182 = vmatprep.subr.bf16.mxu0 %v23019_v14  ;;  %21203 = vmatpush3.bf16.msra.mxu1 %v23018_v12  ;;  %v1548_v6 = vpack.c.bf16 %v1060_v2, %v1060_v2  ;;  %v23058_v12 = vld [vmem:[%s23670_s21 + $0x2810] sm:$0xff]   ;;  %v23060_v14 = vld [vmem:[%s23670_s21 + $0x2858] sm:$0xff]   ;;  %v23085_v60 = vld [vmem:[%s23670_s21 + $0x2948] sm:$0xff]  }
 0x553   : > { %21204 = vmatprep.subr.bf16.mxu1 %v23020_v16  ;;  %17022 = vmatprep.mubr.bf16.mxu0 %v1546_v1  ;;  %v23062_v16 = vld [vmem:[%s23670_s21 + $0x2818] sm:$0xff]   ;;  %v23089_v1 = vld [vmem:[%s23670_s21 + $0x2950] sm:$0xff]  }
 0x554   : > { %17062 = vmatprep.mubr.bf16.mxu1 %v1548_v6  ;;  %v23090_v2 = vld [vmem:[%s23670_s21 + $0x29d0] sm:$0xff]   ;;  %v23094_v6 = vld [vmem:[%s23670_s21 + $0x29d8] sm:$0xff]  }
 0x555   : > { %21183 = vmatpush3.bf16.msra.mxu0 %v23021_v17  ;;  %v23063_v17 = vld [vmem:[%s23670_s21 + $0x2898] sm:$0xff]  }
 0x556   : > { %21184 = vmatprep.subr.bf16.mxu0 %v23023_v19  ;;  %21205 = vmatpush3.bf16.msra.mxu1 %v23022_v18  ;;  %v23064_v18 = vld [vmem:[%s23670_s21 + $0x2860] sm:$0xff]  }
 0x557   : > { %21206 = vmatprep.subr.bf16.mxu1 %v23024_v20  ;;  %v23065_v19 = vld [vmem:[%s23670_s21 + $0x28e0] sm:$0xff]  }
 0x558   : > { %v23066_v20 = vld [vmem:[%s23670_s21 + $0x2820] sm:$0xff]  }
 0x559   : > { %21185 = vmatpush3.bf16.msra.mxu0 %v23025_v21  ;;  %v23067_v21 = vld [vmem:[%s23670_s21 + $0x28a0] sm:$0xff]  }
 0x55a   : > { %21186 = vmatprep.subr.bf16.mxu0 %v23027_v23  ;;  %21207 = vmatpush3.bf16.msra.mxu1 %v23026_v22  ;;  %v23068_v22 = vld [vmem:[%s23670_s21 + $0x2868] sm:$0xff]  }
 0x55b   : > { %21208 = vmatprep.subr.bf16.mxu1 %v23028_v24  ;;  %v23069_v24 = vld [vmem:[%s23670_s21 + $0x28e8] sm:$0xff]  }
 0x55d   : > { %21187 = vmatpush3.bf16.msra.mxu0 %v23029_v25 }
 0x55e   : > { %21188 = vmatprep.subr.bf16.mxu0 %v23031_v27  ;;  %21209 = vmatpush3.bf16.msra.mxu1 %v23030_v26  ;;  %v23070_v26 = vld [vmem:[%s23670_s21 + $0x2828] sm:$0xff]  }
 0x55f   : > { %21210 = vmatprep.subr.bf16.mxu1 %v23032_v28 }
 0x561   : > { %21189 = vmatpush3.bf16.msra.mxu0 %v23033_v29 }
 0x562   : > { %21190 = vmatprep.subr.bf16.mxu0 %v23035_v31  ;;  %21211 = vmatpush3.bf16.msra.mxu1 %v23034_v30  ;;  %v23071_v30 = vld [vmem:[%s23670_s21 + $0x28a8] sm:$0xff]   ;;  %v23072_v31 = vld [vmem:[%s23670_s21 + $0x2870] sm:$0xff]  }
 0x563   : > { %v20888_v32 = vpop.f32.mrb[128].mxu0  ;;  %21212 = vmatprep.subr.bf16.mxu1 %v23036_v33 }
 0x564   : > { %v20889_v34 = vpop.f32.mrb[129].mxu0  ;;  %v20910_v36 = vpop.f32.mrb[128].mxu1 }
 0x565   : > { %v20890_v37 = vadd.f32 %v20889_v34, %v20888_v32  ;;  %v20891_v38 = vpop.f32.mrb[130].mxu0  ;;  %v20911_v41 = vpop.f32.mrb[129].mxu1  ;;  %21191 = vmatpush3.bf16.msra.mxu0 %v23037_v35 }
 0x566   : > { %v20892_v43 = vpop.f32.mrb[131].mxu0  ;;  %v20912_v45 = vadd.f32 %v20911_v41, %v20910_v36  ;;  %v20913_v46 = vpop.f32.mrb[130].mxu1  ;;  %21192 = vmatprep.subr.bf16.mxu0 %v23039_v40  ;;  %21213 = vmatpush3.bf16.msra.mxu1 %v23038_v39  ;;  %v23074_v39 = vld [vmem:[%s23670_s21 + $0x2830] sm:$0xff]  }
 0x567   : > { %v16465_v44 = vadd.f32 %v20890_v37, %v25140_v59  ;;  %v20914_v48 = vpop.f32.mrb[131].mxu1  ;;  %21214 = vmatprep.subr.bf16.mxu1 %v23040_v47  ;;  %v23046_v59 = vld [vmem:[%s23670_s21 + $0x27b8] sm:$0xff]   ;;  %v23073_v37 = vld [vmem:[%s23670_s21 + $0x28f0] sm:$0xff]  }
 0x568   : > { %v23075_v41 = vld [vmem:[%s23670_s21 + $0x28b0] sm:$0xff]   ;;  %v23076_v43 = vld [vmem:[%s23670_s21 + $0x2878] sm:$0xff]  }
 0x569   : > { %v25178_v50 = vadd.f32 %v20912_v45, %v16465_v44  ;;  %21193 = vmatpush3.bf16.msra.mxu0 %v23041_v49  ;;  %v23077_v44 = vld [vmem:[%s23670_s21 + $0x28f8] sm:$0xff]  }
 0x56a   : > { %21194 = vmatprep.subr.bf16.mxu0 %v23043_v52  ;;  %21215 = vmatpush3.bf16.msra.mxu1 %v23042_v51  ;;  %v23078_v45 = vld [vmem:[%s23670_s21 + $0x2838] sm:$0xff]  }
 0x56b   : > { %21216 = vmatprep.subr.bf16.mxu1 %v23044_v53  ;;  %v325_v46 = vld [vmem:[%s23684_s15 + $0x140] sm:$0xff] }
 0x56c   : > { %v23079_v47 = vld [vmem:[%s23670_s21 + $0x28b8] sm:$0xff]   ;;  %v1068_v48 = vrot.slane %v325_v46, %v23723_v42  ;;  %v1061_v49 = vcombine.high %v325_v46, %v325_v46  ;;  %v23082_v53 = vld [vmem:[%s23670_s21 + $0x29c0] sm:$0xff]  }
 0x56d   : > { %21195 = vmatpush3.bf16.msra.mxu0 %v23045_v54  ;;  %v23116_v46 = vld [vmem:[%s23670_s21 + $0x2a00] sm:$0xff]  }
 0x56e   : > { %21224 = vmatprep.subr.bf16.mxu0 %v23048_v58  ;;  %21217 = vmatpush3.bf16.msra.mxu1 %v23046_v59  ;;  %v1076_v51 = vcombine.high %v1068_v48, %v1068_v48  ;;  %v1075_v52 = vrot.slane %v1061_v49, %v23723_v42  ;;  %v1549_v54 = vpack.c.bf16 %v1068_v48, %v1068_v48  ;;  %v23084_v58 = vld [vmem:[%s23670_s21 + $0x2980] sm:$0xff]  }
 0x56f   : > { %21246 = vmatprep.subr.bf16.mxu1 %v23049_v62  ;;  %v23086_v62 = vld [vmem:[%s23670_s21 + $0x29c8] sm:$0xff]   ;;  %v23117_v49 = vld [vmem:[%s23670_s21 + $0x2a80] sm:$0xff]  }
 0x570   : > { %17023 = vmatmul.mubr.bf16.vlgmr.msra.gmra.mrb[156].mxu0 %v1545_v63  ;;  %v1550_v56 = vpack.c.bf16 %v1076_v51, %v1076_v51  ;;  %v1077_v57 = vcombine.high %v1075_v52, %v1075_v52  ;;  %v1551_v59 = vpack.c.bf16 %v1075_v52, %v1075_v52  ;;  %v23087_v63 = vld [vmem:[%s23670_s21 + $0x2908] sm:$0xff]  }
 0x571   : > { %21225 = vmatpush3.bf16.msra.mxu0 %v23050_v0  ;;  %17063 = vmatmul.mubr.bf16.vlgmr.msra.gmra.mrb[156].mxu1 %v1547_v4  ;;  %v23088_v0 = vld [vmem:[%s23670_s21 + $0x2988] sm:$0xff]   ;;  %v23092_v4 = vld [vmem:[%s23670_s21 + $0x2990] sm:$0xff]  }
 0x572   : > { %21226 = vmatprep.subr.bf16.mxu0 %v23052_v5  ;;  %21247 = vmatpush3.bf16.msra.mxu1 %v23051_v3  ;;  %v1552_v61 = vpack.c.bf16 %v1077_v57, %v1077_v57  ;;  %v23091_v3 = vld [vmem:[%s23670_s21 + $0x2910] sm:$0xff]   ;;  %v23093_v5 = vld [vmem:[%s23670_s21 + $0x2958] sm:$0xff]   ;;  %v23118_v51 = vld [vmem:[%s23670_s21 + $0x2a48] sm:$0xff]  }
 0x573   : > { %21248 = vmatprep.subr.bf16.mxu1 %v23053_v7  ;;  %17102 = vmatprep.mubr.bf16.mxu0 %v1550_v56  ;;  %v23095_v7 = vld [vmem:[%s23670_s21 + $0x2918] sm:$0xff]   ;;  %v23122_v56 = vld [vmem:[%s23670_s21 + $0x2a50] sm:$0xff]  }
 0x574   : > { %17142 = vmatprep.mubr.bf16.mxu1 %v1552_v61  ;;  %v23123_v57 = vld [vmem:[%s23670_s21 + $0x2ad0] sm:$0xff]   ;;  %v23127_v61 = vld [vmem:[%s23670_s21 + $0x2ad8] sm:$0xff]  }
 0x575   : > { %21227 = vmatpush3.bf16.msra.mxu0 %v23054_v8  ;;  %v23096_v8 = vld [vmem:[%s23670_s21 + $0x2998] sm:$0xff]  }
 0x576   : > { %21228 = vmatprep.subr.bf16.mxu0 %v23056_v10  ;;  %21249 = vmatpush3.bf16.msra.mxu1 %v23055_v9  ;;  %v23097_v9 = vld [vmem:[%s23670_s21 + $0x2960] sm:$0xff]  }
 0x577   : > { %21250 = vmatprep.subr.bf16.mxu1 %v23057_v11  ;;  %v23098_v10 = vld [vmem:[%s23670_s21 + $0x29e0] sm:$0xff]  }
 0x578   : > { %v23099_v11 = vld [vmem:[%s23670_s21 + $0x2920] sm:$0xff]  }
 0x579   : > { %21229 = vmatpush3.bf16.msra.mxu0 %v23058_v12  ;;  %v23100_v12 = vld [vmem:[%s23670_s21 + $0x29a0] sm:$0xff]  }
 0x57a   : > { %21230 = vmatprep.subr.bf16.mxu0 %v23060_v14  ;;  %21251 = vmatpush3.bf16.msra.mxu1 %v23059_v13  ;;  %v23101_v13 = vld [vmem:[%s23670_s21 + $0x2968] sm:$0xff]  }
 0x57b   : > { %21252 = vmatprep.subr.bf16.mxu1 %v23061_v15  ;;  %v23102_v15 = vld [vmem:[%s23670_s21 + $0x29e8] sm:$0xff]  }
 0x57d   : > { %21231 = vmatpush3.bf16.msra.mxu0 %v23062_v16 }
 0x57e   : > { %21232 = vmatprep.subr.bf16.mxu0 %v23064_v18  ;;  %21253 = vmatpush3.bf16.msra.mxu1 %v23063_v17  ;;  %v23103_v17 = vld [vmem:[%s23670_s21 + $0x2928] sm:$0xff]  }
 0x57f   : > { %21254 = vmatprep.subr.bf16.mxu1 %v23065_v19 }
 0x581   : > { %21233 = vmatpush3.bf16.msra.mxu0 %v23066_v20 }
 0x582   : > { %21234 = vmatprep.subr.bf16.mxu0 %v23068_v22  ;;  %21255 = vmatpush3.bf16.msra.mxu1 %v23067_v21  ;;  %v23104_v22 = vld [vmem:[%s23670_s21 + $0x29a8] sm:$0xff]  }
 0x583   : > { %v20932_v23 = vpop.f32.mrb[132].mxu0  ;;  %21256 = vmatprep.subr.bf16.mxu1 %v23069_v24  ;;  %v23105_v24 = vld [vmem:[%s23670_s21 + $0x2970] sm:$0xff]  }
 0x584   : > { %v20933_v25 = vpop.f32.mrb[133].mxu0  ;;  %v20954_v27 = vpop.f32.mrb[132].mxu1 }
 0x585   : > { %v20934_v28 = vadd.f32 %v20933_v25, %v20932_v23  ;;  %v20935_v29 = vpop.f32.mrb[134].mxu0  ;;  %v20955_v32 = vpop.f32.mrb[133].mxu1  ;;  %21235 = vmatpush3.bf16.msra.mxu0 %v23070_v26 }
 0x586   : > { %v20936_v33 = vpop.f32.mrb[135].mxu0  ;;  %v20956_v35 = vadd.f32 %v20955_v32, %v20954_v27  ;;  %v20957_v36 = vpop.f32.mrb[134].mxu1  ;;  %21236 = vmatprep.subr.bf16.mxu0 %v23072_v31  ;;  %21257 = vmatpush3.bf16.msra.mxu1 %v23071_v30  ;;  %v23107_v30 = vld [vmem:[%s23670_s21 + $0x2930] sm:$0xff]   ;;  %v23109_v32 = vld [vmem:[%s23670_s21 + $0x2978] sm:$0xff]  }
 0x587   : > { %v16545_v34 = vadd.f32 %v20934_v28, %v25178_v50  ;;  %v20958_v38 = vpop.f32.mrb[135].mxu1  ;;  %21258 = vmatprep.subr.bf16.mxu1 %v23073_v37  ;;  %v23081_v50 = vld [vmem:[%s23670_s21 + $0x2940] sm:$0xff]   ;;  %v23106_v28 = vld [vmem:[%s23670_s21 + $0x29f0] sm:$0xff]  }
 0x588   : > { %v23108_v33 = vld [vmem:[%s23670_s21 + $0x29b0] sm:$0xff]   ;;  %v326_v36 = vld [vmem:[%s23684_s15 + $0x148] sm:$0xff] }
 0x589   : > { %v25216_v40 = vadd.f32 %v20956_v35, %v16545_v34  ;;  %21237 = vmatpush3.bf16.msra.mxu0 %v23074_v39  ;;  %v23110_v34 = vld [vmem:[%s23670_s21 + $0x29f8] sm:$0xff]   ;;  %v1085_v37 = vrot.slane %v326_v36, %v23723_v42  ;;  %v1078_v38 = vcombine.high %v326_v36, %v326_v36  ;;  %v23114_v39 = vld [vmem:[%s23670_s21 + $0x2a40] sm:$0xff]  }
 0x58a   : > { %21238 = vmatprep.subr.bf16.mxu0 %v23076_v43  ;;  %21259 = vmatpush3.bf16.msra.mxu1 %v23075_v41  ;;  %v23111_v35 = vld [vmem:[%s23670_s21 + $0x2938] sm:$0xff]   ;;  %v23149_v36 = vld [vmem:[%s23670_s21 + $0x2b00] sm:$0xff]  }
 0x58b   : > { %21260 = vmatprep.subr.bf16.mxu1 %v23077_v44  ;;  %v1093_v41 = vcombine.high %v1085_v37, %v1085_v37  ;;  %v1092_v43 = vrot.slane %v1078_v38, %v23723_v42  ;;  %v23115_v44 = vld [vmem:[%s23670_s21 + $0x2ac0] sm:$0xff]  }
 0x58d   : > { %21239 = vmatpush3.bf16.msra.mxu0 %v23078_v45  ;;  %v1553_v45 = vpack.c.bf16 %v1085_v37, %v1085_v37  ;;  %v1094_v48 = vcombine.high %v1092_v43, %v1092_v43 }
 0x58e   : > { %21268 = vmatprep.subr.bf16.mxu0 %v23081_v50  ;;  %21261 = vmatpush3.bf16.msra.mxu1 %v23079_v47  ;;  %v1554_v47 = vpack.c.bf16 %v1093_v41, %v1093_v41  ;;  %v1555_v50 = vpack.c.bf16 %v1092_v43, %v1092_v43  ;;  %v23151_v41 = vld [vmem:[%s23670_s21 + $0x2b48] sm:$0xff]  }
 0x58f   : > { %21290 = vmatprep.subr.bf16.mxu1 %v23082_v53  ;;  %v1556_v52 = vpack.c.bf16 %v1094_v48, %v1094_v48  ;;  %v23119_v53 = vld [vmem:[%s23670_s21 + $0x2ac8] sm:$0xff]   ;;  %v23156_v48 = vld [vmem:[%s23670_s21 + $0x2bd0] sm:$0xff]  }
 0x590   : > { %17103 = vmatmul.mubr.bf16.vlgmr.msra.gmra.mrb[160].mxu0 %v1549_v54  ;;  %v23120_v54 = vld [vmem:[%s23670_s21 + $0x2a08] sm:$0xff]  }
 0x591   : > { %21269 = vmatpush3.bf16.msra.mxu0 %v23083_v55  ;;  %17143 = vmatmul.mubr.bf16.vlgmr.msra.gmra.mrb[160].mxu1 %v1551_v59  ;;  %v23121_v55 = vld [vmem:[%s23670_s21 + $0x2a88] sm:$0xff]   ;;  %v23125_v59 = vld [vmem:[%s23670_s21 + $0x2a90] sm:$0xff]  }
 0x592   : > { %21270 = vmatprep.subr.bf16.mxu0 %v23085_v60  ;;  %21291 = vmatpush3.bf16.msra.mxu1 %v23084_v58  ;;  %v23124_v58 = vld [vmem:[%s23670_s21 + $0x2a10] sm:$0xff]   ;;  %v23126_v60 = vld [vmem:[%s23670_s21 + $0x2a58] sm:$0xff]  }
 0x593   : > { %21292 = vmatprep.subr.bf16.mxu1 %v23086_v62  ;;  %17182 = vmatprep.mubr.bf16.mxu0 %v1554_v47  ;;  %v23128_v62 = vld [vmem:[%s23670_s21 + $0x2a18] sm:$0xff]   ;;  %v23155_v47 = vld [vmem:[%s23670_s21 + $0x2b50] sm:$0xff]  }
 0x594   : > { %17222 = vmatprep.mubr.bf16.mxu1 %v1556_v52  ;;  %v23160_v52 = vld [vmem:[%s23670_s21 + $0x2bd8] sm:$0xff]  }
 0x595   : > { %21271 = vmatpush3.bf16.msra.mxu0 %v23087_v63  ;;  %v23129_v63 = vld [vmem:[%s23670_s21 + $0x2a98] sm:$0xff]  }
 0x596   : > { %21272 = vmatprep.subr.bf16.mxu0 %v23089_v1  ;;  %21293 = vmatpush3.bf16.msra.mxu1 %v23088_v0  ;;  %v23130_v0 = vld [vmem:[%s23670_s21 + $0x2a60] sm:$0xff]  }
 0x597   : > { %21294 = vmatprep.subr.bf16.mxu1 %v23090_v2  ;;  %v23131_v1 = vld [vmem:[%s23670_s21 + $0x2ae0] sm:$0xff]  }
 0x598   : > { %v23132_v2 = vld [vmem:[%s23670_s21 + $0x2a20] sm:$0xff]  }
 0x599   : > { %21273 = vmatpush3.bf16.msra.mxu0 %v23091_v3  ;;  %v23133_v3 = vld [vmem:[%s23670_s21 + $0x2aa0] sm:$0xff]  }
 0x59a   : > { %21274 = vmatprep.subr.bf16.mxu0 %v23093_v5  ;;  %21295 = vmatpush3.bf16.msra.mxu1 %v23092_v4  ;;  %v23134_v4 = vld [vmem:[%s23670_s21 + $0x2a68] sm:$0xff]  }
 0x59b   : > { %21296 = vmatprep.subr.bf16.mxu1 %v23094_v6  ;;  %v23135_v6 = vld [vmem:[%s23670_s21 + $0x2ae8] sm:$0xff]  }
 0x59d   : > { %21275 = vmatpush3.bf16.msra.mxu0 %v23095_v7 }
 0x59e   : > { %21276 = vmatprep.subr.bf16.mxu0 %v23097_v9  ;;  %21297 = vmatpush3.bf16.msra.mxu1 %v23096_v8  ;;  %v23136_v8 = vld [vmem:[%s23670_s21 + $0x2a28] sm:$0xff]  }
 0x59f   : > { %21298 = vmatprep.subr.bf16.mxu1 %v23098_v10 }
 0x5a1   : > { %21277 = vmatpush3.bf16.msra.mxu0 %v23099_v11 }
 0x5a2   : > { %21278 = vmatprep.subr.bf16.mxu0 %v23101_v13  ;;  %21299 = vmatpush3.bf16.msra.mxu1 %v23100_v12  ;;  %v23137_v12 = vld [vmem:[%s23670_s21 + $0x2aa8] sm:$0xff]   ;;  %v23138_v13 = vld [vmem:[%s23670_s21 + $0x2a70] sm:$0xff]  }
 0x5a3   : > { %v20976_v14 = vpop.f32.mrb[136].mxu0  ;;  %21300 = vmatprep.subr.bf16.mxu1 %v23102_v15 }
 0x5a4   : > { %v20977_v16 = vpop.f32.mrb[137].mxu0  ;;  %v20998_v18 = vpop.f32.mrb[136].mxu1 }
 0x5a5   : > { %v20978_v19 = vadd.f32 %v20977_v16, %v20976_v14  ;;  %v20979_v20 = vpop.f32.mrb[138].mxu0  ;;  %v20999_v21 = vpop.f32.mrb[137].mxu1  ;;  %21279 = vmatpush3.bf16.msra.mxu0 %v23103_v17 }
 0x5a6   : > { %v20980_v23 = vpop.f32.mrb[139].mxu0  ;;  %v21000_v26 = vadd.f32 %v20999_v21, %v20998_v18  ;;  %v21001_v27 = vpop.f32.mrb[138].mxu1  ;;  %21280 = vmatprep.subr.bf16.mxu0 %v23105_v24  ;;  %21301 = vmatpush3.bf16.msra.mxu1 %v23104_v22  ;;  %v23140_v21 = vld [vmem:[%s23670_s21 + $0x2a30] sm:$0xff]   ;;  %v23142_v24 = vld [vmem:[%s23670_s21 + $0x2a78] sm:$0xff]  }
 0x5a7   : > { %v16625_v25 = vadd.f32 %v20978_v19, %v25216_v40  ;;  %v21002_v29 = vpop.f32.mrb[139].mxu1  ;;  %21302 = vmatprep.subr.bf16.mxu1 %v23106_v28  ;;  %v23112_v40 = vld [vmem:[%s23670_s21 + $0x29b8] sm:$0xff]   ;;  %v23139_v19 = vld [vmem:[%s23670_s21 + $0x2af0] sm:$0xff]  }
 0x5a8   : > { %v23141_v23 = vld [vmem:[%s23670_s21 + $0x2ab0] sm:$0xff]  }
 0x5a9   : > { %v25254_v31 = vadd.f32 %v21000_v26, %v16625_v25  ;;  %21281 = vmatpush3.bf16.msra.mxu0 %v23107_v30  ;;  %v23143_v25 = vld [vmem:[%s23670_s21 + $0x2af8] sm:$0xff]   ;;  %v327_v27 = vld [vmem:[%s23684_s15 + $0x150] sm:$0xff]  ;;  %v23147_v30 = vld [vmem:[%s23670_s21 + $0x2b40] sm:$0xff]  }
 0x5aa   : > { %21282 = vmatprep.subr.bf16.mxu0 %v23109_v32  ;;  %21303 = vmatpush3.bf16.msra.mxu1 %v23108_v33  ;;  %v23144_v26 = vld [vmem:[%s23670_s21 + $0x2a38] sm:$0xff]   ;;  %v1102_v28 = vrot.slane %v327_v27, %v23723_v42  ;;  %v1095_v29 = vcombine.high %v327_v27, %v327_v27  ;;  %v23182_v27 = vld [vmem:[%s23670_s21 + $0x2c00] sm:$0xff]  }
 0x5ab   : > { %21304 = vmatprep.subr.bf16.mxu1 %v23110_v34  ;;  %v23148_v34 = vld [vmem:[%s23670_s21 + $0x2bc0] sm:$0xff]  }
 0x5ac   : > { %v1110_v32 = vcombine.high %v1102_v28, %v1102_v28  ;;  %v1109_v33 = vrot.slane %v1095_v29, %v23723_v42 }
 0x5ad   : > { %21283 = vmatpush3.bf16.msra.mxu0 %v23111_v35  ;;  %v1557_v35 = vpack.c.bf16 %v1102_v28, %v1102_v28 }
 0x5ae   : > { %21312 = vmatprep.subr.bf16.mxu0 %v23114_v39  ;;  %21305 = vmatpush3.bf16.msra.mxu1 %v23112_v40  ;;  %v1558_v37 = vpack.c.bf16 %v1110_v32, %v1110_v32  ;;  %v1111_v38 = vcombine.high %v1109_v33, %v1109_v33  ;;  %v23150_v39 = vld [vmem:[%s23670_s21 + $0x2b80] sm:$0xff]   ;;  %v1559_v40 = vpack.c.bf16 %v1109_v33, %v1109_v33  ;;  %v23184_v32 = vld [vmem:[%s23670_s21 + $0x2c48] sm:$0xff]  }
 0x5af   : > { %21334 = vmatprep.subr.bf16.mxu1 %v23115_v44  ;;  %v23152_v44 = vld [vmem:[%s23670_s21 + $0x2bc8] sm:$0xff]  }
 0x5b0   : > { %17183 = vmatmul.mubr.bf16.vlgmr.msra.gmra.mrb[164].mxu0 %v1553_v45  ;;  %v1560_v43 = vpack.c.bf16 %v1111_v38, %v1111_v38  ;;  %v23153_v45 = vld [vmem:[%s23670_s21 + $0x2b08] sm:$0xff]   ;;  %v23189_v38 = vld [vmem:[%s23670_s21 + $0x2cd0] sm:$0xff]  }
 0x5b1   : > { %21313 = vmatpush3.bf16.msra.mxu0 %v23116_v46  ;;  %17223 = vmatmul.mubr.bf16.vlgmr.msra.gmra.mrb[164].mxu1 %v1555_v50  ;;  %v23154_v46 = vld [vmem:[%s23670_s21 + $0x2b88] sm:$0xff]   ;;  %v23158_v50 = vld [vmem:[%s23670_s21 + $0x2b90] sm:$0xff]  }
 0x5b2   : > { %21314 = vmatprep.subr.bf16.mxu0 %v23118_v51  ;;  %21335 = vmatpush3.bf16.msra.mxu1 %v23117_v49  ;;  %v23157_v49 = vld [vmem:[%s23670_s21 + $0x2b10] sm:$0xff]   ;;  %v23159_v51 = vld [vmem:[%s23670_s21 + $0x2b58] sm:$0xff]  }
 0x5b3   : > { %21336 = vmatprep.subr.bf16.mxu1 %v23119_v53  ;;  %17262 = vmatprep.mubr.bf16.mxu0 %v1558_v37  ;;  %v23161_v53 = vld [vmem:[%s23670_s21 + $0x2b18] sm:$0xff]   ;;  %v23188_v37 = vld [vmem:[%s23670_s21 + $0x2c50] sm:$0xff]  }
 0x5b4   : > { %17302 = vmatprep.mubr.bf16.mxu1 %v1560_v43  ;;  %v23193_v43 = vld [vmem:[%s23670_s21 + $0x2cd8] sm:$0xff]  }
 0x5b5   : > { %21315 = vmatpush3.bf16.msra.mxu0 %v23120_v54  ;;  %v23162_v54 = vld [vmem:[%s23670_s21 + $0x2b98] sm:$0xff]  }
 0x5b6   : > { %21316 = vmatprep.subr.bf16.mxu0 %v23122_v56  ;;  %21337 = vmatpush3.bf16.msra.mxu1 %v23121_v55  ;;  %v23163_v55 = vld [vmem:[%s23670_s21 + $0x2b60] sm:$0xff]  }
 0x5b7   : > { %21338 = vmatprep.subr.bf16.mxu1 %v23123_v57  ;;  %v23164_v56 = vld [vmem:[%s23670_s21 + $0x2be0] sm:$0xff]  }
 0x5b8   : > { %v23165_v57 = vld [vmem:[%s23670_s21 + $0x2b20] sm:$0xff]  }
 0x5b9   : > { %21317 = vmatpush3.bf16.msra.mxu0 %v23124_v58  ;;  %v23166_v58 = vld [vmem:[%s23670_s21 + $0x2ba0] sm:$0xff]  }
 0x5ba   : > { %21318 = vmatprep.subr.bf16.mxu0 %v23126_v60  ;;  %21339 = vmatpush3.bf16.msra.mxu1 %v23125_v59  ;;  %v23167_v59 = vld [vmem:[%s23670_s21 + $0x2b68] sm:$0xff]  }
 0x5bb   : > { %21340 = vmatprep.subr.bf16.mxu1 %v23127_v61  ;;  %v23168_v61 = vld [vmem:[%s23670_s21 + $0x2be8] sm:$0xff]  }
 0x5bd   : > { %21319 = vmatpush3.bf16.msra.mxu0 %v23128_v62 }
 0x5be   : > { %21320 = vmatprep.subr.bf16.mxu0 %v23130_v0  ;;  %21341 = vmatpush3.bf16.msra.mxu1 %v23129_v63  ;;  %v23169_v63 = vld [vmem:[%s23670_s21 + $0x2b28] sm:$0xff]  }
 0x5bf   : > { %21342 = vmatprep.subr.bf16.mxu1 %v23131_v1 }
 0x5c1   : > { %21321 = vmatpush3.bf16.msra.mxu0 %v23132_v2 }
 0x5c2   : > { %21322 = vmatprep.subr.bf16.mxu0 %v23134_v4  ;;  %21343 = vmatpush3.bf16.msra.mxu1 %v23133_v3  ;;  %v23170_v3 = vld [vmem:[%s23670_s21 + $0x2ba8] sm:$0xff]   ;;  %v23171_v4 = vld [vmem:[%s23670_s21 + $0x2b70] sm:$0xff]  }
 0x5c3   : > { %v21020_v5 = vpop.f32.mrb[140].mxu0  ;;  %21344 = vmatprep.subr.bf16.mxu1 %v23135_v6 }
 0x5c4   : > { %v21021_v7 = vpop.f32.mrb[141].mxu0  ;;  %v21042_v9 = vpop.f32.mrb[140].mxu1 }
 0x5c5   : > { %v21022_v10 = vadd.f32 %v21021_v7, %v21020_v5  ;;  %v21023_v11 = vpop.f32.mrb[142].mxu0  ;;  %v21043_v14 = vpop.f32.mrb[141].mxu1  ;;  %21323 = vmatpush3.bf16.msra.mxu0 %v23136_v8 }
 0x5c6   : > { %v21024_v15 = vpop.f32.mrb[143].mxu0  ;;  %v21044_v17 = vadd.f32 %v21043_v14, %v21042_v9  ;;  %v21045_v18 = vpop.f32.mrb[142].mxu1  ;;  %21324 = vmatprep.subr.bf16.mxu0 %v23138_v13  ;;  %21345 = vmatpush3.bf16.msra.mxu1 %v23137_v12  ;;  %v23173_v12 = vld [vmem:[%s23670_s21 + $0x2b30] sm:$0xff]  }
 0x5c7   : > { %v16705_v16 = vadd.f32 %v21022_v10, %v25254_v31  ;;  %v21046_v20 = vpop.f32.mrb[143].mxu1  ;;  %21346 = vmatprep.subr.bf16.mxu1 %v23139_v19  ;;  %v23145_v31 = vld [vmem:[%s23670_s21 + $0x2ab8] sm:$0xff]   ;;  %v23172_v10 = vld [vmem:[%s23670_s21 + $0x2bf0] sm:$0xff]  }
 0x5c8   : > { %v23174_v14 = vld [vmem:[%s23670_s21 + $0x2bb0] sm:$0xff]   ;;  %v23175_v15 = vld [vmem:[%s23670_s21 + $0x2b78] sm:$0xff]  }
 0x5c9   : > { %v25292_v22 = vadd.f32 %v21044_v17, %v16705_v16  ;;  %21325 = vmatpush3.bf16.msra.mxu0 %v23140_v21  ;;  %v23176_v16 = vld [vmem:[%s23670_s21 + $0x2bf8] sm:$0xff]  }
 0x5ca   : > { %21326 = vmatprep.subr.bf16.mxu0 %v23142_v24  ;;  %21347 = vmatpush3.bf16.msra.mxu1 %v23141_v23  ;;  %v23177_v17 = vld [vmem:[%s23670_s21 + $0x2b38] sm:$0xff]  }
 0x5cb   : > { %21348 = vmatprep.subr.bf16.mxu1 %v23143_v25  ;;  %v328_v18 = vld [vmem:[%s23684_s15 + $0x158] sm:$0xff]  ;;  %v23181_v25 = vld [vmem:[%s23670_s21 + $0x2cc0] sm:$0xff]  }
 0x5cc   : > { %v23178_v19 = vld [vmem:[%s23670_s21 + $0x2bb8] sm:$0xff]   ;;  %v1119_v20 = vrot.slane %v328_v18, %v23723_v42  ;;  %v1112_v21 = vcombine.high %v328_v18, %v328_v18  ;;  %v23215_v18 = vld [vmem:[%s23670_s21 + $0x2d00] sm:$0xff]  }
 0x5cd   : > { %21327 = vmatpush3.bf16.msra.mxu0 %v23144_v26 }
 0x5ce   : > { %21356 = vmatprep.subr.bf16.mxu0 %v23147_v30  ;;  %21349 = vmatpush3.bf16.msra.mxu1 %v23145_v31  ;;  %v1127_v23 = vcombine.high %v1119_v20, %v1119_v20  ;;  %v1126_v24 = vrot.slane %v1112_v21, %v23723_v42  ;;  %v1561_v26 = vpack.c.bf16 %v1119_v20, %v1119_v20  ;;  %v23183_v30 = vld [vmem:[%s23670_s21 + $0x2c80] sm:$0xff]  }
 0x5cf   : > { %21378 = vmatprep.subr.bf16.mxu1 %v23148_v34  ;;  %v23185_v34 = vld [vmem:[%s23670_s21 + $0x2cc8] sm:$0xff]   ;;  %v23216_v21 = vld [vmem:[%s23670_s21 + $0x2d80] sm:$0xff]  }
 0x5d0   : > { %17263 = vmatmul.mubr.bf16.vlgmr.msra.gmra.mrb[168].mxu0 %v1557_v35  ;;  %v1562_v28 = vpack.c.bf16 %v1127_v23, %v1127_v23  ;;  %v1128_v29 = vcombine.high %v1126_v24, %v1126_v24  ;;  %v1563_v31 = vpack.c.bf16 %v1126_v24, %v1126_v24  ;;  %v23186_v35 = vld [vmem:[%s23670_s21 + $0x2c08] sm:$0xff]  }
 0x5d1   : > { %21357 = vmatpush3.bf16.msra.mxu0 %v23149_v36  ;;  %17303 = vmatmul.mubr.bf16.vlgmr.msra.gmra.mrb[168].mxu1 %v1559_v40  ;;  %v23187_v36 = vld [vmem:[%s23670_s21 + $0x2c88] sm:$0xff]   ;;  %v23191_v40 = vld [vmem:[%s23670_s21 + $0x2c90] sm:$0xff]  }
 0x5d2   : > { %21358 = vmatprep.subr.bf16.mxu0 %v23151_v41  ;;  %21379 = vmatpush3.bf16.msra.mxu1 %v23150_v39  ;;  %v1564_v33 = vpack.c.bf16 %v1128_v29, %v1128_v29  ;;  %v23190_v39 = vld [vmem:[%s23670_s21 + $0x2c10] sm:$0xff]   ;;  %v23192_v41 = vld [vmem:[%s23670_s21 + $0x2c58] sm:$0xff]   ;;  %v23217_v23 = vld [vmem:[%s23670_s21 + $0x2d48] sm:$0xff]  }
 0x5d3   : > { %21380 = vmatprep.subr.bf16.mxu1 %v23152_v44  ;;  %17342 = vmatprep.mubr.bf16.mxu0 %v1562_v28  ;;  %v23194_v44 = vld [vmem:[%s23670_s21 + $0x2c18] sm:$0xff]   ;;  %v23221_v28 = vld [vmem:[%s23670_s21 + $0x2d50] sm:$0xff]  }
 0x5d4   : > { %17382 = vmatprep.mubr.bf16.mxu1 %v1564_v33  ;;  %v23222_v29 = vld [vmem:[%s23670_s21 + $0x2dd0] sm:$0xff]   ;;  %v23226_v33 = vld [vmem:[%s23670_s21 + $0x2dd8] sm:$0xff]  }
 0x5d5   : > { %21359 = vmatpush3.bf16.msra.mxu0 %v23153_v45  ;;  %v23195_v45 = vld [vmem:[%s23670_s21 + $0x2c98] sm:$0xff]  }
 0x5d6   : > { %21360 = vmatprep.subr.bf16.mxu0 %v23155_v47  ;;  %21381 = vmatpush3.bf16.msra.mxu1 %v23154_v46  ;;  %v23196_v46 = vld [vmem:[%s23670_s21 + $0x2c60] sm:$0xff]  }
 0x5d7   : > { %21382 = vmatprep.subr.bf16.mxu1 %v23156_v48  ;;  %v23197_v47 = vld [vmem:[%s23670_s21 + $0x2ce0] sm:$0xff]  }
 0x5d8   : > { %v23198_v48 = vld [vmem:[%s23670_s21 + $0x2c20] sm:$0xff]  }
 0x5d9   : > { %21361 = vmatpush3.bf16.msra.mxu0 %v23157_v49  ;;  %v23199_v49 = vld [vmem:[%s23670_s21 + $0x2ca0] sm:$0xff]  }
 0x5da   : > { %21362 = vmatprep.subr.bf16.mxu0 %v23159_v51  ;;  %21383 = vmatpush3.bf16.msra.mxu1 %v23158_v50  ;;  %v23200_v50 = vld [vmem:[%s23670_s21 + $0x2c68] sm:$0xff]  }
 0x5db   : > { %21384 = vmatprep.subr.bf16.mxu1 %v23160_v52  ;;  %v23201_v52 = vld [vmem:[%s23670_s21 + $0x2ce8] sm:$0xff]  }
 0x5dd   : > { %21363 = vmatpush3.bf16.msra.mxu0 %v23161_v53 }
 0x5de   : > { %21364 = vmatprep.subr.bf16.mxu0 %v23163_v55  ;;  %21385 = vmatpush3.bf16.msra.mxu1 %v23162_v54  ;;  %v23202_v54 = vld [vmem:[%s23670_s21 + $0x2c28] sm:$0xff]  }
 0x5df   : > { %21386 = vmatprep.subr.bf16.mxu1 %v23164_v56 }
 0x5e1   : > { %21365 = vmatpush3.bf16.msra.mxu0 %v23165_v57 }
 0x5e2   : > { %21366 = vmatprep.subr.bf16.mxu0 %v23167_v59  ;;  %21387 = vmatpush3.bf16.msra.mxu1 %v23166_v58  ;;  %v23203_v59 = vld [vmem:[%s23670_s21 + $0x2ca8] sm:$0xff]  }
 0x5e3   : > { %v21064_v60 = vpop.f32.mrb[144].mxu0  ;;  %21388 = vmatprep.subr.bf16.mxu1 %v23168_v61  ;;  %v23204_v61 = vld [vmem:[%s23670_s21 + $0x2c70] sm:$0xff]  }
 0x5e4   : > { %v21065_v62 = vpop.f32.mrb[145].mxu0  ;;  %v21086_v0 = vpop.f32.mrb[144].mxu1 }
 0x5e5   : > { %v21066_v1 = vadd.f32 %v21065_v62, %v21064_v60  ;;  %v21067_v2 = vpop.f32.mrb[146].mxu0  ;;  %v21087_v5 = vpop.f32.mrb[145].mxu1  ;;  %21367 = vmatpush3.bf16.msra.mxu0 %v23169_v63 }
 0x5e6   : > { %v21068_v6 = vpop.f32.mrb[147].mxu0  ;;  %v21088_v8 = vadd.f32 %v21087_v5, %v21086_v0  ;;  %v21089_v9 = vpop.f32.mrb[146].mxu1  ;;  %21368 = vmatprep.subr.bf16.mxu0 %v23171_v4  ;;  %21389 = vmatpush3.bf16.msra.mxu1 %v23170_v3  ;;  %v23206_v3 = vld [vmem:[%s23670_s21 + $0x2c30] sm:$0xff]   ;;  %v23208_v5 = vld [vmem:[%s23670_s21 + $0x2c78] sm:$0xff]  }
 0x5e7   : > { %v16785_v7 = vadd.f32 %v21066_v1, %v25292_v22  ;;  %v21090_v11 = vpop.f32.mrb[147].mxu1  ;;  %21390 = vmatprep.subr.bf16.mxu1 %v23172_v10  ;;  %v23180_v22 = vld [vmem:[%s23670_s21 + $0x2c40] sm:$0xff]   ;;  %v23205_v1 = vld [vmem:[%s23670_s21 + $0x2cf0] sm:$0xff]  }
 0x5e8   : > { %v23207_v6 = vld [vmem:[%s23670_s21 + $0x2cb0] sm:$0xff]   ;;  %v329_v9 = vld [vmem:[%s23684_s15 + $0x160] sm:$0xff] }
 0x5e9   : > { %v25330_v13 = vadd.f32 %v21088_v8, %v16785_v7  ;;  %21369 = vmatpush3.bf16.msra.mxu0 %v23173_v12  ;;  %v23209_v7 = vld [vmem:[%s23670_s21 + $0x2cf8] sm:$0xff]   ;;  %v1136_v10 = vrot.slane %v329_v9, %v23723_v42  ;;  %v1129_v11 = vcombine.high %v329_v9, %v329_v9  ;;  %v23213_v12 = vld [vmem:[%s23670_s21 + $0x2d40] sm:$0xff]  }
 0x5ea   : > { %21370 = vmatprep.subr.bf16.mxu0 %v23175_v15  ;;  %21391 = vmatpush3.bf16.msra.mxu1 %v23174_v14  ;;  %v23210_v8 = vld [vmem:[%s23670_s21 + $0x2c38] sm:$0xff]   ;;  %v23248_v9 = vld [vmem:[%s23670_s21 + $0x2e00] sm:$0xff]  }
 0x5eb   : > { %21392 = vmatprep.subr.bf16.mxu1 %v23176_v16  ;;  %v1144_v14 = vcombine.high %v1136_v10, %v1136_v10  ;;  %v1143_v15 = vrot.slane %v1129_v11, %v23723_v42  ;;  %v23214_v16 = vld [vmem:[%s23670_s21 + $0x2dc0] sm:$0xff]  }
 0x5ed   : > { %21371 = vmatpush3.bf16.msra.mxu0 %v23177_v17  ;;  %v1565_v17 = vpack.c.bf16 %v1136_v10, %v1136_v10  ;;  %v1145_v20 = vcombine.high %v1143_v15, %v1143_v15 }
 0x5ee   : > { %21400 = vmatprep.subr.bf16.mxu0 %v23180_v22  ;;  %21393 = vmatpush3.bf16.msra.mxu1 %v23178_v19  ;;  %v1566_v19 = vpack.c.bf16 %v1144_v14, %v1144_v14  ;;  %v1567_v22 = vpack.c.bf16 %v1143_v15, %v1143_v15  ;;  %v23250_v14 = vld [vmem:[%s23670_s21 + $0x2e48] sm:$0xff]  }
 0x5ef   : > { %21422 = vmatprep.subr.bf16.mxu1 %v23181_v25  ;;  %v1568_v24 = vpack.c.bf16 %v1145_v20, %v1145_v20  ;;  %v23218_v25 = vld [vmem:[%s23670_s21 + $0x2dc8] sm:$0xff]   ;;  %v23255_v20 = vld [vmem:[%s23670_s21 + $0x2ed0] sm:$0xff]  }
 0x5f0   : > { %17343 = vmatmul.mubr.bf16.vlgmr.msra.gmra.mrb[172].mxu0 %v1561_v26  ;;  %v23219_v26 = vld [vmem:[%s23670_s21 + $0x2d08] sm:$0xff]  }
 0x5f1   : > { %21401 = vmatpush3.bf16.msra.mxu0 %v23182_v27  ;;  %17383 = vmatmul.mubr.bf16.vlgmr.msra.gmra.mrb[172].mxu1 %v1563_v31  ;;  %v23220_v27 = vld [vmem:[%s23670_s21 + $0x2d88] sm:$0xff]   ;;  %v23224_v31 = vld [vmem:[%s23670_s21 + $0x2d90] sm:$0xff]  }
 0x5f2   : > { %21402 = vmatprep.subr.bf16.mxu0 %v23184_v32  ;;  %21423 = vmatpush3.bf16.msra.mxu1 %v23183_v30  ;;  %v23223_v30 = vld [vmem:[%s23670_s21 + $0x2d10] sm:$0xff]   ;;  %v23225_v32 = vld [vmem:[%s23670_s21 + $0x2d58] sm:$0xff]  }
 0x5f3   : > { %21424 = vmatprep.subr.bf16.mxu1 %v23185_v34  ;;  %17422 = vmatprep.mubr.bf16.mxu0 %v1566_v19  ;;  %v23227_v34 = vld [vmem:[%s23670_s21 + $0x2d18] sm:$0xff]   ;;  %v23254_v19 = vld [vmem:[%s23670_s21 + $0x2e50] sm:$0xff]  }
 0x5f4   : > { %17462 = vmatprep.mubr.bf16.mxu1 %v1568_v24  ;;  %v23259_v24 = vld [vmem:[%s23670_s21 + $0x2ed8] sm:$0xff]  }
 0x5f5   : > { %21403 = vmatpush3.bf16.msra.mxu0 %v23186_v35  ;;  %v23228_v35 = vld [vmem:[%s23670_s21 + $0x2d98] sm:$0xff]  }
 0x5f6   : > { %21404 = vmatprep.subr.bf16.mxu0 %v23188_v37  ;;  %21425 = vmatpush3.bf16.msra.mxu1 %v23187_v36  ;;  %v23229_v36 = vld [vmem:[%s23670_s21 + $0x2d60] sm:$0xff]  }
 0x5f7   : > { %21426 = vmatprep.subr.bf16.mxu1 %v23189_v38  ;;  %v23230_v37 = vld [vmem:[%s23670_s21 + $0x2de0] sm:$0xff]  }
 0x5f8   : > { %v23231_v38 = vld [vmem:[%s23670_s21 + $0x2d20] sm:$0xff]  }
 0x5f9   : > { %21405 = vmatpush3.bf16.msra.mxu0 %v23190_v39  ;;  %v23232_v39 = vld [vmem:[%s23670_s21 + $0x2da0] sm:$0xff]  }
 0x5fa   : > { %21406 = vmatprep.subr.bf16.mxu0 %v23192_v41  ;;  %21427 = vmatpush3.bf16.msra.mxu1 %v23191_v40  ;;  %v23233_v40 = vld [vmem:[%s23670_s21 + $0x2d68] sm:$0xff]  }
 0x5fb   : > { %21428 = vmatprep.subr.bf16.mxu1 %v23193_v43  ;;  %v23234_v43 = vld [vmem:[%s23670_s21 + $0x2de8] sm:$0xff]  }
 0x5fd   : > { %21407 = vmatpush3.bf16.msra.mxu0 %v23194_v44 }
 0x5fe   : > { %21408 = vmatprep.subr.bf16.mxu0 %v23196_v46  ;;  %21429 = vmatpush3.bf16.msra.mxu1 %v23195_v45  ;;  %v23235_v45 = vld [vmem:[%s23670_s21 + $0x2d28] sm:$0xff]  }
 0x5ff   : > { %21430 = vmatprep.subr.bf16.mxu1 %v23197_v47 }
 0x601   : > { %21409 = vmatpush3.bf16.msra.mxu0 %v23198_v48 }
 0x602   : > { %21410 = vmatprep.subr.bf16.mxu0 %v23200_v50  ;;  %21431 = vmatpush3.bf16.msra.mxu1 %v23199_v49  ;;  %v23236_v49 = vld [vmem:[%s23670_s21 + $0x2da8] sm:$0xff]   ;;  %v23237_v50 = vld [vmem:[%s23670_s21 + $0x2d70] sm:$0xff]  }
 0x603   : > { %v21108_v51 = vpop.f32.mrb[148].mxu0  ;;  %21432 = vmatprep.subr.bf16.mxu1 %v23201_v52 }
 0x604   : > { %v21109_v53 = vpop.f32.mrb[149].mxu0  ;;  %v21130_v55 = vpop.f32.mrb[148].mxu1 }
 0x605   : > { %v21110_v56 = vadd.f32 %v21109_v53, %v21108_v51  ;;  %v21111_v57 = vpop.f32.mrb[150].mxu0  ;;  %v21131_v58 = vpop.f32.mrb[149].mxu1  ;;  %21411 = vmatpush3.bf16.msra.mxu0 %v23202_v54 }
 0x606   : > { %v21112_v60 = vpop.f32.mrb[151].mxu0  ;;  %v21132_v63 = vadd.f32 %v21131_v58, %v21130_v55  ;;  %v21133_v0 = vpop.f32.mrb[150].mxu1  ;;  %21412 = vmatprep.subr.bf16.mxu0 %v23204_v61  ;;  %21433 = vmatpush3.bf16.msra.mxu1 %v23203_v59  ;;  %v23239_v58 = vld [vmem:[%s23670_s21 + $0x2d30] sm:$0xff]   ;;  %v23241_v61 = vld [vmem:[%s23670_s21 + $0x2d78] sm:$0xff]  }
 0x607   : > { %v16865_v62 = vadd.f32 %v21110_v56, %v25330_v13  ;;  %v21134_v2 = vpop.f32.mrb[151].mxu1  ;;  %21434 = vmatprep.subr.bf16.mxu1 %v23205_v1  ;;  %v23211_v13 = vld [vmem:[%s23670_s21 + $0x2cb8] sm:$0xff]   ;;  %v23238_v56 = vld [vmem:[%s23670_s21 + $0x2df0] sm:$0xff]   ;;  %v330_v0 = vld [vmem:[%s23684_s15 + $0x168] sm:$0xff] }
 0x608   : > { %v23240_v60 = vld [vmem:[%s23670_s21 + $0x2db0] sm:$0xff]   ;;  %v1153_v1 = vrot.slane %v330_v0, %v23723_v42  ;;  %v1146_v2 = vcombine.high %v330_v0, %v330_v0  ;;  %v23281_v0 = vld [vmem:[%s23670_s21 + $0x2f00] sm:$0xff]  }
 0x609   : > { %v25368_v4 = vadd.f32 %v21132_v63, %v16865_v62  ;;  %21413 = vmatpush3.bf16.msra.mxu0 %v23206_v3  ;;  %v23242_v62 = vld [vmem:[%s23670_s21 + $0x2df8] sm:$0xff]   ;;  %v23246_v3 = vld [vmem:[%s23670_s21 + $0x2e40] sm:$0xff]  }
 0x60a   : > { %21414 = vmatprep.subr.bf16.mxu0 %v23208_v5  ;;  %21435 = vmatpush3.bf16.msra.mxu1 %v23207_v6  ;;  %v23243_v63 = vld [vmem:[%s23670_s21 + $0x2d38] sm:$0xff]   ;;  %v1161_v5 = vcombine.high %v1153_v1, %v1153_v1  ;;  %v1160_v6 = vrot.slane %v1146_v2, %v23723_v42 }
 0x60b   : > { %21436 = vmatprep.subr.bf16.mxu1 %v23209_v7  ;;  %v23247_v7 = vld [vmem:[%s23670_s21 + $0x2ec0] sm:$0xff]  }
 0x60c   : > { %v1570_v10 = vpack.c.bf16 %v1161_v5, %v1161_v5  ;;  %v1162_v11 = vcombine.high %v1160_v6, %v1160_v6  ;;  %v23283_v5 = vld [vmem:[%s23670_s21 + $0x2f48] sm:$0xff]  }
 0x60d   : > { %21415 = vmatpush3.bf16.msra.mxu0 %v23210_v8  ;;  %v1569_v8 = vpack.c.bf16 %v1153_v1, %v1153_v1 }
 0x60e   : > { %21444 = vmatprep.subr.bf16.mxu0 %v23213_v12  ;;  %21437 = vmatpush3.bf16.msra.mxu1 %v23211_v13  ;;  %v23249_v12 = vld [vmem:[%s23670_s21 + $0x2e80] sm:$0xff]   ;;  %v1571_v13 = vpack.c.bf16 %v1160_v6, %v1160_v6  ;;  %v1572_v15 = vpack.c.bf16 %v1162_v11, %v1162_v11  ;;  %v23288_v11 = vld [vmem:[%s23670_s21 + $0x2fd0] sm:$0xff]  }
 0x60f   : > { %21466 = vmatprep.subr.bf16.mxu1 %v23214_v16  ;;  %v23251_v16 = vld [vmem:[%s23670_s21 + $0x2ec8] sm:$0xff]  }
 0x610   : > { %17423 = vmatmul.mubr.bf16.vlgmr.msra.gmra.mrb[176].mxu0 %v1565_v17  ;;  %v23252_v17 = vld [vmem:[%s23670_s21 + $0x2e08] sm:$0xff]  }
 0x611   : > { %21445 = vmatpush3.bf16.msra.mxu0 %v23215_v18  ;;  %17463 = vmatmul.mubr.bf16.vlgmr.msra.gmra.mrb[176].mxu1 %v1567_v22  ;;  %v23253_v18 = vld [vmem:[%s23670_s21 + $0x2e88] sm:$0xff]   ;;  %v23257_v22 = vld [vmem:[%s23670_s21 + $0x2e90] sm:$0xff]  }
 0x612   : > { %21446 = vmatprep.subr.bf16.mxu0 %v23217_v23  ;;  %21467 = vmatpush3.bf16.msra.mxu1 %v23216_v21  ;;  %v23256_v21 = vld [vmem:[%s23670_s21 + $0x2e10] sm:$0xff]   ;;  %v23258_v23 = vld [vmem:[%s23670_s21 + $0x2e58] sm:$0xff]  }
 0x613   : > { %21468 = vmatprep.subr.bf16.mxu1 %v23218_v25  ;;  %17502 = vmatprep.mubr.bf16.mxu0 %v1570_v10  ;;  %v23260_v25 = vld [vmem:[%s23670_s21 + $0x2e18] sm:$0xff]   ;;  %v23287_v10 = vld [vmem:[%s23670_s21 + $0x2f50] sm:$0xff]  }
 0x614   : > { %17542 = vmatprep.mubr.bf16.mxu1 %v1572_v15  ;;  %v23292_v15 = vld [vmem:[%s23670_s21 + $0x2fd8] sm:$0xff]  }
 0x615   : > { %21447 = vmatpush3.bf16.msra.mxu0 %v23219_v26  ;;  %v23261_v26 = vld [vmem:[%s23670_s21 + $0x2e98] sm:$0xff]  }
 0x616   : > { %21448 = vmatprep.subr.bf16.mxu0 %v23221_v28  ;;  %21469 = vmatpush3.bf16.msra.mxu1 %v23220_v27  ;;  %v23262_v27 = vld [vmem:[%s23670_s21 + $0x2e60] sm:$0xff]  }
 0x617   : > { %21470 = vmatprep.subr.bf16.mxu1 %v23222_v29  ;;  %v23263_v28 = vld [vmem:[%s23670_s21 + $0x2ee0] sm:$0xff]  }
 0x618   : > { %v23264_v29 = vld [vmem:[%s23670_s21 + $0x2e20] sm:$0xff]  }
 0x619   : > { %21449 = vmatpush3.bf16.msra.mxu0 %v23223_v30  ;;  %v23265_v30 = vld [vmem:[%s23670_s21 + $0x2ea0] sm:$0xff]  }
 0x61a   : > { %21450 = vmatprep.subr.bf16.mxu0 %v23225_v32  ;;  %21471 = vmatpush3.bf16.msra.mxu1 %v23224_v31  ;;  %v23266_v31 = vld [vmem:[%s23670_s21 + $0x2e68] sm:$0xff]  }
 0x61b   : > { %21472 = vmatprep.subr.bf16.mxu1 %v23226_v33  ;;  %v23267_v33 = vld [vmem:[%s23670_s21 + $0x2ee8] sm:$0xff]  }
 0x61d   : > { %21451 = vmatpush3.bf16.msra.mxu0 %v23227_v34 }
 0x61e   : > { %21452 = vmatprep.subr.bf16.mxu0 %v23229_v36  ;;  %21473 = vmatpush3.bf16.msra.mxu1 %v23228_v35  ;;  %v23268_v35 = vld [vmem:[%s23670_s21 + $0x2e28] sm:$0xff]  }
 0x61f   : > { %21474 = vmatprep.subr.bf16.mxu1 %v23230_v37 }
 0x621   : > { %21453 = vmatpush3.bf16.msra.mxu0 %v23231_v38 }
 0x622   : > { %21454 = vmatprep.subr.bf16.mxu0 %v23233_v40  ;;  %21475 = vmatpush3.bf16.msra.mxu1 %v23232_v39  ;;  %v23269_v39 = vld [vmem:[%s23670_s21 + $0x2ea8] sm:$0xff]   ;;  %v23270_v40 = vld [vmem:[%s23670_s21 + $0x2e70] sm:$0xff]  }
 0x623   : > { %v21152_v41 = vpop.f32.mrb[152].mxu0  ;;  %21476 = vmatprep.subr.bf16.mxu1 %v23234_v43 }
 0x624   : > { %v21153_v44 = vpop.f32.mrb[153].mxu0  ;;  %v21174_v46 = vpop.f32.mrb[152].mxu1 }
 0x625   : > { %v21154_v47 = vadd.f32 %v21153_v44, %v21152_v41  ;;  %v21155_v48 = vpop.f32.mrb[154].mxu0  ;;  %v21175_v51 = vpop.f32.mrb[153].mxu1  ;;  %21455 = vmatpush3.bf16.msra.mxu0 %v23235_v45 }
 0x626   : > { %v21156_v52 = vpop.f32.mrb[155].mxu0  ;;  %v21176_v54 = vadd.f32 %v21175_v51, %v21174_v46  ;;  %v21177_v55 = vpop.f32.mrb[154].mxu1  ;;  %21456 = vmatprep.subr.bf16.mxu0 %v23237_v50  ;;  %21477 = vmatpush3.bf16.msra.mxu1 %v23236_v49  ;;  %v23272_v49 = vld [vmem:[%s23670_s21 + $0x2e30] sm:$0xff]  }
 0x627   : > { %v16945_v53 = vadd.f32 %v21154_v47, %v25368_v4  ;;  %v21178_v57 = vpop.f32.mrb[155].mxu1  ;;  %21478 = vmatprep.subr.bf16.mxu1 %v23238_v56  ;;  %v23244_v4 = vld [vmem:[%s23670_s21 + $0x2db8] sm:$0xff]   ;;  %v23271_v47 = vld [vmem:[%s23670_s21 + $0x2ef0] sm:$0xff]  }
 0x628   : > { %v23273_v51 = vld [vmem:[%s23670_s21 + $0x2eb0] sm:$0xff]   ;;  %v23274_v52 = vld [vmem:[%s23670_s21 + $0x2e78] sm:$0xff]  }
 0x629   : > { %v25406_v59 = vadd.f32 %v21176_v54, %v16945_v53  ;;  %21457 = vmatpush3.bf16.msra.mxu0 %v23239_v58  ;;  %v23275_v53 = vld [vmem:[%s23670_s21 + $0x2ef8] sm:$0xff]   ;;  %v331_v55 = vld [vmem:[%s23684_s15 + $0x170] sm:$0xff] }
 0x62a   : > { %21458 = vmatprep.subr.bf16.mxu0 %v23241_v61  ;;  %21479 = vmatpush3.bf16.msra.mxu1 %v23240_v60  ;;  %v23276_v54 = vld [vmem:[%s23670_s21 + $0x2e38] sm:$0xff]   ;;  %v1170_v57 = vrot.slane %v331_v55, %v23723_v42  ;;  %v1163_v58 = vcombine.high %v331_v55, %v331_v55 }
 0x62b   : > { %21480 = vmatprep.subr.bf16.mxu1 %v23242_v62  ;;  %v23277_v56 = vld [vmem:[%s23670_s21 + $0x2eb8] sm:$0xff]   ;;  %v23280_v62 = vld [vmem:[%s23670_s21 + $0x2fc0] sm:$0xff]  }
 0x62c   : > { %v1178_v60 = vcombine.high %v1170_v57, %v1170_v57  ;;  %v1177_v61 = vrot.slane %v1163_v58, %v23723_v42 }
 0x62d   : > { %21459 = vmatpush3.bf16.msra.mxu0 %v23243_v63  ;;  %v1573_v63 = vpack.c.bf16 %v1170_v57, %v1170_v57 }
 0x62e   : > { %21488 = vmatprep.subr.bf16.mxu0 %v23246_v3  ;;  %21481 = vmatpush3.bf16.msra.mxu1 %v23244_v4  ;;  %v1574_v1 = vpack.c.bf16 %v1178_v60, %v1178_v60  ;;  %v1179_v2 = vcombine.high %v1177_v61, %v1177_v61  ;;  %v23282_v3 = vld [vmem:[%s23670_s21 + $0x2f80] sm:$0xff]   ;;  %v1575_v4 = vpack.c.bf16 %v1177_v61, %v1177_v61 }
 0x62f   : > { %21510 = vmatprep.subr.bf16.mxu1 %v23247_v7  ;;  %v23284_v7 = vld [vmem:[%s23670_s21 + $0x2fc8] sm:$0xff]  }
 0x630   : > { %17503 = vmatmul.mubr.bf16.vlgmr.msra.gmra.mrb[180].mxu0 %v1569_v8  ;;  %v1576_v6 = vpack.c.bf16 %v1179_v2, %v1179_v2  ;;  %v23285_v8 = vld [vmem:[%s23670_s21 + $0x2f08] sm:$0xff]  }
 0x631   : > { %21489 = vmatpush3.bf16.msra.mxu0 %v23248_v9  ;;  %17543 = vmatmul.mubr.bf16.vlgmr.msra.gmra.mrb[180].mxu1 %v1571_v13  ;;  %v23286_v9 = vld [vmem:[%s23670_s21 + $0x2f88] sm:$0xff]   ;;  %v23290_v13 = vld [vmem:[%s23670_s21 + $0x2f90] sm:$0xff]  }
 0x632   : > { %21490 = vmatprep.subr.bf16.mxu0 %v23250_v14  ;;  %21511 = vmatpush3.bf16.msra.mxu1 %v23249_v12  ;;  %v23289_v12 = vld [vmem:[%s23670_s21 + $0x2f10] sm:$0xff]   ;;  %v23291_v14 = vld [vmem:[%s23670_s21 + $0x2f58] sm:$0xff]  }
 0x633   : > { %21512 = vmatprep.subr.bf16.mxu1 %v23251_v16  ;;  %17582 = vmatprep.mubr.bf16.mxu0 %v1574_v1  ;;  %v23293_v16 = vld [vmem:[%s23670_s21 + $0x2f18] sm:$0xff]  }
 0x634   : > { %17622 = vmatprep.mubr.bf16.mxu1 %v1576_v6 }
 0x635   : > { %21491 = vmatpush3.bf16.msra.mxu0 %v23252_v17  ;;  %v23294_v17 = vld [vmem:[%s23670_s21 + $0x2f98] sm:$0xff]  }
 0x636   : > { %21492 = vmatprep.subr.bf16.mxu0 %v23254_v19  ;;  %21513 = vmatpush3.bf16.msra.mxu1 %v23253_v18  ;;  %v23295_v18 = vld [vmem:[%s23670_s21 + $0x2f60] sm:$0xff]  }
 0x637   : > { %21514 = vmatprep.subr.bf16.mxu1 %v23255_v20  ;;  %v23296_v19 = vld [vmem:[%s23670_s21 + $0x2fe0] sm:$0xff]  }
 0x638   : > { %v23297_v20 = vld [vmem:[%s23670_s21 + $0x2f20] sm:$0xff]  }
 0x639   : > { %21493 = vmatpush3.bf16.msra.mxu0 %v23256_v21  ;;  %v23298_v21 = vld [vmem:[%s23670_s21 + $0x2fa0] sm:$0xff]  }
 0x63a   : > { %21494 = vmatprep.subr.bf16.mxu0 %v23258_v23  ;;  %21515 = vmatpush3.bf16.msra.mxu1 %v23257_v22  ;;  %v23299_v22 = vld [vmem:[%s23670_s21 + $0x2f68] sm:$0xff]  }
 0x63b   : > { %21516 = vmatprep.subr.bf16.mxu1 %v23259_v24  ;;  %v23300_v24 = vld [vmem:[%s23670_s21 + $0x2fe8] sm:$0xff]  }
 0x63d   : > { %21495 = vmatpush3.bf16.msra.mxu0 %v23260_v25 }
 0x63e   : > { %21496 = vmatprep.subr.bf16.mxu0 %v23262_v27  ;;  %21517 = vmatpush3.bf16.msra.mxu1 %v23261_v26  ;;  %v23301_v26 = vld [vmem:[%s23670_s21 + $0x2f28] sm:$0xff]  }
 0x63f   : > { %21518 = vmatprep.subr.bf16.mxu1 %v23263_v28 }
 0x641   : > { %21497 = vmatpush3.bf16.msra.mxu0 %v23264_v29 }
 0x642   : > { %21498 = vmatprep.subr.bf16.mxu0 %v23266_v31  ;;  %21519 = vmatpush3.bf16.msra.mxu1 %v23265_v30  ;;  %v23302_v31 = vld [vmem:[%s23670_s21 + $0x2fa8] sm:$0xff]  }
 0x643   : > { %v21196_v32 = vpop.f32.mrb[156].mxu0  ;;  %21520 = vmatprep.subr.bf16.mxu1 %v23267_v33  ;;  %v23303_v33 = vld [vmem:[%s23670_s21 + $0x2f70] sm:$0xff]  }
 0x644   : > { %v21197_v34 = vpop.f32.mrb[157].mxu0  ;;  %v21218_v36 = vpop.f32.mrb[156].mxu1 }
 0x645   : > { %v21198_v37 = vadd.f32 %v21197_v34, %v21196_v32  ;;  %v21199_v38 = vpop.f32.mrb[158].mxu0  ;;  %v21219_v41 = vpop.f32.mrb[157].mxu1  ;;  %21499 = vmatpush3.bf16.msra.mxu0 %v23268_v35 }
 0x646   : > { %v21200_v43 = vpop.f32.mrb[159].mxu0  ;;  %v21220_v45 = vadd.f32 %v21219_v41, %v21218_v36  ;;  %v21221_v46 = vpop.f32.mrb[158].mxu1  ;;  %21500 = vmatprep.subr.bf16.mxu0 %v23270_v40  ;;  %21521 = vmatpush3.bf16.msra.mxu1 %v23269_v39  ;;  %v23305_v39 = vld [vmem:[%s23670_s21 + $0x2f30] sm:$0xff]   ;;  %v23307_v41 = vld [vmem:[%s23670_s21 + $0x2f78] sm:$0xff]  }
 0x647   : > { %v17025_v44 = vadd.f32 %v21198_v37, %v25406_v59  ;;  %v21222_v48 = vpop.f32.mrb[159].mxu1  ;;  %21522 = vmatprep.subr.bf16.mxu1 %v23271_v47  ;;  %v23279_v59 = vld [vmem:[%s23670_s21 + $0x2f40] sm:$0xff]   ;;  %v23304_v37 = vld [vmem:[%s23670_s21 + $0x2ff0] sm:$0xff]  }
 0x648   : > { %v23306_v43 = vld [vmem:[%s23670_s21 + $0x2fb0] sm:$0xff]  }
 0x649   : > { %v25444_v50 = vadd.f32 %v21220_v45, %v17025_v44  ;;  %21501 = vmatpush3.bf16.msra.mxu0 %v23272_v49  ;;  %v23308_v44 = vld [vmem:[%s23670_s21 + $0x2ff8] sm:$0xff]  }
 0x64a   : > { %21502 = vmatprep.subr.bf16.mxu0 %v23274_v52  ;;  %21523 = vmatpush3.bf16.msra.mxu1 %v23273_v51  ;;  %v23309_v45 = vld [vmem:[%s23670_s21 + $0x2f38] sm:$0xff]  }
 0x64b   : > { %21524 = vmatprep.subr.bf16.mxu1 %v23275_v53  ;;  %v332_v46 = vld [vmem:[%s23684_s15 + $0x178] sm:$0xff] }
 0x64c   : > { %v1187_v47 = vrot.slane %v332_v46, %v23723_v42  ;;  %v1180_v48 = vcombine.high %v332_v46, %v332_v46  ;;  %v23310_v49 = vld [vmem:[%s23670_s21 + $0x2fb8] sm:$0xff]  }
 0x64d   : > { %21503 = vmatpush3.bf16.msra.mxu0 %v23276_v54 }
 0x64e   : > { %21532 = vmatprep.subr.bf16.mxu0 %v23279_v59  ;;  %21525 = vmatpush3.bf16.msra.mxu1 %v23277_v56  ;;  %v1194_v51 = vrot.slane %v1180_v48, %v23723_v42  ;;  %v1577_v52 = vpack.c.bf16 %v1187_v47, %v1187_v47 }
 0x64f   : > { %21554 = vmatprep.subr.bf16.mxu1 %v23280_v62 }
 0x650   : > { %17583 = vmatmul.mubr.bf16.vlgmr.msra.gmra.mrb[184].mxu0 %v1573_v63  ;;  %v1196_v54 = vcombine.high %v1194_v51, %v1194_v51  ;;  %v1579_v55 = vpack.c.bf16 %v1194_v51, %v1194_v51 }
 0x651   : > { %21533 = vmatpush3.bf16.msra.mxu0 %v23281_v0  ;;  %17623 = vmatmul.mubr.bf16.vlgmr.msra.gmra.mrb[184].mxu1 %v1575_v4 }
 0x652   : > { %21534 = vmatprep.subr.bf16.mxu0 %v23283_v5  ;;  %21555 = vmatpush3.bf16.msra.mxu1 %v23282_v3  ;;  %v1580_v56 = vpack.c.bf16 %v1196_v54, %v1196_v54 }
 0x653   : > { %21556 = vmatprep.subr.bf16.mxu1 %v23284_v7 }
 0x654   : > { %17702 = vmatprep.mubr.bf16.mxu1 %v1580_v56 }
 0x655   : > { %21535 = vmatpush3.bf16.msra.mxu0 %v23285_v8 }
 0x656   : > { %21536 = vmatprep.subr.bf16.mxu0 %v23287_v10  ;;  %21557 = vmatpush3.bf16.msra.mxu1 %v23286_v9 }
 0x657   : > { %21558 = vmatprep.subr.bf16.mxu1 %v23288_v11 }
 0x659   : > { %21537 = vmatpush3.bf16.msra.mxu0 %v23289_v12 }
 0x65a   : > { %21538 = vmatprep.subr.bf16.mxu0 %v23291_v14  ;;  %21559 = vmatpush3.bf16.msra.mxu1 %v23290_v13 }
 0x65b   : > { %21560 = vmatprep.subr.bf16.mxu1 %v23292_v15 }
 0x65d   : > { %21539 = vmatpush3.bf16.msra.mxu0 %v23293_v16 }
 0x65e   : > { %21540 = vmatprep.subr.bf16.mxu0 %v23295_v18  ;;  %21561 = vmatpush3.bf16.msra.mxu1 %v23294_v17 }
 0x65f   : > { %21562 = vmatprep.subr.bf16.mxu1 %v23296_v19 }
 0x661   : > { %21541 = vmatpush3.bf16.msra.mxu0 %v23297_v20 }
 0x662   : > { %21542 = vmatprep.subr.bf16.mxu0 %v23299_v22  ;;  %21563 = vmatpush3.bf16.msra.mxu1 %v23298_v21 }
 0x663   : > { %v21240_v23 = vpop.f32.mrb[160].mxu0  ;;  %21564 = vmatprep.subr.bf16.mxu1 %v23300_v24 }
 0x664   : > { %v21241_v25 = vpop.f32.mrb[161].mxu0  ;;  %v21262_v27 = vpop.f32.mrb[160].mxu1 }
 0x665   : > { %v21242_v28 = vadd.f32 %v21241_v25, %v21240_v23  ;;  %v21243_v29 = vpop.f32.mrb[162].mxu0  ;;  %v21263_v30 = vpop.f32.mrb[161].mxu1  ;;  %21543 = vmatpush3.bf16.msra.mxu0 %v23301_v26 }
 0x666   : > { %v21244_v32 = vpop.f32.mrb[163].mxu0  ;;  %v21264_v35 = vadd.f32 %v21263_v30, %v21262_v27  ;;  %v21265_v36 = vpop.f32.mrb[162].mxu1  ;;  %21544 = vmatprep.subr.bf16.mxu0 %v23303_v33  ;;  %21565 = vmatpush3.bf16.msra.mxu1 %v23302_v31 }
 0x667   : > { %v17105_v34 = vadd.f32 %v21242_v28, %v25444_v50  ;;  %v21266_v38 = vpop.f32.mrb[163].mxu1  ;;  %21566 = vmatprep.subr.bf16.mxu1 %v23304_v37  ;;  %v1195_v50 = vcombine.high %v1187_v47, %v1187_v47 }
 0x669   : > { %v17145_v40 = vadd.f32 %v21264_v35, %v17105_v34  ;;  %21545 = vmatpush3.bf16.msra.mxu0 %v23305_v39  ;;  %v1578_v53 = vpack.c.bf16 %v1195_v50, %v1195_v50 }
 0x66a   : > { %21546 = vmatprep.subr.bf16.mxu0 %v23307_v41  ;;  %21567 = vmatpush3.bf16.msra.mxu1 %v23306_v43 }
 0x66b   : > { %21568 = vmatprep.subr.bf16.mxu1 %v23308_v44  ;;  %17662 = vmatprep.mubr.bf16.mxu0 %v1578_v53 }
 0x66d   : > { %21547 = vmatpush3.bf16.msra.mxu0 %v23309_v45 }
 0x66e   : > { %21569 = vmatpush3.bf16.msra.mxu1 %v23310_v49 }
 0x670   : > { %17663 = vmatmul.mubr.bf16.vlgmr.msra.gmra.mrb[188].mxu0 %v1577_v52 }
 0x671   : > { %17703 = vmatmul.mubr.bf16.vlgmr.msra.gmra.mrb[188].mxu1 %v1579_v55 }
 0x683   : > { %v21284_v57 = vpop.f32.mrb[164].mxu0 }
 0x684   : > { %v21285_v58 = vpop.f32.mrb[165].mxu0  ;;  %v21306_v59 = vpop.f32.mrb[164].mxu1 }
 0x685   : > { %v21286_v60 = vadd.f32 %v21285_v58, %v21284_v57  ;;  %v21287_v61 = vpop.f32.mrb[166].mxu0  ;;  %v21307_v62 = vpop.f32.mrb[165].mxu1 }
 0x686   : > { %v21288_v63 = vpop.f32.mrb[167].mxu0  ;;  %v21308_v42 = vadd.f32 %v21307_v62, %v21306_v59  ;;  %v21309_v1 = vpop.f32.mrb[166].mxu1 }
 0x687   : > { %v17185_v0 = vadd.f32 %v21286_v60, %v17145_v40  ;;  %v21310_v2 = vpop.f32.mrb[167].mxu1 }
 0x689   : > { %v17225_v3 = vadd.f32 %v21308_v42, %v17185_v0 }
 0x6a3   : > { %v21328_v4 = vpop.f32.mrb[168].mxu0 }
 0x6a4   : > { %v21329_v5 = vpop.f32.mrb[169].mxu0  ;;  %v21350_v6 = vpop.f32.mrb[168].mxu1 }
 0x6a5   : > { %v21330_v7 = vadd.f32 %v21329_v5, %v21328_v4  ;;  %v21331_v8 = vpop.f32.mrb[170].mxu0  ;;  %v21351_v9 = vpop.f32.mrb[169].mxu1 }
 0x6a6   : > { %v21332_v10 = vpop.f32.mrb[171].mxu0  ;;  %v21352_v12 = vadd.f32 %v21351_v9, %v21350_v6  ;;  %v21353_v13 = vpop.f32.mrb[170].mxu1 }
 0x6a7   : > { %v17265_v11 = vadd.f32 %v21330_v7, %v17225_v3  ;;  %v21354_v14 = vpop.f32.mrb[171].mxu1  ;;  %v1581_v10 = vld [vmem:[#allocation2] sm:$0x3] }
 0x6a8   : > { %v17726_v14 = vld [vmem:[%s25578_s3] sm:$0xff] (!%p19456_p6) }
 0x6a9   : > { %v17305_v15 = vadd.f32 %v21352_v12, %v17265_v11 }
 0x6c3   : > { %v21372_v16 = vpop.f32.mrb[172].mxu0 }
 0x6c4   : > { %v21373_v17 = vpop.f32.mrb[173].mxu0  ;;  %v21394_v18 = vpop.f32.mrb[172].mxu1 }
 0x6c5   : > { %v21374_v19 = vadd.f32 %v21373_v17, %v21372_v16  ;;  %v21375_v20 = vpop.f32.mrb[174].mxu0  ;;  %v21395_v21 = vpop.f32.mrb[173].mxu1  ;;  %v17728_v16 = vld [vmem:[%s25578_s3 + $0x10] sm:$0xff] (!%p19456_p6)  ;;  %v23475_v17 = vmov (!%p19456_p6), 0.0|0.0  }
 0x6c6   : > { %v21376_v22 = vpop.f32.mrb[175].mxu0  ;;  %v21396_v24 = vadd.f32 %v21395_v21, %v21394_v18  ;;  %v21397_v25 = vpop.f32.mrb[174].mxu1  ;;  %21628 = vmatprep.subr.bf16.mxu0 (!%p19456_p6), %v23475_v17  ;;  %v23477_v20 = vmov (!%p19456_p6), 0.0  }
 0x6c7   : > { %v17345_v23 = vadd.f32 %v21374_v19, %v17305_v15  ;;  %v21398_v26 = vpop.f32.mrb[175].mxu1  ;;  %v17727_v15 = vld [vmem:[%s25578_s3 + $0x8] sm:$0xff] (!%p19456_p6)  ;;  %v17729_v19 = vld [vmem:[%s25578_s3 + $0x18] sm:$0xff] (!%p19456_p6)  ;;  %21625 = vmatprep.mubr.msk.f32.mxu0 (!%p19456_p6), %vm23476_vm0, %v23477_v20  ;;  %v17730_v22 = vld [vmem:[%s25578_s3 + $0x20] sm:$0xff] (!%p19456_p6) }
 0x6c8   : > { %v21629_v18 = vpack.c.bf16 (!%p19456_p6), %v17727_v15, %v17726_v14  ;;  %v21632_v21 = vpack.c.bf16 (!%p19456_p6), %v17729_v19, %v17728_v16  ;;  %v17732_v25 = vld [vmem:[%s25578_s3 + $0x30] sm:$0xff] (!%p19456_p6)  ;;  %v17733_v26 = vld [vmem:[%s25578_s3 + $0x38] sm:$0xff] (!%p19456_p6) }
 0x6c9   : > { %v17385_v27 = vadd.f32 %v21396_v24, %v17345_v23  ;;  %v17731_v23 = vld [vmem:[%s25578_s3 + $0x28] sm:$0xff] (!%p19456_p6) }
 0x6ca   : > { %21630 = vmatpush3.bf16.msra.mxu0 (!%p19456_p6), %v21629_v18  ;;  %v21635_v24 = vpack.c.bf16 (!%p19456_p6), %v17731_v23, %v17730_v22 }
 0x6cb   : > { %21631 = vmatprep.subr.bf16.mxu0 (!%p19456_p6), %v23475_v17 }
 0x6ce   : > { %21633 = vmatpush3.bf16.msra.mxu0 (!%p19456_p6), %v21632_v21 }
 0x6cf   : > { %21634 = vmatprep.subr.bf16.mxu0 (!%p19456_p6), %v23475_v17 }
 0x6d2   : > { %21636 = vmatpush3.bf16.msra.mxu0 (!%p19456_p6), %v21635_v24 }
 0x6d3   : > { %21637 = vmatprep.subr.bf16.mxu0 (!%p19456_p6), %v23475_v17 }
 0x6e3   : > { %v21416_v28 = vpop.f32.mrb[176].mxu0 }
 0x6e4   : > { %v21417_v29 = vpop.f32.mrb[177].mxu0  ;;  %v21438_v30 = vpop.f32.mrb[176].mxu1 }
 0x6e5   : > { %v21418_v31 = vadd.f32 %v21417_v29, %v21416_v28  ;;  %v21419_v32 = vpop.f32.mrb[178].mxu0  ;;  %v21439_v33 = vpop.f32.mrb[177].mxu1  ;;  %v17734_v28 = vld [vmem:[%s25578_s3 + $0x40] sm:$0xff] (!%p19456_p6)  ;;  %v17735_v29 = vld [vmem:[%s25578_s3 + $0x48] sm:$0xff] (!%p19456_p6) }
 0x6e6   : > { %v21420_v34 = vpop.f32.mrb[179].mxu0  ;;  %v21440_v36 = vadd.f32 %v21439_v33, %v21438_v30  ;;  %v21441_v37 = vpop.f32.mrb[178].mxu1  ;;  %v21641_v30 = vpack.c.bf16 (!%p19456_p6), %v17735_v29, %v17734_v28  ;;  %v17737_v32 = vld [vmem:[%s25578_s3 + $0x58] sm:$0xff] (!%p19456_p6) }
 0x6e7   : > { %v17425_v35 = vadd.f32 %v21418_v31, %v17385_v27  ;;  %v21442_v38 = vpop.f32.mrb[179].mxu1  ;;  %v21638_v27 = vpack.c.bf16 (!%p19456_p6), %v17733_v26, %v17732_v25  ;;  %v17736_v31 = vld [vmem:[%s25578_s3 + $0x50] sm:$0xff] (!%p19456_p6)  ;;  %v17738_v34 = vld [vmem:[%s25578_s3 + $0x60] sm:$0xff] (!%p19456_p6) }
 0x6e8   : > { %v21644_v33 = vpack.c.bf16 (!%p19456_p6), %v17737_v32, %v17736_v31  ;;  %v19457_v38 = vld [vmem:[#allocation6] ss:$0 sm:$0xff] (!%p19456_p6) }
 0x6e9   : > { %v17465_v39 = vadd.f32 %v21440_v36, %v17425_v35  ;;  %21639 = vmatpush3.bf16.msra.mxu0 (!%p19456_p6), %v21638_v27  ;;  %v17739_v35 = vld [vmem:[%s25578_s3 + $0x68] sm:$0xff] (!%p19456_p6) }
 0x6ea   : > { %21640 = vmatprep.subr.bf16.mxu0 (!%p19456_p6), %v23475_v17  ;;  %v21647_v36 = vpack.c.bf16 (!%p19456_p6), %v17739_v35, %v17738_v34 }
 0x6ed   : > { %21642 = vmatpush3.bf16.msra.mxu0 (!%p19456_p6), %v21641_v30 }
 0x6ee   : > { %21643 = vmatprep.subr.bf16.mxu0 (!%p19456_p6), %v23475_v17 }
 0x6f1   : > { %21645 = vmatpush3.bf16.msra.mxu0 (!%p19456_p6), %v21644_v33 }
 0x6f2   : > { %21646 = vmatprep.subr.bf16.mxu0 (!%p19456_p6), %v23475_v17 }
 0x6f5   : > { %21648 = vmatpush3.bf16.msra.mxu0 (!%p19456_p6), %v21647_v36 }
 0x6f6   : > { %21649 = vmatprep.subr.bf16.mxu0 (!%p19456_p6), %v23475_v17 }
 0x703   : > { %v21460_v40 = vpop.f32.mrb[180].mxu0 }
 0x704   : > { %v21461_v41 = vpop.f32.mrb[181].mxu0  ;;  %v21482_v43 = vpop.f32.mrb[180].mxu1 }
 0x705   : > { %v21462_v44 = vadd.f32 %v21461_v41, %v21460_v40  ;;  %v21463_v45 = vpop.f32.mrb[182].mxu0  ;;  %v21483_v46 = vpop.f32.mrb[181].mxu1  ;;  %v17741_v40 = vld [vmem:[%s25578_s3 + $0x78] sm:$0xff] (!%p19456_p6) }
 0x706   : > { %v21464_v47 = vpop.f32.mrb[183].mxu0  ;;  %v21484_v49 = vadd.f32 %v21483_v46, %v21482_v43  ;;  %v21485_v50 = vpop.f32.mrb[182].mxu1  ;;  %v19458_v45 = vld [vmem:[#allocation8] ss:$0 sm:$0xff] (!%p19456_p6) }
 0x707   : > { %v17505_v48 = vadd.f32 %v21462_v44, %v17465_v39  ;;  %v21486_v51 = vpop.f32.mrb[183].mxu1  ;;  %v17740_v39 = vld [vmem:[%s25578_s3 + $0x70] sm:$0xff] (!%p19456_p6) }
 0x708   : > { %v21650_v43 = vpack.c.bf16 (!%p19456_p6), %v17741_v40, %v17740_v39 }
 0x709   : > { %v17545_v52 = vadd.f32 %v21484_v49, %v17505_v48 }
 0x70a   : > { %21651 = vmatpush3.bf16.msra.mxu0 (!%p19456_p6), %v21650_v43 }
 0x723   : > { %v21504_v53 = vpop.f32.mrb[184].mxu0 }
 0x724   : > { %v21505_v54 = vpop.f32.mrb[185].mxu0  ;;  %v21526_v55 = vpop.f32.mrb[184].mxu1 }
 0x725   : > { %v21506_v56 = vadd.f32 %v21505_v54, %v21504_v53  ;;  %v21507_v57 = vpop.f32.mrb[186].mxu0  ;;  %v21527_v58 = vpop.f32.mrb[185].mxu1 }
 0x726   : > { %v21508_v59 = vpop.f32.mrb[187].mxu0  ;;  %v21528_v61 = vadd.f32 %v21527_v58, %v21526_v55  ;;  %v21529_v62 = vpop.f32.mrb[186].mxu1 }
 0x727   : > { %v17585_v60 = vadd.f32 %v21506_v56, %v17545_v52  ;;  %v21530_v63 = vpop.f32.mrb[187].mxu1 }
 0x729   : > { %v17625_v0 = vadd.f32 %v21528_v61, %v17585_v60 }
 0x743   : > { %v21548_v42 = vpop.f32.mrb[188].mxu0 }
 0x744   : > { %v21549_v1 = vpop.f32.mrb[189].mxu0  ;;  %v21570_v2 = vpop.f32.mrb[188].mxu1 }
 0x745   : > { %v21550_v3 = vadd.f32 %v21549_v1, %v21548_v42  ;;  %v21551_v4 = vpop.f32.mrb[190].mxu0  ;;  %v21571_v5 = vpop.f32.mrb[189].mxu1 }
 0x746   : > { %v21552_v6 = vpop.f32.mrb[191].mxu0  ;;  %v21572_v8 = vadd.f32 %v21571_v5, %v21570_v2  ;;  %v21573_v9 = vpop.f32.mrb[190].mxu1 }
 0x747   : > { %v17665_v7 = vadd.f32 %v21550_v3, %v17625_v0  ;;  %v21574_v11 = vpop.f32.mrb[191].mxu1  ;;  %17715 = sbr.rel (%p19456_p6) target bundleno = 2096 (0x830), region = 60 }
 0x749   : > { %v17705_v12 = vadd.f32 %v21572_v8, %v17665_v7 }
 0x74b   : > { %v17710_v13 = vadd.f32 %v17705_v12, %v1581_v10 }
 0x74d   : > { %17711 = vst [vmem:[#allocation2] sm:$0x3] %v17710_v13 }
 0x754   : > { %v17716_v37 = vld [vmem:[#allocation2] sm:$0x3] }
 0x755   : > { %v17724_v41 = vadd.f32 %v19457_v38, %v17716_v37 }
 0x757   : > { %v17725_v44 = vmax.f32 %v17724_v41, 0.0 }
 0x759   : > { %21626 = vmatmul.mubr.f32.vlgmr.msra.gmra.mrb[0].mxu0 %v17725_v44 }
 0x82c   : > { %v17815_v46 = vpop.f32.mrb[0].mxu0 }
 0x82d   : > { %v17816_v47 = vadd.f32 %v19458_v45, %v17815_v46  ;;  %v21627_v48 = vpop.f32.mrb[1].mxu0 }
 0x82f   : > { %17820 = vst.msk [vmem:[#allocation9] sm:$0x3] %vm17819_vm1, %v17816_v47 }
 0x830 PF: > { %p21684_p7 = scmp.eq.s32.totalorder %s23528_s22, 1  ;;  %s23478_s7 = smov [#allocation9]  }
 0x831   : > { %s17828_s9 = sshll.u32 %s23478_s7, 4  ;;  %s17829_s9 = int_to_ptr.vmem [resolvable:$true] %s17828_s9 }
 0x832   : > { %s23398_s21 = scalar_lea.vmem %s17829_s9, 32  ;;  %p23405_p5 = scmp.lt.s32.totalorder %s17829_s9, %s17829_s9 }
 0x833   : > { %p23399_p11 = scmp.ne.s32.totalorder %s17829_s9, %s23398_s21  ;;  %p23406_p9 = scmp.lt.s32.totalorder %s23398_s21, %s23398_s21 }
 0x835   : > { %p23400_p12 = pnand %p23399_p11, %p21684_p7  ;;  %p23407_p10 = por %p23406_p9, %p23405_p5 }
 0x837   : > { %p23401_p13 = pneg %p23400_p12 }
 0x839   : > { %p23408_p1 = pnand %p23407_p10, %p23401_p13 }
 0x83b   : > { %23411 = shalt.err (!%p23408_p1)
}
 0x83c   : > { %s23412_s13 = scalar_lea.hbm %s25580_s5, 32 }
 0x83d   : > { %p23413_p8 = scmp.ne.s32.totalorder %s25580_s5, %s23412_s13  ;;  %p23418_p3 = scmp.lt.u32.totalorder %s23412_s13, %s25580_s5 }
 0x83f   : > { %p23414_p0 = pnand %p23413_p8, %p21684_p7 }
 0x841   : > { %p23415_p2 = pneg %p23414_p0 }
 0x843   : > { %p23420_p4 = pnand %p23418_p3, %p23415_p2 }
 0x845   : > { %23423 = shalt.err (!%p23420_p4)
}
 0x846   : > { %21665 = dma.vmem_to_hbm [thread:$0]  (%p21684_p7), %s17829_s9, 32, %s25580_s5, [#allocation5]  }
 0x847   : > { %23449 = dma.done.wait (%p21684_p7), [#allocation5], 32  }
 0x848   : > { %23451 = vsyncadd (%p21684_p7), [#allocation5], 4294967264 }
 0x849 PF: > { %p17_p6 = scmp.ge.s32.totalorder %s23531_s23, 4   ;;  %s25596_s18 = smov %s23458_s19 }
 0x84a   : > { %s25597_s19 = smov %s23462_s20  ;;  %s25598_s20 = smov %s23541_s26 }
 0x84b   : > { %s25599_s21 = smov %s23531_s23  ;;  %19 = sbr.rel (!%p17_p6) target bundleno = 5 (0x5), region = 96 }
 0x852   :  { %17841 = vsyncpa [#allocation4], 1 }
 0x853   :  { %17843 = vsyncpa [#allocation4 + $0x1], 1 }
 0x854   :  { %17844 = vsyncpa [#allocation7], 1 }
 0x855   :  { %17845 = vsyncpa [#allocation5], 1 }
 0x856   :  { %17847 = vsyncpa [#allocation5 + $0x1], 1 }

</bundles_post_ra>
